<compile_context>
chip_gen: v7x
topology: tpu7x:2x2x1
jax: 0.10.0
libtpu: 0.0.40
codegen_flags: <defaults>
</compile_context>

<pallas_src>
from math import sqrt

import jax
import jax.numpy as jnp
from jax.experimental import pallas as pl
from jax.experimental.pallas import tpu as pltpu


def _make_vdsr_kernel(W, Wp, Rimg, M_total, n_layers):
    Wph = Wp // 2          # buffer row stride in pixel-pairs
    M2 = M_total // 2      # conv-output pair rows
    HWp = Rimg - 2 * Wp    # valid local output indices per image: [0, H*Wp)

    def kernel(x_full_ref, x_res_ref, w_ref, o_ref, xp_ref):
        # x_full_ref: (R2, 128) bf16 : zero-bordered, batch-folded, pair-packed input
        # x_res_ref : (M2, 128) f32  : residual (input) in conv-output index space
        # w_ref     : (n_layers, 768, 128) bf16 : pixel-pair weight slabs
        # o_ref     : (M2, 128) f32  : network output (pre-crop), output index space
        # xp_ref    : (R2, 128) bf16 : resident activation buffer (updated in place)

        # Stage the padded input (borders already zero) into the activation buffer.
        xp_ref[...] = x_full_ref[...]

        # Hoisted index math: pair-row q / lane l -> flat output index
        # m = 2q + (l >= 64); column w = m mod Wp; an output is valid iff w < W
        # and m is not in the junk rows trailing each folded image.
        q = jax.lax.broadcasted_iota(jnp.int32, (M2, 128), 0)
        lane = jax.lax.broadcasted_iota(jnp.int32, (M2, 128), 1)
        hi_lane = lane >= 64
        m = 2 * q + hi_lane.astype(jnp.int32)
        valid = jnp.logical_and(m % Wp < W, m % Rimg < HWp)
        zero_blk = jnp.zeros((M2, 128), xp_ref.dtype)

        def conv(layer):
            # im2col: per dy, the 4-pixel window of an output pair is exactly two
            # adjacent pair-rows of the buffer -> one (M2, 768) operand and one
            # K=768 / N=128 MXU matmul against the (768, 128) weight slab.
            ops = []
            for dy in range(3):
                base = dy * Wph
                ops.append(xp_ref[pl.ds(base, M2), :])
                ops.append(xp_ref[pl.ds(base + 1, M2), :])
            op = jnp.concatenate(ops, axis=1)                       # (M2, 768) bf16
            return jnp.dot(op, w_ref[layer],
                           preferred_element_type=jnp.float32)      # (M2, 128) f32

        def store_shifted(act_f32):
            # Output pair (2q, 2q+1) lands at flat pixels (2q+Wp+1, 2q+Wp+2): a
            # one-pixel (64-lane) shift w.r.t. the pair grid.  Swap lane halves
            # (XLU roll), then write the two half-shifted row ranges.
            rolled = pltpu.roll(act_f32, shift=64, axis=1).astype(xp_ref.dtype)
            # rows [Wph, Wph+M2): hi lanes <- even-pixel outputs, lo lanes <- 0
            # (the lo positions are either the left-pad column, which must be
            #  zero, or are overwritten by the second store just below).
            xp_ref[pl.ds(Wph, M2), :] = jnp.where(hi_lane, rolled, zero_blk)
            # rows [Wph+1, Wph+1+M2): lo lanes <- odd-pixel outputs, hi lanes
            # preserved (they were written by the store above).
            cur = xp_ref[pl.ds(Wph + 1, M2), :]
            xp_ref[pl.ds(Wph + 1, M2), :] = jnp.where(hi_lane, cur, rolled)

        def body(layer, carry):
            acc = conv(layer)
            # ReLU + pad/junk mask (keeps every padding position zero).
            act = jnp.where(valid, jnp.maximum(acc, 0.0), 0.0)
            store_shifted(act)
            return carry

        # input conv + 18 residual Conv+ReLU blocks, activation updated in place.
        jax.lax.fori_loop(0, n_layers - 1, body, 0)

        # output conv (no ReLU) + residual add, in f32.  Junk columns/rows and
        # padded channels are cropped by the wrapper.
        o_ref[...] = conv(n_layers - 1) + x_res_ref[...]

    return kernel


def vdsr_forward(x_nchw, w_packed):
    """VDSR forward. x_nchw: (B, 3, H, W) f32 -> (B, 3, H, W) f32."""
    B, Cin, H, W = x_nchw.shape
    C = 64
    n_layers = w_packed.shape[0]
    Wp = W + 2 + (W % 2)           # even padded row width (>= W + 2)
    Rimg = (H + 2) * Wp            # pixels per padded image in the folded stream
    M_total = B * Rimg             # conv-output index range (junk positions masked)
    M2 = M_total // 2
    R_total = M_total + 3 * Wp     # + slack so junk window reads stay in bounds
    R2 = R_total // 2

    x = jnp.transpose(x_nchw, (0, 2, 3, 1)).astype(jnp.float32)       # (B, H, W, Cin)

    # Folded, zero-bordered input stream, pair-packed, bf16 (feeds the in-kernel blit).
    xf = jnp.pad(x, ((0, 0), (1, 1), (1, Wp - W - 1), (0, C - Cin)))   # (B, H+2, Wp, 64)
    xf = jnp.pad(xf.reshape(B * Rimg, C), ((0, 3 * Wp), (0, 0)))
    xf = xf.reshape(R2, 2 * C).astype(jnp.bfloat16)

    # Residual (input) in conv-output index space, f32 for an exact final add.
    xr = jnp.pad(x, ((0, 0), (0, 2), (0, Wp - W), (0, C - Cin)))       # (B, H+2, Wp, 64)
    xr = xr.reshape(M2, 2 * C)

    kernel = _make_vdsr_kernel(W, Wp, Rimg, M_total, n_layers)

    # Rough resident VMEM need: pipelined blocks (x2), weights (x2), scratch, temps.
    bytes_blocks = xf.size * 2 + xr.size * 4 + M2 * 2 * C * 4
    bytes_temps = M2 * 6 * 2 * C * 2 + 4 * M2 * 2 * C * 4
    vmem_need = 2 * (bytes_blocks + w_packed.size * 2) + R2 * 2 * C * 2 + bytes_temps
    # TODO(synk): for large SR resolutions add a row-tile grid axis with a
    # ~(2*n_layers)-row halo (or per-group layer fusion) so the resident tile
    # fits v7x's 64 MiB VMEM and feeds both its TensorCores; whole-stream
    # residency is fine at these sizes.
    vmem_limit = int(min(100 * 2 ** 20, max(32 * 2 ** 20, int(1.25 * vmem_need))))

    cost = pl.CostEstimate(
        flops=2 * M2 * (6 * 2 * C) * (2 * C) * n_layers,
        transcendentals=0,
        bytes_accessed=xf.size * 2 + xr.size * 4 + w_packed.size * 2 + M2 * 2 * C * 4,
    )

    y = pl.pallas_call(
        kernel,
        out_shape=jax.ShapeDtypeStruct((M2, 2 * C), jnp.float32),
        grid=(1,),
        in_specs=[
            pl.BlockSpec((R2, 2 * C), lambda i: (0, 0)),
            pl.BlockSpec((M2, 2 * C), lambda i: (0, 0)),
            # Full weight stack, constant index map -> staged into VMEM once.
            pl.BlockSpec(w_packed.shape, lambda i: (0, 0, 0)),
        ],
        out_specs=pl.BlockSpec((M2, 2 * C), lambda i: (0, 0)),
        scratch_shapes=[pltpu.VMEM((R2, 2 * C), jnp.bfloat16)],
        compiler_params=pltpu.CompilerParams(
            dimension_semantics=("arbitrary",),
            vmem_limit_bytes=vmem_limit,
        ),
        cost_estimate=cost,
    )(xf, xr, w_packed)

    # Crop padded rows/cols/channels, back to NCHW.
    y = y.reshape(B, H + 2, Wp, C)[:, :H, :W, :Cin]
    return jnp.transpose(y, (0, 3, 1, 2))


def init_vdsr_params(key):
    """Matches VDSR.__init__: input 3->64, 18x (64->64), output 64->3.

    Weight init: normal(0, sqrt(2 / (k*k*out_channels))). Weights stored as
    (3, 3, Cin, Cout) (cross-correlation, like PyTorch).
    """

    def init_w(k, cin, cout):
        std = sqrt(2.0 / (3 * 3 * cout))
        return std * jax.random.normal(k, (3, 3, cin, cout), jnp.float32)

    keys = jax.random.split(key, 20)
    return {
        "input": init_w(keys[0], 3, 64),
        "residual": [init_w(keys[1 + i], 64, 64) for i in range(18)],
        "output": init_w(keys[19], 64, 3),
    }


def pack_vdsr_weights(params, compute_dtype=jnp.bfloat16):
    """Pad degenerate channel dims to 64 and pack pixel-pair slabs (20, 768, 128).

    Slab row index = dy*256 + dxa*64 + cin  (dxa in 0..3: column of the 4-wide
    pair window); slab col index = outpix*64 + cout (outpix in {0,1}).
    Output pixel 0 uses kernel col kx = dxa (dxa <= 2); output pixel 1 uses
    kx = dxa - 1 (dxa >= 1); the two remaining 64x64 corner blocks are zero.
    """
    C = 64
    w_in = jnp.pad(params["input"], ((0, 0), (0, 0), (0, C - 3), (0, 0)))    # Cin 3->64
    w_out = jnp.pad(params["output"], ((0, 0), (0, 0), (0, 0), (0, C - 3)))  # Cout 3->64
    ws = [w_in] + list(params["residual"]) + [w_out]        # 20 x (3, 3, 64, 64)
    w = jnp.stack(ws)                                       # (L, ky, kx, cin, cout)
    L = w.shape[0]
    slab = jnp.zeros((L, 3, 4, C, 2, C), jnp.float32)
    slab = slab.at[:, :, 0:3, :, 0, :].set(w)               # output pixel 0
    slab = slab.at[:, :, 1:4, :, 1, :].set(w)               # output pixel 1
    return slab.reshape(L, 3 * 4 * C, 2 * C).astype(compute_dtype)


if __name__ == "__main__":
    key = jax.random.PRNGKey(0)
    k_param, k_x = jax.random.split(key)
    params = init_vdsr_params(k_param)
    w_packed = pack_vdsr_weights(params)

    B, C, H, W = 2, 3, 16, 16  # module fixes C=3 (input/output convs)
    x = jax.random.normal(k_x, (B, C, H, W), jnp.float32)

    fwd = jax.jit(vdsr_forward)
    y = fwd(x, w_packed)
    jax.block_until_ready(y)
    assert y.shape == (B, C, H, W) and y.dtype == jnp.float32
    assert bool(jnp.all(jnp.isfinite(y)))
    print("KERNEL_OK")
</pallas_src>

<mosaic_0001>
module attributes {stable_mosaic.version = 11 : i64} {
  func.func @kernel(%arg0: i32, %arg1: memref<351x128xbf16, #tpu.memory_space<vmem>>, %arg2: memref<324x128xf32, #tpu.memory_space<vmem>>, %arg3: memref<20x768x128xbf16, #tpu.memory_space<vmem>>, %arg4: memref<324x128xf32, #tpu.memory_space<vmem>>, %arg5: memref<351x128xbf16, #tpu.memory_space<vmem>>) attributes {dimension_semantics = [#tpu.dimension_semantics<arbitrary>], iteration_bounds = array<i64: 1>, scalar_prefetch = 0 : i64, scratch_operands = 1 : i64, tpu.core_type = #tpu.core_type<tc>, window_params = [{pipeline_mode = #tpu.pipeline_mode<synchronous>, transform_indices = @transform_0, window_bounds = array<i64: 351, 128>}, {pipeline_mode = #tpu.pipeline_mode<synchronous>, transform_indices = @transform_1, window_bounds = array<i64: 324, 128>}, {pipeline_mode = #tpu.pipeline_mode<synchronous>, transform_indices = @transform_2, window_bounds = array<i64: 20, 768, 128>}, {pipeline_mode = #tpu.pipeline_mode<synchronous>, transform_indices = @transform_3, window_bounds = array<i64: 324, 128>}]} {
    %c0 = arith.constant 0 : index
    %c0_0 = arith.constant 0 : index
    %0 = vector.load %arg1[%c0, %c0_0] : memref<351x128xbf16, #tpu.memory_space<vmem>>, vector<351x128xbf16>
    %c0_1 = arith.constant 0 : index
    %c0_2 = arith.constant 0 : index
    %1 = vector.load %arg5[%c0_1, %c0_2] : memref<351x128xbf16, #tpu.memory_space<vmem>>, vector<351x128xbf16>
    tpu.vector_store %arg5[%c0_1, %c0_2], %0 {strides = array<i32>} : memref<351x128xbf16, #tpu.memory_space<vmem>>, vector<351x128xbf16>,
    %2 = tpu.iota {dimensions = array<i32: 0>} : vector<324x128xi32>
    %3 = tpu.iota {dimensions = array<i32: 1>} : vector<324x128xi32>
    %c64_i32 = arith.constant 64 : i32
    %4 = vector.broadcast %c64_i32 : i32 to vector<324x128xi32>
    %5 = arith.cmpi sge, %3, %4 : vector<324x128xi32>
    %c2_i32 = arith.constant 2 : i32
    %6 = vector.broadcast %c2_i32 : i32 to vector<324x128xi32>
    %7 = arith.muli %6, %2 : vector<324x128xi32>
    %8 = arith.extui %5 : vector<324x128xi1> to vector<324x128xi32>
    %9 = arith.addi %7, %8 : vector<324x128xi32>
    %c18_i32 = arith.constant 18 : i32
    %c0_i32 = arith.constant 0 : i32
    %10 = arith.cmpi eq, %c18_i32, %c0_i32 : i32
    %c1_i32 = arith.constant 1 : i32
    %11 = arith.select %10, %c1_i32, %c18_i32 : i32
    %12 = vector.broadcast %11 : i32 to vector<324x128xi32>
    %13 = arith.remsi %9, %12 : vector<324x128xi32>
    %c0_i32_3 = arith.constant 0 : i32
    %14 = vector.broadcast %c0_i32_3 : i32 to vector<324x128xi32>
    %15 = arith.cmpi ne, %13, %14 : vector<324x128xi32>
    %c0_i32_4 = arith.constant 0 : i32
    %16 = vector.broadcast %c0_i32_4 : i32 to vector<324x128xi32>
    %17 = arith.cmpi slt, %13, %16 : vector<324x128xi32>
    %c0_i32_5 = arith.constant 0 : i32
    %18 = arith.cmpi slt, %11, %c0_i32_5 : i32
    %19 = vector.broadcast %18 : i1 to vector<324x128xi1>
    %20 = vector.broadcast %19 : vector<324x128xi1> to vector<324x128xi1>
    %21 = arith.xori %17, %20 : vector<324x128xi1>
    %22 = arith.andi %21, %15 : vector<324x128xi1>
    %23 = vector.broadcast %11 : i32 to vector<324x128xi32>
    %24 = arith.addi %13, %23 : vector<324x128xi32>
    %25 = arith.select %22, %24, %13 : vector<324x128xi1>, vector<324x128xi32>
    %c16_i32 = arith.constant 16 : i32
    %26 = vector.broadcast %c16_i32 : i32 to vector<324x128xi32>
    %27 = arith.cmpi slt, %25, %26 : vector<324x128xi32>
    %c324_i32 = arith.constant 324 : i32
    %c0_i32_6 = arith.constant 0 : i32
    %28 = arith.cmpi eq, %c324_i32, %c0_i32_6 : i32
    %c1_i32_7 = arith.constant 1 : i32
    %29 = arith.select %28, %c1_i32_7, %c324_i32 : i32
    %30 = vector.broadcast %29 : i32 to vector<324x128xi32>
    %31 = arith.remsi %9, %30 : vector<324x128xi32>
    %c0_i32_8 = arith.constant 0 : i32
    %32 = vector.broadcast %c0_i32_8 : i32 to vector<324x128xi32>
    %33 = arith.cmpi ne, %31, %32 : vector<324x128xi32>
    %c0_i32_9 = arith.constant 0 : i32
    %34 = vector.broadcast %c0_i32_9 : i32 to vector<324x128xi32>
    %35 = arith.cmpi slt, %31, %34 : vector<324x128xi32>
    %c0_i32_10 = arith.constant 0 : i32
    %36 = arith.cmpi slt, %29, %c0_i32_10 : i32
    %37 = vector.broadcast %36 : i1 to vector<324x128xi1>
    %38 = vector.broadcast %37 : vector<324x128xi1> to vector<324x128xi1>
    %39 = arith.xori %35, %38 : vector<324x128xi1>
    %40 = arith.andi %39, %33 : vector<324x128xi1>
    %41 = vector.broadcast %29 : i32 to vector<324x128xi32>
    %42 = arith.addi %31, %41 : vector<324x128xi32>
    %43 = arith.select %40, %42, %31 : vector<324x128xi1>, vector<324x128xi32>
    %c288_i32 = arith.constant 288 : i32
    %44 = vector.broadcast %c288_i32 : i32 to vector<324x128xi32>
    %45 = arith.cmpi slt, %43, %44 : vector<324x128xi32>
    %46 = arith.andi %27, %45 : vector<324x128xi1>
    %cst = arith.constant 0.000000e+00 : bf16
    %47 = vector.broadcast %cst : bf16 to vector<324x128xbf16>
    %c0_i32_11 = arith.constant 0 : i32
    %c19_i32 = arith.constant 19 : i32
    %48 = arith.addi %c0_i32_11, %c19_i32 : i32
    %c1_i32_12 = arith.constant 1 : i32
    scf.for %arg6 = %c0_i32_11 to %48 step %c1_i32_12  : i32 {
      %c0_29 = arith.constant 0 : index
      %c0_30 = arith.constant 0 : index
      %62 = vector.load %arg5[%c0_29, %c0_30] : memref<351x128xbf16, #tpu.memory_space<vmem>>, vector<324x128xbf16>
      %c1_31 = arith.constant 1 : index
      %c0_32 = arith.constant 0 : index
      %63 = vector.load %arg5[%c1_31, %c0_32] : memref<351x128xbf16, #tpu.memory_space<vmem>>, vector<324x128xbf16>
      %c9_33 = arith.constant 9 : index
      %c0_34 = arith.constant 0 : index
      %64 = vector.load %arg5[%c9_33, %c0_34] : memref<351x128xbf16, #tpu.memory_space<vmem>>, vector<324x128xbf16>
      %c10_35 = arith.constant 10 : index
      %c0_36 = arith.constant 0 : index
      %65 = vector.load %arg5[%c10_35, %c0_36] : memref<351x128xbf16, #tpu.memory_space<vmem>>, vector<324x128xbf16>
      %c18_37 = arith.constant 18 : index
      %c0_38 = arith.constant 0 : index
      %66 = vector.load %arg5[%c18_37, %c0_38] : memref<351x128xbf16, #tpu.memory_space<vmem>>, vector<324x128xbf16>
      %c19_39 = arith.constant 19 : index
      %c0_40 = arith.constant 0 : index
      %67 = vector.load %arg5[%c19_39, %c0_40] : memref<351x128xbf16, #tpu.memory_space<vmem>>, vector<324x128xbf16>
      %68 = tpu.concatenate %62, %63, %64, %65, %66, %67 in 1 : vector<324x128xbf16>, vector<324x128xbf16>, vector<324x128xbf16>, vector<324x128xbf16>, vector<324x128xbf16>, vector<324x128xbf16> -> vector<324x768xbf16>
      %69 = arith.index_cast %arg6 : i32 to index
      %c0_41 = arith.constant 0 : index
      %c0_42 = arith.constant 0 : index
      %70 = vector.load %arg3[%69, %c0_41, %c0_42] : memref<20x768x128xbf16, #tpu.memory_space<vmem>>, vector<1x768x128xbf16>
      %71 = vector.shape_cast %70 : vector<1x768x128xbf16> to vector<768x128xbf16>
      %cst_43 = arith.constant dense<0.000000e+00> : vector<324x128xf32>
      %72 = tpu.matmul %68, %71, %cst_43 {dimension_numbers = #tpu.dot_dimension_numbers<[1], [0], [0], [1], [0, 0, 1, 1], [], []>} : vector<324x768xbf16>, vector<768x128xbf16>, vector<324x128xf32> -> vector<324x128xf32>
      %cst_44 = arith.constant 0.000000e+00 : f32
      %73 = vector.broadcast %cst_44 : f32 to vector<324x128xf32>
      %74 = arith.maximumf %72, %73 : vector<324x128xf32>
      %cst_45 = arith.constant 0.000000e+00 : f32
      %75 = vector.broadcast %cst_45 : f32 to vector<324x128xf32>
      %76 = arith.select %46, %74, %75 : vector<324x128xi1>, vector<324x128xf32>
      %c64_i32_46 = arith.constant 64 : i32
      %77 = tpu.dynamic_rotate %76 by %c64_i32_46 dim 1 : vector<324x128xf32>, i32 -> vector<324x128xf32>
      %78 = arith.truncf %77 : vector<324x128xf32> to vector<324x128xbf16>
      %79 = arith.select %5, %78, %47 : vector<324x128xi1>, vector<324x128xbf16>
      %c9_47 = arith.constant 9 : index
      %c0_48 = arith.constant 0 : index
      %80 = vector.load %arg5[%c9_47, %c0_48] : memref<351x128xbf16, #tpu.memory_space<vmem>>, vector<324x128xbf16>
      tpu.vector_store %arg5[%c9_47, %c0_48], %79 {strides = array<i32>} : memref<351x128xbf16, #tpu.memory_space<vmem>>, vector<324x128xbf16>,
      %c10_49 = arith.constant 10 : index
      %c0_50 = arith.constant 0 : index
      %81 = vector.load %arg5[%c10_49, %c0_50] : memref<351x128xbf16, #tpu.memory_space<vmem>>, vector<324x128xbf16>
      %82 = arith.select %5, %81, %78 : vector<324x128xi1>, vector<324x128xbf16>
      %c10_51 = arith.constant 10 : index
      %c0_52 = arith.constant 0 : index
      %83 = vector.load %arg5[%c10_51, %c0_52] : memref<351x128xbf16, #tpu.memory_space<vmem>>, vector<324x128xbf16>
      tpu.vector_store %arg5[%c10_51, %c0_52], %82 {strides = array<i32>} : memref<351x128xbf16, #tpu.memory_space<vmem>>, vector<324x128xbf16>,
    }
    %c19_i32_13 = arith.constant 19 : i32
    %c0_14 = arith.constant 0 : index
    %c0_15 = arith.constant 0 : index
    %49 = vector.load %arg5[%c0_14, %c0_15] : memref<351x128xbf16, #tpu.memory_space<vmem>>, vector<324x128xbf16>
    %c1 = arith.constant 1 : index
    %c0_16 = arith.constant 0 : index
    %50 = vector.load %arg5[%c1, %c0_16] : memref<351x128xbf16, #tpu.memory_space<vmem>>, vector<324x128xbf16>
    %c9 = arith.constant 9 : index
    %c0_17 = arith.constant 0 : index
    %51 = vector.load %arg5[%c9, %c0_17] : memref<351x128xbf16, #tpu.memory_space<vmem>>, vector<324x128xbf16>
    %c10 = arith.constant 10 : index
    %c0_18 = arith.constant 0 : index
    %52 = vector.load %arg5[%c10, %c0_18] : memref<351x128xbf16, #tpu.memory_space<vmem>>, vector<324x128xbf16>
    %c18 = arith.constant 18 : index
    %c0_19 = arith.constant 0 : index
    %53 = vector.load %arg5[%c18, %c0_19] : memref<351x128xbf16, #tpu.memory_space<vmem>>, vector<324x128xbf16>
    %c19 = arith.constant 19 : index
    %c0_20 = arith.constant 0 : index
    %54 = vector.load %arg5[%c19, %c0_20] : memref<351x128xbf16, #tpu.memory_space<vmem>>, vector<324x128xbf16>
    %55 = tpu.concatenate %49, %50, %51, %52, %53, %54 in 1 : vector<324x128xbf16>, vector<324x128xbf16>, vector<324x128xbf16>, vector<324x128xbf16>, vector<324x128xbf16>, vector<324x128xbf16> -> vector<324x768xbf16>
    %c19_21 = arith.constant 19 : index
    %c0_22 = arith.constant 0 : index
    %c0_23 = arith.constant 0 : index
    %56 = vector.load %arg3[%c19_21, %c0_22, %c0_23] : memref<20x768x128xbf16, #tpu.memory_space<vmem>>, vector<1x768x128xbf16>
    %57 = vector.shape_cast %56 : vector<1x768x128xbf16> to vector<768x128xbf16>
    %cst_24 = arith.constant dense<0.000000e+00> : vector<324x128xf32>
    %58 = tpu.matmul %55, %57, %cst_24 {dimension_numbers = #tpu.dot_dimension_numbers<[1], [0], [0], [1], [0, 0, 1, 1], [], []>} : vector<324x768xbf16>, vector<768x128xbf16>, vector<324x128xf32> -> vector<324x128xf32>
    %c0_25 = arith.constant 0 : index
    %c0_26 = arith.constant 0 : index
    %59 = vector.load %arg2[%c0_25, %c0_26] : memref<324x128xf32, #tpu.memory_space<vmem>>, vector<324x128xf32>
    %60 = arith.addf %58, %59 : vector<324x128xf32>
    %c0_27 = arith.constant 0 : index
    %c0_28 = arith.constant 0 : index
    %61 = vector.load %arg4[%c0_27, %c0_28] : memref<324x128xf32, #tpu.memory_space<vmem>>, vector<324x128xf32>
    tpu.vector_store %arg4[%c0_27, %c0_28], %60 {strides = array<i32>} : memref<324x128xf32, #tpu.memory_space<vmem>>, vector<324x128xf32>,
    return
  }
  func.func @transform_0(%arg0: i32) -> (i32, i32) {
    %c0_i32 = arith.constant 0 : i32
    %c0_i32_0 = arith.constant 0 : i32
    %c0_i32_1 = arith.constant 0 : i32
    return %c0_i32, %c0_i32_0 : i32, i32
  }
  func.func @transform_1(%arg0: i32) -> (i32, i32) {
    %c0_i32 = arith.constant 0 : i32
    %c0_i32_0 = arith.constant 0 : i32
    %c0_i32_1 = arith.constant 0 : i32
    return %c0_i32, %c0_i32_0 : i32, i32
  }
  func.func @transform_2(%arg0: i32) -> (i32, i32, i32) {
    %c0_i32 = arith.constant 0 : i32
    %c0_i32_0 = arith.constant 0 : i32
    %c0_i32_1 = arith.constant 0 : i32
    %c0_i32_2 = arith.constant 0 : i32
    return %c0_i32, %c0_i32_0, %c0_i32_1 : i32, i32, i32
  }
  func.func @transform_3(%arg0: i32) -> (i32, i32) {
    %c0_i32 = arith.constant 0 : i32
    %c0_i32_0 = arith.constant 0 : i32
    %c0_i32_1 = arith.constant 0 : i32
    return %c0_i32, %c0_i32_0 : i32, i32
  }
}

</mosaic_0001>

<bundles_post_ra>
// kernel: vdsr_forward.1
= control target key start
LH: loop header
LB: loop body
LE: loop exit
PB: predicated region body
PF: predicated region fallthrough
CT: control target
= control target key end

     0   :  { %8 = vsyncpa [#allocation4], 0  ;;  %s7860_s12 = smov [#allocation3]   ;;  %s13978_s0 = inlined_call_operand.vmem [shape: bf16[351,128], index: 0, kind: input, shape index: {}]   ;;  %s13979_s1 = inlined_call_operand.vmem [shape: f32[324,128], index: 1, kind: input, shape index: {}]   ;;  %s13980_s2 = inlined_call_operand.hbm [shape: bf16[20,768,128], index: 2, kind: input, shape index: {}]   ;;  %s13981_s3 = inlined_call_operand.vmem [shape: f32[324,128], index: 3, kind: output, shape index: {}]  }
   0x1   :  { %s18_s13 = sshll.u32 %s7860_s12, 4  ;;  %s7828_s16 = scalar_lea.hbm %s13980_s2, 122880  ;;  %s19_s13 = int_to_ptr.vmem [resolvable:$true] %s18_s13 }
   0x2   :  { %p7829_p0 = scmp.ne.s32.totalorder %s13980_s2, %s7828_s16  ;;  %p7832_p1 = scmp.lt.u32.totalorder %s7828_s16, %s13980_s2 }
   0x4   :  { %p7834_p2 = pnand %p7832_p1, %p7829_p0 }
   0x6   :  { %7837 = shalt.err (!%p7834_p2)
}
   0x7   :  { %s7838_s21 = scalar_lea.vmem %s19_s13, 122880  ;;  %p7843_p4 = scmp.lt.s32.totalorder %s19_s13, %s19_s13 }
   0x8   :  { %p7839_p3 = scmp.ne.s32.totalorder %s19_s13, %s7838_s21  ;;  %p7844_p5 = scmp.lt.s32.totalorder %s7838_s21, %s7838_s21 }
   0xa   :  { %p7845_p6 = por %p7844_p5, %p7843_p4 }
   0xc   :  { %p7846_p7 = pnand %p7845_p6, %p7839_p3 }
   0xe   :  { %7849 = shalt.err (!%p7846_p7)
}
   0xf   :  { %s7861_s22 = smov 64   ;;  %s7862_s23 = smov 4  }
  0x10   :  { %24 = dma.hbm_to_vmem [thread:$0]  %s13980_s2, 122880, %s19_s13, [#allocation4], %s7861_s22, %s7861_s22, %s7862_s23  }
  0x11   :  { %7854 = dma.done.wait [#allocation4], 122880  }
  0x12   :  { %7855 = vsyncadd [#allocation4], 4294844416  ;;  %vm14033_vm0 = vcmask 1043456   ;;  %vm119_vm1 = vsmask.f32 3328  ;;  %v31_v1 = vld [vmem:[%s13978_s0] sm:$0xff]   ;;  %v124_v26 = vlaneseq }
  0x13   :  { %vm7899_vm2 = vmand %vm14033_vm0, %vm119_vm1  ;;  %v33_v2 = vld [vmem:[%s13978_s0 + $0x8] sm:$0xff]   ;;  %v35_v3 = vld [vmem:[%s13978_s0 + $0x10] sm:$0xff]   ;;  %75 = vst [vmem:[#allocation2] sm:$0xff] %v31_v1  }
  0x14   :  { %77 = vst [vmem:[#allocation2 + $0x8] sm:$0xff] %v33_v2   ;;  %79 = vst [vmem:[#allocation2 + $0x10] sm:$0xff] %v35_v3   ;;  %v37_v4 = vld [vmem:[%s13978_s0 + $0x18] sm:$0xff]   ;;  %v39_v5 = vld [vmem:[%s13978_s0 + $0x20] sm:$0xff]   ;;  %v7974_v27 = vshrl.u32 %v124_v26, 7  ;;  %v7979_v31 = vand.u32 127, %v124_v26 }
  0x15   :  { %v41_v6 = vld [vmem:[%s13978_s0 + $0x28] sm:$0xff]   ;;  %81 = vst [vmem:[#allocation2 + $0x18] sm:$0xff] %v37_v4   ;;  %83 = vst [vmem:[#allocation2 + $0x20] sm:$0xff] %v39_v5   ;;  %v43_v7 = vld [vmem:[%s13978_s0 + $0x30] sm:$0xff]  }
  0x16   :  { %85 = vst [vmem:[#allocation2 + $0x28] sm:$0xff] %v41_v6   ;;  %v45_v8 = vld [vmem:[%s13978_s0 + $0x38] sm:$0xff]   ;;  %v47_v9 = vld [vmem:[%s13978_s0 + $0x40] sm:$0xff]   ;;  %87 = vst [vmem:[#allocation2 + $0x30] sm:$0xff] %v43_v7   ;;  %v126_v28 = vadd.s32 8, %v7974_v27  ;;  %v127_v29 = vadd.s32 16, %v7974_v27 }
  0x17   :  { %89 = vst [vmem:[#allocation2 + $0x38] sm:$0xff] %v45_v8   ;;  %91 = vst [vmem:[#allocation2 + $0x40] sm:$0xff] %v47_v9   ;;  %v49_v10 = vld [vmem:[%s13978_s0 + $0x48] sm:$0xff]   ;;  %v51_v11 = vld [vmem:[%s13978_s0 + $0x50] sm:$0xff]   ;;  %v128_v30 = vadd.s32 24, %v7974_v27  ;;  %v129_v32 = vadd.s32 32, %v7974_v27 }
  0x18   :  { %v53_v12 = vld [vmem:[%s13978_s0 + $0x58] sm:$0xff]   ;;  %93 = vst [vmem:[#allocation2 + $0x48] sm:$0xff] %v49_v10   ;;  %95 = vst [vmem:[#allocation2 + $0x50] sm:$0xff] %v51_v11   ;;  %v55_v13 = vld [vmem:[%s13978_s0 + $0x60] sm:$0xff]   ;;  %v130_v33 = vadd.s32 40, %v7974_v27  ;;  %v131_v34 = vadd.s32 48, %v7974_v27 }
  0x19   :  { %97 = vst [vmem:[#allocation2 + $0x58] sm:$0xff] %v53_v12   ;;  %v57_v14 = vld [vmem:[%s13978_s0 + $0x68] sm:$0xff]   ;;  %v59_v15 = vld [vmem:[%s13978_s0 + $0x70] sm:$0xff]   ;;  %99 = vst [vmem:[#allocation2 + $0x60] sm:$0xff] %v55_v13   ;;  %v132_v35 = vadd.s32 56, %v7974_v27  ;;  %v133_v36 = vadd.s32 64, %v7974_v27 }
  0x1a   :  { %101 = vst [vmem:[#allocation2 + $0x68] sm:$0xff] %v57_v14   ;;  %103 = vst [vmem:[#allocation2 + $0x70] sm:$0xff] %v59_v15   ;;  %v61_v16 = vld [vmem:[%s13978_s0 + $0x78] sm:$0xff]   ;;  %v63_v17 = vld [vmem:[%s13978_s0 + $0x80] sm:$0xff]   ;;  %v7987_v37 = vadd.s32 72, %v7974_v27  ;;  %v7990_v38 = vadd.s32 80, %v7974_v27 }
  0x1b   :  { %v65_v18 = vld [vmem:[%s13978_s0 + $0x88] sm:$0xff]   ;;  %105 = vst [vmem:[#allocation2 + $0x78] sm:$0xff] %v61_v16   ;;  %107 = vst [vmem:[#allocation2 + $0x80] sm:$0xff] %v63_v17   ;;  %v67_v19 = vld [vmem:[%s13978_s0 + $0x90] sm:$0xff]   ;;  %v7993_v39 = vadd.s32 88, %v7974_v27  ;;  %v7996_v40 = vadd.s32 96, %v7974_v27 }
  0x1c   :  { %109 = vst [vmem:[#allocation2 + $0x88] sm:$0xff] %v65_v18   ;;  %v69_v20 = vld [vmem:[%s13978_s0 + $0x98] sm:$0xff]   ;;  %v71_v21 = vld [vmem:[%s13978_s0 + $0xa0] sm:$0xff]   ;;  %111 = vst [vmem:[#allocation2 + $0x90] sm:$0xff] %v67_v19   ;;  %v7999_v41 = vadd.s32 104, %v7974_v27  ;;  %v8002_v42 = vadd.s32 112, %v7974_v27 }
  0x1d   :  { %113 = vst [vmem:[#allocation2 + $0x98] sm:$0xff] %v69_v20   ;;  %115 = vst [vmem:[#allocation2 + $0xa0] sm:$0xff] %v71_v21   ;;  %v73_v22 = vld [vmem:[%s13978_s0 + $0xa8] sm:$0xf]  ;;  %v74_v23 = vld [vmem:[%s13978_s0 + $0xac] sm:$0xf] }
  0x1e   :  { %v121_v24 = vld [vmem:[#allocation2 + $0xac] sm:$0xf]  ;;  %117 = vst [vmem:[#allocation2 + $0xa8] sm:$0xf] %v73_v22  ;;  %14560 = vst [vmem:[#allocation6_spill] sm:$0xff] %v7974_v27  ;;  %v8005_v43 = vadd.s32 120, %v7974_v27 }
  0x1f   :  { %v122_v25 = vsel %vm7899_vm2, %v74_v23, %v121_v24  ;;  %14561 = vst [vmem:[#allocation7_spill] sm:$0xff] %v7979_v31  ;;  %v8008_v44 = vadd.s32 128, %v7974_v27  ;;  %v8011_v45 = vadd.s32 136, %v7974_v27  ;;  %v8014_v46 = vadd.s32 144, %v7974_v27  ;;  %s11259_s0 = smov 0  }
  0x20   :  { %123 = vst [vmem:[#allocation2 + $0xac] sm:$0xf] %v122_v25  ;;  %v8017_v47 = vadd.s32 152, %v7974_v27  ;;  %v8020_v48 = vadd.s32 160, %v7974_v27  ;;  %v8023_v49 = vadd.s32 168, %v7974_v27  ;;  %v8026_v50 = vadd.s32 176, %v7974_v27 }
  0x21   :  { %v8029_v51 = vadd.s32 184, %v7974_v27  ;;  %v8032_v52 = vadd.s32 192, %v7974_v27  ;;  %v8035_v53 = vadd.s32 200, %v7974_v27  ;;  %v8038_v54 = vadd.s32 208, %v7974_v27 }
  0x22   :  { %v8041_v55 = vadd.s32 216, %v7974_v27  ;;  %v8044_v56 = vadd.s32 224, %v7974_v27  ;;  %v8047_v57 = vadd.s32 232, %v7974_v27  ;;  %v8050_v58 = vadd.s32 240, %v7974_v27 }
  0x23   :  { %vm14034_vm3 = vcmp.ge.s32.totalorder %v7979_v31, 64  ;;  %v8054_v59 = vadd.s32 248, %v7974_v27  ;;  %v8057_v60 = vadd.s32 256, %v7974_v27  ;;  %v8060_v61 = vadd.s32 264, %v7974_v27 }
  0x24   :  { %v169_v62 = vmul.u32 2, %v7974_v27  ;;  %v8064_v63 = vadd.s32 272, %v7974_v27  ;;  %v8067_v0 = vadd.s32 280, %v7974_v27  ;;  %v170_v1 = vmul.u32 2, %v126_v28 }
  0x25   :  { %v171_v2 = vmul.u32 2, %v127_v29  ;;  %v8070_v3 = vadd.s32 288, %v7974_v27  ;;  %v172_v4 = vmul.u32 2, %v128_v30  ;;  %v13982_v6 = vmov 0  }
  0x26   :  { %v173_v5 = vmul.u32 2, %v129_v32  ;;  %v8075_v7 = vsel %vm14034_vm3, 1, %v13982_v6  ;;  %v8078_v8 = vadd.s32 296, %v7974_v27  ;;  %v8081_v9 = vadd.s32 304, %v7974_v27 }
  0x27   :  { %v174_v10 = vmul.u32 2, %v130_v33  ;;  %v175_v11 = vmul.u32 2, %v131_v34  ;;  %v8084_v12 = vadd.s32 312, %v7974_v27  ;;  %v8087_v13 = vadd.s32 320, %v7974_v27 }
  0x28   :  { %v176_v14 = vmul.u32 2, %v132_v35  ;;  %v177_v15 = vmul.u32 2, %v133_v36  ;;  %v8092_v18 = vadd.s32 %v8075_v7, %v169_v62  ;;  %v8095_v19 = vadd.s32 %v8075_v7, %v170_v1 }
  0x29   :  { %v178_v16 = vmul.u32 2, %v7987_v37  ;;  %v179_v17 = vmul.u32 2, %v7990_v38  ;;  %v8099_v21 = vadd.s32 %v8075_v7, %v171_v2  ;;  %v8102_v22 = vadd.s32 %v8075_v7, %v172_v4 }
  0x2a   :  { %14562 = vst [vmem:[#allocation8_spill] sm:$0xff] %v8092_v18  ;;  %14563 = vst [vmem:[#allocation9_spill] sm:$0xff] %v8095_v19  ;;  %v180_v20 = vmul.u32 2, %v7993_v39  ;;  %v8105_v23 = vadd.s32 %v8075_v7, %v173_v5  ;;  %v181_v24 = vmul.u32 2, %v7996_v40  ;;  %v8110_v26 = vadd.s32 %v8075_v7, %v174_v10 }
  0x2b   :  { %14564 = vst [vmem:[#allocation10_spill] sm:$0xff] %v8099_v21  ;;  %14565 = vst [vmem:[#allocation11_spill] sm:$0xff] %v8102_v22  ;;  %v182_v25 = vmul.u32 2, %v7999_v41  ;;  %v8113_v28 = vadd.s32 %v8075_v7, %v175_v11  ;;  %v183_v29 = vmul.u32 2, %v8002_v42  ;;  %v8118_v32 = vadd.s32 %v8075_v7, %v176_v14 }
  0x2c   :  { %14566 = vst [vmem:[#allocation12_spill] sm:$0xff] %v8105_v23  ;;  %14567 = vst [vmem:[#allocation13_spill] sm:$0xff] %v8110_v26  ;;  %v184_v30 = vmul.u32 2, %v8005_v43  ;;  %v8121_v33 = vadd.s32 %v8075_v7, %v177_v15  ;;  %v185_v34 = vmul.u32 2, %v8008_v44  ;;  %v8126_v36 = vadd.s32 %v8075_v7, %v178_v16 }
  0x2d   :  { %14568 = vst [vmem:[#allocation14_spill] sm:$0xff] %v8113_v28  ;;  %14569 = vst [vmem:[#allocation15_spill] sm:$0xff] %v8118_v32  ;;  %v186_v35 = vmul.u32 2, %v8011_v45  ;;  %v8129_v37 = vadd.s32 %v8075_v7, %v179_v17  ;;  %v187_v38 = vmul.u32 2, %v8014_v46  ;;  %v8134_v40 = vadd.s32 %v8075_v7, %v180_v20 }
  0x2e   :  { %14570 = vst [vmem:[#allocation16_spill] sm:$0xff] %v8121_v33  ;;  %14571 = vst [vmem:[#allocation17_spill] sm:$0xff] %v8126_v36  ;;  %v188_v39 = vmul.u32 2, %v8017_v47  ;;  %v253_v41 = vsub.s32 0, %v8092_v18  ;;  %v8138_v42 = vadd.s32 %v8075_v7, %v181_v24  ;;  %v8141_v43 = vadd.s32 %v8075_v7, %v182_v25 }
  0x2f   :  { %14572 = vst [vmem:[#allocation18_spill] sm:$0xff] %v8129_v37  ;;  %14573 = vst [vmem:[#allocation19_spill] sm:$0xff] %v8134_v40  ;;  %v264_v44 = vsub.s32 0, %v8095_v19  ;;  %v275_v45 = vsub.s32 0, %v8099_v21  ;;  %v189_v62 = vmul.u32 2, %v8020_v48  ;;  %v8147_v46 = vadd.s32 %v8075_v7, %v183_v29 }
  0x30   :  { %14574 = vst [vmem:[#allocation20_spill] sm:$0xff] %v8138_v42  ;;  %14575 = vst [vmem:[#allocation21_spill] sm:$0xff] %v8141_v43  ;;  %v8150_v47 = vadd.s32 %v8075_v7, %v184_v30  ;;  %v286_v1 = vsub.s32 0, %v8102_v22  ;;  %v190_v2 = vmul.u32 2, %v8023_v49  ;;  %v191_v4 = vmul.u32 2, %v8026_v50 }
  0x31   :  { %14576 = vst [vmem:[#allocation22_spill] sm:$0xff] %v8147_v46  ;;  %v8156_v5 = vadd.s32 %v8075_v7, %v185_v34  ;;  %v8159_v10 = vadd.s32 %v8075_v7, %v186_v35  ;;  %v192_v48 = vmul.u32 2, %v8029_v51  ;;  %v8163_v11 = vadd.s32 %v8075_v7, %v187_v38 }
  0x32   :  { %14577 = vst [vmem:[#allocation23_spill] sm:$0xff] %v8150_v47  ;;  %v8166_v14 = vadd.s32 %v8075_v7, %v188_v39  ;;  %v8169_v15 = vmin.u32 %v253_v41, %v8092_v18  ;;  %v193_v49 = vmul.u32 2, %v8032_v52  ;;  %v194_v50 = vmul.u32 2, %v8035_v53 }
  0x33   :  { %14578 = vst [vmem:[#allocation24_spill] sm:$0xff] %v8156_v5  ;;  %14579 = vst [vmem:[#allocation25_spill] sm:$0xff] %v8159_v10  ;;  %v8174_v16 = vmin.u32 %v264_v44, %v8095_v19  ;;  %v8177_v17 = vmin.u32 %v275_v45, %v8099_v21  ;;  %v195_v51 = vmul.u32 2, %v8038_v54  ;;  %v196_v20 = vmul.u32 2, %v8041_v55 }
  0x34   :  { %14580 = vst [vmem:[#allocation26_spill] sm:$0xff] %v8163_v11  ;;  %14581 = vst [vmem:[#allocation27_spill] sm:$0xff] %v8166_v14  ;;  %v8182_v24 = vadd.s32 %v8075_v7, %v189_v62  ;;  %v8185_v25 = vmin.u32 %v286_v1, %v8102_v22  ;;  %v197_v52 = vmul.u32 2, %v8044_v56  ;;  %v198_v53 = vmul.u32 2, %v8047_v57 }
  0x35   :  { %14582 = vst [vmem:[#allocation28_spill] sm:$0xff] %v8169_v15  ;;  %14583 = vst [vmem:[#allocation29_spill] sm:$0xff] %v8174_v16  ;;  %v8190_v29 = vadd.s32 %v8075_v7, %v190_v2  ;;  %v8193_v30 = vadd.s32 %v8075_v7, %v191_v4  ;;  %v199_v54 = vmul.u32 2, %v8050_v58  ;;  %v297_v35 = vsub.s32 0, %v8105_v23 }
  0x36   :  { %14584 = vst [vmem:[#allocation30_spill] sm:$0xff] %v8177_v17  ;;  %14585 = vst [vmem:[#allocation31_spill] sm:$0xff] %v8182_v24  ;;  %v8197_v55 = vmul.u32.u64.low 3817748708, %v8169_v15  ;;  %v8198_v34 = vmul.u32.u64.high 3817748708, %v8169_v15, %v8197_v55  ;;  %v8202_v38 = vmul.u32.u64.low 3817748708, %v8174_v16  ;;  %v8203_v39 = vmul.u32.u64.high 3817748708, %v8174_v16, %v8202_v38 }
  0x37   :  { %14586 = vst [vmem:[#allocation32_spill] sm:$0xff] %v8185_v25  ;;  %14587 = vst [vmem:[#allocation33_spill] sm:$0xff] %v8190_v29  ;;  %v8206_v56 = vmul.u32.u64.low 3817748708, %v8177_v17  ;;  %v8207_v57 = vmul.u32.u64.high 3817748708, %v8177_v17, %v8206_v56  ;;  %v200_v41 = vmul.u32 2, %v8054_v59  ;;  %v308_v58 = vsub.s32 0, %v8110_v26 }
  0x38   :  { %14588 = vst [vmem:[#allocation34_spill] sm:$0xff] %v8193_v30  ;;  %v8211_v44 = vmul.u32.u64.low 3817748708, %v8185_v25  ;;  %v8212_v45 = vmul.u32.u64.high 3817748708, %v8185_v25, %v8211_v44  ;;  %v8216_v62 = vadd.s32 %v8075_v7, %v192_v48  ;;  %v8219_v1 = vadd.s32 %v8075_v7, %v193_v49 }
  0x39   :  { %v8222_v2 = vadd.s32 %v8075_v7, %v194_v50  ;;  %v8225_v4 = vadd.s32 %v8075_v7, %v195_v51  ;;  %v201_v59 = vmul.u32 2, %v8057_v60  ;;  %v202_v55 = vmul.u32 2, %v8060_v61 }
  0x3a   :  { %14589 = vst [vmem:[#allocation35_spill] sm:$0xff] %v8216_v62  ;;  %14590 = vst [vmem:[#allocation36_spill] sm:$0xff] %v8219_v1  ;;  %v8230_v38 = vadd.s32 %v8075_v7, %v196_v20  ;;  %v8233_v56 = vmin.u32 %v297_v35, %v8105_v23  ;;  %v203_v48 = vmul.u32 2, %v8064_v63  ;;  %v204_v49 = vmul.u32 2, %v8067_v0 }
  0x3b   :  { %14591 = vst [vmem:[#allocation37_spill] sm:$0xff] %v8222_v2  ;;  %14592 = vst [vmem:[#allocation38_spill] sm:$0xff] %v8225_v4  ;;  %v8238_v50 = vadd.s32 %v8075_v7, %v197_v52  ;;  %v8241_v51 = vadd.s32 %v8075_v7, %v198_v53  ;;  %v8244_v60 = vadd.s32 %v8075_v7, %v199_v54  ;;  %v319_v35 = vsub.s32 0, %v8113_v28 }
  0x3c   :  { %14593 = vst [vmem:[#allocation39_spill] sm:$0xff] %v8230_v38  ;;  %14594 = vst [vmem:[#allocation40_spill] sm:$0xff] %v8233_v56  ;;  %v8247_v61 = vadd.s32 %v8075_v7, %v200_v41  ;;  %v8250_v20 = vmin.u32 %v308_v58, %v8110_v26  ;;  %v205_v63 = vmul.u32 2, %v8070_v3  ;;  %v206_v0 = vmul.u32 2, %v8078_v8 }
  0x3d   :  { %14595 = vst [vmem:[#allocation41_spill] sm:$0xff] %v8238_v50  ;;  %14596 = vst [vmem:[#allocation42_spill] sm:$0xff] %v8241_v51  ;;  %v330_v52 = vsub.s32 0, %v8118_v32  ;;  %v341_v53 = vsub.s32 0, %v8121_v33  ;;  %v258_v44 = vshrl.u32 %v8198_v34, 4  ;;  %v352_v41 = vsub.s32 0, %v8126_v36 }
  0x3e   :  { %14597 = vst [vmem:[#allocation43_spill] sm:$0xff] %v8244_v60  ;;  %14598 = vst [vmem:[#allocation44_spill] sm:$0xff] %v8247_v61  ;;  %v8259_v54 = vmul.u32.u64.low 3817748708, %v8233_v56  ;;  %v8260_v6 = vmul.u32.u64.high 3817748708, %v8233_v56, %v8259_v54  ;;  %v8264_v58 = vadd.s32 %v8075_v7, %v201_v59  ;;  %v269_v27 = vshrl.u32 %v8203_v39, 4 }
  0x3f   :  { %14599 = vst [vmem:[#allocation45_spill] sm:$0xff] %v8250_v20  ;;  %v280_v3 = vshrl.u32 %v8207_v57, 4  ;;  %v363_v8 = vsub.s32 0, %v8129_v37  ;;  %v291_v31 = vshrl.u32 %v8212_v45, 4  ;;  %v8275_v60 = vmin.u32 %v319_v35, %v8113_v28 }
  0x40   :  { %14600 = vst [vmem:[#allocation46_spill] sm:$0xff] %v8264_v58  ;;  %v8271_v61 = vmul.u32.u64.low 3817748708, %v8250_v20  ;;  %v8272_v34 = vmul.u32.u64.high 3817748708, %v8250_v20, %v8271_v61  ;;  %v207_v54 = vmul.u32 2, %v8081_v9  ;;  %v8280_v58 = vmin.u32 %v330_v52, %v8118_v32 }
  0x41   :  { %14601 = vst [vmem:[#allocation47_spill] sm:$0xff] %v8275_v60  ;;  %v208_v59 = vmul.u32 2, %v8084_v12  ;;  %v8283_v39 = vmin.u32 %v341_v53, %v8121_v33  ;;  %v209_v57 = vmul.u32 2, %v8087_v13  ;;  %v8287_v45 = vadd.s32 %v8075_v7, %v202_v55 }
  0x42   :  { %14602 = vst [vmem:[#allocation48_spill] sm:$0xff] %v8280_v58  ;;  %v259_v51 = vmul.u32 18, %v258_v44  ;;  %v8290_v61 = vmin.u32 %v352_v41, %v8126_v36  ;;  %v8293_v35 = vadd.s32 %v8075_v7, %v203_v48  ;;  %v270_v9 = vmul.u32 18, %v269_v27 }
  0x43   :  { %14603 = vst [vmem:[#allocation49_spill] sm:$0xff] %v8283_v39  ;;  %14604 = vst [vmem:[#allocation50_spill] sm:$0xff] %v8287_v45  ;;  %v281_v12 = vmul.u32 18, %v280_v3  ;;  %v8296_v52 = vmin.u32 %v363_v8, %v8129_v37  ;;  %v8299_v53 = vadd.s32 %v8075_v7, %v204_v49  ;;  %v292_v50 = vmul.u32 18, %v291_v31 }
  0x44   :  { %14605 = vst [vmem:[#allocation51_spill] sm:$0xff] %v8290_v61  ;;  %14606 = vst [vmem:[#allocation52_spill] sm:$0xff] %v8293_v35  ;;  %v8302_v13 = vmul.u32.u64.low 3817748708, %v8275_v60  ;;  %v8303_v55 = vmul.u32.u64.high 3817748708, %v8275_v60, %v8302_v13  ;;  %v8306_v44 = vmul.u32.u64.low 3817748708, %v8280_v58  ;;  %v8307_v41 = vmul.u32.u64.high 3817748708, %v8280_v58, %v8306_v44 }
  0x45   :  { %14607 = vst [vmem:[#allocation53_spill] sm:$0xff] %v8296_v52  ;;  %14608 = vst [vmem:[#allocation54_spill] sm:$0xff] %v8299_v53  ;;  %v8310_v48 = vmul.u32.u64.low 3817748708, %v8283_v39  ;;  %v8311_v35 = vmul.u32.u64.high 3817748708, %v8283_v39, %v8310_v48  ;;  %v8314_v27 = vadd.s32 %v8075_v7, %v205_v63  ;;  %v374_v31 = vsub.s32 0, %v8134_v40 }
  0x46   :  { %v8317_v3 = vmul.u32.u64.low 3817748708, %v8290_v61  ;;  %v8318_v49 = vmul.u32.u64.high 3817748708, %v8290_v61, %v8317_v3  ;;  %v260_v8 = vsub.s32 %v8169_v15, %v259_v51  ;;  %v302_v13 = vshrl.u32 %v8260_v6, 4 }
  0x47   :  { %14609 = vst [vmem:[#allocation55_spill] sm:$0xff] %v8314_v27  ;;  %v8324_v53 = vmul.u32.u64.low 3817748708, %v8296_v52  ;;  %v8325_v44 = vmul.u32.u64.high 3817748708, %v8296_v52, %v8324_v53  ;;  %v8328_v45 = vadd.s32 %v8075_v7, %v206_v0  ;;  %v271_v63 = vsub.s32 %v8174_v16, %v270_v9 }
  0x48   :  { %v282_v48 = vsub.s32 %v8177_v17, %v281_v12  ;;  %v313_v27 = vshrl.u32 %v8272_v34, 4  ;;  %v8334_v3 = vadd.s32 %v8075_v7, %v207_v54  ;;  %v8337_v51 = vadd.s32 %v8075_v7, %v208_v59 }
  0x49   :  { %14610 = vst [vmem:[#allocation56_spill] sm:$0xff] %v8328_v45  ;;  %vm14143_vm4 = vcmp.lt.s32.totalorder %v8092_v18, 0  ;;  %v293_v6 = vsub.s32 %v8185_v25, %v292_v50  ;;  %v8342_v53 = vadd.s32 %v8075_v7, %v209_v57  ;;  %vm14141_vm5 = vcmp.lt.s32.totalorder %v8095_v19, 0 }
  0x4a   :  { %14611 = vst [vmem:[#allocation57_spill] sm:$0xff] %v8334_v3  ;;  %14612 = vst [vmem:[#allocation58_spill] sm:$0xff] %v8337_v51  ;;  %v8346_v0 = vmin.u32 %v374_v31, %v8134_v40  ;;  %v385_v34 = vsub.s32 0, %v8138_v42  ;;  %v261_v9 = vsub.s32 0, %v260_v8  ;;  %vm14139_vm6 = vcmp.lt.s32.totalorder %v8099_v21, 0 }
  0x4b   :  { %14613 = vst [vmem:[#allocation59_spill] sm:$0xff] %v8342_v53  ;;  %vm14136_vm7 = vcmp.lt.s32.totalorder %v8102_v22, 0  ;;  %v303_v54 = vmul.u32 18, %v302_v13  ;;  %v272_v59 = vsub.s32 0, %v271_v63  ;;  %v283_v12 = vsub.s32 0, %v282_v48 }
  0x4c   :  { %14614 = vst [vmem:[#allocation60_spill] sm:$0xff] %v8346_v0  ;;  %v314_v17 = vmul.u32 18, %v313_v27  ;;  %v324_v50 = vshrl.u32 %v8303_v55, 4  ;;  %v294_v7 = vsub.s32 0, %v293_v6  ;;  %v335_v57 = vshrl.u32 %v8307_v41, 4 }
  0x4d   :  { %v346_v25 = vshrl.u32 %v8311_v35, 4  ;;  %v396_v31 = vsub.s32 0, %v8141_v43  ;;  %vm14135_vm8 = vcmp.lt.s32.totalorder %v8105_v23, 0  ;;  %v357_v16 = vshrl.u32 %v8318_v49, 4 }
  0x4e   :  { %v8358_v15 = vmul.u32.u64.low 3817748708, %v8346_v0  ;;  %v8359_v53 = vmul.u32.u64.high 3817748708, %v8346_v0, %v8358_v15  ;;  %v8362_v13 = vmin.u32 %v385_v34, %v8138_v42  ;;  %v8366_v55 = vsel %vm14143_vm4, %v261_v9, %v260_v8 }
  0x4f   :  { %14616 = vst [vmem:[#allocation62_spill] sm:$0xff] %v8366_v55  ;;  %v304_v41 = vsub.s32 %v8233_v56, %v303_v54  ;;  %v368_v35 = vshrl.u32 %v8325_v44, 4  ;;  %v407_v27 = vsub.s32 0, %v8147_v46  ;;  %v8373_v49 = vsel %vm14141_vm5, %v272_v59, %v271_v63 }
  0x50   :  { %14615 = vst [vmem:[#allocation61_spill] sm:$0xff] %v8362_v13  ;;  %14617 = vst [vmem:[#allocation63_spill] sm:$0xff] %v8373_v49  ;;  %v315_v51 = vsub.s32 %v8250_v20, %v314_v17  ;;  %v325_v15 = vmul.u32 18, %v324_v50  ;;  %v418_v34 = vsub.s32 0, %v8150_v47  ;;  %v8379_v18 = vsel %vm14139_vm6, %v283_v12, %v282_v48 }
  0x51   :  { %14618 = vst [vmem:[#allocation64_spill] sm:$0xff] %v8379_v18  ;;  %v8383_v8 = vsel %vm14136_vm7, %v294_v7, %v293_v6  ;;  %v336_v44 = vmul.u32 18, %v335_v57  ;;  %v347_v9 = vmul.u32 18, %v346_v25  ;;  %v8390_v17 = vmin.u32 %v396_v31, %v8141_v43 }
  0x52   :  { %14619 = vst [vmem:[#allocation65_spill] sm:$0xff] %v8383_v8  ;;  %v358_v54 = vmul.u32 18, %v357_v16  ;;  %v8386_v19 = vmul.u32.u64.low 3817748708, %v8362_v13  ;;  %v8387_v63 = vmul.u32.u64.high 3817748708, %v8362_v13, %v8386_v19  ;;  %v305_v59 = vsub.s32 0, %v304_v41 }
  0x53   :  { %14620 = vst [vmem:[#allocation66_spill] sm:$0xff] %v8390_v17  ;;  %vm14129_vm9 = vcmp.lt.s32.totalorder %v8110_v26, 0  ;;  %vm14123_vm10 = vcmp.lt.s32.totalorder %v8113_v28, 0  ;;  %v369_v48 = vmul.u32 18, %v368_v35  ;;  %v8395_v12 = vmin.u32 %v407_v27, %v8147_v46 }
  0x54   :  { %v429_v6 = vsub.s32 0, %v8156_v5  ;;  %v316_v25 = vsub.s32 0, %v315_v51  ;;  %vm14049_vm11 = vcmp.lt.s32.totalorder %v8118_v32, 0  ;;  %vm14048_vm12 = vcmp.lt.s32.totalorder %v8121_v33, 0 }
  0x55   :  { %14621 = vst [vmem:[#allocation67_spill] sm:$0xff] %v8395_v12  ;;  %v8401_v19 = vmin.u32 %v418_v34, %v8150_v47  ;;  %v440_v16 = vsub.s32 0, %v8159_v10  ;;  %v451_v50 = vsub.s32 0, %v8163_v11  ;;  %v326_v7 = vsub.s32 %v8275_v60, %v325_v15 }
  0x56   :  { %v337_v57 = vsub.s32 %v8280_v58, %v336_v44  ;;  %v348_v31 = vsub.s32 %v8283_v39, %v347_v9  ;;  %vm14044_vm13 = vcmp.lt.s32.totalorder %v8126_v36, 0  ;;  %vm14043_vm14 = vcmp.lt.s32.totalorder %v8129_v37, 0 }
  0x57   :  { %14622 = vst [vmem:[#allocation68_spill] sm:$0xff] %v8401_v19  ;;  %v462_v35 = vsub.s32 0, %v8166_v14  ;;  %v359_v27 = vsub.s32 %v8290_v61, %v358_v54  ;;  %v379_v34 = vshrl.u32 %v8359_v53, 4  ;;  %v370_v15 = vsub.s32 %v8296_v52, %v369_v48 }
  0x58   :  { %v8414_v22 = vmul.u32.u64.low 3817748708, %v8390_v17  ;;  %v8415_v21 = vmul.u32.u64.high 3817748708, %v8390_v17, %v8414_v22  ;;  %v8419_v44 = vmul.u32.u64.low 3817748708, %v8395_v12  ;;  %v8420_v58 = vmul.u32.u64.high 3817748708, %v8395_v12, %v8419_v44 }
  0x59   :  { %v8423_v9 = vmin.u32 %v429_v6, %v8156_v5  ;;  %v8426_v39 = vmul.u32.u64.low 3817748708, %v8401_v19  ;;  %v8427_v60 = vmul.u32.u64.high 3817748708, %v8401_v19, %v8426_v39  ;;  %v8430_v54 = vmin.u32 %v440_v16, %v8159_v10 }
  0x5a   :  { %v8433_v53 = vmin.u32 %v451_v50, %v8163_v11  ;;  %v8437_v22 = vsel %vm14135_vm8, %v305_v59, %v304_v41  ;;  %v327_v48 = vsub.s32 0, %v326_v7  ;;  %v8440_v44 = vmin.u32 %v462_v35, %v8166_v14 }
  0x5b   :  { %14623 = vst [vmem:[#allocation69_spill] sm:$0xff] %v8423_v9  ;;  %14624 = vst [vmem:[#allocation70_spill] sm:$0xff] %v8430_v54  ;;  %v473_v6 = vsub.s32 0, %v8182_v24  ;;  %v338_v52 = vsub.s32 0, %v337_v57  ;;  %v349_v61 = vsub.s32 0, %v348_v31  ;;  %v380_v20 = vmul.u32 18, %v379_v34 }
  0x5c   :  { %14625 = vst [vmem:[#allocation71_spill] sm:$0xff] %v8433_v53  ;;  %14626 = vst [vmem:[#allocation72_spill] sm:$0xff] %v8437_v22  ;;  %v390_v39 = vshrl.u32 %v8387_v63, 4  ;;  %v360_v16 = vsub.s32 0, %v359_v27  ;;  %v371_v56 = vsub.s32 0, %v370_v15  ;;  %v484_v34 = vsub.s32 0, %v8190_v29 }
  0x5d   :  { %14627 = vst [vmem:[#allocation73_spill] sm:$0xff] %v8440_v44  ;;  %v8445_v50 = vmul.u32.u64.low 3817748708, %v8423_v9  ;;  %v8446_v8 = vmul.u32.u64.high 3817748708, %v8423_v9, %v8445_v50  ;;  %v8449_v41 = vmul.u32.u64.low 3817748708, %v8430_v54  ;;  %v8450_v59 = vmul.u32.u64.high 3817748708, %v8430_v54, %v8449_v41 }
  0x5e   :  { %v8453_v35 = vmul.u32.u64.low 3817748708, %v8433_v53  ;;  %v8454_v23 = vmul.u32.u64.high 3817748708, %v8433_v53, %v8453_v35  ;;  %v8457_v22 = vmul.u32.u64.low 3817748708, %v8440_v44  ;;  %v8458_v18 = vmul.u32.u64.high 3817748708, %v8440_v44, %v8457_v22 }
  0x5f   :  { %v8461_v63 = vmin.u32 %v473_v6, %v8182_v24  ;;  %v8466_v50 = vsel %vm14129_vm9, %v316_v25, %v315_v51  ;;  %v8470_v41 = vsel %vm14123_vm10, %v327_v48, %v326_v7  ;;  %v391_v49 = vmul.u32 18, %v390_v39 }
  0x60   :  { %14629 = vst [vmem:[#allocation75_spill] sm:$0xff] %v8466_v50  ;;  %14630 = vst [vmem:[#allocation76_spill] sm:$0xff] %v8470_v41  ;;  %v401_v35 = vshrl.u32 %v8415_v21, 4  ;;  %v8475_v55 = vsel %vm14049_vm11, %v338_v52, %v337_v57  ;;  %v8479_v22 = vsel %vm14048_vm12, %v349_v61, %v348_v31  ;;  %v381_v6 = vsub.s32 %v8346_v0, %v380_v20 }
  0x61   :  { %14628 = vst [vmem:[#allocation74_spill] sm:$0xff] %v8461_v63  ;;  %14631 = vst [vmem:[#allocation77_spill] sm:$0xff] %v8475_v55  ;;  %v495_v51 = vsub.s32 0, %v8193_v30  ;;  %v8485_v25 = vsel %vm14044_vm13, %v360_v16, %v359_v27  ;;  %v8489_v7 = vsel %vm14043_vm14, %v371_v56, %v370_v15  ;;  %v412_v21 = vshrl.u32 %v8420_v58, 4 }
  0x62   :  { %14632 = vst [vmem:[#allocation78_spill] sm:$0xff] %v8479_v22  ;;  %14633 = vst [vmem:[#allocation79_spill] sm:$0xff] %v8485_v25  ;;  %v423_v52 = vshrl.u32 %v8427_v60, 4  ;;  %vm14047_vm15 = vcmp.lt.s32.totalorder %v8134_v40, 0  ;;  %v8495_v61 = vmul.u32.u64.low 3817748708, %v8461_v63  ;;  %v8496_v57 = vmul.u32.u64.high 3817748708, %v8461_v63, %v8495_v61 }
  0x63   :  { %14634 = vst [vmem:[#allocation80_spill] sm:$0xff] %v8489_v7  ;;  %v8499_v20 = vmin.u32 %v484_v34, %v8190_v29  ;;  %v506_v31 = vsub.s32 0, %v8216_v62  ;;  %v392_v27 = vsub.s32 %v8362_v13, %v391_v49  ;;  %v402_v48 = vmul.u32 18, %v401_v35 }
  0x64   :  { %v517_v56 = vsub.s32 0, %v8219_v1  ;;  %v528_v58 = vsub.s32 0, %v8222_v2  ;;  %v382_v15 = vsub.s32 0, %v381_v6  ;;  %vm14120_vm1 = vcmp.lt.s32.totalorder %v8138_v42, 0 }
  0x65   :  { %14635 = vst [vmem:[#allocation81_spill] sm:$0xff] %v8499_v20  ;;  %v434_v60 = vshrl.u32 %v8446_v8, 4  ;;  %v8508_v39 = vmin.u32 %v495_v51, %v8193_v30  ;;  %v539_v16 = vsub.s32 0, %v8225_v4  ;;  %vm14109_vm2 = vcmp.lt.s32.totalorder %v8141_v43, 0 }
  0x66   :  { %v413_v34 = vmul.u32 18, %v412_v21  ;;  %v424_v61 = vmul.u32 18, %v423_v52  ;;  %v445_v49 = vshrl.u32 %v8450_v59, 4  ;;  %v456_v35 = vshrl.u32 %v8454_v23, 4 }
  0x67   :  { %14636 = vst [vmem:[#allocation82_spill] sm:$0xff] %v8508_v39  ;;  %v467_v37 = vshrl.u32 %v8458_v18, 4  ;;  %v8516_v36 = vmul.u32.u64.low 3817748708, %v8499_v20  ;;  %v8517_v33 = vmul.u32.u64.high 3817748708, %v8499_v20, %v8516_v36  ;;  %v8520_v8 = vmin.u32 %v506_v31, %v8216_v62 }
  0x68   :  { %v393_v51 = vsub.s32 0, %v392_v27  ;;  %v403_v32 = vsub.s32 %v8390_v17, %v402_v48  ;;  %vm14108_vm0 = vcmp.lt.s32.totalorder %v8147_v46, 0  ;;  %v8525_v21 = vmin.u32 %v517_v56, %v8219_v1 }
  0x69   :  { %14637 = vst [vmem:[#allocation83_spill] sm:$0xff] %v8520_v8  ;;  %v8528_v59 = vmin.u32 %v528_v58, %v8222_v2  ;;  %vm14090_vm3 = vcmp.lt.s32.totalorder %v8150_v47, 0  ;;  %v435_v18 = vmul.u32 18, %v434_v60  ;;  %v8536_v52 = vmin.u32 %v539_v16, %v8225_v4 }
  0x6a   :  { %14638 = vst [vmem:[#allocation84_spill] sm:$0xff] %v8525_v21  ;;  %v8532_v23 = vmul.u32.u64.low 3817748708, %v8508_v39  ;;  %v8533_v36 = vmul.u32.u64.high 3817748708, %v8508_v39, %v8532_v23  ;;  %v414_v31 = vsub.s32 %v8395_v12, %v413_v34  ;;  %v425_v48 = vsub.s32 %v8401_v19, %v424_v61  ;;  %v14669_v12 = vld [vmem:[#allocation59_spill] sm:$0xff] }
  0x6b   :  { %14639 = vst [vmem:[#allocation85_spill] sm:$0xff] %v8528_v59  ;;  %14640 = vst [vmem:[#allocation86_spill] sm:$0xff] %v8536_v52  ;;  %v446_v28 = vmul.u32 18, %v445_v49  ;;  %v457_v56 = vmul.u32 18, %v456_v35  ;;  %v478_v58 = vshrl.u32 %v8496_v57, 4  ;;  %v404_v34 = vsub.s32 0, %v403_v32 }
  0x6c   :  { %v468_v26 = vmul.u32 18, %v467_v37  ;;  %v8542_v17 = vmul.u32.u64.low 3817748708, %v8520_v8  ;;  %v8543_v13 = vmul.u32.u64.high 3817748708, %v8520_v8, %v8542_v17  ;;  %v436_v61 = vsub.s32 %v8423_v9, %v435_v18 }
  0x6d   :  { %v8546_v60 = vmul.u32.u64.low 3817748708, %v8525_v21  ;;  %v8547_v0 = vmul.u32.u64.high 3817748708, %v8525_v21, %v8546_v60  ;;  %v8550_v16 = vmul.u32.u64.low 3817748708, %v8528_v59  ;;  %v8551_v23 = vmul.u32.u64.high 3817748708, %v8528_v59, %v8550_v16 }
  0x6e   :  { %v8555_v49 = vmul.u32.u64.low 3817748708, %v8536_v52  ;;  %v8556_v37 = vmul.u32.u64.high 3817748708, %v8536_v52, %v8555_v49  ;;  %v8560_v57 = vsel %vm14047_vm15, %v382_v15, %v381_v6  ;;  %vm14089_vm14 = vcmp.lt.s32.totalorder %v8156_v5, 0 }
  0x6f   :  { %14641 = vst [vmem:[#allocation87_spill] sm:$0xff] %v8560_v57  ;;  %v447_v17 = vsub.s32 %v8430_v54, %v446_v28  ;;  %v458_v35 = vsub.s32 %v8433_v53, %v457_v56  ;;  %v415_v60 = vsub.s32 0, %v414_v31  ;;  %vm14088_vm13 = vcmp.lt.s32.totalorder %v8159_v10, 0 }
  0x70   :  { %v479_v16 = vmul.u32 18, %v478_v58  ;;  %v489_v18 = vshrl.u32 %v8517_v33, 4  ;;  %v8569_v9 = vsel %vm14120_vm1, %v393_v51, %v392_v27  ;;  %v426_v49 = vsub.s32 0, %v425_v48 }
  0x71   :  { %14642 = vst [vmem:[#allocation88_spill] sm:$0xff] %v8569_v9  ;;  %vm14080_vm15 = vcmp.lt.s32.totalorder %v8163_v11, 0  ;;  %v469_v6 = vsub.s32 %v8440_v44, %v468_v26  ;;  %v8575_v28 = vsel %vm14109_vm2, %v404_v34, %v403_v32  ;;  %v437_v15 = vsub.s32 0, %v436_v61 }
  0x72   :  { %14643 = vst [vmem:[#allocation89_spill] sm:$0xff] %v8575_v28  ;;  %vm14079_vm12 = vcmp.lt.s32.totalorder %v8166_v14, 0  ;;  %v500_v56 = vshrl.u32 %v8533_v36, 4  ;;  %v448_v58 = vsub.s32 0, %v447_v17  ;;  %v459_v33 = vsub.s32 0, %v458_v35 }
  0x73   :  { %vm14070_vm11 = vcmp.lt.s32.totalorder %v8182_v24, 0  ;;  %v550_v27 = vsub.s32 0, %v8230_v38  ;;  %v8583_v51 = vsel %vm14108_vm0, %v415_v60, %v414_v31  ;;  %v480_v26 = vsub.s32 %v8461_v63, %v479_v16  ;;  %v14647_v16 = vld [vmem:[#allocation41_spill] sm:$0xff] }
  0x74   :  { %14644 = vst [vmem:[#allocation90_spill] sm:$0xff] %v8583_v51  ;;  %v490_v43 = vmul.u32 18, %v489_v18  ;;  %v511_v32 = vshrl.u32 %v8543_v13, 4  ;;  %v8589_v34 = vsel %vm14090_vm3, %v426_v49, %v425_v48  ;;  %v470_v36 = vsub.s32 0, %v469_v6 }
  0x75   :  { %14645 = vst [vmem:[#allocation91_spill] sm:$0xff] %v8589_v34  ;;  %v522_v42 = vshrl.u32 %v8547_v0, 4  ;;  %v533_v40 = vshrl.u32 %v8551_v23, 4  ;;  %v8595_v44 = vsel %vm14089_vm14, %v437_v15, %v436_v61  ;;  %v501_v31 = vmul.u32 18, %v500_v56  ;;  %v14651_v23 = vld [vmem:[#allocation42_spill] sm:$0xff]  ;;  %v14652_v56 = vld [vmem:[#allocation43_spill] sm:$0xff] }
  0x76   :  { %14646 = vst [vmem:[#allocation92_spill] sm:$0xff] %v8595_v44  ;;  %v544_v60 = vshrl.u32 %v8556_v37, 4  ;;  %v561_v18 = vsub.s32 0, %v14647_v16  ;;  %v8601_v13 = vsel %vm14088_vm13, %v448_v58, %v447_v17  ;;  %v8605_v48 = vsel %vm14080_vm15, %v459_v33, %v458_v35  ;;  %v14654_v35 = vld [vmem:[#allocation44_spill] sm:$0xff] }
  0x77   :  { %14648 = vst [vmem:[#allocation93_spill] sm:$0xff] %v8601_v13  ;;  %14649 = vst [vmem:[#allocation94_spill] sm:$0xff] %v8605_v48  ;;  %v8608_v0 = vmin.u32 %v550_v27, %v8230_v38  ;;  %v572_v49 = vsub.s32 0, %v14651_v23  ;;  %v481_v61 = vsub.s32 0, %v480_v26  ;;  %v8612_v15 = vsub.s32 %v8499_v20, %v490_v43  ;;  %v14656_v43 = vld [vmem:[#allocation46_spill] sm:$0xff] }
  0x78   :  { %v512_v37 = vmul.u32 18, %v511_v32  ;;  %v583_v5 = vsub.s32 0, %v14652_v56  ;;  %v8617_v17 = vsel %vm14079_vm12, %v470_v36, %v469_v6  ;;  %v523_v58 = vmul.u32 18, %v522_v42  ;;  %v14658_v42 = vld [vmem:[#allocation50_spill] sm:$0xff] }
  0x79   :  { %14650 = vst [vmem:[#allocation95_spill] sm:$0xff] %v8608_v0  ;;  %14653 = vst [vmem:[#allocation96_spill] sm:$0xff] %v8617_v17  ;;  %v534_v11 = vmul.u32 18, %v533_v40  ;;  %v594_v33 = vsub.s32 0, %v14654_v35  ;;  %v8621_v27 = vsub.s32 %v8508_v39, %v501_v31  ;;  %v545_v10 = vmul.u32 18, %v544_v60 }
  0x7a   :  { %v8624_v47 = vmin.u32 %v561_v18, %v14647_v16  ;;  %v605_v46 = vsub.s32 0, %v14656_v43  ;;  %v8628_v32 = vmul.u32.u64.low 3817748708, %v8608_v0  ;;  %v8629_v20 = vmul.u32.u64.high 3817748708, %v8608_v0, %v8628_v32  ;;  %v14661_v18 = vld [vmem:[#allocation52_spill] sm:$0xff] }
  0x7b   :  { %v8632_v6 = vmin.u32 %v572_v49, %v14651_v23  ;;  %v616_v40 = vsub.s32 0, %v14658_v42  ;;  %v8637_v36 = vsel %vm14070_vm11, %v481_v61, %v480_v26  ;;  %v492_v31 = vsub.s32 0, %v8612_v15 }
  0x7c   :  { %14655 = vst [vmem:[#allocation97_spill] sm:$0xff] %v8624_v47  ;;  %14659 = vst [vmem:[#allocation99_spill] sm:$0xff] %v8637_v36  ;;  %v8641_v60 = vmin.u32 %v583_v5, %v14652_v56  ;;  %v627_v14 = vsub.s32 0, %v14661_v18  ;;  %v8645_v39 = vsub.s32 %v8520_v8, %v512_v37  ;;  %v8648_v32 = vsub.s32 %v8525_v21, %v523_v58 }
  0x7d   :  { %14657 = vst [vmem:[#allocation98_spill] sm:$0xff] %v8632_v6  ;;  %v8651_v49 = vsub.s32 %v8528_v59, %v534_v11  ;;  %v8654_v24 = vmin.u32 %v594_v33, %v14654_v35  ;;  %v8657_v26 = vsub.s32 %v8536_v52, %v545_v10  ;;  %v8664_v63 = vmin.u32 %v605_v46, %v14656_v43  ;;  %v14665_v59 = vld [vmem:[#allocation54_spill] sm:$0xff]  ;;  %v14667_v46 = vld [vmem:[#allocation55_spill] sm:$0xff] }
  0x7e   :  { %14660 = vst [vmem:[#allocation100_spill] sm:$0xff] %v8641_v60  ;;  %v8660_v5 = vmul.u32.u64.low 3817748708, %v8624_v47  ;;  %v8661_v61 = vmul.u32.u64.high 3817748708, %v8624_v47, %v8660_v5  ;;  %v8667_v37 = vmul.u32.u64.low 3817748708, %v8632_v6  ;;  %v8668_v58 = vmul.u32.u64.high 3817748708, %v8632_v6, %v8667_v37 }
  0x7f   :  { %14662 = vst [vmem:[#allocation101_spill] sm:$0xff] %v8654_v24  ;;  %14663 = vst [vmem:[#allocation102_spill] sm:$0xff] %v8664_v63  ;;  %v8671_v11 = vmin.u32 %v616_v40, %v14658_v42  ;;  %v638_v33 = vsub.s32 0, %v14665_v59  ;;  %vm14114_vm11 = vcmp.lt.s32.totalorder %v8190_v29, 0  ;;  %v8680_v5 = vmin.u32 %v627_v14, %v14661_v18  ;;  %v14668_v14 = vld [vmem:[#allocation58_spill] sm:$0xff] }
  0x80   :  { %v8676_v10 = vmul.u32.u64.low 3817748708, %v8641_v60  ;;  %v8677_v52 = vmul.u32.u64.high 3817748708, %v8641_v60, %v8676_v10  ;;  %v649_v21 = vsub.s32 0, %v14667_v46  ;;  %v660_v40 = vsub.s32 0, %v8328_v45 }
  0x81   :  { %14664 = vst [vmem:[#allocation103_spill] sm:$0xff] %v8671_v11  ;;  %14666 = vst [vmem:[#allocation104_spill] sm:$0xff] %v8680_v5  ;;  %v8684_v8 = vmul.u32.u64.low 3817748708, %v8654_v24  ;;  %v8685_v53 = vmul.u32.u64.high 3817748708, %v8654_v24, %v8684_v8  ;;  %v671_v37 = vsub.s32 0, %v8334_v3  ;;  %vm14119_vm12 = vcmp.lt.s32.totalorder %v8193_v30, 0 }
  0x82   :  { %vm14115_vm15 = vcmp.lt.s32.totalorder %v8216_v62, 0  ;;  %v8692_v54 = vmul.u32.u64.low 3817748708, %v8664_v63  ;;  %v8693_v10 = vmul.u32.u64.high 3817748708, %v8664_v63, %v8692_v54  ;;  %v682_v19 = vsub.s32 0, %v14668_v14 }
  0x83   :  { %v693_v36 = vsub.s32 0, %v14669_v12  ;;  %vm14118_vm13 = vcmp.lt.s32.totalorder %v8219_v1, 0  ;;  %vm14116_vm14 = vcmp.lt.s32.totalorder %v8222_v2, 0  ;;  %vm14117_vm3 = vcmp.lt.s32.totalorder %v8225_v4, 0  ;;  %v14735_v30 = vld [vmem:[#allocation99_spill] sm:$0xff] }
  0x84   :  { %v555_v8 = vshrl.u32 %v8629_v20, 4  ;;  %v8702_v17 = vmul.u32.u64.low 3817748708, %v8671_v11  ;;  %v8703_v48 = vmul.u32.u64.high 3817748708, %v8671_v11, %v8702_v17  ;;  %v8706_v13 = vmin.u32 %v638_v33, %v14665_v59 }
  0x85   :  { %v503_v54 = vsub.s32 0, %v8621_v27  ;;  %v8710_v44 = vmul.u32.u64.low 3817748708, %v8680_v5  ;;  %v8711_v34 = vmul.u32.u64.high 3817748708, %v8680_v5, %v8710_v44  ;;  %v8714_v51 = vmin.u32 %v649_v21, %v14667_v46 }
  0x86   :  { %14670 = vst [vmem:[#allocation105_spill] sm:$0xff] %v8706_v13  ;;  %v514_v28 = vsub.s32 0, %v8645_v39  ;;  %v525_v20 = vsub.s32 0, %v8648_v32  ;;  %v8719_v9 = vmin.u32 %v660_v40, %v8328_v45  ;;  %v8722_v17 = vmin.u32 %v671_v37, %v8334_v3 }
  0x87   :  { %14671 = vst [vmem:[#allocation106_spill] sm:$0xff] %v8714_v51  ;;  %v536_v33 = vsub.s32 0, %v8651_v49  ;;  %v547_v57 = vsub.s32 0, %v8657_v26  ;;  %v8727_v7 = vmin.u32 %v682_v19, %v14668_v14  ;;  %v8730_v44 = vmin.u32 %v693_v36, %v14669_v12 }
  0x88   :  { %14672 = vst [vmem:[#allocation107_spill] sm:$0xff] %v8719_v9  ;;  %14673 = vst [vmem:[#allocation108_spill] sm:$0xff] %v8722_v17  ;;  %v556_v21 = vmul.u32 18, %v555_v8  ;;  %v566_v25 = vshrl.u32 %v8661_v61, 4  ;;  %v8734_v22 = vmul.u32.u64.low 3817748708, %v8706_v13  ;;  %v8735_v40 = vmul.u32.u64.high 3817748708, %v8706_v13, %v8734_v22 }
  0x89   :  { %14674 = vst [vmem:[#allocation109_spill] sm:$0xff] %v8727_v7  ;;  %14675 = vst [vmem:[#allocation110_spill] sm:$0xff] %v8730_v44  ;;  %v577_v37 = vshrl.u32 %v8668_v58, 4  ;;  %v588_v55 = vshrl.u32 %v8677_v52, 4  ;;  %v8740_v41 = vmul.u32.u64.low 3817748708, %v8714_v51  ;;  %v8741_v50 = vmul.u32.u64.high 3817748708, %v8714_v51, %v8740_v41 }
  0x8a   :  { %v8744_v19 = vmul.u32.u64.low 3817748708, %v8719_v9  ;;  %v8745_v14 = vmul.u32.u64.high 3817748708, %v8719_v9, %v8744_v19  ;;  %v8748_v36 = vmul.u32.u64.low 3817748708, %v8722_v17  ;;  %v8749_v8 = vmul.u32.u64.high 3817748708, %v8722_v17, %v8748_v36 }
  0x8b   :  { %v8752_v61 = vmul.u32.u64.low 3817748708, %v8727_v7  ;;  %v8753_v12 = vmul.u32.u64.high 3817748708, %v8727_v7, %v8752_v61  ;;  %v8756_v22 = vmul.u32.u64.low 3817748708, %v8730_v44  ;;  %v8757_v58 = vmul.u32.u64.high 3817748708, %v8730_v44, %v8756_v22 }
  0x8c   :  { %v8762_v41 = vsel %vm14114_vm11, %v492_v31, %v8612_v15  ;;  %vm14121_vm0 = vcmp.lt.s32.totalorder %v8230_v38, 0  ;;  %v567_v52 = vmul.u32 18, %v566_v25  ;;  %v599_v19 = vshrl.u32 %v8685_v53, 4  ;;  %v14705_v38 = vld [vmem:[#allocation79_spill] sm:$0xff] }
  0x8d   :  { %14676 = vst [vmem:[#allocation111_spill] sm:$0xff] %v8762_v41  ;;  %v610_v36 = vshrl.u32 %v8693_v10, 4  ;;  %vm14122_vm2 = vcmp.lt.s32.totalorder %v14647_v16, 0  ;;  %v578_v7 = vmul.u32 18, %v577_v37  ;;  %v621_v61 = vshrl.u32 %v8703_v48, 4  ;;  %v14704_v16 = vld [vmem:[#allocation78_spill] sm:$0xff] }
  0x8e   :  { %v632_v44 = vshrl.u32 %v8711_v34, 4  ;;  %v8773_v22 = vsel %vm14119_vm12, %v503_v54, %v8621_v27  ;;  %v8778_v25 = vsel %vm14115_vm15, %v514_v28, %v8645_v39  ;;  %vm14125_vm11 = vcmp.lt.s32.totalorder %v14651_v23, 0  ;;  %v14703_v23 = vld [vmem:[#allocation77_spill] sm:$0xff] }
  0x8f   :  { %14677 = vst [vmem:[#allocation112_spill] sm:$0xff] %v8773_v22  ;;  %14678 = vst [vmem:[#allocation113_spill] sm:$0xff] %v8778_v25  ;;  %v589_v53 = vmul.u32 18, %v588_v55  ;;  %v8784_v15 = vsel %vm14118_vm13, %v525_v20, %v8648_v32  ;;  %v8789_v34 = vsel %vm14116_vm14, %v536_v33, %v8651_v49  ;;  %v8794_v48 = vsel %vm14117_vm3, %v547_v57, %v8657_v26 }
  0x90   :  { %14679 = vst [vmem:[#allocation114_spill] sm:$0xff] %v8784_v15  ;;  %14680 = vst [vmem:[#allocation115_spill] sm:$0xff] %v8789_v34  ;;  %v557_v39 = vsub.s32 %v8608_v0, %v556_v21  ;;  %vm14124_vm15 = vcmp.lt.s32.totalorder %v14652_v56, 0  ;;  %v568_v55 = vsub.s32 %v8624_v47, %v567_v52  ;;  %v600_v28 = vmul.u32 18, %v599_v19 }
  0x91   :  { %14681 = vst [vmem:[#allocation116_spill] sm:$0xff] %v8794_v48  ;;  %v611_v27 = vmul.u32 18, %v610_v36  ;;  %v643_v31 = vshrl.u32 %v8735_v40, 4  ;;  %v579_v32 = vsub.s32 %v8632_v6, %v578_v7  ;;  %vm14126_vm14 = vcmp.lt.s32.totalorder %v14654_v35, 0 }
  0x92   :  { %v622_v49 = vmul.u32 18, %v621_v61  ;;  %v633_v10 = vmul.u32 18, %v632_v44  ;;  %v654_v54 = vshrl.u32 %v8741_v50, 4  ;;  %v590_v57 = vsub.s32 %v8641_v60, %v589_v53 }
  0x93   :  { %vm14128_vm3 = vcmp.lt.s32.totalorder %v14656_v43, 0  ;;  %v665_v26 = vshrl.u32 %v8745_v14, 4  ;;  %v676_v20 = vshrl.u32 %v8749_v8, 4  ;;  %v558_v33 = vsub.s32 0, %v557_v39  ;;  %v14695_v43 = vld [vmem:[#allocation63_spill] sm:$0xff] }
  0x94   :  { %vm14133_vm13 = vcmp.lt.s32.totalorder %v14658_v42, 0  ;;  %v687_v21 = vshrl.u32 %v8753_v12, 4  ;;  %v698_v7 = vshrl.u32 %v8757_v58, 4  ;;  %v569_v40 = vsub.s32 0, %v568_v55  ;;  %v14697_v42 = vld [vmem:[#allocation65_spill] sm:$0xff] }
  0x95   :  { %v601_v44 = vsub.s32 %v8654_v24, %v600_v28  ;;  %v612_v50 = vsub.s32 %v8664_v63, %v611_v27  ;;  %v644_v37 = vmul.u32 18, %v643_v31  ;;  %v580_v52 = vsub.s32 0, %v579_v32 }
  0x96   :  { %v623_v19 = vsub.s32 %v8671_v11, %v622_v49  ;;  %v634_v14 = vsub.s32 %v8680_v5, %v633_v10  ;;  %v655_v36 = vmul.u32 18, %v654_v54  ;;  %v591_v8 = vsub.s32 0, %v590_v57 }
  0x97   :  { %vm14134_vm12 = vcmp.lt.s32.totalorder %v14661_v18, 0  ;;  %v666_v61 = vmul.u32 18, %v665_v26  ;;  %v677_v53 = vmul.u32 18, %v676_v20  ;;  %v8817_v12 = vsel %vm14121_vm0, %v558_v33, %v557_v39 }
  0x98   :  { %14682 = vst [vmem:[#allocation117_spill] sm:$0xff] %v8817_v12  ;;  %vm14144_vm1 = vcmp.lt.s32.totalorder %v14665_v59, 0  ;;  %v688_v58 = vmul.u32 18, %v687_v21  ;;  %v699_v28 = vmul.u32 18, %v698_v7  ;;  %v8822_v27 = vsel %vm14122_vm2, %v569_v40, %v568_v55  ;;  %v14687_v40 = vld [vmem:[#allocation110_spill] sm:$0xff]  ;;  %v14708_v59 = vld [vmem:[#allocation87_spill] sm:$0xff] }
  0x99   :  { %14683 = vst [vmem:[#allocation118_spill] sm:$0xff] %v8822_v27  ;;  %v602_v31 = vsub.s32 0, %v601_v44  ;;  %v613_v49 = vsub.s32 0, %v612_v50  ;;  %v645_v10 = vsub.s32 %v8706_v13, %v644_v37  ;;  %v8827_v54 = vsel %vm14125_vm11, %v580_v52, %v579_v32  ;;  %v14686_v32 = vld [vmem:[#allocation109_spill] sm:$0xff] }
  0x9a   :  { %14684 = vst [vmem:[#allocation119_spill] sm:$0xff] %v8827_v54  ;;  %v624_v26 = vsub.s32 0, %v623_v19  ;;  %v635_v20 = vsub.s32 0, %v634_v14  ;;  %v656_v39 = vsub.s32 %v8714_v51, %v655_v36  ;;  %v8832_v33 = vsel %vm14124_vm15, %v591_v8, %v590_v57  ;;  %v14690_v8 = vld [vmem:[#allocation58_spill] sm:$0xff] }
  0x9b   :  { %14685 = vst [vmem:[#allocation120_spill] sm:$0xff] %v8832_v33  ;;  %vm14148_vm0 = vcmp.lt.s32.totalorder %v14667_v46, 0  ;;  %vm14147_vm2 = vcmp.lt.s32.totalorder %v8328_v45, 0  ;;  %v667_v55 = vsub.s32 %v8719_v9, %v666_v61  ;;  %vm14149_vm10 = vcmp.lt.s32.totalorder %v8334_v3, 0 }
  0x9c   :  { %v678_v21 = vsub.s32 %v8722_v17, %v677_v53  ;;  %v689_v7 = vsub.s32 %v14686_v32, %v688_v58  ;;  %v700_v37 = vsub.s32 %v14687_v40, %v699_v28  ;;  %v8843_v52 = vsel %vm14126_vm14, %v602_v31, %v601_v44  ;;  %v14693_v28 = vld [vmem:[#allocation59_spill] sm:$0xff]  ;;  %v14694_v31 = vld [vmem:[#allocation62_spill] sm:$0xff]  ;;  %v14709_v40 = vld [vmem:[#allocation88_spill] sm:$0xff] }
  0x9d   :  { %14688 = vst [vmem:[#allocation121_spill] sm:$0xff] %v8843_v52  ;;  %v8847_v57 = vsel %vm14128_vm3, %v613_v49, %v612_v50  ;;  %v646_v36 = vsub.s32 0, %v645_v10  ;;  %vm14150_vm15 = vcmp.lt.s32.totalorder %v14690_v8, 0  ;;  %v8852_v61 = vsel %vm14133_vm13, %v624_v26, %v623_v19  ;;  %v14696_v50 = vld [vmem:[#allocation64_spill] sm:$0xff]  ;;  %v14700_v26 = vld [vmem:[#allocation75_spill] sm:$0xff] }
  0x9e   :  { %14689 = vst [vmem:[#allocation122_spill] sm:$0xff] %v8847_v57  ;;  %14691 = vst [vmem:[#allocation123_spill] sm:$0xff] %v8852_v61  ;;  %v8856_v53 = vsel %vm14134_vm12, %v635_v20, %v634_v14  ;;  %v657_v58 = vsub.s32 0, %v656_v39  ;;  %vm14151_vm11 = vcmp.lt.s32.totalorder %v14693_v28, 0  ;;  %v668_v44 = vsub.s32 0, %v667_v55  ;;  %v14699_v14 = vld [vmem:[#allocation72_spill] sm:$0xff] }
  0x9f   :  { %14692 = vst [vmem:[#allocation124_spill] sm:$0xff] %v8856_v53  ;;  %vm703_vm14 = vcmp.ne.s32.totalorder %v14694_v31, 0  ;;  %vm704_vm3 = vcmp.ne.s32.totalorder %v14695_v43, 0  ;;  %vm705_vm9 = vcmp.ne.s32.totalorder %v14696_v50, 0  ;;  %v679_v49 = vsub.s32 0, %v678_v21  ;;  %v14701_v20 = vld [vmem:[#allocation76_spill] sm:$0xff] }
  0xa0   :  { %v690_v35 = vsub.s32 0, %v689_v7  ;;  %v701_v56 = vsub.s32 0, %v700_v37  ;;  %v8865_v19 = vsel %vm14144_vm1, %v646_v36, %v645_v10  ;;  %v8872_v18 = vsel %vm14148_vm0, %v657_v58, %v656_v39  ;;  %v14707_v36 = vld [vmem:[#allocation80_spill] sm:$0xff] }
  0xa1   :  { %14698 = vst [vmem:[#allocation125_spill] sm:$0xff] %v8865_v19  ;;  %14702 = vst [vmem:[#allocation126_spill] sm:$0xff] %v8872_v18  ;;  %v8879_v10 = vsel %vm14147_vm2, %v668_v44, %v667_v55  ;;  %v8886_v39 = vsel %vm14149_vm10, %v679_v49, %v678_v21  ;;  %v14713_v55 = vld [vmem:[#allocation89_spill] sm:$0xff]  ;;  %vm744_vm0 = vcmp.lt.s32.totalorder %v14694_v31, 0  ;;  %v14714_v44 = vld [vmem:[#allocation90_spill] sm:$0xff]  ;;  %vm745_vm7 = vcmp.lt.s32.totalorder %v14695_v43, 0 }
  0xa2   :  { %14706 = vst [vmem:[#allocation127_spill] sm:$0xff] %v8879_v10  ;;  %14710 = vst [vmem:[#allocation128_spill] sm:$0xff] %v8886_v39  ;;  %v8890_v58 = vsel %vm14150_vm15, %v690_v35, %v689_v7  ;;  %v8894_v46 = vsel %vm14151_vm11, %v701_v56, %v700_v37  ;;  %vm746_vm1 = vcmp.lt.s32.totalorder %v14696_v50, 0  ;;  %v14715_v35 = vld [vmem:[#allocation91_spill] sm:$0xff]  ;;  %v14716_v56 = vld [vmem:[#allocation92_spill] sm:$0xff]  ;;  %v14719_v37 = vmov 0 }
  0xa3   :  { %14711 = vst [vmem:[#allocation129_spill] sm:$0xff] %v8890_v58  ;;  %14712 = vst [vmem:[#allocation130_spill] sm:$0xff] %v8894_v46  ;;  %v14717_v21 = vld [vmem:[#allocation93_spill] sm:$0xff]  ;;  %v14718_v7 = vld [vmem:[#allocation94_spill] sm:$0xff]  ;;  %v8930_v49 = vadd.s32 18, %v14694_v31  ;;  %v8933_v28 = vadd.s32 18, %v14695_v43 }
  0xa4   :  { %vm8925_vm4 = vmand %vm744_vm0, %vm703_vm14  ;;  %v14724_v8 = vld [vmem:[#allocation96_spill] sm:$0xff]  ;;  %v14725_v3 = vmov 0  ;;  %v14728_v45 = vmov 0  ;;  %v8954_v4 = vadd.s32 18, %v14696_v50  ;;  %v8957_v2 = vadd.s32 18, %v14697_v42  ;;  %v15032_v50 = vld [vmem:[#allocation22_spill] sm:$0xff] }
  0xa5   :  { %v14720_v37 = vsel %vm8925_vm4, 4294967295, %v14719_v37  ;;  %14722 = vst [vmem:[#allocation132_spill] sm:$0xff] %v8930_v49  ;;  %14723 = vst [vmem:[#allocation133_spill] sm:$0xff] %v8933_v28  ;;  %v8960_v1 = vadd.s32 18, %v14699_v14  ;;  %v8963_v62 = vadd.s32 18, %v14700_v26  ;;  %vm14737_vm14 = vcmp.lt.s32.totalorder %v14697_v42, 0 }
  0xa6   :  { %14721 = vst [vmem:[#allocation131_spill] sm:$0xff] %v14720_v37  ;;  %vm8941_vm13 = vmand %vm745_vm7, %vm704_vm3  ;;  %v14738_v29 = vmov 0  ;;  %vm14741_vm12 = vcmp.ne.s32.totalorder %v14699_v14, 0  ;;  %vm14742_vm8 = vcmp.lt.s32.totalorder %v14699_v14, 0  ;;  %v14743_v32 = vmov 0  ;;  %v15048_v43 = vld [vmem:[#allocation104_spill] sm:$0xff] }
  0xa7   :  { %v14726_v3 = vsel %vm8941_vm13, 4294967295, %v14725_v3  ;;  %vm8949_vm0 = vmand %vm746_vm1, %vm705_vm9  ;;  %14731 = vst [vmem:[#allocation136_spill] sm:$0xff] %v8954_v4  ;;  %vm14736_vm9 = vcmp.ne.s32.totalorder %v14697_v42, 0  ;;  %vm14746_vm3 = vcmp.ne.s32.totalorder %v14700_v26, 0  ;;  %vm14747_vm7 = vcmp.lt.s32.totalorder %v14700_v26, 0  ;;  %v15020_v42 = vld [vmem:[#allocation19_spill] sm:$0xff] }
  0xa8   :  { %14727 = vst [vmem:[#allocation134_spill] sm:$0xff] %v14726_v3  ;;  %v14729_v45 = vsel %vm8949_vm0, 4294967295, %v14728_v45  ;;  %14732 = vst [vmem:[#allocation137_spill] sm:$0xff] %v8957_v2  ;;  %v14748_v17 = vmov 0  ;;  %v14753_v9 = vmov 0  ;;  %v9000_v51 = vadd.s32 18, %v14701_v20 }
  0xa9   :  { %14730 = vst [vmem:[#allocation135_spill] sm:$0xff] %v14729_v45  ;;  %14733 = vst [vmem:[#allocation138_spill] sm:$0xff] %v8960_v1  ;;  %v9003_v13 = vadd.s32 18, %v14703_v23  ;;  %v9006_v5 = vadd.s32 18, %v14704_v16  ;;  %v9009_v11 = vadd.s32 18, %v14705_v38  ;;  %v14762_v63 = vmov 0 }
  0xaa   :  { %14734 = vst [vmem:[#allocation139_spill] sm:$0xff] %v8963_v62  ;;  %vm8971_vm1 = vmand %vm14737_vm14, %vm14736_vm9  ;;  %vm14751_vm9 = vcmp.ne.s32.totalorder %v14701_v20, 0  ;;  %vm14752_vm14 = vcmp.lt.s32.totalorder %v14701_v20, 0  ;;  %vm14766_vm11 = vcmp.lt.s32.totalorder %v14704_v16, 0  ;;  %v14767_v24 = vmov 0  ;;  %v15035_v4 = vld [vmem:[#allocation23_spill] sm:$0xff] }
  0xab   :  { %v14739_v29 = vsel %vm8971_vm1, 4294967295, %v14738_v29  ;;  %vm8979_vm15 = vmand %vm14742_vm8, %vm14741_vm12  ;;  %14756 = vst [vmem:[#allocation144_spill] sm:$0xff] %v9000_v51  ;;  %v9030_v60 = vadd.s32 18, %v14707_v36  ;;  %v9033_v6 = vadd.s32 18, %v14708_v59  ;;  %v9036_v47 = vadd.s32 18, %v14709_v40 }
  0xac   :  { %14740 = vst [vmem:[#allocation140_spill] sm:$0xff] %v14739_v29  ;;  %v14744_v32 = vsel %vm8979_vm15, 4294967295, %v14743_v32  ;;  %vm8987_vm6 = vmand %vm14747_vm7, %vm14746_vm3  ;;  %vm14760_vm3 = vcmp.ne.s32.totalorder %v14703_v23, 0  ;;  %vm14761_vm7 = vcmp.lt.s32.totalorder %v14703_v23, 0  ;;  %v9039_v0 = vadd.s32 18, %v14713_v55 }
  0xad   :  { %14745 = vst [vmem:[#allocation141_spill] sm:$0xff] %v14744_v32  ;;  %v14749_v17 = vsel %vm8987_vm6, 4294967295, %v14748_v17  ;;  %vm8995_vm2 = vmand %vm14752_vm14, %vm14751_vm9  ;;  %vm14765_vm14 = vcmp.ne.s32.totalorder %v14704_v16, 0  ;;  %vm14779_vm8 = vcmp.ne.s32.totalorder %v14707_v36, 0  ;;  %vm14780_vm10 = vcmp.lt.s32.totalorder %v14707_v36, 0  ;;  %v14915_v16 = vld [vmem:[#allocation47_spill] sm:$0xff] }
  0xae   :  { %14750 = vst [vmem:[#allocation142_spill] sm:$0xff] %v14749_v17  ;;  %v14754_v9 = vsel %vm8995_vm2, 4294967295, %v14753_v9  ;;  %14757 = vst [vmem:[#allocation145_spill] sm:$0xff] %v9003_v13  ;;  %v9074_v36 = vadd.s32 18, %v14716_v56  ;;  %v14885_v51 = vmov 0  ;;  %v14895_v13 = vld [vmem:[#allocation114_spill] sm:$0xff] }
  0xaf   :  { %14755 = vst [vmem:[#allocation143_spill] sm:$0xff] %v14754_v9  ;;  %14758 = vst [vmem:[#allocation146_spill] sm:$0xff] %v9006_v5  ;;  %v14925_v9 = vld [vmem:[#allocation117_spill] sm:$0xff] }
  0xb0   :  { %14759 = vst [vmem:[#allocation147_spill] sm:$0xff] %v9009_v11  ;;  %vm9017_vm9 = vmand %vm14761_vm7, %vm14760_vm3  ;;  %v14776_v11 = vmov 0  ;;  %vm14784_vm3 = vcmp.ne.s32.totalorder %v14708_v59, 0  ;;  %vm14785_vm7 = vcmp.lt.s32.totalorder %v14708_v59, 0  ;;  %v14894_v59 = vld [vmem:[#allocation40_spill] sm:$0xff] }
  0xb1   :  { %v14763_v63 = vsel %vm9017_vm9, 4294967295, %v14762_v63  ;;  %vm9025_vm5 = vmand %vm14766_vm11, %vm14765_vm14  ;;  %14770 = vst [vmem:[#allocation150_spill] sm:$0xff] %v9030_v60  ;;  %vm14774_vm11 = vcmp.ne.s32.totalorder %v14705_v38, 0  ;;  %vm14775_vm14 = vcmp.lt.s32.totalorder %v14705_v38, 0  ;;  %v9071_v60 = vadd.s32 18, %v14715_v35 }
  0xb2   :  { %14764 = vst [vmem:[#allocation148_spill] sm:$0xff] %v14763_v63  ;;  %v14768_v24 = vsel %vm9025_vm5, 4294967295, %v14767_v24  ;;  %14771 = vst [vmem:[#allocation151_spill] sm:$0xff] %v9033_v6  ;;  %v9068_v6 = vadd.s32 18, %v14714_v44  ;;  %v14898_v38 = vmov 0  ;;  %v14914_v63 = vld [vmem:[#allocation45_spill] sm:$0xff] }
  0xb3   :  { %14769 = vst [vmem:[#allocation149_spill] sm:$0xff] %v14768_v24  ;;  %14772 = vst [vmem:[#allocation152_spill] sm:$0xff] %v9036_v47  ;;  %v14781_v47 = vmov 0  ;;  %v14911_v24 = vmov 0 }
  0xb4   :  { %14773 = vst [vmem:[#allocation153_spill] sm:$0xff] %v9039_v0  ;;  %vm9047_vm12 = vmand %vm14775_vm14, %vm14774_vm11  ;;  %v14786_v0 = vmov 0  ;;  %vm14836_vm14 = vcmp.ne.s32.totalorder %v14717_v21, 0 }
  0xb5   :  { %v14777_v11 = vsel %vm9047_vm12, 4294967295, %v14776_v11  ;;  %vm9055_vm5 = vmand %vm14780_vm10, %vm14779_vm8  ;;  %14789 = vst [vmem:[#allocation157_spill] sm:$0xff] %v9068_v6  ;;  %v9099_v6 = vadd.s32 18, %v8762_v41  ;;  %vm14837_vm8 = vcmp.lt.s32.totalorder %v14717_v21, 0  ;;  %vm14897_vm12 = vcmp.lt.s32.totalorder %v14895_v13, 0 }
  0xb6   :  { %14778 = vst [vmem:[#allocation154_spill] sm:$0xff] %v14777_v11  ;;  %v14782_v47 = vsel %vm9055_vm5, 4294967295, %v14781_v47  ;;  %vm9063_vm9 = vmand %vm14785_vm7, %vm14784_vm3  ;;  %v9077_v11 = vadd.s32 18, %v14717_v21  ;;  %vm14793_vm3 = vcmp.ne.s32.totalorder %v14709_v40, 0  ;;  %vm14794_vm7 = vcmp.lt.s32.totalorder %v14709_v40, 0  ;;  %v14916_v40 = vld [vmem:[#allocation116_spill] sm:$0xff] }
  0xb7   :  { %14783 = vst [vmem:[#allocation155_spill] sm:$0xff] %v14782_v47  ;;  %v14787_v0 = vsel %vm9063_vm9, 4294967295, %v14786_v0  ;;  %14790 = vst [vmem:[#allocation158_spill] sm:$0xff] %v9071_v60  ;;  %v9090_v60 = vadd.s32 18, %v14718_v7  ;;  %vm14917_vm9 = vcmp.ne.s32.totalorder %v14916_v40, 0  ;;  %vm14927_vm5 = vcmp.lt.s32.totalorder %v14925_v9, 0 }
  0xb8   :  { %14788 = vst [vmem:[#allocation156_spill] sm:$0xff] %v14787_v0  ;;  %14791 = vst [vmem:[#allocation159_spill] sm:$0xff] %v9074_v36  ;;  %v14795_v0 = vmov 0  ;;  %v9093_v36 = vadd.s32 18, %v14724_v8 }
  0xb9   :  { %14792 = vst [vmem:[#allocation160_spill] sm:$0xff] %v9077_v11  ;;  %vm9085_vm11 = vmand %vm14794_vm7, %vm14793_vm3  ;;  %v9096_v11 = vadd.s32 18, %v14735_v30  ;;  %vm14802_vm3 = vcmp.ne.s32.totalorder %v14713_v55, 0  ;;  %vm14803_vm7 = vcmp.lt.s32.totalorder %v14713_v55, 0 }
  0xba   :  { %v14796_v0 = vsel %vm9085_vm11, 4294967295, %v14795_v0  ;;  %14798 = vst [vmem:[#allocation162_spill] sm:$0xff] %v9090_v60  ;;  %14799 = vst [vmem:[#allocation163_spill] sm:$0xff] %v9093_v36  ;;  %v9112_v36 = vadd.s32 18, %v8773_v22  ;;  %v9121_v60 = vadd.s32 18, %v8789_v34  ;;  %vm14819_vm11 = vcmp.ne.s32.totalorder %v14715_v35, 0 }
  0xbb   :  { %14797 = vst [vmem:[#allocation161_spill] sm:$0xff] %v14796_v0  ;;  %14800 = vst [vmem:[#allocation164_spill] sm:$0xff] %v9096_v11  ;;  %v14804_v0 = vmov 0  ;;  %v9115_v11 = vadd.s32 18, %v8778_v25  ;;  %v14821_v34 = vmov 0 }
  0xbc   :  { %14801 = vst [vmem:[#allocation165_spill] sm:$0xff] %v9099_v6  ;;  %vm9107_vm10 = vmand %vm14803_vm7, %vm14802_vm3  ;;  %v9118_v6 = vadd.s32 18, %v8784_v15  ;;  %vm14811_vm3 = vcmp.ne.s32.totalorder %v14714_v44, 0  ;;  %vm14812_vm7 = vcmp.lt.s32.totalorder %v14714_v44, 0 }
  0xbd   :  { %v14805_v0 = vsel %vm9107_vm10, 4294967295, %v14804_v0  ;;  %14807 = vst [vmem:[#allocation167_spill] sm:$0xff] %v9112_v36  ;;  %14808 = vst [vmem:[#allocation168_spill] sm:$0xff] %v9115_v11  ;;  %v9134_v11 = vadd.s32 18, %v8794_v48  ;;  %v14818_v36 = vld [vmem:[#allocation28_spill] sm:$0xff]  ;;  %v14830_v48 = vmov 0 }
  0xbe   :  { %14806 = vst [vmem:[#allocation166_spill] sm:$0xff] %v14805_v0  ;;  %14809 = vst [vmem:[#allocation169_spill] sm:$0xff] %v9118_v6  ;;  %v14813_v0 = vmov 0  ;;  %v9137_v6 = vadd.s32 18, %v8817_v12  ;;  %v14838_v12 = vmov 0 }
  0xbf   :  { %14810 = vst [vmem:[#allocation170_spill] sm:$0xff] %v9121_v60  ;;  %vm9129_vm10 = vmand %vm14812_vm7, %vm14811_vm3  ;;  %v9140_v60 = vmul.u32.u64.low 3393554407, %v14818_v36  ;;  %v9141_v15 = vmul.u32.u64.high 3393554407, %v14818_v36, %v9140_v60  ;;  %vm14820_vm3 = vcmp.lt.s32.totalorder %v14715_v35, 0  ;;  %v9163_v36 = vadd.s32 18, %v8843_v52 }
  0xc0   :  { %v14814_v0 = vsel %vm9129_vm10, 4294967295, %v14813_v0  ;;  %14816 = vst [vmem:[#allocation172_spill] sm:$0xff] %v9134_v11  ;;  %14817 = vst [vmem:[#allocation173_spill] sm:$0xff] %v9137_v6  ;;  %v9154_v11 = vadd.s32 18, %v8822_v27  ;;  %v9157_v6 = vadd.s32 18, %v8827_v54  ;;  %v9160_v60 = vadd.s32 18, %v8832_v33 }
  0xc1   :  { %14815 = vst [vmem:[#allocation171_spill] sm:$0xff] %v14814_v0  ;;  %vm9149_vm7 = vmand %vm14820_vm3, %vm14819_vm11  ;;  %vm14828_vm11 = vcmp.ne.s32.totalorder %v14716_v56, 0  ;;  %vm14829_vm3 = vcmp.lt.s32.totalorder %v14716_v56, 0  ;;  %v955_v20 = vshrl.u32 %v9141_v15, 8 }
  0xc2   :  { %v14822_v34 = vsel %vm9149_vm7, 4294967295, %v14821_v34  ;;  %14824 = vst [vmem:[#allocation175_spill] sm:$0xff] %v9154_v11  ;;  %14825 = vst [vmem:[#allocation176_spill] sm:$0xff] %v9157_v6  ;;  %v9176_v6 = vadd.s32 18, %v8847_v57  ;;  %v14835_v11 = vld [vmem:[#allocation29_spill] sm:$0xff] }
  0xc3   :  { %14823 = vst [vmem:[#allocation174_spill] sm:$0xff] %v14822_v34  ;;  %14826 = vst [vmem:[#allocation177_spill] sm:$0xff] %v9160_v60  ;;  %v9179_v60 = vadd.s32 18, %v8852_v61  ;;  %v9338_v15 = vmul.u32.u64.low 3393554407, %v14894_v59  ;;  %v9339_v23 = vmul.u32.u64.high 3393554407, %v14894_v59, %v9338_v15  ;;  %v956_v5 = vmul.u32 324, %v955_v20 }
  0xc4   :  { %14827 = vst [vmem:[#allocation178_spill] sm:$0xff] %v9163_v36  ;;  %vm9171_vm7 = vmand %vm14829_vm3, %vm14828_vm11  ;;  %v9182_v36 = vmul.u32.u64.low 3393554407, %v14835_v11  ;;  %v9183_v34 = vmul.u32.u64.high 3393554407, %v14835_v11, %v9182_v36  ;;  %v9203_v11 = vadd.s32 18, %v8879_v10  ;;  %vm14854_vm11 = vcmp.lt.s32.totalorder %v14724_v8, 0  ;;  %v14924_v15 = vld [vmem:[#allocation48_spill] sm:$0xff] }
  0xc5   :  { %v14831_v48 = vsel %vm9171_vm7, 4294967295, %v14830_v48  ;;  %14833 = vst [vmem:[#allocation180_spill] sm:$0xff] %v9176_v6  ;;  %14834 = vst [vmem:[#allocation181_spill] sm:$0xff] %v9179_v60  ;;  %v9197_v6 = vadd.s32 18, %v8865_v19  ;;  %v9200_v60 = vadd.s32 18, %v8872_v18  ;;  %v14847_v36 = vmov 0 }
  0xc6   :  { %14832 = vst [vmem:[#allocation179_spill] sm:$0xff] %v14831_v48  ;;  %vm9189_vm10 = vmand %vm14837_vm8, %vm14836_vm14  ;;  %v9194_v48 = vadd.s32 18, %v8856_v53  ;;  %vm14845_vm8 = vcmp.ne.s32.totalorder %v14718_v7, 0  ;;  %vm14846_vm14 = vcmp.lt.s32.totalorder %v14718_v7, 0  ;;  %vm14860_vm3 = vcmp.lt.s32.totalorder %v14735_v30, 0  ;;  %v14933_v20 = vld [vmem:[#allocation49_spill] sm:$0xff] }
  0xc7   :  { %v14839_v12 = vsel %vm9189_vm10, 4294967295, %v14838_v12  ;;  %14842 = vst [vmem:[#allocation184_spill] sm:$0xff] %v9197_v6  ;;  %14843 = vst [vmem:[#allocation185_spill] sm:$0xff] %v9200_v60  ;;  %v9216_v6 = vadd.s32 18, %v8886_v39  ;;  %v9219_v60 = vadd.s32 18, %v8890_v58  ;;  %v14861_v39 = vmov 0 }
  0xc8   :  { %14840 = vst [vmem:[#allocation182_spill] sm:$0xff] %v14839_v12  ;;  %14841 = vst [vmem:[#allocation183_spill] sm:$0xff] %v9194_v48  ;;  %v14871_v48 = vld [vmem:[#allocation32_spill] sm:$0xff]  ;;  %v14874_v53 = vmov 0  ;;  %v966_v47 = vshrl.u32 %v9183_v34, 8  ;;  %vm14918_vm7 = vcmp.lt.s32.totalorder %v14916_v40, 0 }
  0xc9   :  { %14844 = vst [vmem:[#allocation186_spill] sm:$0xff] %v9203_v11  ;;  %vm9211_vm10 = vmand %vm14846_vm14, %vm14845_vm8  ;;  %v9222_v11 = vadd.s32 18, %v8894_v46  ;;  %vm14853_vm14 = vcmp.ne.s32.totalorder %v14724_v8, 0  ;;  %vm14865_vm8 = vcmp.lt.s32.totalorder %v8762_v41, 0  ;;  %v14919_v34 = vmov 0  ;;  %v15009_v7 = vld [vmem:[#allocation15_spill] sm:$0xff] }
  0xca   :  { %v14848_v36 = vsel %vm9211_vm10, 4294967295, %v14847_v36  ;;  %14850 = vst [vmem:[#allocation188_spill] sm:$0xff] %v9216_v6  ;;  %14851 = vst [vmem:[#allocation189_spill] sm:$0xff] %v9219_v60  ;;  %v14855_v6 = vmov 0  ;;  %v14858_v60 = vld [vmem:[#allocation30_spill] sm:$0xff]  ;;  %v14940_v12 = vmov 0 }
  0xcb   :  { %14849 = vst [vmem:[#allocation187_spill] sm:$0xff] %v14848_v36  ;;  %14852 = vst [vmem:[#allocation190_spill] sm:$0xff] %v9222_v11  ;;  %v9247_v46 = vmul.u32.u64.low 3393554407, %v14858_v60  ;;  %v9248_v58 = vmul.u32.u64.high 3393554407, %v14858_v60, %v9247_v46  ;;  %v9295_v18 = vmul.u32.u64.low 3393554407, %v14871_v48  ;;  %v9296_v19 = vmul.u32.u64.high 3393554407, %v14871_v48, %v9295_v18 }
  0xcc   :  { %vm9234_vm10 = vmand %vm14854_vm11, %vm14853_vm14  ;;  %vm14859_vm14 = vcmp.ne.s32.totalorder %v14735_v30, 0  ;;  %vm14864_vm11 = vcmp.ne.s32.totalorder %v8762_v41, 0  ;;  %v14866_v46 = vmov 0  ;;  %v14908_v11 = vld [vmem:[#allocation115_spill] sm:$0xff]  ;;  %v15015_v36 = vld [vmem:[#allocation85_spill] sm:$0xff] }
  0xcd   :  { %v14856_v6 = vsel %vm9234_vm10, 4294967295, %v14855_v6  ;;  %vm9256_vm4 = vmand %vm14860_vm3, %vm14859_vm14  ;;  %vm14873_vm3 = vcmp.lt.s32.totalorder %v8773_v22, 0  ;;  %v9373_v44 = vmul.u32.u64.low 3393554407, %v14914_v63  ;;  %v9374_v18 = vmul.u32.u64.high 3393554407, %v14914_v63, %v9373_v44 }
  0xce   :  { %14857 = vst [vmem:[#allocation191_spill] sm:$0xff] %v14856_v6  ;;  %v14862_v39 = vsel %vm9256_vm4, 4294967295, %v14861_v39  ;;  %vm9282_vm1 = vmand %vm14865_vm8, %vm14864_vm11  ;;  %vm14872_vm11 = vcmp.ne.s32.totalorder %v8773_v22, 0  ;;  %v9377_v35 = vmul.u32.u64.low 3393554407, %v14915_v16  ;;  %v9378_v55 = vmul.u32.u64.high 3393554407, %v14915_v16, %v9377_v35 }
  0xcf   :  { %14863 = vst [vmem:[#allocation30_spill] sm:$0xff] %v14862_v39  ;;  %v14867_v46 = vsel %vm9282_vm1, 4294967295, %v14866_v46  ;;  %vm9304_vm15 = vmand %vm14873_vm3, %vm14872_vm11  ;;  %vm14883_vm3 = vcmp.ne.s32.totalorder %v8778_v25, 0  ;;  %vm14884_vm11 = vcmp.lt.s32.totalorder %v8778_v25, 0  ;;  %v14928_v35 = vmov 0  ;;  %v15000_v39 = vld [vmem:[#allocation74_spill] sm:$0xff] }
  0xd0   :  { %14868 = vst [vmem:[#allocation192_spill] sm:$0xff] %v14867_v46  ;;  %v14875_v53 = vsel %vm9304_vm15, 4294967295, %v14874_v53  ;;  %vm9325_vm8 = vmand %vm14884_vm11, %vm14883_vm3  ;;  %vm14896_vm11 = vcmp.ne.s32.totalorder %v14895_v13, 0  ;;  %v9393_v44 = vmul.u32.u64.low 3393554407, %v14924_v15  ;;  %v9394_v0 = vmul.u32.u64.high 3393554407, %v14924_v15, %v9393_v44  ;;  %v14953_v13 = vld [vmem:[#allocation28_spill] sm:$0xff] }
  0xd1   :  { %14876 = vst [vmem:[#allocation32_spill] sm:$0xff] %v14875_v53  ;;  %v14886_v51 = vsel %vm9325_vm8, 4294967295, %v14885_v51  ;;  %vm9347_vm2 = vmand %vm14897_vm12, %vm14896_vm11  ;;  %vm14909_vm12 = vcmp.ne.s32.totalorder %v14908_v11, 0  ;;  %vm14910_vm11 = vcmp.lt.s32.totalorder %v14908_v11, 0  ;;  %v977_v56 = vshrl.u32 %v9248_v58, 8  ;;  %v15001_v44 = vld [vmem:[#allocation81_spill] sm:$0xff] }
  0xd2   :  { %14887 = vst [vmem:[#allocation193_spill] sm:$0xff] %v14886_v51  ;;  %v14899_v38 = vsel %vm9347_vm2, 4294967295, %v14898_v38  ;;  %vm9368_vm3 = vmand %vm14910_vm11, %vm14909_vm12  ;;  %vm14926_vm11 = vcmp.ne.s32.totalorder %v14925_v9, 0  ;;  %v9410_v21 = vmul.u32.u64.low 3393554407, %v14933_v20  ;;  %v9411_v10 = vmul.u32.u64.high 3393554407, %v14933_v20, %v9410_v21 }
  0xd3   :  { %14900 = vst [vmem:[#allocation40_spill] sm:$0xff] %v14899_v38  ;;  %v14912_v24 = vsel %vm9368_vm3, 4294967295, %v14911_v24  ;;  %vm9384_vm14 = vmand %vm14918_vm7, %vm14917_vm9  ;;  %vm14939_vm7 = vcmp.lt.s32.totalorder %v8822_v27, 0  ;;  %v967_v53 = vmul.u32 324, %v966_v47  ;;  %v988_v21 = vshrl.u32 %v9296_v19, 8  ;;  %v14966_v19 = vld [vmem:[#allocation60_spill] sm:$0xff] }
  0xd4   :  { %14913 = vst [vmem:[#allocation194_spill] sm:$0xff] %v14912_v24  ;;  %v14920_v34 = vsel %vm9384_vm14, 4294967295, %v14919_v34  ;;  %vm9400_vm6 = vmand %vm14927_vm5, %vm14926_vm11  ;;  %vm14938_vm5 = vcmp.ne.s32.totalorder %v8822_v27, 0  ;;  %vm14945_vm15 = vcmp.ne.s32.totalorder %v8827_v54, 0  ;;  %v14947_v22 = vmov 0 }
  0xd5   :  { %14921 = vst [vmem:[#allocation45_spill] sm:$0xff] %v14920_v34  ;;  %v14929_v35 = vsel %vm9400_vm6, 4294967295, %v14928_v35  ;;  %vm9433_vm11 = vmand %vm14939_vm7, %vm14938_vm5  ;;  %vm14946_vm5 = vcmp.lt.s32.totalorder %v8827_v54, 0  ;;  %v957_v62 = vsub.s32 %v14953_v13, %v956_v5  ;;  %v14956_v38 = vmov 0  ;;  %v14959_v34 = vld [vmem:[#allocation51_spill] sm:$0xff]  ;;  %v14965_v5 = vld [vmem:[#allocation53_spill] sm:$0xff] }
  0xd6   :  { %14930 = vst [vmem:[#allocation47_spill] sm:$0xff] %v14929_v35  ;;  %v14941_v12 = vsel %vm9433_vm11, 4294967295, %v14940_v12  ;;  %vm9450_vm7 = vmand %vm14946_vm5, %vm14945_vm15  ;;  %vm14954_vm15 = vcmp.ne.s32.totalorder %v8832_v33, 0  ;;  %vm14955_vm5 = vcmp.lt.s32.totalorder %v8832_v33, 0  ;;  %v978_v30 = vmul.u32 324, %v977_v56 }
  0xd7   :  { %14942 = vst [vmem:[#allocation48_spill] sm:$0xff] %v14941_v12  ;;  %v14948_v22 = vsel %vm9450_vm7, 4294967295, %v14947_v22  ;;  %vm9471_vm2 = vmand %vm14955_vm5, %vm14954_vm15  ;;  %v999_v11 = vshrl.u32 %v9339_v23, 8  ;;  %v9477_v47 = vmul.u32.u64.low 3393554407, %v14959_v34  ;;  %v9478_v40 = vmul.u32.u64.high 3393554407, %v14959_v34, %v9477_v47 }
  0xd8   :  { %14949 = vst [vmem:[#allocation49_spill] sm:$0xff] %v14948_v22  ;;  %v14957_v38 = vsel %vm9471_vm2, 4294967295, %v14956_v38  ;;  %vm14960_vm14 = vcmp.ne.s32.totalorder %v8843_v52, 0  ;;  %vm14961_vm6 = vcmp.lt.s32.totalorder %v8843_v52, 0  ;;  %v14962_v13 = vmov 0  ;;  %v14972_v47 = vld [vmem:[#allocation29_spill] sm:$0xff] }
  0xd9   :  { %14958 = vst [vmem:[#allocation28_spill] sm:$0xff] %v14957_v38  ;;  %vm9484_vm3 = vmand %vm14961_vm6, %vm14960_vm14  ;;  %v9489_v41 = vmul.u32.u64.low 3393554407, %v14965_v5  ;;  %v9490_v9 = vmul.u32.u64.high 3393554407, %v14965_v5, %v9489_v41  ;;  %v9493_v56 = vmul.u32.u64.low 3393554407, %v14966_v19  ;;  %v9494_v35 = vmul.u32.u64.high 3393554407, %v14966_v19, %v9493_v56  ;;  %v14983_v38 = vld [vmem:[#allocation61_spill] sm:$0xff] }
  0xda   :  { %v14963_v13 = vsel %vm9484_vm3, 4294967295, %v14962_v13  ;;  %vm14967_vm15 = vcmp.ne.s32.totalorder %v8847_v57, 0  ;;  %vm14968_vm5 = vcmp.lt.s32.totalorder %v8847_v57, 0  ;;  %v14969_v23 = vmov 0 }
  0xdb   :  { %14964 = vst [vmem:[#allocation51_spill] sm:$0xff] %v14963_v13  ;;  %vm9500_vm8 = vmand %vm14968_vm5, %vm14967_vm15  ;;  %v968_v25 = vsub.s32 %v14972_v47, %v967_v53  ;;  %v989_v58 = vmul.u32 324, %v988_v21  ;;  %v1010_v24 = vshrl.u32 %v9374_v18, 8  ;;  %v1021_v14 = vshrl.u32 %v9378_v55, 8 }
  0xdc   :  { %v14970_v23 = vsel %vm9500_vm8, 4294967295, %v14969_v23  ;;  %v1032_v21 = vshrl.u32 %v9394_v0, 8  ;;  %vm14976_vm6 = vcmp.ne.s32.totalorder %v8852_v61, 0  ;;  %vm14977_vm14 = vcmp.lt.s32.totalorder %v8852_v61, 0  ;;  %v14992_v0 = vld [vmem:[#allocation69_spill] sm:$0xff] }
  0xdd   :  { %14971 = vst [vmem:[#allocation53_spill] sm:$0xff] %v14970_v23  ;;  %vm9524_vm15 = vmand %vm14977_vm14, %vm14976_vm6  ;;  %v14978_v55 = vmov 0  ;;  %v958_v1 = vsub.s32 0, %v957_v62  ;;  %v979_v56 = vsub.s32 %v14858_v60, %v978_v30  ;;  %v1043_v53 = vshrl.u32 %v9411_v10, 8  ;;  %v14985_v60 = vld [vmem:[#allocation66_spill] sm:$0xff] }
  0xde   :  { %v14979_v55 = vsel %vm9524_vm15, 4294967295, %v14978_v55  ;;  %v1000_v46 = vmul.u32 324, %v999_v11  ;;  %v9539_v54 = vmul.u32.u64.low 3393554407, %v14983_v38  ;;  %v9540_v51 = vmul.u32.u64.high 3393554407, %v14983_v38, %v9539_v54  ;;  %v14986_v11 = vld [vmem:[#allocation8_spill] sm:$0xff] }
  0xdf   :  { %14980 = vst [vmem:[#allocation60_spill] sm:$0xff] %v14979_v55  ;;  %v969_v22 = vsub.s32 0, %v968_v25  ;;  %v990_v27 = vsub.s32 %v14871_v48, %v989_v58  ;;  %v1011_v13 = vmul.u32 324, %v1010_v24  ;;  %v1022_v47 = vmul.u32 324, %v1021_v14  ;;  %v14988_v58 = vld [vmem:[#allocation67_spill] sm:$0xff] }
  0xe0   :  { %v1033_v10 = vmul.u32 324, %v1032_v21  ;;  %v9548_v18 = vmul.u32.u64.low 3393554407, %v14985_v60  ;;  %v9549_v23 = vmul.u32.u64.high 3393554407, %v14985_v60, %v9548_v18  ;;  %vm14987_vm5 = vcmp.lt.s32.totalorder %v14986_v11, 0  ;;  %v14989_v21 = vld [vmem:[#allocation9_spill] sm:$0xff] }
  0xe1   :  { %v9553_v33 = vsel %vm14987_vm5, %v958_v1, %v957_v62  ;;  %v980_v54 = vsub.s32 0, %v979_v56  ;;  %v1044_v57 = vmul.u32 324, %v1043_v53  ;;  %v1054_v48 = vshrl.u32 %v9478_v40, 8 }
  0xe2   :  { %v1065_v24 = vshrl.u32 %v9490_v9, 8  ;;  %v1076_v14 = vshrl.u32 %v9494_v35, 8  ;;  %v9559_v55 = vmul.u32.u64.low 3393554407, %v14988_v58  ;;  %v9560_v30 = vmul.u32.u64.high 3393554407, %v14988_v58, %v9559_v55  ;;  %v14991_v9 = vld [vmem:[#allocation68_spill] sm:$0xff] }
  0xe3   :  { %vm14990_vm6 = vcmp.lt.s32.totalorder %v14989_v21, 0  ;;  %v991_v18 = vsub.s32 0, %v990_v27  ;;  %v1001_v62 = vsub.s32 %v14894_v59, %v1000_v46  ;;  %v1012_v1 = vsub.s32 %v14914_v63, %v1011_v13 }
  0xe4   :  { %v9564_v61 = vsel %vm14990_vm6, %v969_v22, %v968_v25  ;;  %v1023_v53 = vsub.s32 %v14915_v16, %v1022_v47  ;;  %v1034_v40 = vsub.s32 %v14924_v15, %v1033_v10  ;;  %v1045_v52 = vsub.s32 %v14933_v20, %v1044_v57  ;;  %v14993_v25 = vld [vmem:[#allocation10_spill] sm:$0xff]  ;;  %v14995_v15 = vld [vmem:[#allocation11_spill] sm:$0xff] }
  0xe5   :  { %v9571_v11 = vmul.u32.u64.low 3393554407, %v14991_v9  ;;  %v9572_v35 = vmul.u32.u64.high 3393554407, %v14991_v9, %v9571_v11  ;;  %v1055_v55 = vmul.u32 324, %v1054_v48  ;;  %vm14994_vm14 = vcmp.lt.s32.totalorder %v14993_v25, 0  ;;  %v14997_v10 = vld [vmem:[#allocation70_spill] sm:$0xff] }
  0xe6   :  { %v9576_v21 = vmul.u32.u64.low 3393554407, %v14992_v0  ;;  %v9577_v22 = vmul.u32.u64.high 3393554407, %v14992_v0, %v9576_v21  ;;  %v9581_v59 = vsel %vm14994_vm14, %v980_v54, %v979_v56  ;;  %v1066_v63 = vmul.u32 324, %v1065_v24  ;;  %v14998_v24 = vld [vmem:[#allocation71_spill] sm:$0xff] }
  0xe7   :  { %v1077_v46 = vmul.u32 324, %v1076_v14  ;;  %v1087_v16 = vshrl.u32 %v9540_v51, 8  ;;  %vm14996_vm5 = vcmp.lt.s32.totalorder %v14995_v15, 0  ;;  %v1002_v47 = vsub.s32 0, %v1001_v62 }
  0xe8   :  { %v9586_v13 = vsel %vm14996_vm5, %v991_v18, %v990_v27  ;;  %v9589_v57 = vmul.u32.u64.low 3393554407, %v14997_v10  ;;  %v9590_v20 = vmul.u32.u64.high 3393554407, %v14997_v10, %v9589_v57  ;;  %v1013_v48 = vsub.s32 0, %v1012_v1 }
  0xe9   :  { %v1024_v11 = vsub.s32 0, %v1023_v53  ;;  %v1035_v21 = vsub.s32 0, %v1034_v40  ;;  %v1098_v25 = vshrl.u32 %v9549_v23, 8  ;;  %v1046_v56 = vsub.s32 0, %v1045_v52  ;;  %v14999_v57 = vld [vmem:[#allocation73_spill] sm:$0xff] }
  0xea   :  { %v1056_v54 = vsub.s32 %v14959_v34, %v1055_v55  ;;  %v9595_v14 = vmul.u32.u64.low 3393554407, %v14998_v24  ;;  %v9596_v51 = vmul.u32.u64.high 3393554407, %v14998_v24, %v9595_v14  ;;  %v1067_v27 = vsub.s32 %v14965_v5, %v1066_v63  ;;  %v15002_v5 = vld [vmem:[#allocation12_spill] sm:$0xff]  ;;  %v15004_v63 = vld [vmem:[#allocation82_spill] sm:$0xff] }
  0xeb   :  { %v1078_v18 = vsub.s32 %v14966_v19, %v1077_v46  ;;  %v1088_v15 = vmul.u32 324, %v1087_v16  ;;  %v1109_v41 = vshrl.u32 %v9560_v30, 8  ;;  %v1099_v34 = vmul.u32 324, %v1098_v25  ;;  %v15005_v16 = vld [vmem:[#allocation13_spill] sm:$0xff]  ;;  %v15007_v25 = vld [vmem:[#allocation14_spill] sm:$0xff] }
  0xec   :  { %v9602_v12 = vmul.u32.u64.low 3393554407, %v14999_v57  ;;  %v9603_v17 = vmul.u32.u64.high 3393554407, %v14999_v57, %v9602_v12  ;;  %v9606_v23 = vmul.u32.u64.low 3393554407, %v15000_v39  ;;  %v9607_v8 = vmul.u32.u64.high 3393554407, %v15000_v39, %v9606_v23 }
  0xed   :  { %v1120_v55 = vshrl.u32 %v9572_v35, 8  ;;  %v9611_v14 = vmul.u32.u64.low 3393554407, %v15001_v44  ;;  %v9612_v6 = vmul.u32.u64.high 3393554407, %v15001_v44, %v9611_v14  ;;  %vm15003_vm6 = vcmp.lt.s32.totalorder %v15002_v5, 0 }
  0xee   :  { %v9616_v19 = vsel %vm15003_vm6, %v1002_v47, %v1001_v62  ;;  %v1131_v30 = vshrl.u32 %v9577_v22, 8  ;;  %v9620_v46 = vmul.u32.u64.low 3393554407, %v15004_v63  ;;  %v9621_v12 = vmul.u32.u64.high 3393554407, %v15004_v63, %v9620_v46  ;;  %v15011_v47 = vld [vmem:[#allocation16_spill] sm:$0xff] }
  0xef   :  { %vm15006_vm14 = vcmp.lt.s32.totalorder %v15005_v16, 0  ;;  %vm15008_vm5 = vcmp.lt.s32.totalorder %v15007_v25, 0  ;;  %vm15010_vm15 = vcmp.lt.s32.totalorder %v15009_v7, 0  ;;  %v1057_v62 = vsub.s32 0, %v1056_v54 }
  0xf0   :  { %v9625_v23 = vsel %vm15006_vm14, %v1013_v48, %v1012_v1  ;;  %v9629_v35 = vsel %vm15008_vm5, %v1024_v11, %v1023_v53  ;;  %v9633_v14 = vsel %vm15010_vm15, %v1035_v21, %v1034_v40  ;;  %vm15012_vm6 = vcmp.lt.s32.totalorder %v15011_v47, 0  ;;  %v15013_v40 = vld [vmem:[#allocation83_spill] sm:$0xff]  ;;  %v15014_v47 = vld [vmem:[#allocation84_spill] sm:$0xff] }
  0xf1   :  { %v9637_v22 = vsel %vm15012_vm6, %v1046_v56, %v1045_v52  ;;  %v1068_v5 = vsub.s32 0, %v1067_v27  ;;  %v1089_v46 = vsub.s32 %v14983_v38, %v1088_v15  ;;  %v1142_v16 = vshrl.u32 %v9590_v20, 8 }
  0xf2   :  { %v1079_v1 = vsub.s32 0, %v1078_v18  ;;  %v1100_v48 = vsub.s32 %v14985_v60, %v1099_v34  ;;  %v1110_v25 = vmul.u32 324, %v1109_v41  ;;  %v1121_v53 = vmul.u32 324, %v1120_v55  ;;  %v15016_v34 = vld [vmem:[#allocation17_spill] sm:$0xff]  ;;  %v15018_v55 = vld [vmem:[#allocation18_spill] sm:$0xff] }
  0xf3   :  { %v1132_v11 = vmul.u32 324, %v1131_v30  ;;  %v1153_v7 = vshrl.u32 %v9596_v51, 8  ;;  %v9644_v21 = vmul.u32.u64.low 3393554407, %v15013_v40  ;;  %v9645_v26 = vmul.u32.u64.high 3393554407, %v15013_v40, %v9644_v21 }
  0xf4   :  { %v9648_v52 = vmul.u32.u64.low 3393554407, %v15014_v47  ;;  %v9649_v56 = vmul.u32.u64.high 3393554407, %v15014_v47, %v9648_v52  ;;  %v9652_v38 = vmul.u32.u64.low 3393554407, %v15015_v36  ;;  %v9653_v15 = vmul.u32.u64.high 3393554407, %v15015_v36, %v9652_v38 }
  0xf5   :  { %v1090_v20 = vsub.s32 0, %v1089_v46  ;;  %v1143_v32 = vmul.u32 324, %v1142_v16  ;;  %v1164_v41 = vshrl.u32 %v9603_v17, 8  ;;  %v1175_v60 = vshrl.u32 %v9607_v8, 8 }
  0xf6   :  { %vm15017_vm15 = vcmp.lt.s32.totalorder %v15016_v34, 0  ;;  %vm15019_vm14 = vcmp.lt.s32.totalorder %v15018_v55, 0  ;;  %v1111_v21 = vsub.s32 %v14988_v58, %v1110_v25  ;;  %v1186_v52 = vshrl.u32 %v9612_v6, 8  ;;  %v15022_v34 = vld [vmem:[#allocation86_spill] sm:$0xff]  ;;  %v15026_v25 = vld [vmem:[#allocation95_spill] sm:$0xff] }
  0xf7   :  { %v9659_v51 = vsel %vm15017_vm15, %v1057_v62, %v1056_v54  ;;  %v9663_v30 = vsel %vm15019_vm14, %v1068_v5, %v1067_v27  ;;  %vm15021_vm5 = vcmp.lt.s32.totalorder %v15020_v42, 0  ;;  %v1122_v17 = vsub.s32 %v14991_v9, %v1121_v53  ;;  %v15023_v5 = vld [vmem:[#allocation20_spill] sm:$0xff] }
  0xf8   :  { %v9669_v38 = vsel %vm15021_vm5, %v1079_v1, %v1078_v18  ;;  %v1133_v8 = vsub.s32 %v14992_v0, %v1132_v11  ;;  %v1197_v16 = vshrl.u32 %v9621_v12, 8  ;;  %v1101_v54 = vsub.s32 0, %v1100_v48 }
  0xf9   :  { %v1154_v62 = vmul.u32 324, %v1153_v7  ;;  %v9675_v55 = vmul.u32.u64.low 3393554407, %v15022_v34  ;;  %v9676_v27 = vmul.u32.u64.high 3393554407, %v15022_v34, %v9675_v55  ;;  %vm15024_vm6 = vcmp.lt.s32.totalorder %v15023_v5, 0 }
  0xfa   :  { %v9680_v58 = vsel %vm15024_vm6, %v1090_v20, %v1089_v46  ;;  %v1144_v6 = vsub.s32 %v14997_v10, %v1143_v32  ;;  %v1165_v42 = vmul.u32 324, %v1164_v41  ;;  %v1176_v18 = vmul.u32 324, %v1175_v60  ;;  %v15027_v20 = vld [vmem:[#allocation97_spill] sm:$0xff] }
  0xfb   :  { %15025 = vst [vmem:[#allocation29_spill] sm:$0xff] %v9680_v58  ;;  %v1112_v1 = vsub.s32 0, %v1111_v21  ;;  %v1187_v9 = vmul.u32 324, %v1186_v52  ;;  %v9684_v0 = vmul.u32.u64.low 3393554407, %v15026_v25  ;;  %v9685_v53 = vmul.u32.u64.high 3393554407, %v15026_v25, %v9684_v0 }
  0xfc   :  { %v1123_v12 = vsub.s32 0, %v1122_v17  ;;  %v1134_v11 = vsub.s32 0, %v1133_v8  ;;  %v1198_v7 = vmul.u32 324, %v1197_v16  ;;  %v1208_v2 = vshrl.u32 %v9645_v26, 8  ;;  %v15028_v0 = vld [vmem:[#allocation21_spill] sm:$0xff] }
  0xfd   :  { %v1219_v55 = vshrl.u32 %v9649_v56, 8  ;;  %v1230_v46 = vshrl.u32 %v9653_v15, 8  ;;  %v9691_v5 = vmul.u32.u64.low 3393554407, %v15027_v20  ;;  %v9692_v32 = vmul.u32.u64.high 3393554407, %v15027_v20, %v9691_v5  ;;  %v15031_v56 = vld [vmem:[#allocation98_spill] sm:$0xff] }
  0xfe   :  { %v1145_v10 = vsub.s32 0, %v1144_v6  ;;  %v1155_v41 = vsub.s32 %v14998_v24, %v1154_v62  ;;  %v1166_v60 = vsub.s32 %v14999_v57, %v1165_v42  ;;  %v1177_v52 = vsub.s32 %v15000_v39, %v1176_v18  ;;  %v15038_v62 = vld [vmem:[#allocation24_spill] sm:$0xff] }
  0xff   :  { %vm15029_vm15 = vcmp.lt.s32.totalorder %v15028_v0, 0  ;;  %v1188_v26 = vsub.s32 %v15001_v44, %v1187_v9  ;;  %v9703_v29 = vmul.u32.u64.low 3393554407, %v15031_v56  ;;  %v9704_v15 = vmul.u32.u64.high 3393554407, %v15031_v56, %v9703_v29  ;;  %v15046_v0 = vld [vmem:[#allocation102_spill] sm:$0xff] }
 0x100   :  { %v9699_v16 = vsel %vm15029_vm15, %v1101_v54, %v1100_v48  ;;  %vm15033_vm14 = vcmp.lt.s32.totalorder %v15032_v50, 0  ;;  %vm15036_vm5 = vcmp.lt.s32.totalorder %v15035_v4, 0  ;;  %v1199_v39 = vsub.s32 %v15004_v63, %v1198_v7  ;;  %v15041_v29 = vld [vmem:[#allocation25_spill] sm:$0xff]  ;;  %v15044_v63 = vld [vmem:[#allocation100_spill] sm:$0xff] }
 0x101   :  { %15030 = vst [vmem:[#allocation61_spill] sm:$0xff] %v9699_v16  ;;  %v9708_v5 = vsel %vm15033_vm14, %v1112_v1, %v1111_v21  ;;  %v9712_v24 = vsel %vm15036_vm5, %v1123_v12, %v1122_v17  ;;  %v1209_v57 = vmul.u32 324, %v1208_v2  ;;  %vm15039_vm6 = vcmp.lt.s32.totalorder %v15038_v62, 0 }
 0x102   :  { %15034 = vst [vmem:[#allocation66_spill] sm:$0xff] %v9708_v5  ;;  %15037 = vst [vmem:[#allocation8_spill] sm:$0xff] %v9712_v24  ;;  %v9717_v48 = vsel %vm15039_vm6, %v1134_v11, %v1133_v8  ;;  %v1220_v44 = vmul.u32 324, %v1219_v55  ;;  %v1231_v54 = vmul.u32 324, %v1230_v46  ;;  %v1241_v42 = vshrl.u32 %v9676_v27, 8  ;;  %v15045_v11 = vld [vmem:[#allocation101_spill] sm:$0xff] }
 0x103   :  { %15040 = vst [vmem:[#allocation67_spill] sm:$0xff] %v9717_v48  ;;  %vm15042_vm15 = vcmp.lt.s32.totalorder %v15041_v29, 0  ;;  %v1156_v21 = vsub.s32 0, %v1155_v41  ;;  %v1167_v18 = vsub.s32 0, %v1166_v60  ;;  %v1178_v4 = vsub.s32 0, %v1177_v52  ;;  %v15047_v29 = vld [vmem:[#allocation103_spill] sm:$0xff] }
 0x104   :  { %v9722_v50 = vsel %vm15042_vm15, %v1145_v10, %v1144_v6  ;;  %v1189_v17 = vsub.s32 0, %v1188_v26  ;;  %v1252_v1 = vshrl.u32 %v9685_v53, 8  ;;  %v1200_v8 = vsub.s32 0, %v1199_v39 }
 0x105   :  { %15043 = vst [vmem:[#allocation9_spill] sm:$0xff] %v9722_v50  ;;  %v9726_v2 = vmul.u32.u64.low 3393554407, %v15044_v63  ;;  %v9727_v9 = vmul.u32.u64.high 3393554407, %v15044_v63, %v9726_v2  ;;  %v1210_v12 = vsub.s32 %v15013_v40, %v1209_v57  ;;  %v1221_v6 = vsub.s32 %v15014_v47, %v1220_v44  ;;  %v15049_v47 = vld [vmem:[#allocation105_spill] sm:$0xff] }
 0x106   :  { %v9731_v7 = vmul.u32.u64.low 3393554407, %v15045_v11  ;;  %v9732_v27 = vmul.u32.u64.high 3393554407, %v15045_v11, %v9731_v7  ;;  %v1232_v55 = vsub.s32 %v15015_v36, %v1231_v54  ;;  %v1242_v46 = vmul.u32 324, %v1241_v42 }
 0x107   :  { %v1263_v10 = vshrl.u32 %v9692_v32, 8  ;;  %v9738_v53 = vmul.u32.u64.low 3393554407, %v15046_v0  ;;  %v9739_v62 = vmul.u32.u64.high 3393554407, %v15046_v0, %v9738_v53  ;;  %v1253_v40 = vmul.u32 324, %v1252_v1  ;;  %v15050_v32 = vld [vmem:[#allocation106_spill] sm:$0xff] }
 0x108   :  { %v9742_v2 = vmul.u32.u64.low 3393554407, %v15047_v29  ;;  %v9743_v45 = vmul.u32.u64.high 3393554407, %v15047_v29, %v9742_v2  ;;  %v1274_v57 = vshrl.u32 %v9704_v15, 8  ;;  %v15051_v53 = vld [vmem:[#allocation107_spill] sm:$0xff]  ;;  %v1211_v15 = vsub.s32 0, %v1210_v12 }
 0x109   :  { %v9747_v7 = vmul.u32.u64.low 3393554407, %v15048_v43  ;;  %v9748_v28 = vmul.u32.u64.high 3393554407, %v15048_v43, %v9747_v7  ;;  %v9751_v36 = vmul.u32.u64.low 3393554407, %v15049_v47  ;;  %v9752_v44 = vmul.u32.u64.high 3393554407, %v15049_v47, %v9751_v36  ;;  %v15052_v2 = vld [vmem:[#allocation108_spill] sm:$0xff] }
 0x10a   :  { %v9755_v54 = vmul.u32.u64.low 3393554407, %v15050_v32  ;;  %v9756_v42 = vmul.u32.u64.high 3393554407, %v15050_v32, %v9755_v54  ;;  %v9759_v3 = vmul.u32.u64.low 3393554407, %v15051_v53  ;;  %v9760_v50 = vmul.u32.u64.high 3393554407, %v15051_v53, %v9759_v3  ;;  %v15053_v7 = vld [vmem:[#allocation109_spill] sm:$0xff]  ;;  %v15054_v36 = vld [vmem:[#allocation26_spill] sm:$0xff] }
 0x10b   :  { %v9763_v1 = vmul.u32.u64.low 3393554407, %v15052_v2  ;;  %v9764_v31 = vmul.u32.u64.high 3393554407, %v15052_v2, %v9763_v1  ;;  %v1243_v49 = vsub.s32 %v15022_v34, %v1242_v46  ;;  %vm15055_vm14 = vcmp.lt.s32.totalorder %v15054_v36, 0  ;;  %v15056_v3 = vld [vmem:[#allocation27_spill] sm:$0xff] }
 0x10c   :  { %v9768_v37 = vmul.u32.u64.low 3393554407, %v15053_v7  ;;  %v9769_v48 = vmul.u32.u64.high 3393554407, %v15053_v7, %v9768_v37  ;;  %v9773_v24 = vsel %vm15055_vm14, %v1156_v21, %v1155_v41  ;;  %v1222_v54 = vsub.s32 0, %v1221_v6  ;;  %v15058_v1 = vld [vmem:[#allocation31_spill] sm:$0xff]  ;;  %v15062_v41 = vld [vmem:[#allocation34_spill] sm:$0xff] }
 0x10d   :  { %v1264_v5 = vmul.u32 324, %v1263_v10  ;;  %v1285_v16 = vshrl.u32 %v9727_v9, 8  ;;  %vm15057_vm5 = vcmp.lt.s32.totalorder %v15056_v3, 0  ;;  %vm15059_vm6 = vcmp.lt.s32.totalorder %v15058_v1, 0  ;;  %v15060_v37 = vld [vmem:[#allocation33_spill] sm:$0xff] }
 0x10e   :  { %v9778_v58 = vsel %vm15057_vm5, %v1167_v18, %v1166_v60  ;;  %v9782_v2 = vsel %vm15059_vm6, %v1178_v4, %v1177_v52  ;;  %v1233_v34 = vsub.s32 0, %v1232_v55  ;;  %v1254_v46 = vsub.s32 %v15026_v25, %v1253_v40  ;;  %v15064_v60 = vld [vmem:[#allocation35_spill] sm:$0xff] }
 0x10f   :  { %vm15061_vm15 = vcmp.lt.s32.totalorder %v15060_v37, 0  ;;  %vm15063_vm14 = vcmp.lt.s32.totalorder %v15062_v41, 0  ;;  %v1275_v9 = vmul.u32 324, %v1274_v57  ;;  %v1296_v10 = vshrl.u32 %v9732_v27, 8 }
 0x110   :  { %v9787_v36 = vsel %vm15061_vm15, %v1189_v17, %v1188_v26  ;;  %v9791_v21 = vsel %vm15063_vm14, %v1200_v8, %v1199_v39  ;;  %vm15065_vm8 = vcmp.lt.s32.totalorder %v15064_v60, 0  ;;  %v1244_v18 = vsub.s32 0, %v1243_v49  ;;  %v15066_v26 = vld [vmem:[#allocation36_spill] sm:$0xff] }
 0x111   :  { %v9797_v52 = vsel %vm15065_vm8, %v1211_v15, %v1210_v12  ;;  %v1307_v25 = vshrl.u32 %v9739_v62, 8  ;;  %v1318_v4 = vshrl.u32 %v9743_v45, 8  ;;  %vm15067_vm15 = vcmp.lt.s32.totalorder %v15066_v26, 0  ;;  %v15068_v12 = vld [vmem:[#allocation37_spill] sm:$0xff] }
 0x112   :  { %v9804_v39 = vsel %vm15067_vm15, %v1222_v54, %v1221_v6  ;;  %v1265_v17 = vsub.s32 %v15027_v20, %v1264_v5  ;;  %v1286_v8 = vmul.u32 324, %v1285_v16  ;;  %v1329_v27 = vshrl.u32 %v9748_v28, 8  ;;  %v15070_v16 = vld [vmem:[#allocation38_spill] sm:$0xff] }
 0x113   :  { %vm15069_vm8 = vcmp.lt.s32.totalorder %v15068_v12, 0  ;;  %v1255_v62 = vsub.s32 0, %v1254_v46  ;;  %v1340_v45 = vshrl.u32 %v9752_v44, 8  ;;  %v1351_v57 = vshrl.u32 %v9756_v42, 8 }
 0x114   :  { %v9811_v40 = vsel %vm15069_vm8, %v1233_v34, %v1232_v55  ;;  %v1276_v6 = vsub.s32 %v15031_v56, %v1275_v9  ;;  %v1297_v15 = vmul.u32 324, %v1296_v10  ;;  %v1362_v20 = vshrl.u32 %v9760_v50, 8  ;;  %v15072_v56 = vld [vmem:[#allocation110_spill] sm:$0xff] }
 0x115   :  { %v1373_v28 = vshrl.u32 %v9764_v31, 8  ;;  %vm15071_vm14 = vcmp.lt.s32.totalorder %v15070_v16, 0  ;;  %v1308_v55 = vmul.u32 324, %v1307_v25  ;;  %v1319_v54 = vmul.u32 324, %v1318_v4  ;;  %v15073_v31 = vld [vmem:[#allocation39_spill] sm:$0xff] }
 0x116   :  { %v9822_v5 = vsel %vm15071_vm14, %v1244_v18, %v1243_v49  ;;  %v1384_v44 = vshrl.u32 %v9769_v48, 8  ;;  %v1266_v42 = vsub.s32 0, %v1265_v17  ;;  %v1330_v3 = vmul.u32 324, %v1329_v27  ;;  %v15081_v27 = vld [vmem:[#allocation108_spill] sm:$0xff] }
 0x117   :  { %v9827_v1 = vmul.u32.u64.low 3393554407, %v15072_v56  ;;  %v9828_v34 = vmul.u32.u64.high 3393554407, %v15072_v56, %v9827_v1  ;;  %vm15074_vm15 = vcmp.lt.s32.totalorder %v15073_v31, 0  ;;  %v1287_v49 = vsub.s32 %v15044_v63, %v1286_v8  ;;  %v15075_v63 = vld [vmem:[#allocation41_spill] sm:$0xff]  ;;  %v15106_v31 = vld [vmem:[#allocation44_spill] sm:$0xff] }
 0x118   :  { %v9833_v50 = vsel %vm15074_vm15, %v1255_v62, %v1254_v46  ;;  %v1341_v37 = vmul.u32 324, %v1340_v45  ;;  %v1352_v41 = vmul.u32 324, %v1351_v57  ;;  %v1298_v48 = vsub.s32 %v15045_v11, %v1297_v15  ;;  %v15087_v15 = vld [vmem:[#allocation61_spill] sm:$0xff]  ;;  %v15101_v1 = vld [vmem:[#allocation8_spill] sm:$0xff] }
 0x119   :  { %v1363_v9 = vmul.u32 324, %v1362_v20  ;;  %v1374_v10 = vmul.u32 324, %v1373_v28  ;;  %v1309_v60 = vsub.s32 %v15046_v0, %v1308_v55  ;;  %v1320_v18 = vsub.s32 %v15047_v29, %v1319_v54  ;;  %v15092_v20 = vld [vmem:[#allocation42_spill] sm:$0xff] }
 0x11a   :  { %v1385_v46 = vmul.u32 324, %v1384_v44  ;;  %vm15076_vm3 = vcmp.lt.s32.totalorder %v15075_v63, 0  ;;  %v1277_v11 = vsub.s32 0, %v1276_v6  ;;  %v1331_v4 = vsub.s32 %v15048_v43, %v1330_v3  ;;  %v15099_v44 = vld [vmem:[#allocation43_spill] sm:$0xff]  ;;  %v15116_v63 = vld [vmem:[#allocation132_spill] sm:$0xff] }
 0x11b   :  { %v9846_v25 = vsel %vm15076_vm3, %v1266_v42, %v1265_v17  ;;  %v1288_v26 = vsub.s32 0, %v1287_v49  ;;  %v1342_v0 = vsub.s32 %v15049_v47, %v1341_v37  ;;  %v1353_v29 = vsub.s32 %v15050_v32, %v1352_v41  ;;  %v15082_v47 = vld [vmem:[#allocation29_spill] sm:$0xff] }
 0x11c   :  { %vm15077_vm5 = vcmp.ne.s32.totalorder %v9553_v33, 0  ;;  %vm15078_vm3 = vcmp.lt.s32.totalorder %v9553_v33, 0  ;;  %v1299_v43 = vsub.s32 0, %v1298_v48  ;;  %v1364_v8 = vsub.s32 %v15051_v53, %v1363_v9  ;;  %v15109_v9 = vld [vmem:[#allocation67_spill] sm:$0xff] }
 0x11d   :  { %vm9859_vm2 = vmand %vm15078_vm3, %vm15077_vm5  ;;  %v1375_v12 = vsub.s32 %v15081_v27, %v1374_v10  ;;  %vm15083_vm15 = vcmp.ne.s32.totalorder %v9564_v61, 0  ;;  %vm15084_vm6 = vcmp.lt.s32.totalorder %v9564_v61, 0  ;;  %v1310_v62 = vsub.s32 0, %v1309_v60 }
 0x11e   :  { %vm9871_vm7 = vmand %vm15084_vm6, %vm15083_vm15  ;;  %v1321_v45 = vsub.s32 0, %v1320_v18  ;;  %v1386_v57 = vsub.s32 %v15053_v7, %v1385_v46  ;;  %vm15088_vm8 = vcmp.ne.s32.totalorder %v9581_v59, 0  ;;  %vm15089_vm14 = vcmp.lt.s32.totalorder %v9581_v59, 0  ;;  %v15094_v7 = vld [vmem:[#allocation66_spill] sm:$0xff]  ;;  %v15114_v46 = vld [vmem:[#allocation131_spill] sm:$0xff] }
 0x11f   :  { %vm9882_vm11 = vmand %vm15089_vm14, %vm15088_vm8  ;;  %vm15093_vm6 = vcmp.lt.s32.totalorder %v15092_v20, 0  ;;  %v1332_v16 = vsub.s32 0, %v1331_v4  ;;  %v1395_v55 = vshrl.u32 %v9828_v34, 8  ;;  %vm15095_vm3 = vcmp.ne.s32.totalorder %v9586_v13, 0  ;;  %v15124_v20 = vld [vmem:[#allocation50_spill] sm:$0xff] }
 0x120   :  { %v9888_v28 = vsel %vm15093_vm6, %v1277_v11, %v1276_v6  ;;  %vm15096_vm1 = vcmp.lt.s32.totalorder %v9586_v13, 0  ;;  %vm15100_vm8 = vcmp.lt.s32.totalorder %v15099_v44, 0  ;;  %v1343_v6 = vsub.s32 0, %v1342_v0  ;;  %v15117_v11 = vld [vmem:[#allocation62_spill] sm:$0xff] }
 0x121   :  { %vm9897_vm4 = vmand %vm15096_vm1, %vm15095_vm3  ;;  %v9903_v42 = vsel %vm15100_vm8, %v1288_v26, %v1287_v49  ;;  %v1354_v3 = vsub.s32 0, %v1353_v29  ;;  %vm15102_vm15 = vcmp.ne.s32.totalorder %v9616_v19, 0  ;;  %vm15103_vm5 = vcmp.lt.s32.totalorder %v9616_v19, 0 }
 0x122   :  { %vm9911_vm10 = vmand %vm15103_vm5, %vm15102_vm15  ;;  %vm15107_vm1 = vcmp.lt.s32.totalorder %v15106_v31, 0  ;;  %v1365_v49 = vsub.s32 0, %v1364_v8  ;;  %v1376_v41 = vsub.s32 0, %v1375_v12  ;;  %vm15110_vm14 = vcmp.ne.s32.totalorder %v9625_v23, 0 }
 0x123   :  { %v9917_v37 = vsel %vm15107_vm1, %v1299_v43, %v1298_v48  ;;  %vm15111_vm6 = vcmp.lt.s32.totalorder %v9625_v23, 0  ;;  %vm15115_vm5 = vnez %v15114_v46  ;;  %v15119_v26 = vmov 0  ;;  %v15122_v43 = vld [vmem:[#allocation46_spill] sm:$0xff] }
 0x124   :  { %15108 = vst [vmem:[#allocation68_spill] sm:$0xff] %v9917_v37  ;;  %vm9925_vm9 = vmand %vm15111_vm6, %vm15110_vm14  ;;  %v15118_v48 = vsel %vm15115_vm5, %v15116_v63, %v15117_v11  ;;  %vm15123_vm1 = vcmp.lt.s32.totalorder %v15122_v43, 0  ;;  %vm15125_vm3 = vcmp.lt.s32.totalorder %v15124_v20, 0  ;;  %v1387_v31 = vsub.s32 0, %v1386_v57  ;;  %v15127_v37 = vld [vmem:[#allocation9_spill] sm:$0xff] }
 0x125   :  { %vm9934_vm15 = vcmp.lt.s32.totalorder %v15118_v48, 16  ;;  %v9940_v27 = vsel %vm15123_vm1, %v1310_v62, %v1309_v60  ;;  %v9944_v44 = vsel %vm15125_vm3, %v1321_v45, %v1320_v18  ;;  %vm15128_vm8 = vcmp.ne.s32.totalorder %v9629_v35, 0  ;;  %v15133_v60 = vld [vmem:[#allocation133_spill] sm:$0xff]  ;;  %v15134_v62 = vld [vmem:[#allocation63_spill] sm:$0xff]  ;;  %v15139_v45 = vld [vmem:[#allocation52_spill] sm:$0xff] }
 0x126   :  { %v15120_v26 = vsel %vm9934_vm15, 4294967295, %v15119_v26  ;;  %15126 = vst [vmem:[#allocation10_spill] sm:$0xff] %v9944_v44  ;;  %vm15129_vm5 = vcmp.lt.s32.totalorder %v9629_v35, 0  ;;  %v15135_v11 = vsel %vm8941_vm13, %v15133_v60, %v15134_v62  ;;  %v15136_v18 = vmov 0  ;;  %v15147_v62 = vld [vmem:[#allocation136_spill] sm:$0xff] }
 0x127   :  { %15121 = vst [vmem:[#allocation69_spill] sm:$0xff] %v15120_v26  ;;  %vm9952_vm12 = vmand %vm15129_vm5, %vm15128_vm8  ;;  %vm9961_vm3 = vcmp.lt.s32.totalorder %v15135_v11, 16  ;;  %vm15140_vm1 = vcmp.lt.s32.totalorder %v15139_v45, 0  ;;  %v1396_v43 = vmul.u32 324, %v1395_v55  ;;  %vm15142_vm5 = vcmp.ne.s32.totalorder %v9633_v14, 0  ;;  %v15153_v11 = vld [vmem:[#allocation54_spill] sm:$0xff] }
 0x128   :  { %v15137_v18 = vsel %vm9961_vm3, 4294967295, %v15136_v18  ;;  %v9967_v48 = vsel %vm15140_vm1, %v1332_v16, %v1331_v4  ;;  %vm15143_vm6 = vcmp.lt.s32.totalorder %v9633_v14, 0  ;;  %v15144_v20 = vmov 0  ;;  %v15148_v4 = vld [vmem:[#allocation64_spill] sm:$0xff] }
 0x129   :  { %15138 = vst [vmem:[#allocation11_spill] sm:$0xff] %v15137_v18  ;;  %15141 = vst [vmem:[#allocation70_spill] sm:$0xff] %v9967_v48  ;;  %v1523_v63 = vadd.s32 324, %v9553_v33  ;;  %v15149_v16 = vsel %vm8949_vm0, %v15147_v62, %v15148_v4  ;;  %v15150_v55 = vmov 0  ;;  %vm15154_vm1 = vcmp.lt.s32.totalorder %v15153_v11, 0  ;;  %v15155_v48 = vld [vmem:[#allocation55_spill] sm:$0xff] }
 0x12a   :  { %vm9975_vm15 = vmand %vm15143_vm6, %vm15142_vm5  ;;  %vm9985_vm13 = vcmp.lt.s32.totalorder %v15149_v16, 16  ;;  %v9991_v45 = vsel %vm15154_vm1, %v1343_v6, %v1342_v0  ;;  %vm15156_vm6 = vcmp.lt.s32.totalorder %v15155_v48, 0  ;;  %vm15158_vm8 = vcmp.ne.s32.totalorder %v9637_v22, 0  ;;  %v15162_v0 = vld [vmem:[#allocation140_spill] sm:$0xff]  ;;  %v15164_v6 = vld [vmem:[#allocation137_spill] sm:$0xff] }
 0x12b   :  { %v15145_v20 = vsel %vm9975_vm15, 4294967295, %v15144_v20  ;;  %v15151_v55 = vsel %vm9985_vm13, 4294967295, %v15150_v55  ;;  %v9995_v44 = vsel %vm15156_vm6, %v1354_v3, %v1353_v29  ;;  %vm15159_vm0 = vcmp.lt.s32.totalorder %v9637_v22, 0  ;;  %v15165_v48 = vld [vmem:[#allocation65_spill] sm:$0xff]  ;;  %v15170_v4 = vld [vmem:[#allocation56_spill] sm:$0xff] }
 0x12c   :  { %15152 = vst [vmem:[#allocation71_spill] sm:$0xff] %v15151_v55  ;;  %15157 = vst [vmem:[#allocation73_spill] sm:$0xff] %v9995_v44  ;;  %v15160_v60 = vmov 0  ;;  %v1524_v62 = vadd.s32 324, %v9564_v61  ;;  %vm15163_vm1 = vnez %v15162_v0  ;;  %v15167_v3 = vmov 0  ;;  %v15173_v11 = vld [vmem:[#allocation57_spill] sm:$0xff] }
 0x12d   :  { %vm10003_vm3 = vmand %vm15159_vm0, %vm15158_vm8  ;;  %v15166_v29 = vsel %vm15163_vm1, %v15164_v6, %v15165_v48  ;;  %vm15171_vm5 = vcmp.lt.s32.totalorder %v15170_v4, 0  ;;  %vm15174_vm8 = vcmp.lt.s32.totalorder %v15173_v11, 0  ;;  %vm15176_vm13 = vcmp.ne.s32.totalorder %v9659_v51, 0  ;;  %v15183_v48 = vld [vmem:[#allocation72_spill] sm:$0xff]  ;;  %v15372_v11 = vld [vmem:[#allocation10_spill] sm:$0xff] }
 0x12e   :  { %v15161_v60 = vsel %vm10003_vm3, 4294967295, %v15160_v60  ;;  %vm10013_vm6 = vcmp.lt.s32.totalorder %v15166_v29, 16  ;;  %v10019_v16 = vsel %vm15171_vm5, %v1365_v49, %v1364_v8  ;;  %v10023_v44 = vsel %vm15174_vm8, %v1376_v41, %v1375_v12  ;;  %v15180_v8 = vld [vmem:[#allocation141_spill] sm:$0xff]  ;;  %v15182_v49 = vld [vmem:[#allocation138_spill] sm:$0xff] }
 0x12f   :  { %v15168_v3 = vsel %vm10013_vm6, 4294967295, %v15167_v3  ;;  %15172 = vst [vmem:[#allocation81_spill] sm:$0xff] %v10019_v16  ;;  %15175 = vst [vmem:[#allocation12_spill] sm:$0xff] %v10023_v44  ;;  %vm15177_vm1 = vcmp.lt.s32.totalorder %v9659_v51, 0  ;;  %v15178_v0 = vmov 0  ;;  %v1525_v6 = vadd.s32 324, %v9581_v59 }
 0x130   :  { %15169 = vst [vmem:[#allocation74_spill] sm:$0xff] %v15168_v3  ;;  %vm10031_vm3 = vmand %vm15177_vm1, %vm15176_vm13  ;;  %vm15181_vm5 = vnez %v15180_v8  ;;  %v15185_v41 = vmov 0  ;;  %v15188_v29 = vld [vmem:[#allocation58_spill] sm:$0xff]  ;;  %vm15191_vm6 = vcmp.ne.s32.totalorder %v9663_v30, 0  ;;  %v1526_v8 = vadd.s32 324, %v9586_v13 }
 0x131   :  { %v15179_v0 = vsel %vm10031_vm3, 4294967295, %v15178_v0  ;;  %v15184_v12 = vsel %vm15181_vm5, %v15182_v49, %v15183_v48  ;;  %vm15189_vm0 = vcmp.lt.s32.totalorder %v15188_v29, 0  ;;  %vm15192_vm3 = vcmp.lt.s32.totalorder %v9663_v30, 0  ;;  %v15195_v49 = vld [vmem:[#allocation142_spill] sm:$0xff] }
 0x132   :  { %vm10041_vm8 = vcmp.lt.s32.totalorder %v15184_v12, 16  ;;  %v10047_v4 = vsel %vm15189_vm0, %v1387_v31, %v1386_v57  ;;  %vm10056_vm15 = vmand %vm15192_vm3, %vm15191_vm6  ;;  %vm15196_vm5 = vnez %v15195_v49  ;;  %v15197_v57 = vld [vmem:[#allocation139_spill] sm:$0xff]  ;;  %v15200_v12 = vmov 0 }
 0x133   :  { %v15186_v41 = vsel %vm10041_vm8, 4294967295, %v15185_v41  ;;  %15190 = vst [vmem:[#allocation13_spill] sm:$0xff] %v10047_v4  ;;  %v15198_v31 = vld [vmem:[#allocation75_spill] sm:$0xff]  ;;  %v10071_v29 = vsub.s32 %v15072_v56, %v1396_v43  ;;  %vm15203_vm6 = vcmp.ne.s32.totalorder %v9669_v38, 0  ;;  %vm15204_vm14 = vcmp.lt.s32.totalorder %v9669_v38, 0  ;;  %v15209_v43 = vld [vmem:[#allocation144_spill] sm:$0xff] }
 0x134   :  { %15187 = vst [vmem:[#allocation82_spill] sm:$0xff] %v15186_v41  ;;  %v15199_v48 = vsel %vm15196_vm5, %v15197_v57, %v15198_v31  ;;  %vm10079_vm1 = vmand %vm15204_vm14, %vm15203_vm6  ;;  %v15205_v49 = vmov 0  ;;  %v1527_v57 = vadd.s32 324, %v9616_v19  ;;  %v1564_v31 = vsel %vm9859_vm2, %v1523_v63, %v9553_v33  ;;  %v15207_v56 = vld [vmem:[#allocation143_spill] sm:$0xff] }
 0x135   :  { %vm10066_vm0 = vcmp.lt.s32.totalorder %v15199_v48, 16  ;;  %v15206_v49 = vsel %vm10079_vm1, 4294967295, %v15205_v49  ;;  %vm15208_vm5 = vnez %v15207_v56  ;;  %v15210_v48 = vld [vmem:[#allocation76_spill] sm:$0xff]  ;;  %v15212_v44 = vmov 0  ;;  %v15221_v56 = vld [vmem:[#allocation145_spill] sm:$0xff] }
 0x136   :  { %v15201_v12 = vsel %vm10066_vm0, 4294967295, %v15200_v12  ;;  %v15211_v4 = vsel %vm15208_vm5, %v15209_v43, %v15210_v48  ;;  %vm15215_vm0 = vcmp.ne.s32.totalorder %v15082_v47, 0  ;;  %vm15216_vm1 = vcmp.lt.s32.totalorder %v15082_v47, 0  ;;  %v15222_v43 = vld [vmem:[#allocation77_spill] sm:$0xff] }
 0x137   :  { %15202 = vst [vmem:[#allocation14_spill] sm:$0xff] %v15201_v12  ;;  %vm10092_vm13 = vcmp.lt.s32.totalorder %v15211_v4, 16  ;;  %vm10103_vm2 = vmand %vm15216_vm1, %vm15215_vm0  ;;  %v1528_v17 = vadd.s32 324, %v9625_v23  ;;  %v1565_v63 = vsel %vm9871_vm7, %v1524_v62, %v9564_v61  ;;  %v15219_v4 = vld [vmem:[#allocation148_spill] sm:$0xff]  ;;  %v15224_v16 = vmov 0 }
 0x138   :  { %v15213_v44 = vsel %vm10092_vm13, 4294967295, %v15212_v44  ;;  %vm15220_vm5 = vnez %v15219_v4  ;;  %vm15227_vm6 = vcmp.ne.s32.totalorder %v15087_v15, 0  ;;  %vm15228_vm13 = vcmp.lt.s32.totalorder %v15087_v15, 0  ;;  %v15232_v4 = vld [vmem:[#allocation149_spill] sm:$0xff] }
 0x139   :  { %15214 = vst [vmem:[#allocation15_spill] sm:$0xff] %v15213_v44  ;;  %v15223_v48 = vsel %vm15220_vm5, %v15221_v56, %v15222_v43  ;;  %vm10127_vm7 = vmand %vm15228_vm13, %vm15227_vm6  ;;  %v15229_v61 = vmov 0  ;;  %v1529_v32 = vadd.s32 324, %v9629_v35  ;;  %v1566_v62 = vsel %vm9882_vm11, %v1525_v6, %v9581_v59  ;;  %v15234_v56 = vld [vmem:[#allocation146_spill] sm:$0xff]  ;;  %v15422_v44 = vld [vmem:[#allocation96_spill] sm:$0xff] }
 0x13a   :  { %vm10116_vm14 = vcmp.lt.s32.totalorder %v15223_v48, 16  ;;  %v15230_v61 = vsel %vm10127_vm7, 4294967295, %v15229_v61  ;;  %vm15233_vm5 = vnez %v15232_v4  ;;  %v15235_v43 = vld [vmem:[#allocation78_spill] sm:$0xff]  ;;  %vm15240_vm3 = vcmp.ne.s32.totalorder %v15094_v7, 0 }
 0x13b   :  { %v15225_v16 = vsel %vm10116_vm14, 4294967295, %v15224_v16  ;;  %15231 = vst [vmem:[#allocation83_spill] sm:$0xff] %v15230_v61  ;;  %v15236_v48 = vsel %vm15233_vm5, %v15234_v56, %v15235_v43  ;;  %vm15241_vm0 = vcmp.lt.s32.totalorder %v15094_v7, 0  ;;  %v15242_v53 = vmov 0  ;;  %v15247_v56 = vld [vmem:[#allocation154_spill] sm:$0xff]  ;;  %v15249_v43 = vld [vmem:[#allocation147_spill] sm:$0xff] }
 0x13c   :  { %15226 = vst [vmem:[#allocation16_spill] sm:$0xff] %v15225_v16  ;;  %vm10140_vm1 = vcmp.lt.s32.totalorder %v15236_v48, 16  ;;  %v15237_v16 = vmov 0  ;;  %vm10150_vm14 = vmand %vm15241_vm0, %vm15240_vm3  ;;  %v1530_v59 = vadd.s32 324, %v9633_v14  ;;  %v1567_v6 = vsel %vm9897_vm4, %v1526_v8, %v9586_v13  ;;  %v15250_v48 = vld [vmem:[#allocation79_spill] sm:$0xff] }
 0x13d   :  { %v15238_v16 = vsel %vm10140_vm1, 4294967295, %v15237_v16  ;;  %v15243_v53 = vsel %vm10150_vm14, 4294967295, %v15242_v53  ;;  %vm10158_vm11 = vcmp.lt.s32.totalorder %v1564_v31, 288  ;;  %v15244_v4 = vmov 0  ;;  %v15263_v31 = vld [vmem:[#allocation124_spill] sm:$0xff] }
 0x13e   :  { %15239 = vst [vmem:[#allocation84_spill] sm:$0xff] %v15238_v16  ;;  %v15245_v4 = vsel %vm10158_vm11, 4294967295, %v15244_v4  ;;  %vm15248_vm5 = vnez %v15247_v56  ;;  %v15252_v61 = vmov 0  ;;  %vm15255_vm6 = vcmp.ne.s32.totalorder %v15101_v1, 0  ;;  %v15264_v56 = vld [vmem:[#allocation155_spill] sm:$0xff] }
 0x13f   :  { %15246 = vst [vmem:[#allocation85_spill] sm:$0xff] %v15245_v4  ;;  %v15251_v16 = vsel %vm15248_vm5, %v15249_v43, %v15250_v48  ;;  %vm15256_vm4 = vcmp.lt.s32.totalorder %v15101_v1, 0  ;;  %v15257_v13 = vmov 0  ;;  %v1531_v54 = vadd.s32 324, %v9637_v22  ;;  %v15266_v43 = vld [vmem:[#allocation150_spill] sm:$0xff]  ;;  %v15267_v48 = vld [vmem:[#allocation80_spill] sm:$0xff] }
 0x140   :  { %vm10167_vm13 = vcmp.lt.s32.totalorder %v15251_v16, 16  ;;  %vm10177_vm1 = vmand %vm15256_vm4, %vm15255_vm6  ;;  %v1568_v16 = vsel %vm9911_vm10, %v1527_v57, %v9616_v19  ;;  %vm10185_vm5 = vcmp.lt.s32.totalorder %v1565_v63, 288  ;;  %v15260_v8 = vmov 0 }
 0x141   :  { %v15253_v61 = vsel %vm10167_vm13, 4294967295, %v15252_v61  ;;  %v15258_v13 = vsel %vm10177_vm1, 4294967295, %v15257_v13  ;;  %v15261_v8 = vsel %vm10185_vm5, 4294967295, %v15260_v8  ;;  %vm15265_vm13 = vnez %v15264_v56  ;;  %v15282_v56 = vld [vmem:[#allocation151_spill] sm:$0xff] }
 0x142   :  { %15254 = vst [vmem:[#allocation17_spill] sm:$0xff] %v15253_v61  ;;  %15259 = vst [vmem:[#allocation18_spill] sm:$0xff] %v15258_v13  ;;  %v15268_v61 = vsel %vm15265_vm13, %v15266_v43, %v15267_v48  ;;  %v15269_v13 = vmov 0  ;;  %vm15272_vm1 = vcmp.ne.s32.totalorder %v15109_v9, 0  ;;  %vm15273_vm14 = vcmp.lt.s32.totalorder %v15109_v9, 0  ;;  %v15283_v43 = vld [vmem:[#allocation87_spill] sm:$0xff] }
 0x143   :  { %15262 = vst [vmem:[#allocation19_spill] sm:$0xff] %v15261_v8  ;;  %vm10196_vm6 = vcmp.lt.s32.totalorder %v15268_v61, 16  ;;  %vm10206_vm3 = vmand %vm15273_vm14, %vm15272_vm1  ;;  %v15274_v19 = vmov 0  ;;  %v1532_v34 = vadd.s32 324, %v9659_v51  ;;  %v1569_v57 = vsel %vm9925_vm9, %v1528_v17, %v9625_v23  ;;  %v15280_v61 = vld [vmem:[#allocation156_spill] sm:$0xff] }
 0x144   :  { %v15270_v13 = vsel %vm10196_vm6, 4294967295, %v15269_v13  ;;  %v15275_v19 = vsel %vm10206_vm3, 4294967295, %v15274_v19  ;;  %vm10214_vm13 = vcmp.lt.s32.totalorder %v1566_v62, 288  ;;  %v15277_v63 = vmov 0 }
 0x145   :  { %15271 = vst [vmem:[#allocation86_spill] sm:$0xff] %v15270_v13  ;;  %15276 = vst [vmem:[#allocation20_spill] sm:$0xff] %v15275_v19  ;;  %v15278_v63 = vsel %vm10214_vm13, 4294967295, %v15277_v63  ;;  %vm15281_vm4 = vnez %v15280_v61  ;;  %v15285_v13 = vmov 0  ;;  %vm15288_vm1 = vcmp.ne.s32.totalorder %v15127_v37, 0  ;;  %v15296_v61 = vld [vmem:[#allocation161_spill] sm:$0xff] }
 0x146   :  { %15279 = vst [vmem:[#allocation95_spill] sm:$0xff] %v15278_v63  ;;  %v15284_v48 = vsel %vm15281_vm4, %v15282_v56, %v15283_v43  ;;  %vm15289_vm9 = vcmp.lt.s32.totalorder %v15127_v37, 0  ;;  %v15290_v23 = vmov 0  ;;  %v10238_v10 = vadd.s32 324, %v9663_v30  ;;  %v15298_v56 = vld [vmem:[#allocation152_spill] sm:$0xff]  ;;  %v15352_v63 = vld [vmem:[#allocation91_spill] sm:$0xff] }
 0x147   :  { %vm10223_vm0 = vcmp.lt.s32.totalorder %v15284_v48, 16  ;;  %vm10233_vm10 = vmand %vm15289_vm9, %vm15288_vm1  ;;  %v1570_v17 = vsel %vm9952_vm12, %v1529_v32, %v9629_v35  ;;  %vm10243_vm4 = vcmp.lt.s32.totalorder %v1567_v6, 288  ;;  %v15292_v62 = vmov 0  ;;  %v15299_v43 = vld [vmem:[#allocation88_spill] sm:$0xff] }
 0x148   :  { %v15286_v13 = vsel %vm10223_vm0, 4294967295, %v15285_v13  ;;  %v15291_v23 = vsel %vm10233_vm10, 4294967295, %v15290_v23  ;;  %v15293_v62 = vsel %vm10243_vm4, 4294967295, %v15292_v62  ;;  %vm15297_vm1 = vnez %v15296_v61  ;;  %v15313_v61 = vld [vmem:[#allocation166_spill] sm:$0xff] }
 0x149   :  { %15287 = vst [vmem:[#allocation97_spill] sm:$0xff] %v15286_v13  ;;  %15294 = vst [vmem:[#allocation21_spill] sm:$0xff] %v15293_v62  ;;  %v15300_v48 = vsel %vm15297_vm1, %v15298_v56, %v15299_v43  ;;  %v15301_v19 = vmov 0  ;;  %vm15304_vm6 = vcmp.ne.s32.totalorder %v9773_v24, 0  ;;  %vm15305_vm3 = vcmp.lt.s32.totalorder %v9773_v24, 0  ;;  %v15315_v56 = vld [vmem:[#allocation153_spill] sm:$0xff] }
 0x14a   :  { %vm10256_vm9 = vcmp.lt.s32.totalorder %v15300_v48, 16  ;;  %vm10266_vm7 = vmand %vm15305_vm3, %vm15304_vm6  ;;  %v15306_v35 = vmov 0  ;;  %v10271_v46 = vadd.s32 324, %v9669_v38  ;;  %vm15308_vm14 = vnez %v15145_v20  ;;  %v15316_v43 = vld [vmem:[#allocation89_spill] sm:$0xff] }
 0x14b   :  { %v15302_v19 = vsel %vm10256_vm9, 4294967295, %v15301_v19  ;;  %v15307_v35 = vsel %vm10266_vm7, 4294967295, %v15306_v35  ;;  %v1571_v32 = vsel %vm15308_vm14, %v1530_v59, %v9633_v14  ;;  %vm10276_vm1 = vcmp.lt.s32.totalorder %v1568_v16, 288 }
 0x14c   :  { %15303 = vst [vmem:[#allocation98_spill] sm:$0xff] %v15302_v19  ;;  %v15309_v6 = vmov 0  ;;  %vm15314_vm3 = vnez %v15313_v61  ;;  %v15318_v4 = vmov 0  ;;  %vm15321_vm11 = vcmp.ne.s32.totalorder %v9778_v58, 0  ;;  %v15330_v61 = vld [vmem:[#allocation125_spill] sm:$0xff] }
 0x14d   :  { %v15310_v6 = vsel %vm10276_vm1, 4294967295, %v15309_v6  ;;  %v15317_v48 = vsel %vm15314_vm3, %v15315_v56, %v15316_v43  ;;  %vm15322_vm9 = vcmp.lt.s32.totalorder %v9778_v58, 0  ;;  %v15323_v14 = vmov 0  ;;  %v15331_v56 = vld [vmem:[#allocation171_spill] sm:$0xff]  ;;  %v15333_v43 = vld [vmem:[#allocation157_spill] sm:$0xff] }
 0x14e   :  { %15311 = vst [vmem:[#allocation22_spill] sm:$0xff] %v15310_v6  ;;  %vm10289_vm6 = vcmp.lt.s32.totalorder %v15317_v48, 16  ;;  %vm10299_vm7 = vmand %vm15322_vm9, %vm15321_vm11  ;;  %v10304_v20 = vadd.s32 324, %v15082_v47  ;;  %vm15325_vm0 = vnez %v15161_v60  ;;  %vm10309_vm3 = vcmp.lt.s32.totalorder %v1569_v57, 288  ;;  %v15334_v48 = vld [vmem:[#allocation90_spill] sm:$0xff]  ;;  %v15339_v60 = vld [vmem:[#allocation68_spill] sm:$0xff] }
 0x14f   :  { %v15319_v4 = vsel %vm10289_vm6, 4294967295, %v15318_v4  ;;  %v15324_v14 = vsel %vm10299_vm7, 4294967295, %v15323_v14  ;;  %v1572_v59 = vsel %vm15325_vm0, %v1531_v54, %v9637_v22  ;;  %v15326_v16 = vmov 0 }
 0x150   :  { %15320 = vst [vmem:[#allocation23_spill] sm:$0xff] %v15319_v4  ;;  %v15327_v16 = vsel %vm10309_vm3, 4294967295, %v15326_v16  ;;  %vm15332_vm10 = vnez %v15331_v56  ;;  %v15336_v22 = vmov 0  ;;  %vm15340_vm7 = vcmp.ne.s32.totalorder %v9782_v2, 0 }
 0x151   :  { %15328 = vst [vmem:[#allocation24_spill] sm:$0xff] %v15327_v16  ;;  %v15335_v26 = vsel %vm15332_vm10, %v15333_v43, %v15334_v48  ;;  %vm15341_vm12 = vcmp.lt.s32.totalorder %v9782_v2, 0  ;;  %v15342_v54 = vmov 0  ;;  %v10339_v57 = vadd.s32 324, %v15087_v15  ;;  %v15349_v43 = vld [vmem:[#allocation174_spill] sm:$0xff] }
 0x152   :  { %vm10324_vm5 = vcmp.lt.s32.totalorder %v15335_v26, 16  ;;  %vm10334_vm14 = vmand %vm15341_vm12, %vm15340_vm7  ;;  %vm15344_vm10 = vnez %v15179_v0  ;;  %vm10344_vm9 = vcmp.lt.s32.totalorder %v1570_v17, 288  ;;  %v15345_v56 = vmov 0  ;;  %v15351_v48 = vld [vmem:[#allocation158_spill] sm:$0xff]  ;;  %v15366_v17 = vld [vmem:[#allocation159_spill] sm:$0xff] }
 0x153   :  { %v15337_v22 = vsel %vm10324_vm5, 4294967295, %v15336_v22  ;;  %v15343_v54 = vsel %vm10334_vm14, 4294967295, %v15342_v54  ;;  %v1573_v26 = vsel %vm15344_vm10, %v1532_v34, %v9659_v51  ;;  %v15346_v56 = vsel %vm10344_vm9, 4294967295, %v15345_v56  ;;  %v15403_v16 = vld [vmem:[#allocation94_spill] sm:$0xff] }
 0x154   :  { %15338 = vst [vmem:[#allocation25_spill] sm:$0xff] %v15337_v22  ;;  %15347 = vst [vmem:[#allocation100_spill] sm:$0xff] %v15346_v56  ;;  %vm15350_vm7 = vnez %v15349_v43  ;;  %v15354_v8 = vmov 0  ;;  %vm15357_vm13 = vcmp.ne.s32.totalorder %v9787_v36, 0  ;;  %vm15358_vm5 = vcmp.lt.s32.totalorder %v9787_v36, 0  ;;  %v15367_v43 = vld [vmem:[#allocation92_spill] sm:$0xff] }
 0x155   :  { %v15353_v55 = vsel %vm15350_vm7, %v15351_v48, %v15352_v63  ;;  %vm10367_vm14 = vmand %vm15358_vm5, %vm15357_vm13  ;;  %v10372_v0 = vadd.s32 324, %v15094_v7  ;;  %vm10378_vm0 = vcmp.lt.s32.totalorder %v1571_v32, 288  ;;  %v15361_v34 = vmov 0  ;;  %v15364_v63 = vld [vmem:[#allocation179_spill] sm:$0xff] }
 0x156   :  { %vm10357_vm12 = vcmp.lt.s32.totalorder %v15353_v55, 16  ;;  %v1574_v55 = vsel %vm10056_vm15, %v10238_v10, %v9663_v30  ;;  %v15362_v34 = vsel %vm10378_vm0, 4294967295, %v15361_v34  ;;  %vm15365_vm13 = vnez %v15364_v63  ;;  %v15421_v56 = vld [vmem:[#allocation163_spill] sm:$0xff] }
 0x157   :  { %v15355_v8 = vsel %vm10357_vm12, 4294967295, %v15354_v8  ;;  %15363 = vst [vmem:[#allocation102_spill] sm:$0xff] %v15362_v34  ;;  %v15368_v48 = vsel %vm15365_vm13, %v15366_v17, %v15367_v43  ;;  %v15369_v62 = vmov 0  ;;  %vm15373_vm10 = vcmp.ne.s32.totalorder %v9791_v21, 0  ;;  %v15382_v17 = vld [vmem:[#allocation182_spill] sm:$0xff]  ;;  %v15384_v43 = vld [vmem:[#allocation160_spill] sm:$0xff] }
 0x158   :  { %15356 = vst [vmem:[#allocation101_spill] sm:$0xff] %v15355_v8  ;;  %vm10391_vm7 = vcmp.lt.s32.totalorder %v15368_v48, 16  ;;  %vm15374_vm6 = vcmp.lt.s32.totalorder %v9791_v21, 0  ;;  %v15375_v30 = vmov 0  ;;  %v10406_v10 = vadd.s32 324, %v15101_v1  ;;  %v15385_v48 = vld [vmem:[#allocation93_spill] sm:$0xff] }
 0x159   :  { %v15370_v62 = vsel %vm10391_vm7, 4294967295, %v15369_v62  ;;  %vm10401_vm4 = vmand %vm15374_vm6, %vm15373_vm10  ;;  %vm15377_vm13 = vnez %v15206_v49  ;;  %vm10412_vm5 = vcmp.lt.s32.totalorder %v1572_v59, 288  ;;  %v15378_v63 = vmov 0  ;;  %v15390_v49 = vld [vmem:[#allocation70_spill] sm:$0xff]  ;;  %v15445_v34 = vld [vmem:[#allocation99_spill] sm:$0xff] }
 0x15a   :  { %15371 = vst [vmem:[#allocation103_spill] sm:$0xff] %v15370_v62  ;;  %v15376_v30 = vsel %vm10401_vm4, 4294967295, %v15375_v30  ;;  %v1575_v32 = vsel %vm15377_vm13, %v10271_v46, %v9669_v38  ;;  %v15379_v63 = vsel %vm10412_vm5, 4294967295, %v15378_v63  ;;  %vm15383_vm10 = vnez %v15382_v17  ;;  %v15399_v17 = vld [vmem:[#allocation126_spill] sm:$0xff]  ;;  %v15700_v62 = vld [vmem:[#allocation119_spill] sm:$0xff] }
 0x15b   :  { %15380 = vst [vmem:[#allocation104_spill] sm:$0xff] %v15379_v63  ;;  %v15386_v6 = vsel %vm15383_vm10, %v15384_v43, %v15385_v48  ;;  %v15387_v41 = vmov 0  ;;  %vm15391_vm8 = vcmp.ne.s32.totalorder %v9797_v52, 0  ;;  %vm15392_vm7 = vcmp.lt.s32.totalorder %v9797_v52, 0  ;;  %v15400_v43 = vld [vmem:[#allocation187_spill] sm:$0xff]  ;;  %v15402_v48 = vld [vmem:[#allocation162_spill] sm:$0xff] }
 0x15c   :  { %vm10425_vm11 = vcmp.lt.s32.totalorder %v15386_v6, 16  ;;  %vm10435_vm4 = vmand %vm15392_vm7, %vm15391_vm8  ;;  %v10440_v46 = vadd.s32 324, %v15109_v9  ;;  %v1576_v6 = vsel %vm10103_vm2, %v10304_v20, %v15082_v47  ;;  %vm10446_vm15 = vcmp.lt.s32.totalorder %v1573_v26, 288  ;;  %v15477_v63 = vld [vmem:[#allocation12_spill] sm:$0xff] }
 0x15d   :  { %v15388_v41 = vsel %vm10425_vm11, 4294967295, %v15387_v41  ;;  %v15395_v59 = vmov 0  ;;  %vm15401_vm13 = vnez %v15400_v43  ;;  %v15405_v47 = vmov 0 }
 0x15e   :  { %15389 = vst [vmem:[#allocation105_spill] sm:$0xff] %v15388_v41  ;;  %v15396_v59 = vsel %vm10446_vm15, 4294967295, %v15395_v59  ;;  %v15404_v12 = vsel %vm15401_vm13, %v15402_v48, %v15403_v16  ;;  %vm15408_vm11 = vcmp.ne.s32.totalorder %v9804_v39, 0  ;;  %vm15409_vm10 = vcmp.lt.s32.totalorder %v9804_v39, 0  ;;  %v15419_v48 = vld [vmem:[#allocation191_spill] sm:$0xff] }
 0x15f   :  { %15397 = vst [vmem:[#allocation106_spill] sm:$0xff] %v15396_v59  ;;  %vm10461_vm1 = vcmp.lt.s32.totalorder %v15404_v12, 16  ;;  %vm10471_vm8 = vmand %vm15409_vm10, %vm15408_vm11  ;;  %v15410_v33 = vmov 0  ;;  %v10476_v20 = vadd.s32 324, %v15127_v37  ;;  %v15412_v12 = vld [vmem:[#allocation83_spill] sm:$0xff]  ;;  %vm10482_vm6 = vcmp.lt.s32.totalorder %v1574_v55, 288 }
 0x160   :  { %v15406_v47 = vsel %vm10461_vm1, 4294967295, %v15405_v47  ;;  %v15411_v33 = vsel %vm10471_vm8, 4294967295, %v15410_v33  ;;  %vm15413_vm13 = vnez %v15412_v12  ;;  %v15414_v26 = vmov 0  ;;  %v15430_v12 = vld [vmem:[#allocation73_spill] sm:$0xff] }
 0x161   :  { %15407 = vst [vmem:[#allocation107_spill] sm:$0xff] %v15406_v47  ;;  %v1577_v16 = vsel %vm15413_vm13, %v10339_v57, %v15087_v15  ;;  %v15415_v26 = vsel %vm10482_vm6, 4294967295, %v15414_v26  ;;  %vm15420_vm10 = vnez %v15419_v48  ;;  %v15424_v18 = vmov 0  ;;  %v15428_v57 = vld [vmem:[#allocation59_spill] sm:$0xff]  ;;  %v15640_v47 = vld [vmem:[#allocation124_spill] sm:$0xff] }
 0x162   :  { %15416 = vst [vmem:[#allocation109_spill] sm:$0xff] %v15415_v26  ;;  %v15423_v3 = vsel %vm15420_vm10, %v15421_v56, %v15422_v44  ;;  %v15427_v15 = vsub.s32 0, %v10071_v29  ;;  %vm15429_vm13 = vcmp.lt.s32.totalorder %v15428_v57, 0  ;;  %vm15431_vm2 = vcmp.ne.s32.totalorder %v9811_v40, 0  ;;  %v15441_v48 = vld [vmem:[#allocation127_spill] sm:$0xff]  ;;  %v15444_v57 = vld [vmem:[#allocation164_spill] sm:$0xff] }
 0x163   :  { %vm10495_vm7 = vcmp.lt.s32.totalorder %v15423_v3, 16  ;;  %vm15432_vm11 = vcmp.lt.s32.totalorder %v9811_v40, 0  ;;  %v15433_v43 = vmov 0  ;;  %v10516_v44 = vadd.s32 324, %v9773_v24  ;;  %v15513_v26 = vld [vmem:[#allocation113_spill] sm:$0xff] }
 0x164   :  { %v15425_v18 = vsel %vm10495_vm7, 4294967295, %v15424_v18  ;;  %v10504_v55 = vsel %vm15429_vm13, %v15427_v15, %v10071_v29  ;;  %vm10511_vm0 = vmand %vm15432_vm11, %vm15431_vm2  ;;  %vm15435_vm10 = vnez %v15243_v53  ;;  %vm10522_vm13 = vcmp.lt.s32.totalorder %v1575_v32, 288  ;;  %v15442_v15 = vld [vmem:[#allocation30_spill] sm:$0xff]  ;;  %v15450_v53 = vld [vmem:[#allocation81_spill] sm:$0xff] }
 0x165   :  { %15426 = vst [vmem:[#allocation26_spill] sm:$0xff] %v15425_v18  ;;  %v15434_v43 = vsel %vm10511_vm0, 4294967295, %v15433_v43  ;;  %v1578_v3 = vsel %vm15435_vm10, %v10372_v0, %v15094_v7  ;;  %v15436_v29 = vmov 0  ;;  %vm15443_vm7 = vnez %v15442_v15 }
 0x166   :  { %v15437_v29 = vsel %vm10522_vm13, 4294967295, %v15436_v29  ;;  %v15446_v18 = vsel %vm15443_vm7, %v15444_v57, %v15445_v34  ;;  %v15447_v7 = vmov 0  ;;  %vm15451_vm8 = vcmp.ne.s32.totalorder %v9822_v5, 0  ;;  %v15493_v57 = vld [vmem:[#allocation167_spill] sm:$0xff] }
 0x167   :  { %15438 = vst [vmem:[#allocation27_spill] sm:$0xff] %v15437_v29  ;;  %vm10537_vm0 = vcmp.lt.s32.totalorder %v15446_v18, 16  ;;  %vm15452_vm3 = vcmp.lt.s32.totalorder %v9822_v5, 0  ;;  %v15453_v0 = vmov 0  ;;  %v1542_v32 = vadd.s32 324, %v9778_v58  ;;  %v15456_v18 = vld [vmem:[#allocation18_spill] sm:$0xff] }
 0x168   :  { %v15448_v7 = vsel %vm10537_vm0, 4294967295, %v15447_v7  ;;  %vm10547_vm11 = vmand %vm15452_vm3, %vm15451_vm8  ;;  %vm15457_vm7 = vnez %v15456_v18  ;;  %vm10556_vm9 = vcmp.lt.s32.totalorder %v1576_v6, 288  ;;  %v15458_v56 = vmov 0  ;;  %v15472_v6 = vld [vmem:[#allocation111_spill] sm:$0xff] }
 0x169   :  { %15449 = vst [vmem:[#allocation31_spill] sm:$0xff] %v15448_v7  ;;  %v15454_v0 = vsel %vm10547_vm11, 4294967295, %v15453_v0  ;;  %v1579_v34 = vsel %vm15457_vm7, %v10406_v10, %v15101_v1  ;;  %v15459_v56 = vsel %vm10556_vm9, 4294967295, %v15458_v56  ;;  %vm15464_vm1 = vcmp.ne.s32.totalorder %v15263_v31, 0  ;;  %v15469_v1 = vld [vmem:[#allocation192_spill] sm:$0xff]  ;;  %v15471_v10 = vld [vmem:[#allocation165_spill] sm:$0xff] }
 0x16a   :  { %15455 = vst [vmem:[#allocation33_spill] sm:$0xff] %v15454_v0  ;;  %15460 = vst [vmem:[#allocation34_spill] sm:$0xff] %v15459_v56  ;;  %vm15465_vm5 = vcmp.lt.s32.totalorder %v15263_v31, 0  ;;  %v15466_v18 = vmov 0  ;;  %vm15470_vm7 = vnez %v15469_v1  ;;  %v15474_v15 = vmov 0  ;;  %v15494_v7 = vld [vmem:[#allocation112_spill] sm:$0xff] }
 0x16b   :  { %vm10570_vm0 = vmand %vm15465_vm5, %vm15464_vm1  ;;  %v15473_v59 = vsel %vm15470_vm7, %v15471_v10, %v15472_v6  ;;  %vm15478_vm3 = vcmp.ne.s32.totalorder %v9833_v50, 0  ;;  %vm15479_vm1 = vcmp.lt.s32.totalorder %v9833_v50, 0  ;;  %v15480_v31 = vmov 0 }
 0x16c   :  { %v15467_v18 = vsel %vm10570_vm0, 4294967295, %v15466_v18  ;;  %vm10579_vm11 = vcmp.lt.s32.totalorder %v15473_v59, 16  ;;  %vm10589_vm5 = vmand %vm15479_vm1, %vm15478_vm3  ;;  %v1543_v1 = vadd.s32 324, %v9782_v2  ;;  %v15483_v59 = vld [vmem:[#allocation20_spill] sm:$0xff]  ;;  %vm10598_vm8 = vcmp.lt.s32.totalorder %v1577_v16, 288 }
 0x16d   :  { %15468 = vst [vmem:[#allocation35_spill] sm:$0xff] %v15467_v18  ;;  %v15475_v15 = vsel %vm10579_vm11, 4294967295, %v15474_v15  ;;  %v15481_v31 = vsel %vm10589_vm5, 4294967295, %v15480_v31  ;;  %vm15484_vm7 = vnez %v15483_v59  ;;  %v15485_v6 = vmov 0  ;;  %v15490_v18 = vld [vmem:[#allocation129_spill] sm:$0xff]  ;;  %v15512_v59 = vld [vmem:[#allocation168_spill] sm:$0xff] }
 0x16e   :  { %15476 = vst [vmem:[#allocation36_spill] sm:$0xff] %v15475_v15  ;;  %15482 = vst [vmem:[#allocation37_spill] sm:$0xff] %v15481_v31  ;;  %v1580_v10 = vsel %vm15484_vm7, %v10440_v46, %v15109_v9  ;;  %v15486_v6 = vsel %vm10598_vm8, 4294967295, %v15485_v6  ;;  %v15491_v31 = vld [vmem:[#allocation32_spill] sm:$0xff]  ;;  %v15496_v9 = vmov 0  ;;  %v15499_v46 = vld [vmem:[#allocation13_spill] sm:$0xff] }
 0x16f   :  { %15487 = vst [vmem:[#allocation38_spill] sm:$0xff] %v15486_v6  ;;  %vm15492_vm15 = vnez %v15491_v31  ;;  %vm15500_vm0 = vcmp.ne.s32.totalorder %v9846_v25, 0  ;;  %vm15501_vm10 = vcmp.lt.s32.totalorder %v9846_v25, 0  ;;  %v15502_v16 = vmov 0  ;;  %v15510_v15 = vld [vmem:[#allocation193_spill] sm:$0xff]  ;;  %v15568_v6 = vld [vmem:[#allocation116_spill] sm:$0xff] }
 0x170   :  { %v15495_v0 = vsel %vm15492_vm15, %v15493_v57, %v15494_v7  ;;  %vm10623_vm2 = vmand %vm15501_vm10, %vm15500_vm0  ;;  %v1544_v31 = vadd.s32 324, %v9787_v36  ;;  %vm15504_vm15 = vnez %v15291_v23  ;;  %vm10632_vm1 = vcmp.lt.s32.totalorder %v1578_v3, 288  ;;  %v15509_v57 = vld [vmem:[#allocation130_spill] sm:$0xff] }
 0x171   :  { %vm10613_vm11 = vcmp.lt.s32.totalorder %v15495_v0, 16  ;;  %v15503_v16 = vsel %vm10623_vm2, 4294967295, %v15502_v16  ;;  %v1581_v7 = vsel %vm15504_vm15, %v10476_v20, %v15127_v37  ;;  %v15505_v0 = vmov 0 }
 0x172   :  { %v15497_v9 = vsel %vm10613_vm11, 4294967295, %v15496_v9  ;;  %v15506_v0 = vsel %vm10632_vm1, 4294967295, %v15505_v0  ;;  %vm15511_vm5 = vnez %v15510_v15  ;;  %v15515_v37 = vmov 0  ;;  %v15529_v15 = vld [vmem:[#allocation169_spill] sm:$0xff] }
 0x173   :  { %15498 = vst [vmem:[#allocation110_spill] sm:$0xff] %v15497_v9  ;;  %15507 = vst [vmem:[#allocation39_spill] sm:$0xff] %v15506_v0  ;;  %v15514_v9 = vsel %vm15511_vm5, %v15512_v59, %v15513_v26  ;;  %vm15518_vm11 = vcmp.ne.s32.totalorder %v9888_v28, 0  ;;  %vm15519_vm2 = vcmp.lt.s32.totalorder %v9888_v28, 0  ;;  %v1545_v20 = vadd.s32 324, %v9791_v21  ;;  %v15530_v59 = vld [vmem:[#allocation114_spill] sm:$0xff] }
 0x174   :  { %vm10647_vm6 = vcmp.lt.s32.totalorder %v15514_v9, 16  ;;  %vm10656_vm7 = vmand %vm15519_vm2, %vm15518_vm11  ;;  %vm15522_vm5 = vnez %v15307_v35  ;;  %vm10665_vm3 = vcmp.lt.s32.totalorder %v1579_v34, 288  ;;  %v15523_v3 = vmov 0  ;;  %v15527_v9 = vld [vmem:[#allocation40_spill] sm:$0xff] }
 0x175   :  { %v15516_v37 = vsel %vm10647_vm6, 4294967295, %v15515_v37  ;;  %v1582_v26 = vsel %vm15522_vm5, %v10516_v44, %v9773_v24  ;;  %v15524_v3 = vsel %vm10665_vm3, 4294967295, %v15523_v3  ;;  %vm15528_vm11 = vnez %v15527_v9  ;;  %v15548_v9 = vld [vmem:[#allocation194_spill] sm:$0xff] }
 0x176   :  { %15517 = vst [vmem:[#allocation41_spill] sm:$0xff] %v15516_v37  ;;  %15525 = vst [vmem:[#allocation108_spill] sm:$0xff] %v15524_v3  ;;  %v15531_v29 = vsel %vm15528_vm11, %v15529_v15, %v15530_v59  ;;  %v15532_v13 = vmov 0  ;;  %vm15535_vm0 = vcmp.ne.s32.totalorder %v9903_v42, 0  ;;  %vm15536_vm13 = vcmp.lt.s32.totalorder %v9903_v42, 0 }
 0x177   :  { %vm10678_vm2 = vcmp.lt.s32.totalorder %v15531_v29, 16  ;;  %vm10687_vm6 = vmand %vm15536_vm13, %vm15535_vm0  ;;  %v15537_v24 = vmov 0  ;;  %v1546_v35 = vadd.s32 324, %v9797_v52  ;;  %vm15539_vm15 = vnez %v15324_v14  ;;  %v15551_v14 = vld [vmem:[#allocation115_spill] sm:$0xff] }
 0x178   :  { %v15533_v13 = vsel %vm10678_vm2, 4294967295, %v15532_v13  ;;  %v15538_v24 = vsel %vm10687_vm6, 4294967295, %v15537_v24  ;;  %v1583_v44 = vsel %vm15539_vm15, %v1542_v32, %v9778_v58  ;;  %vm10695_vm11 = vcmp.lt.s32.totalorder %v1580_v10, 288  ;;  %v15550_v58 = vld [vmem:[#allocation170_spill] sm:$0xff] }
 0x179   :  { %15534 = vst [vmem:[#allocation29_spill] sm:$0xff] %v15533_v13  ;;  %v15540_v29 = vmov 0  ;;  %vm15544_vm13 = vcmp.ne.s32.totalorder %v15330_v61, 0  ;;  %vm15545_vm0 = vcmp.lt.s32.totalorder %v15330_v61, 0  ;;  %v15546_v34 = vmov 0 }
 0x17a   :  { %v15541_v29 = vsel %vm10695_vm11, 4294967295, %v15540_v29  ;;  %vm10707_vm9 = vmand %vm15545_vm0, %vm15544_vm13  ;;  %vm15549_vm2 = vnez %v15548_v9  ;;  %v15553_v10 = vmov 0  ;;  %vm15556_vm10 = vcmp.ne.s32.totalorder %v15339_v60, 0 }
 0x17b   :  { %15542 = vst [vmem:[#allocation61_spill] sm:$0xff] %v15541_v29  ;;  %v15547_v34 = vsel %vm10707_vm9, 4294967295, %v15546_v34  ;;  %v15552_v32 = vsel %vm15549_vm2, %v15550_v58, %v15551_v14  ;;  %vm15557_vm5 = vcmp.lt.s32.totalorder %v15339_v60, 0  ;;  %v15558_v15 = vmov 0  ;;  %v15565_v14 = vld [vmem:[#allocation45_spill] sm:$0xff]  ;;  %v15681_v29 = vld [vmem:[#allocation48_spill] sm:$0xff] }
 0x17c   :  { %vm10716_vm15 = vcmp.lt.s32.totalorder %v15552_v32, 16  ;;  %vm10725_vm8 = vmand %vm15557_vm5, %vm15556_vm10  ;;  %v1547_v59 = vadd.s32 324, %v9804_v39  ;;  %vm15560_vm13 = vnez %v15343_v54  ;;  %vm10733_vm2 = vcmp.lt.s32.totalorder %v1581_v7, 288  ;;  %v15567_v32 = vld [vmem:[#allocation172_spill] sm:$0xff] }
 0x17d   :  { %v15554_v10 = vsel %vm10716_vm15, 4294967295, %v15553_v10  ;;  %v15559_v15 = vsel %vm10725_vm8, 4294967295, %v15558_v15  ;;  %v1584_v9 = vsel %vm15560_vm13, %v1543_v1, %v9782_v2  ;;  %v15561_v58 = vmov 0 }
 0x17e   :  { %15555 = vst [vmem:[#allocation42_spill] sm:$0xff] %v15554_v10  ;;  %v15562_v58 = vsel %vm10733_vm2, 4294967295, %v15561_v58  ;;  %vm15566_vm5 = vnez %v15565_v14  ;;  %v15570_v56 = vmov 0  ;;  %vm15573_vm15 = vcmp.ne.s32.totalorder %v9940_v27, 0 }
 0x17f   :  { %15563 = vst [vmem:[#allocation66_spill] sm:$0xff] %v15562_v58  ;;  %v15569_v4 = vsel %vm15566_vm5, %v15567_v32, %v15568_v6  ;;  %vm15574_vm8 = vcmp.lt.s32.totalorder %v9940_v27, 0  ;;  %v1548_v54 = vadd.s32 324, %v9811_v40  ;;  %v1585_v1 = vsel %vm10367_vm14, %v1544_v31, %v9787_v36 }
 0x180   :  { %vm10746_vm10 = vcmp.lt.s32.totalorder %v15569_v4, 16  ;;  %vm10755_vm9 = vmand %vm15574_vm8, %vm15573_vm15  ;;  %vm10763_vm0 = vcmp.lt.s32.totalorder %v1582_v26, 288  ;;  %v15577_v4 = vmov 0  ;;  %vm15580_vm15 = vcmp.ne.s32.totalorder %v15372_v11, 0 }
 0x181   :  { %v15571_v56 = vsel %vm10746_vm10, 4294967295, %v15570_v56  ;;  %v15578_v4 = vsel %vm10763_vm0, 4294967295, %v15577_v4  ;;  %vm15581_vm6 = vcmp.lt.s32.totalorder %v15372_v11, 0  ;;  %v15582_v6 = vmov 0 }
 0x182   :  { %15572 = vst [vmem:[#allocation43_spill] sm:$0xff] %v15571_v56  ;;  %15579 = vst [vmem:[#allocation8_spill] sm:$0xff] %v15578_v4  ;;  %v1549_v36 = vadd.s32 324, %v9822_v5  ;;  %vm15584_vm14 = vnez %v15376_v30  ;;  %vm10784_vm1 = vcmp.lt.s32.totalorder %v1583_v44, 288  ;;  %v15585_v31 = vmov 0 }
 0x183   :  { %vm10776_vm13 = vmand %vm15581_vm6, %vm15580_vm15  ;;  %v1586_v51 = vsel %vm15584_vm14, %v1545_v20, %v9791_v21  ;;  %v15586_v31 = vsel %vm10784_vm1, 4294967295, %v15585_v31  ;;  %vm15589_vm15 = vcmp.ne.s32.totalorder %v15390_v49, 0  ;;  %vm15590_vm3 = vcmp.lt.s32.totalorder %v15390_v49, 0 }
 0x184   :  { %v15583_v6 = vsel %vm10776_vm13, 4294967295, %v15582_v6  ;;  %15587 = vst [vmem:[#allocation44_spill] sm:$0xff] %v15586_v31  ;;  %vm10797_vm12 = vmand %vm15590_vm3, %vm15589_vm15  ;;  %v15591_v7 = vmov 0  ;;  %v1550_v21 = vadd.s32 324, %v9833_v50  ;;  %v1587_v30 = vsel %vm10435_vm4, %v1546_v35, %v9797_v52  ;;  %v15635_v31 = vld [vmem:[#allocation128_spill] sm:$0xff] }
 0x185   :  { %v15592_v7 = vsel %vm10797_vm12, 4294967295, %v15591_v7  ;;  %vm10805_vm14 = vcmp.lt.s32.totalorder %v1584_v9, 288  ;;  %v15593_v20 = vmov 0  ;;  %vm15597_vm3 = vcmp.ne.s32.totalorder %v15399_v17, 0 }
 0x186   :  { %v15594_v20 = vsel %vm10805_vm14, 4294967295, %v15593_v20  ;;  %vm15598_vm15 = vcmp.lt.s32.totalorder %v15399_v17, 0  ;;  %v15599_v26 = vmov 0  ;;  %vm15601_vm4 = vcmp.ne.s32.totalorder %v9991_v45, 0 }
 0x187   :  { %15595 = vst [vmem:[#allocation67_spill] sm:$0xff] %v15594_v20  ;;  %vm10817_vm6 = vmand %vm15598_vm15, %vm15597_vm3  ;;  %vm15602_vm12 = vcmp.lt.s32.totalorder %v9991_v45, 0  ;;  %v15603_v52 = vmov 0  ;;  %v1551_v38 = vadd.s32 324, %v9846_v25  ;;  %vm15605_vm5 = vnez %v15411_v33  ;;  %v15648_v20 = vld [vmem:[#allocation37_spill] sm:$0xff] }
 0x188   :  { %v15600_v26 = vsel %vm10817_vm6, 4294967295, %v15599_v26  ;;  %vm10826_vm13 = vmand %vm15602_vm12, %vm15601_vm4  ;;  %v1588_v35 = vsel %vm15605_vm5, %v1547_v59, %v9804_v39  ;;  %vm10834_vm3 = vcmp.lt.s32.totalorder %v1585_v1, 288  ;;  %v15606_v44 = vmov 0 }
 0x189   :  { %v15604_v52 = vsel %vm10826_vm13, 4294967295, %v15603_v52  ;;  %v15607_v44 = vsel %vm10834_vm3, 4294967295, %v15606_v44  ;;  %vm15610_vm4 = vcmp.ne.s32.totalorder %v15430_v12, 0  ;;  %vm15611_vm11 = vcmp.lt.s32.totalorder %v15430_v12, 0 }
 0x18a   :  { %15608 = vst [vmem:[#allocation131_spill] sm:$0xff] %v15607_v44  ;;  %vm10847_vm2 = vmand %vm15611_vm11, %vm15610_vm4  ;;  %v15612_v9 = vmov 0  ;;  %v1552_v39 = vadd.s32 324, %v9888_v28  ;;  %vm15614_vm5 = vnez %v15434_v43  ;;  %vm10855_vm13 = vcmp.lt.s32.totalorder %v1586_v51, 288 }
 0x18b   :  { %v15613_v9 = vsel %vm10847_vm2, 4294967295, %v15612_v9  ;;  %v1589_v33 = vsel %vm15614_vm5, %v1548_v54, %v9811_v40  ;;  %v15615_v59 = vmov 0  ;;  %vm15620_vm11 = vcmp.ne.s32.totalorder %v15441_v48, 0  ;;  %v15628_v54 = vld [vmem:[#allocation33_spill] sm:$0xff] }
 0x18c   :  { %v15616_v59 = vsel %vm10855_vm13, 4294967295, %v15615_v59  ;;  %vm15621_vm4 = vcmp.lt.s32.totalorder %v15441_v48, 0  ;;  %v15622_v32 = vmov 0  ;;  %vm15624_vm5 = vcmp.ne.s32.totalorder %v15450_v53, 0 }
 0x18d   :  { %15617 = vst [vmem:[#allocation132_spill] sm:$0xff] %v15616_v59  ;;  %vm10867_vm12 = vmand %vm15621_vm4, %vm15620_vm11  ;;  %vm15625_vm2 = vcmp.lt.s32.totalorder %v15450_v53, 0  ;;  %v15626_v40 = vmov 0  ;;  %v1553_v43 = vadd.s32 324, %v9903_v42  ;;  %vm15629_vm15 = vnez %v15628_v54  ;;  %v15641_v54 = vld [vmem:[#allocation183_spill] sm:$0xff] }
 0x18e   :  { %v15623_v32 = vsel %vm10867_vm12, 4294967295, %v15622_v32  ;;  %vm10876_vm6 = vmand %vm15625_vm2, %vm15624_vm5  ;;  %v1590_v1 = vsel %vm15629_vm15, %v1549_v36, %v9822_v5  ;;  %vm10884_vm11 = vcmp.lt.s32.totalorder %v1587_v30, 288  ;;  %v15630_v51 = vmov 0  ;;  %v15642_v5 = vld [vmem:[#allocation35_spill] sm:$0xff] }
 0x18f   :  { %v15627_v40 = vsel %vm10876_vm6, 4294967295, %v15626_v40  ;;  %v15631_v51 = vsel %vm10884_vm11, 4294967295, %v15630_v51  ;;  %vm15636_vm2 = vcmp.ne.s32.totalorder %v15635_v31, 0  ;;  %vm15637_vm5 = vcmp.lt.s32.totalorder %v15635_v31, 0 }
 0x190   :  { %15632 = vst [vmem:[#allocation62_spill] sm:$0xff] %v15631_v51  ;;  %vm10896_vm0 = vmand %vm15637_vm5, %vm15636_vm2  ;;  %v15638_v4 = vmov 0  ;;  %vm15643_vm15 = vnez %v15642_v5  ;;  %vm15644_vm1 = vcmp.ne.s32.totalorder %v15477_v63, 0  ;;  %vm15645_vm6 = vcmp.lt.s32.totalorder %v15477_v63, 0  ;;  %v15659_v5 = vld [vmem:[#allocation47_spill] sm:$0xff] }
 0x191   :  { %v15639_v4 = vsel %vm10896_vm0, 4294967295, %v15638_v4  ;;  %v901_v36 = vsel %vm15643_vm15, %v15641_v54, %v15640_v47  ;;  %vm10908_vm12 = vmand %vm15645_vm6, %vm15644_vm1  ;;  %v15646_v30 = vmov 0  ;;  %v1554_v14 = vadd.s32 324, %v15339_v60 }
 0x192   :  { %v15647_v30 = vsel %vm10908_vm12, 4294967295, %v15646_v30  ;;  %vm15649_vm4 = vnez %v15648_v20  ;;  %vm10916_vm2 = vcmp.lt.s32.totalorder %v1588_v35, 288  ;;  %v15650_v41 = vmov 0 }
 0x193   :  { %v1591_v58 = vsel %vm15649_vm4, %v1550_v21, %v9833_v50  ;;  %v15651_v41 = vsel %vm10916_vm2, 4294967295, %v15650_v41  ;;  %vm15655_vm1 = vcmp.ne.s32.totalorder %v15490_v18, 0  ;;  %vm15656_vm6 = vcmp.lt.s32.totalorder %v15490_v18, 0  ;;  %v15661_v50 = vld [vmem:[#allocation173_spill] sm:$0xff] }
 0x194   :  { %15652 = vst [vmem:[#allocation46_spill] sm:$0xff] %v15651_v41  ;;  %vm10928_vm8 = vmand %vm15656_vm6, %vm15655_vm1  ;;  %v15657_v54 = vmov 0  ;;  %vm15660_vm14 = vnez %v15659_v5  ;;  %v15662_v21 = vld [vmem:[#allocation117_spill] sm:$0xff]  ;;  %v15664_v35 = vmov 0  ;;  %vm15667_vm12 = vcmp.ne.s32.totalorder %v15499_v46, 0 }
 0x195   :  { %v15658_v54 = vsel %vm10928_vm8, 4294967295, %v15657_v54  ;;  %v15663_v20 = vsel %vm15660_vm14, %v15661_v50, %v15662_v21  ;;  %vm15668_vm5 = vcmp.lt.s32.totalorder %v15499_v46, 0  ;;  %v15669_v47 = vmov 0 }
 0x196   :  { %vm10937_vm4 = vcmp.lt.s32.totalorder %v15663_v20, 16  ;;  %vm10945_vm15 = vmand %vm15668_vm5, %vm15667_vm12  ;;  %v1555_v44 = vadd.s32 324, %v9940_v27  ;;  %vm15671_vm1 = vnez %v15503_v16  ;;  %vm10953_vm6 = vcmp.lt.s32.totalorder %v1589_v33, 288  ;;  %v15684_v16 = vld [vmem:[#allocation118_spill] sm:$0xff] }
 0x197   :  { %v15665_v35 = vsel %vm10937_vm4, 4294967295, %v15664_v35  ;;  %v15670_v47 = vsel %vm10945_vm15, 4294967295, %v15669_v47  ;;  %v1592_v5 = vsel %vm15671_vm1, %v1551_v38, %v9846_v25  ;;  %v15672_v50 = vmov 0  ;;  %v15683_v25 = vld [vmem:[#allocation175_spill] sm:$0xff] }
 0x198   :  { %15666 = vst [vmem:[#allocation50_spill] sm:$0xff] %v15665_v35  ;;  %v15673_v50 = vsel %vm10953_vm6, 4294967295, %v15672_v50  ;;  %vm15677_vm12 = vcmp.ne.s32.totalorder %v15509_v57, 0  ;;  %vm15678_vm5 = vcmp.lt.s32.totalorder %v15509_v57, 0  ;;  %vm15682_vm8 = vnez %v15681_v29 }
 0x199   :  { %15674 = vst [vmem:[#allocation9_spill] sm:$0xff] %v15673_v50  ;;  %vm10965_vm15 = vmand %vm15678_vm5, %vm15677_vm12  ;;  %v15685_v38 = vsel %vm15682_vm8, %v15683_v25, %v15684_v16  ;;  %v15686_v33 = vmov 0  ;;  %vm15689_vm0 = vcmp.ne.s32.totalorder %v10504_v55, 0  ;;  %vm15690_vm14 = vcmp.lt.s32.totalorder %v10504_v55, 0  ;;  %v15697_v16 = vld [vmem:[#allocation49_spill] sm:$0xff] }
 0x19a   :  { %vm10974_vm1 = vcmp.lt.s32.totalorder %v15685_v38, 16  ;;  %vm10982_vm3 = vmand %vm15690_vm14, %vm15689_vm0  ;;  %v15691_v21 = vmov 0  ;;  %v1556_v59 = vadd.s32 324, %v15372_v11  ;;  %v1593_v29 = vsel %vm10656_vm7, %v1552_v39, %v9888_v28  ;;  %v15699_v38 = vld [vmem:[#allocation176_spill] sm:$0xff] }
 0x19b   :  { %v15687_v33 = vsel %vm10974_vm1, 4294967295, %v15686_v33  ;;  %v15692_v21 = vsel %vm10982_vm3, 4294967295, %v15691_v21  ;;  %vm10990_vm12 = vcmp.lt.s32.totalorder %v1590_v1, 288  ;;  %v15693_v25 = vmov 0 }
 0x19c   :  { %15688 = vst [vmem:[#allocation134_spill] sm:$0xff] %v15687_v33  ;;  %v15694_v25 = vsel %vm10990_vm12, 4294967295, %v15693_v25  ;;  %vm15698_vm0 = vnez %v15697_v16  ;;  %v15702_v8 = vmov 0  ;;  %v1557_v28 = vadd.s32 324, %v15390_v49 }
 0x19d   :  { %15695 = vst [vmem:[#allocation133_spill] sm:$0xff] %v15694_v25  ;;  %v15701_v3 = vsel %vm15698_vm0, %v15699_v38, %v15700_v62  ;;  %vm15705_vm7 = vnez %v15538_v24  ;;  %vm11011_vm13 = vcmp.lt.s32.totalorder %v1591_v58, 288  ;;  %v15706_v39 = vmov 0  ;;  %v15710_v62 = vld [vmem:[#allocation184_spill] sm:$0xff]  ;;  %v15730_v38 = vld [vmem:[#allocation178_spill] sm:$0xff] }
 0x19e   :  { %vm11003_vm14 = vcmp.lt.s32.totalorder %v15701_v3, 16  ;;  %v1594_v23 = vsel %vm15705_vm7, %v1553_v43, %v9903_v42  ;;  %v15707_v39 = vsel %vm11011_vm13, 4294967295, %v15706_v39  ;;  %vm15711_vm0 = vnez %v15547_v34  ;;  %v15717_v58 = vld [vmem:[#allocation28_spill] sm:$0xff]  ;;  %v15719_v43 = vld [vmem:[#allocation177_spill] sm:$0xff] }
 0x19f   :  { %v15703_v8 = vsel %vm11003_vm14, 4294967295, %v15702_v8  ;;  %15708 = vst [vmem:[#allocation52_spill] sm:$0xff] %v15707_v39  ;;  %v902_v3 = vsel %vm15711_vm0, %v15710_v62, %v15330_v61  ;;  %v1558_v1 = vadd.s32 324, %v9991_v45  ;;  %vm15712_vm11 = vnez %v15559_v15  ;;  %v15720_v34 = vld [vmem:[#allocation120_spill] sm:$0xff]  ;;  %v15731_v62 = vld [vmem:[#allocation121_spill] sm:$0xff] }
 0x1a0   :  { %15704 = vst [vmem:[#allocation63_spill] sm:$0xff] %v15703_v8  ;;  %v1595_v42 = vsel %vm15712_vm11, %v1554_v14, %v15339_v60  ;;  %vm11027_vm7 = vcmp.lt.s32.totalorder %v1592_v5, 288  ;;  %v15713_v24 = vmov 0  ;;  %vm15718_vm5 = vnez %v15717_v58  ;;  %v15728_v5 = vld [vmem:[#allocation51_spill] sm:$0xff] }
 0x1a1   :  { %v15714_v24 = vsel %vm11027_vm7, 4294967295, %v15713_v24  ;;  %v15721_v61 = vsel %vm15718_vm5, %v15719_v43, %v15720_v34  ;;  %v15722_v16 = vmov 0  ;;  %v1559_v60 = vadd.s32 324, %v15430_v12  ;;  %v15742_v34 = vld [vmem:[#allocation180_spill] sm:$0xff] }
 0x1a2   :  { %15715 = vst [vmem:[#allocation135_spill] sm:$0xff] %v15714_v24  ;;  %vm11040_vm0 = vcmp.lt.s32.totalorder %v15721_v61, 16  ;;  %v1596_v15 = vsel %vm10755_vm9, %v1555_v44, %v9940_v27  ;;  %vm11048_vm11 = vcmp.lt.s32.totalorder %v1593_v29, 288  ;;  %v15725_v14 = vmov 0  ;;  %v15740_v29 = vld [vmem:[#allocation53_spill] sm:$0xff]  ;;  %v15743_v61 = vld [vmem:[#allocation122_spill] sm:$0xff] }
 0x1a3   :  { %v15723_v16 = vsel %vm11040_vm0, 4294967295, %v15722_v16  ;;  %v15726_v14 = vsel %vm11048_vm11, 4294967295, %v15725_v14  ;;  %vm15729_vm5 = vnez %v15728_v5  ;;  %v15733_v43 = vmov 0 }
 0x1a4   :  { %15724 = vst [vmem:[#allocation136_spill] sm:$0xff] %v15723_v16  ;;  %15727 = vst [vmem:[#allocation64_spill] sm:$0xff] %v15726_v14  ;;  %v15732_v58 = vsel %vm15729_vm5, %v15730_v38, %v15731_v62  ;;  %v1560_v27 = vadd.s32 324, %v15450_v53  ;;  %vm15736_vm9 = vnez %v15583_v6  ;;  %vm11069_vm6 = vcmp.lt.s32.totalorder %v1594_v23, 288  ;;  %v15752_v23 = vld [vmem:[#allocation185_spill] sm:$0xff] }
 0x1a5   :  { %vm11061_vm8 = vcmp.lt.s32.totalorder %v15732_v58, 16  ;;  %v1597_v2 = vsel %vm15736_vm9, %v1556_v59, %v15372_v11  ;;  %v15737_v44 = vmov 0  ;;  %vm15741_vm5 = vnez %v15740_v29 }
 0x1a6   :  { %v15734_v43 = vsel %vm11061_vm8, 4294967295, %v15733_v43  ;;  %v15738_v44 = vsel %vm11069_vm6, 4294967295, %v15737_v44  ;;  %v15744_v5 = vsel %vm15741_vm5, %v15742_v34, %v15743_v61  ;;  %v15745_v38 = vmov 0 }
 0x1a7   :  { %15735 = vst [vmem:[#allocation54_spill] sm:$0xff] %v15734_v43  ;;  %15739 = vst [vmem:[#allocation55_spill] sm:$0xff] %v15738_v44  ;;  %vm11082_vm12 = vcmp.lt.s32.totalorder %v15744_v5, 16  ;;  %v1561_v11 = vadd.s32 324, %v15477_v63  ;;  %vm15748_vm9 = vnez %v15592_v7  ;;  %vm11090_vm10 = vcmp.lt.s32.totalorder %v1595_v42, 288  ;;  %v15760_v42 = vld [vmem:[#allocation181_spill] sm:$0xff] }
 0x1a8   :  { %v15746_v38 = vsel %vm11082_vm12, 4294967295, %v15745_v38  ;;  %v1598_v6 = vsel %vm15748_vm9, %v1557_v28, %v15390_v49  ;;  %v15749_v59 = vmov 0  ;;  %vm15753_vm5 = vnez %v15600_v26  ;;  %v15758_v28 = vld [vmem:[#allocation60_spill] sm:$0xff]  ;;  %v15761_v26 = vld [vmem:[#allocation123_spill] sm:$0xff] }
 0x1a9   :  { %15747 = vst [vmem:[#allocation140_spill] sm:$0xff] %v15746_v38  ;;  %v15750_v59 = vsel %vm11090_vm10, 4294967295, %v15749_v59  ;;  %v903_v62 = vsel %vm15753_vm5, %v15752_v23, %v15399_v17  ;;  %v1562_v58 = vadd.s32 324, %v15499_v46  ;;  %vm15754_vm13 = vnez %v15604_v52 }
 0x1aa   :  { %15751 = vst [vmem:[#allocation137_spill] sm:$0xff] %v15750_v59  ;;  %v1599_v49 = vsel %vm15754_vm13, %v1558_v1, %v9991_v45  ;;  %vm11106_vm9 = vcmp.lt.s32.totalorder %v1596_v15, 288  ;;  %v15755_v7 = vmov 0  ;;  %vm15759_vm7 = vnez %v15758_v28  ;;  %v15770_v15 = vld [vmem:[#allocation186_spill] sm:$0xff] }
 0x1ab   :  { %v15756_v7 = vsel %vm11106_vm9, 4294967295, %v15755_v7  ;;  %v15762_v17 = vsel %vm15759_vm7, %v15760_v42, %v15761_v26  ;;  %v15763_v29 = vmov 0  ;;  %v1563_v45 = vadd.s32 324, %v10504_v55 }
 0x1ac   :  { %15757 = vst [vmem:[#allocation65_spill] sm:$0xff] %v15756_v7  ;;  %vm11119_vm5 = vcmp.lt.s32.totalorder %v15762_v17, 16  ;;  %vm15766_vm13 = vnez %v15613_v9  ;;  %vm11127_vm1 = vcmp.lt.s32.totalorder %v1597_v2, 288  ;;  %v15767_v1 = vmov 0 }
 0x1ad   :  { %v15764_v29 = vsel %vm11119_vm5, 4294967295, %v15763_v29  ;;  %v1600_v52 = vsel %vm15766_vm13, %v1559_v60, %v15430_v12  ;;  %v15768_v1 = vsel %vm11127_vm1, 4294967295, %v15767_v1  ;;  %vm15771_vm7 = vnez %v15623_v32  ;;  %v15779_v32 = vld [vmem:[#allocation188_spill] sm:$0xff] }
 0x1ae   :  { %15765 = vst [vmem:[#allocation56_spill] sm:$0xff] %v15764_v29  ;;  %15769 = vst [vmem:[#allocation57_spill] sm:$0xff] %v15768_v1  ;;  %v904_v34 = vsel %vm15771_vm7, %v15770_v15, %v15441_v48  ;;  %vm11139_vm11 = vcmp.lt.s32.totalorder %v901_v36, 16  ;;  %v15772_v61 = vmov 0  ;;  %vm15775_vm13 = vnez %v15627_v40 }
 0x1af   :  { %v15773_v61 = vsel %vm11139_vm11, 4294967295, %v15772_v61  ;;  %v1601_v12 = vsel %vm15775_vm13, %v1560_v27, %v15450_v53  ;;  %vm11146_vm14 = vcmp.lt.s32.totalorder %v1598_v6, 288  ;;  %v15776_v9 = vmov 0 }
 0x1b0   :  { %15774 = vst [vmem:[#allocation141_spill] sm:$0xff] %v15773_v61  ;;  %v15777_v9 = vsel %vm11146_vm14, 4294967295, %v15776_v9  ;;  %vm15780_vm7 = vnez %v15639_v4  ;;  %vm11158_vm6 = vcmp.lt.s32.totalorder %v902_v3, 16  ;;  %v15781_v36 = vmov 0  ;;  %v15788_v4 = vld [vmem:[#allocation189_spill] sm:$0xff] }
 0x1b1   :  { %15778 = vst [vmem:[#allocation138_spill] sm:$0xff] %v15777_v9  ;;  %v905_v48 = vsel %vm15780_vm7, %v15779_v32, %v15635_v31  ;;  %v15782_v36 = vsel %vm11158_vm6, 4294967295, %v15781_v36  ;;  %vm15784_vm13 = vnez %v15647_v30  ;;  %vm11165_vm0 = vcmp.lt.s32.totalorder %v1599_v49, 288 }
 0x1b2   :  { %15783 = vst [vmem:[#allocation72_spill] sm:$0xff] %v15782_v36  ;;  %v1602_v53 = vsel %vm15784_vm13, %v1561_v11, %v15477_v63  ;;  %v15785_v40 = vmov 0  ;;  %vm15789_vm7 = vnez %v15658_v54  ;;  %vm11177_vm10 = vcmp.lt.s32.totalorder %v903_v62, 16  ;;  %v15797_v54 = vld [vmem:[#allocation190_spill] sm:$0xff] }
 0x1b3   :  { %v15786_v40 = vsel %vm11165_vm0, 4294967295, %v15785_v40  ;;  %v906_v31 = vsel %vm15789_vm7, %v15788_v4, %v15490_v18  ;;  %v15790_v3 = vmov 0  ;;  %vm15793_vm13 = vnez %v15670_v47 }
 0x1b4   :  { %15787 = vst [vmem:[#allocation58_spill] sm:$0xff] %v15786_v40  ;;  %v15791_v3 = vsel %vm11177_vm10, 4294967295, %v15790_v3  ;;  %v1603_v63 = vsel %vm15793_vm13, %v1562_v58, %v15499_v46  ;;  %vm11184_vm8 = vcmp.lt.s32.totalorder %v1600_v52, 288  ;;  %v15794_v30 = vmov 0 }
 0x1b5   :  { %15792 = vst [vmem:[#allocation142_spill] sm:$0xff] %v15791_v3  ;;  %v15795_v30 = vsel %vm11184_vm8, 4294967295, %v15794_v30  ;;  %v907_v18 = vsel %vm10965_vm15, %v15797_v54, %v15509_v57  ;;  %vm11196_vm7 = vcmp.lt.s32.totalorder %v904_v34, 16  ;;  %v15798_v60 = vmov 0 }
 0x1b6   :  { %15796 = vst [vmem:[#allocation139_spill] sm:$0xff] %v15795_v30  ;;  %v15799_v60 = vsel %vm11196_vm7, 4294967295, %v15798_v60  ;;  %vm15801_vm13 = vnez %v15692_v21  ;;  %vm11203_vm9 = vcmp.lt.s32.totalorder %v1601_v12, 288  ;;  %v15802_v47 = vmov 0 }
 0x1b7   :  { %15800 = vst [vmem:[#allocation75_spill] sm:$0xff] %v15799_v60  ;;  %v1604_v46 = vsel %vm15801_vm13, %v1563_v45, %v10504_v55  ;;  %v15803_v47 = vsel %vm11203_vm9, 4294967295, %v15802_v47  ;;  %vm11211_vm1 = vcmp.lt.s32.totalorder %v905_v48, 16  ;;  %v15805_v20 = vmov 0 }
 0x1b8   :  { %15804 = vst [vmem:[#allocation143_spill] sm:$0xff] %v15803_v47  ;;  %v15806_v20 = vsel %vm11211_vm1, 4294967295, %v15805_v20  ;;  %vm11215_vm15 = vcmp.lt.s32.totalorder %v1602_v53, 288  ;;  %v15808_v57 = vmov 0  ;;  %vm11223_vm5 = vcmp.lt.s32.totalorder %v906_v31, 16 }
 0x1b9   :  { %15807 = vst [vmem:[#allocation144_spill] sm:$0xff] %v15806_v20  ;;  %v15809_v57 = vsel %vm11215_vm15, 4294967295, %v15808_v57  ;;  %v15811_v55 = vmov 0  ;;  %vm11227_vm12 = vcmp.lt.s32.totalorder %v1603_v63, 288  ;;  %v15814_v21 = vmov 0 }
 0x1ba   :  { %15810 = vst [vmem:[#allocation76_spill] sm:$0xff] %v15809_v57  ;;  %v15812_v55 = vsel %vm11223_vm5, 4294967295, %v15811_v55  ;;  %v15815_v21 = vsel %vm11227_vm12, 4294967295, %v15814_v21  ;;  %vm11235_vm14 = vcmp.lt.s32.totalorder %v907_v18, 16  ;;  %v15817_v27 = vmov 0 }
 0x1bb   :  { %15813 = vst [vmem:[#allocation148_spill] sm:$0xff] %v15812_v55  ;;  %15816 = vst [vmem:[#allocation145_spill] sm:$0xff] %v15815_v21  ;;  %v15818_v27 = vsel %vm11235_vm14, 4294967295, %v15817_v27  ;;  %vm11239_vm11 = vcmp.lt.s32.totalorder %v1604_v46, 288  ;;  %v15820_v2 = vmov 0 }
 0x1bc   :  { %15819 = vst [vmem:[#allocation77_spill] sm:$0xff] %v15818_v27  ;;  %v15821_v2 = vsel %vm11239_vm11, 4294967295, %v15820_v2 }
 0x1bd   :  { %15822 = vst [vmem:[#allocation149_spill] sm:$0xff] %v15821_v2 }
 0x1be LB: > { %v1693_v5 = vld [vmem:[#allocation2] sm:$0xf]  ;;  %v11264_v11 = vld [vmem:[#allocation2 + $0x4] sm:$0xf]  ;;  %v14484_v6 = vmov 0   ;;  %s6959_s16 = smul.u32 384, %s7858_s0  ;;  %s7858_s0 = sphi %s11259_s0, %s1692_s0  }
 0x1bf   : > { %2918 = vmatprep.subr.bf16.mxu1 %v14484_v6  ;;  %3118 = vmatprep.subr.bf16.mxu0 %v14484_v6  ;;  %v11268_v23 = vld [vmem:[#allocation2 + $0x8] sm:$0xf]  ;;  %v1696_v62 = vld [vmem:[#allocation2 + $0xc] sm:$0xf]  ;;  %v11271_v58 = vcombine.low %v1693_v5, %v11264_v11  ;;  %v1697_v28 = vld [vmem:[#allocation2 + $0x10] sm:$0xf] }
 0x1c0   : > { %v11275_v49 = vcombine.low %v11268_v23, %v1696_v62  ;;  %v1737_v42 = vld [vmem:[#allocation2 + $0x4] sm:$0xe]  ;;  %vm14528_vm13 = vsmask.f32 7424  ;;  %v11281_v15 = vcombine.low %v1696_v62, %v1697_v28  ;;  %vm14529_vm6 = vcmask 1046528   ;;  %s11283_s17 = scalar_lea.vmem [#allocation3], %s6959_s16 }
 0x1c1   : > { %v1871_v26 = vshrl.u32 %v11271_v58, 16  ;;  %v1873_v17 = vshll.u32 %v11271_v58, 16  ;;  %v6727_v45 = vcombine.low %v1737_v42, %v11268_v23  ;;  %v7634_v34 = vld [vmem:[%s11283_s17] sm:$0xff]   ;;  %v7636_v53 = vld [vmem:[%s11283_s17 + $0x8] sm:$0xff]   ;;  %v7638_v5 = vld [vmem:[%s11283_s17 + $0x10] sm:$0xff]   ;;  %v6706_v57 = vcombine.low %v11264_v11, %v11268_v23  ;;  %s7865_s18 = smov 64  }
 0x1c2   : > { %v1878_v52 = vshll.u32 %v11275_v49, 16  ;;  %v11287_v32 = vld [vmem:[%s11283_s17 + $0x80] sm:$0xff]   ;;  %2919 = vmatpush1.bf16.msra.mxu1 %v7634_v34  ;;  %v11295_v63 = vld [vmem:[%s11283_s17 + $0x88] sm:$0xff]   ;;  %v14458_v54 = vrot.slane %v11281_v15, 1  ;;  %v11308_v62 = vld [vmem:[%s11283_s17 + $0x90] sm:$0xff]   ;;  %v2091_v40 = vshll.u32 %v11281_v15, 16 }
 0x1c3   : > { %v1875_v12 = vrot.slane %v1873_v17, 1  ;;  %v2275_v31 = vrot.slane %v6727_v45, 1  ;;  %3119 = vmatpush1.bf16.msra.mxu0 %v11287_v32  ;;  %2920 = vmatprep.subr.bf16.mxu1 %v14484_v6  ;;  %v11311_v42 = vld [vmem:[#allocation2 + $0x14] sm:$0xf]  ;;  %v11317_v17 = vld [vmem:[%s11283_s17 + $0x98] sm:$0xff]   ;;  %v7642_v45 = vld [vmem:[%s11283_s17 + $0x20] sm:$0xff]  }
 0x1c4   : > { %v11289_v48 = vrot.slane %v1878_v52, 1  ;;  %3120 = vmatprep.subr.bf16.mxu0 %v14484_v6  ;;  %v11322_v52 = vcombine.low %v1697_v28, %v11311_v42  ;;  %v11327_v34 = vld [vmem:[%s11283_s17 + $0xa0] sm:$0xff]   ;;  %v11335_v28 = vld [vmem:[#allocation2 + $0x18] sm:$0xf]  ;;  %v7660_v20 = vld [vmem:[%s11283_s17 + $0x68] sm:$0xff]   ;;  %v2086_v21 = vshll.u32 %v6706_v57, 16 }
 0x1c5   : > { %v1876_v4 = vor.u32 %v1875_v12, %v1871_v26  ;;  %v2277_v46 = vsel %vm14529_vm6, %v2275_v31, %v14458_v54  ;;  %v7640_v26 = vld [vmem:[%s11283_s17 + $0x18] sm:$0xff]   ;;  %v7662_v11 = vld [vmem:[%s11283_s17 + $0x70] sm:$0xff]   ;;  %v2084_v23 = vshrl.u32 %v6706_v57, 16  ;;  %v1882_v36 = vshrl.u32 %v11275_v49, 16  ;;  %v1701_v38 = vld [vmem:[#allocation2 + $0x20] sm:$0xf] }
 0x1c6   : > { %2921 = vmatpush1.bf16.msra.mxu1 %v7636_v53  ;;  %3150 = vmatprep.mubr.bf16.mxu0 %v2277_v46  ;;  %v11330_v12 = vld [vmem:[#allocation2 + $0x1c] sm:$0xf]  ;;  %v14459_v53 = vshrl.u32 %v11322_v52, 16  ;;  %v14460_v31 = vshll.u32 %v11322_v52, 16  ;;  %v2088_v55 = vrot.slane %v2086_v21, 1  ;;  %v11430_v30 = vcombine.low %v11311_v42, %v11335_v28  ;;  %v7685_v0 = vld [vmem:[%s11283_s17 + $0x130] sm:$0xff]  }
 0x1c7   : > { %v1881_v18 = vsel %vm14528_vm13, %v1876_v4, %v11289_v48  ;;  %3121 = vmatpush1.bf16.msra.mxu0 %v11295_v63  ;;  %2922 = vmatprep.subr.bf16.mxu1 %v14484_v6  ;;  %v7644_v4 = vld [vmem:[%s11283_s17 + $0x28] sm:$0xff]   ;;  %v11400_v27 = vld [vmem:[%s11283_s17 + $0xd8] sm:$0xff]   ;;  %v2093_v3 = vrot.slane %v2091_v40, 1  ;;  %v1884_v9 = vor.u32 %v1882_v36, %v11289_v48  ;;  %v15823_v61 = vshll.u32 %v11322_v52, 16  ;;  %v7671_v40 = vld [vmem:[%s11283_s17 + $0x100] sm:$0xff]   ;;  %s1692_s0 = sadd.s32 1, %s7858_s0  }
 0x1c8   : > { %2950 = vmatprep.mubr.bf16.mxu1 %v1881_v18  ;;  %3122 = vmatprep.subr.bf16.mxu0 %v14484_v6  ;;  %v11340_v18 = vld [vmem:[%s11283_s17 + $0xa8] sm:$0xff]   ;;  %v2420_v46 = vrot.slane %v14459_v53, 1  ;;  %v11357_v53 = vld [vmem:[%s11283_s17 + $0xb0] sm:$0xff]   ;;  %v11436_v57 = vld [vmem:[%s11283_s17 + $0xf8] sm:$0xff]   ;;  %v2089_v21 = vor.u32 %v2088_v55, %v2084_v23  ;;  %v2278_v42 = vrot.slane %v11430_v30, 1  ;;  %v2095_v29 = vshrl.u32 %v11281_v15, 16 }
 0x1c9   : > { %v1888_v1 = vrot.slane %v15823_v61, 1  ;;  %v2099_v7 = vshll.u32 %v11430_v30, 16  ;;  %v15824_v48 = vrot.slane %v11281_v15, 1  ;;  %v1703_v16 = vld [vmem:[#allocation2 + $0x28] sm:$0xf]  ;;  %p1689_p8 = scmp.ge.s32.totalorder %s1692_s0, 19  }
 0x1ca   : > { %2923 = vmatpush1.bf16.msra.mxu1 %v7638_v5  ;;  %v2421_v5 = vrot.slane %v14460_v31, 2  ;;  %v2094_v36 = vsel %vm14528_vm13, %v2089_v21, %v2093_v3  ;;  %v1702_v21 = vld [vmem:[#allocation2 + $0x24] sm:$0xf]  ;;  %v11470_v14 = vld [vmem:[#allocation2 + $0x2c] sm:$0xf] }
 0x1cb   : > { %3123 = vmatpush1.bf16.msra.mxu0 %v11308_v62  ;;  %2924 = vmatprep.subr.bf16.mxu1 %v14484_v6  ;;  %v1889_v61 = vsel %vm14528_vm13, %v1884_v9, %v1888_v1  ;;  %v2279_v23 = vsel %vm14529_vm6, %v15824_v48, %v2278_v42  ;;  %v2097_v9 = vor.u32 %v2095_v29, %v2093_v3  ;;  %v2101_v59 = vrot.slane %v2099_v7, 1  ;;  %v11510_v8 = vld [vmem:[#allocation2 + $0x3c] sm:$0xf]  ;;  %v11550_v56 = vld [vmem:[#allocation2 + $0x40] sm:$0xf] }
 0x1cc   : > { %3124 = vmatprep.subr.bf16.mxu0 %v14484_v6  ;;  %v11352_v54 = vor.u32 %v2421_v5, %v2420_v46  ;;  %v11368_v5 = vld [vmem:[%s11283_s17 + $0xb8] sm:$0xff]   ;;  %v15826_v48 = vshrl.u32 %v11322_v52, 16  ;;  %v11475_v29 = vcombine.low %v1701_v38, %v1702_v21  ;;  %v15827_v3 = vmov 0   ;;  %v11565_v41 = vld [vmem:[#allocation2 + $0x4c] sm:$0xf] }
 0x1cd   : > { %vm14527_vm0 = vsmask.f32 6400 }
 0x1ce   : > { %2925 = vmatpush1.bf16.msra.mxu1 %v7640_v26  ;;  %v11349_v26 = vcombine.low %v11335_v28, %v11330_v12  ;;  %v11443_v28 = vld [vmem:[#allocation2 + $0x5c] sm:$0xf] }
 0x1cf   : > { %3125 = vmatpush1.bf16.msra.mxu0 %v11317_v17  ;;  %2926 = vmatprep.subr.bf16.mxu1 %v14484_v6 }
 0x1d0   : > { %3126 = vmatprep.subr.bf16.mxu0 %v14484_v6  ;;  %v14464_v31 = vshrl.u32 %v11349_v26, 16  ;;  %v14465_v47 = vshll.u32 %v11349_v26, 16  ;;  %v15829_v24 = vshrl.u32 %v11349_v26, 16 }
 0x1d2   : > { %2927 = vmatpush1.bf16.msra.mxu1 %v7642_v45  ;;  %v7646_v45 = vld [vmem:[%s11283_s17 + $0x30] sm:$0xff]   ;;  %v2424_v46 = vrot.slane %v14464_v31, 1  ;;  %v2425_v60 = vrot.slane %v14465_v47, 2  ;;  %v11379_v31 = vld [vmem:[%s11283_s17 + $0xc0] sm:$0xff]   ;;  %v7652_v47 = vld [vmem:[%s11283_s17 + $0x48] sm:$0xff]  }
 0x1d3   : > { %3127 = vmatpush1.bf16.msra.mxu0 %v11327_v34  ;;  %2928 = vmatprep.subr.bf16.mxu1 %v14484_v6 }
 0x1d4   : > { %3128 = vmatprep.subr.bf16.mxu0 %v14484_v6  ;;  %v11373_v2 = vor.u32 %v2425_v60, %v2424_v46  ;;  %v11386_v60 = vld [vmem:[%s11283_s17 + $0xc8] sm:$0xff]   ;;  %v11393_v46 = vld [vmem:[%s11283_s17 + $0xd0] sm:$0xff]  }
 0x1d6   : > { %2929 = vmatpush1.bf16.msra.mxu1 %v7644_v4  ;;  %v7648_v4 = vld [vmem:[%s11283_s17 + $0x38] sm:$0xff]  }
 0x1d7   : > { %3129 = vmatpush1.bf16.msra.mxu0 %v11340_v18  ;;  %2930 = vmatprep.subr.bf16.mxu1 %v14484_v6 }
 0x1d8   : > { %3130 = vmatprep.subr.bf16.mxu0 %v14484_v6 }
 0x1da   : > { %2931 = vmatpush1.bf16.msra.mxu1 %v7646_v45  ;;  %v7650_v45 = vld [vmem:[%s11283_s17 + $0x40] sm:$0xff]  }
 0x1db   : > { %3131 = vmatpush1.bf16.msra.mxu0 %v11357_v53  ;;  %2932 = vmatprep.subr.bf16.mxu1 %v14484_v6 }
 0x1dc   : > { %3132 = vmatprep.subr.bf16.mxu0 %v14484_v6 }
 0x1de   : > { %2933 = vmatpush1.bf16.msra.mxu1 %v7648_v4  ;;  %v7654_v4 = vld [vmem:[%s11283_s17 + $0x50] sm:$0xff]  }
 0x1df   : > { %3133 = vmatpush1.bf16.msra.mxu0 %v11368_v5  ;;  %2934 = vmatprep.subr.bf16.mxu1 %v14484_v6 }
 0x1e0   : > { %3134 = vmatprep.subr.bf16.mxu0 %v14484_v6 }
 0x1e2   : > { %2935 = vmatpush1.bf16.msra.mxu1 %v7650_v45  ;;  %v7656_v45 = vld [vmem:[%s11283_s17 + $0x58] sm:$0xff]  }
 0x1e3   : > { %3135 = vmatpush1.bf16.msra.mxu0 %v11379_v31  ;;  %2936 = vmatprep.subr.bf16.mxu1 %v14484_v6 }
 0x1e4   : > { %3136 = vmatprep.subr.bf16.mxu0 %v14484_v6 }
 0x1e6   : > { %2937 = vmatpush1.bf16.msra.mxu1 %v7652_v47  ;;  %v7658_v47 = vld [vmem:[%s11283_s17 + $0x60] sm:$0xff]  }
 0x1e7   : > { %3137 = vmatpush1.bf16.msra.mxu0 %v11386_v60  ;;  %2938 = vmatprep.subr.bf16.mxu1 %v14484_v6 }
 0x1e8   : > { %3138 = vmatprep.subr.bf16.mxu0 %v14484_v6 }
 0x1ea   : > { %2939 = vmatpush1.bf16.msra.mxu1 %v7654_v4  ;;  %v11409_v4 = vld [vmem:[%s11283_s17 + $0xe0] sm:$0xff]  }
 0x1eb   : > { %3139 = vmatpush1.bf16.msra.mxu0 %v11393_v46  ;;  %2940 = vmatprep.subr.bf16.mxu1 %v14484_v6 }
 0x1ec   : > { %3140 = vmatprep.subr.bf16.mxu0 %v14484_v6 }
 0x1ee   : > { %2941 = vmatpush1.bf16.msra.mxu1 %v7656_v45  ;;  %v11416_v45 = vld [vmem:[%s11283_s17 + $0xe8] sm:$0xff]  }
 0x1ef   : > { %3141 = vmatpush1.bf16.msra.mxu0 %v11400_v27  ;;  %2942 = vmatprep.subr.bf16.mxu1 %v14484_v6 }
 0x1f0   : > { %3142 = vmatprep.subr.bf16.mxu0 %v14484_v6 }
 0x1f2   : > { %2943 = vmatpush1.bf16.msra.mxu1 %v7658_v47  ;;  %v11424_v47 = vld [vmem:[%s11283_s17 + $0xf0] sm:$0xff]  }
 0x1f3   : > { %3143 = vmatpush1.bf16.msra.mxu0 %v11409_v4  ;;  %2944 = vmatprep.subr.bf16.mxu1 %v14484_v6 }
 0x1f4   : > { %3144 = vmatprep.subr.bf16.mxu0 %v14484_v6 }
 0x1f6   : > { %2945 = vmatpush1.bf16.msra.mxu1 %v7660_v20  ;;  %v7664_v20 = vld [vmem:[%s11283_s17 + $0x78] sm:$0xff]  }
 0x1f7   : > { %3145 = vmatpush1.bf16.msra.mxu0 %v11416_v45  ;;  %2946 = vmatprep.subr.bf16.mxu1 %v14484_v6 }
 0x1f8   : > { %3146 = vmatprep.subr.bf16.mxu0 %v14484_v6 }
 0x1fa   : > { %2947 = vmatpush1.bf16.msra.mxu1 %v7662_v11  ;;  %v11445_v11 = vld [vmem:[#allocation2 + $0x60] sm:$0xf] }
 0x1fb   : > { %3147 = vmatpush1.bf16.msra.mxu0 %v11424_v47  ;;  %2948 = vmatprep.subr.bf16.mxu1 %v14484_v6  ;;  %v11456_v55 = vcombine.low %v11443_v28, %v11445_v11 }
 0x1fc   : > { %3148 = vmatprep.subr.bf16.mxu0 %v14484_v6 }
 0x1fd   : > { %v2171_v43 = vshll.u32 %v11456_v55, 16  ;;  %v2175_v44 = vshrl.u32 %v11456_v55, 16 }
 0x1fe   : > { %2949 = vmatpush1.bf16.msra.mxu1 %v7664_v20  ;;  %v11463_v20 = vcombine.low %v11330_v12, %v1701_v38  ;;  %v7674_v12 = vld [vmem:[%s11283_s17 + $0x108] sm:$0xff]  }
 0x1ff   : > { %3149 = vmatpush1.bf16.msra.mxu0 %v11436_v57  ;;  %7001 = vmatprep.subr.bf16.mxu1 %v14484_v6  ;;  %v11477_v7 = vrot.slane %v2171_v43, 1 }
 0x200   : > { %3318 = vmatprep.subr.bf16.mxu0 %v14484_v6  ;;  %v15825_v6 = vshll.u32 %v11349_v26, 16  ;;  %v2107_v43 = vshll.u32 %v11463_v20, 16 }
 0x201   : > { %2951 = vmatmul.mubr.bf16.vlgmr.msra.gmra.mrb[0].mxu1 %v11271_v58  ;;  %v1892_v58 = vor.u32 %v15826_v48, %v1888_v1  ;;  %v11487_v38 = vor.u32 %v2175_v44, %v11477_v7  ;;  %v11490_v1 = vcombine.low %v1702_v21, %v1703_v16  ;;  %v1902_v48 = vshll.u32 %v11475_v29, 16 }
 0x202   : > { %3151 = vmatmul.mubr.bf16.vlgmr.msra.gmra.mrb[0].mxu0 %v2094_v36  ;;  %2958 = vmatprep.mubr.bf16.mxu1 %v1889_v61  ;;  %v1896_v15 = vrot.slane %v15825_v6, 1  ;;  %v2280_v6 = vrot.slane %v11463_v20, 1  ;;  %v2102_v36 = vsel %vm14528_vm13, %v2097_v9, %v2101_v59  ;;  %v14491_v61 = vshrl.u32 %v11475_v29, 16  ;;  %v7675_v9 = vld [vmem:[%s11283_s17 + $0x110] sm:$0xff]  }
 0x203   : > { %3319 = vmatpush1.bf16.msra.mxu0 %v7671_v40  ;;  %3158 = vmatprep.mubr.bf16.mxu0 %v2279_v23  ;;  %v2103_v40 = vshrl.u32 %v11430_v30, 16  ;;  %15828 = vst [vmem:[#allocation195_spill] sm:$0xff] %v11487_v38  ;;  %v11493_v23 = vcombine.low %v1703_v16, %v11470_v14  ;;  %v11503_v44 = vsel %vm14527_vm0, %v11352_v54, %v11373_v2  ;;  %v2429_v39 = vrot.slane %v1902_v48, 2 }
 0x204   : > { %3320 = vmatprep.subr.bf16.mxu0 %v15827_v3  ;;  %7017 = vmatpush1.bf16.msra.mxu1 %v11287_v32  ;;  %v11495_v32 = vld [vmem:[#allocation2 + $0x34] sm:$0xf]  ;;  %v1897_v30 = vsel %vm14528_vm13, %v1892_v58, %v1896_v15  ;;  %v2428_v21 = vrot.slane %v14491_v61, 1  ;;  %v2281_v16 = vsel %vm14529_vm6, %v2278_v42, %v2280_v6  ;;  %v1900_v33 = vor.u32 %v15829_v24, %v1896_v15  ;;  %v7678_v24 = vld [vmem:[%s11283_s17 + $0x118] sm:$0xff]  }
 0x205   : > { %7002 = vmatprep.subr.bf16.mxu1 %v15827_v3  ;;  %v2105_v58 = vor.u32 %v2103_v40, %v2101_v59  ;;  %v2109_v42 = vrot.slane %v2107_v43, 1  ;;  %v1910_v35 = vshll.u32 %v11493_v23, 16  ;;  %v14495_v25 = vshrl.u32 %v11493_v23, 16  ;;  %v11532_v43 = vld [vmem:[#allocation2 + $0x44] sm:$0xf] }
 0x206   : > { %v1904_v59 = vrot.slane %v1902_v48, 1  ;;  %v2111_v15 = vshrl.u32 %v11463_v20, 16  ;;  %v15831_v50 = vrot.slane %v11493_v23, 1  ;;  %v15838_v22 = vrot.slane %v11490_v1, 1 }
 0x207   : > { %3321 = vmatpush1.bf16.msra.mxu0 %v7674_v12  ;;  %v1705_v12 = vld [vmem:[#allocation2 + $0x30] sm:$0xf]  ;;  %v2433_v48 = vrot.slane %v1910_v35, 2 }
 0x208   : > { %3322 = vmatprep.subr.bf16.mxu0 %v15827_v3  ;;  %7018 = vmatpush1.bf16.msra.mxu1 %v11295_v63  ;;  %v11517_v61 = vcombine.low %v1705_v12, %v11495_v32  ;;  %v15832_v63 = vrot.slane %v11475_v29, 1 }
 0x209   : > { %2959 = vmatmul.mubr.bf16.gmra.mrb[4].mxu1 %v11275_v49  ;;  %7003 = vmatprep.subr.bf16.mxu1 %v15827_v3  ;;  %v11522_v49 = vld [vmem:[#allocation2 + $0x38] sm:$0xf] }
 0x20a   : > { %3159 = vmatmul.mubr.bf16.gmra.mrb[4].mxu0 %v2102_v36  ;;  %2966 = vmatprep.mubr.bf16.mxu1 %v1897_v30  ;;  %v11528_v40 = vcombine.low %v11522_v49, %v11510_v8  ;;  %v2430_v36 = vor.u32 %v2429_v39, %v2428_v21  ;;  %v2110_v21 = vsel %vm14528_vm13, %v2105_v58, %v2109_v42  ;;  %v15830_v30 = vrot.slane %v11490_v1, 1  ;;  %v7681_v39 = vld [vmem:[%s11283_s17 + $0x120] sm:$0xff]  }
 0x20b   : > { %3323 = vmatpush1.bf16.msra.mxu0 %v7675_v9  ;;  %3166 = vmatprep.mubr.bf16.mxu0 %v2281_v16  ;;  %v2432_v9 = vrot.slane %v14495_v25, 1  ;;  %v2115_v16 = vshll.u32 %v11490_v1, 16  ;;  %v11557_v10 = vsel %vm14529_vm6, %v15832_v63, %v15831_v50  ;;  %v11563_v58 = vcombine.low %v11550_v56, %v11532_v43 }
 0x20c   : > { %3324 = vmatprep.subr.bf16.mxu0 %v15827_v3  ;;  %7019 = vmatpush1.bf16.msra.mxu1 %v11308_v62  ;;  %v11544_v62 = vsel %vm14527_vm0, %v11373_v2, %v2430_v36  ;;  %v2283_v25 = vsel %vm14529_vm6, %v2280_v6, %v15830_v30  ;;  %v1905_v2 = vsel %vm14528_vm13, %v1900_v33, %v1904_v59  ;;  %v15833_v6 = vshrl.u32 %v11517_v61, 16 }
 0x20d   : > { %7004 = vmatprep.subr.bf16.mxu1 %v15827_v3  ;;  %v2434_v20 = vor.u32 %v2433_v48, %v2432_v9  ;;  %v15834_v9 = vshll.u32 %v11517_v61, 16  ;;  %v11573_v50 = vcombine.low %v11470_v14, %v1705_v12  ;;  %v14501_v63 = vshrl.u32 %v11528_v40, 16 }
 0x20e   : > { %v2436_v30 = vrot.slane %v15833_v6, 1  ;;  %v2113_v6 = vor.u32 %v2111_v15, %v2109_v42  ;;  %v2117_v13 = vrot.slane %v2115_v16, 1  ;;  %v15836_v15 = vshll.u32 %v11528_v40, 16 }
 0x20f   : > { %3325 = vmatpush1.bf16.msra.mxu0 %v7678_v24  ;;  %v2437_v48 = vrot.slane %v15834_v9, 2  ;;  %v11579_v24 = vsel %vm14527_vm0, %v2430_v36, %v2434_v20  ;;  %v11583_v9 = vld [vmem:[#allocation2 + $0x48] sm:$0xf]  ;;  %v11591_v36 = vld [vmem:[#allocation2 + $0x54] sm:$0xf]  ;;  %v2440_v42 = vrot.slane %v14501_v63, 1 }
 0x210   : > { %3326 = vmatprep.subr.bf16.mxu0 %v15827_v3  ;;  %7020 = vmatpush1.bf16.msra.mxu1 %v11317_v17  ;;  %v15835_v17 = vshrl.u32 %v11475_v29, 16  ;;  %v11589_v33 = vcombine.low %v11583_v9, %v11565_v41  ;;  %v2441_v16 = vrot.slane %v15836_v15, 2  ;;  %v2119_v63 = vshrl.u32 %v11490_v1, 16  ;;  %v7688_v1 = vld [vmem:[%s11283_s17 + $0x138] sm:$0xff]  }
 0x211   : > { %2967 = vmatmul.mubr.bf16.gmra.mrb[8].mxu1 %v11322_v52  ;;  %7005 = vmatprep.subr.bf16.mxu1 %v15827_v3  ;;  %v2438_v14 = vor.u32 %v2437_v48, %v2436_v30  ;;  %v7682_v30 = vld [vmem:[%s11283_s17 + $0x128] sm:$0xff]   ;;  %v2123_v51 = vshll.u32 %v11573_v50, 16 }
 0x212   : > { %3167 = vmatmul.mubr.bf16.gmra.mrb[8].mxu0 %v2110_v21  ;;  %2974 = vmatprep.mubr.bf16.mxu1 %v1905_v2  ;;  %v1908_v12 = vor.u32 %v15835_v17, %v1904_v59  ;;  %v1912_v21 = vrot.slane %v1910_v35, 1  ;;  %v14506_v2 = vshll.u32 %v11563_v58, 16  ;;  %v14505_v59 = vshrl.u32 %v11563_v58, 16 }
 0x213   : > { %3174 = vmatprep.mubr.bf16.mxu0 %v2283_v25  ;;  %3327 = vmatpush1.bf16.msra.mxu0 %v7681_v39  ;;  %v11601_v48 = vsel %vm14527_vm0, %v2434_v20, %v2438_v14  ;;  %v11607_v25 = vld [vmem:[#allocation2 + $0x50] sm:$0xf]  ;;  %v2442_v39 = vor.u32 %v2441_v16, %v2440_v42  ;;  %v2118_v35 = vsel %vm14528_vm13, %v2113_v6, %v2117_v13  ;;  %v11622_v16 = vld [vmem:[#allocation2 + $0x58] sm:$0xf]  ;;  %v15837_v42 = vrot.slane %v11573_v50, 1 }
 0x214   : > { %3328 = vmatprep.subr.bf16.mxu0 %v15827_v3  ;;  %7021 = vmatpush1.bf16.msra.mxu1 %v11327_v34  ;;  %v11613_v20 = vcombine.low %v11607_v25, %v11591_v36  ;;  %v2444_v15 = vrot.slane %v14505_v59, 1  ;;  %v2445_v17 = vrot.slane %v14506_v2, 2  ;;  %v1913_v37 = vsel %vm14528_vm13, %v1908_v12, %v1912_v21 }
 0x215   : > { %7006 = vmatprep.subr.bf16.mxu1 %v15827_v3  ;;  %v11625_v6 = vsel %vm14527_vm0, %v2438_v14, %v2442_v39  ;;  %v11631_v59 = vcombine.low %v11495_v32, %v11522_v49  ;;  %v11635_v2 = vcombine.low %v11622_v16, %v11443_v28  ;;  %v2285_v14 = vsel %vm14529_vm6, %v15838_v22, %v15837_v42  ;;  %v11652_v22 = vld [vmem:[#allocation2 + $0x64] sm:$0xf] }
 0x216   : > { %v2446_v34 = vor.u32 %v2445_v17, %v2444_v15  ;;  %v14511_v12 = vshrl.u32 %v11613_v20, 16  ;;  %v15839_v32 = vshrl.u32 %v11589_v33, 16  ;;  %v2121_v17 = vor.u32 %v2119_v63, %v2117_v13 }
 0x217   : > { %3329 = vmatpush1.bf16.msra.mxu0 %v7682_v30  ;;  %v15840_v30 = vshll.u32 %v11589_v33, 16  ;;  %v2125_v15 = vrot.slane %v2123_v51, 1  ;;  %v15841_v42 = vshrl.u32 %v11493_v23, 16  ;;  %v15842_v13 = vshll.u32 %v11517_v61, 16 }
 0x218   : > { %3330 = vmatprep.subr.bf16.mxu0 %v15827_v3  ;;  %7022 = vmatpush1.bf16.msra.mxu1 %v11340_v18  ;;  %v2448_v49 = vrot.slane %v15839_v32, 1  ;;  %v11655_v18 = vsel %vm14527_vm0, %v2442_v39, %v2446_v34  ;;  %v2452_v19 = vrot.slane %v14511_v12, 1  ;;  %v14510_v38 = vshll.u32 %v11635_v2, 16 }
 0x219   : > { %v2449_v28 = vrot.slane %v15840_v30, 2  ;;  %2975 = vmatmul.mubr.bf16.gmra.mrb[12].mxu1 %v11349_v26  ;;  %7007 = vmatprep.subr.bf16.mxu1 %v15827_v3  ;;  %v1916_v32 = vor.u32 %v15841_v42, %v1912_v21  ;;  %v1920_v63 = vrot.slane %v15842_v13, 1  ;;  %v14509_v39 = vshrl.u32 %v11635_v2, 16 }
 0x21a   : > { %3175 = vmatmul.mubr.bf16.gmra.mrb[12].mxu0 %v2118_v35  ;;  %2982 = vmatprep.mubr.bf16.mxu1 %v1913_v37  ;;  %v15843_v37 = vshll.u32 %v11613_v20, 16  ;;  %v2286_v21 = vrot.slane %v11631_v59, 1  ;;  %v2127_v42 = vshrl.u32 %v11573_v50, 16  ;;  %v2126_v13 = vsel %vm14528_vm13, %v2121_v17, %v2125_v15 }
 0x21b   : > { %v2450_v30 = vor.u32 %v2449_v28, %v2448_v49  ;;  %3182 = vmatprep.mubr.bf16.mxu0 %v2285_v14  ;;  %3331 = vmatpush1.bf16.msra.mxu0 %v7685_v0  ;;  %v11673_v0 = vcombine.low %v11445_v11, %v11652_v22  ;;  %v2456_v49 = vrot.slane %v14509_v39, 1  ;;  %v2457_v28 = vrot.slane %v14510_v38, 2 }
 0x21c   : > { %v2453_v51 = vrot.slane %v15843_v37, 2  ;;  %3332 = vmatprep.subr.bf16.mxu0 %v15827_v3  ;;  %7023 = vmatpush1.bf16.msra.mxu1 %v11357_v53  ;;  %v2131_v53 = vshll.u32 %v11631_v59, 16  ;;  %v1921_v11 = vsel %vm14528_vm13, %v1916_v32, %v1920_v63  ;;  %v11697_v38 = vcombine.low %v11510_v8, %v11550_v56  ;;  %v11706_v32 = vld [vmem:[#allocation2 + $0x6c] sm:$0xf] }
 0x21d   : > { %v11676_v35 = vsel %vm14527_vm0, %v2446_v34, %v2450_v30  ;;  %7008 = vmatprep.subr.bf16.mxu1 %v15827_v3  ;;  %v7689_v34 = vld [vmem:[%s11283_s17 + $0x140] sm:$0xff]   ;;  %v14513_v17 = vshll.u32 %v11673_v0, 16  ;;  %v15847_v12 = vshll.u32 %v11528_v40, 16 }
 0x21e   : > { %v2454_v14 = vor.u32 %v2453_v51, %v2452_v19  ;;  %v2458_v19 = vor.u32 %v2457_v28, %v2456_v49  ;;  %v15844_v51 = vrot.slane %v11573_v50, 1  ;;  %v11704_v50 = vld [vmem:[#allocation2 + $0x68] sm:$0xf]  ;;  %v2133_v49 = vrot.slane %v2131_v53, 1 }
 0x21f   : > { %3333 = vmatpush1.bf16.msra.mxu0 %v7688_v1  ;;  %v14512_v1 = vshrl.u32 %v11673_v0, 16  ;;  %v2461_v56 = vrot.slane %v14513_v17, 2  ;;  %v15846_v28 = vshrl.u32 %v11517_v61, 16  ;;  %v2135_v53 = vshrl.u32 %v11631_v59, 16  ;;  %v11746_v59 = vld [vmem:[#allocation2 + $0x70] sm:$0xf] }
 0x220   : > { %v11689_v37 = vsel %vm14527_vm0, %v2450_v30, %v2454_v14  ;;  %v2287_v39 = vsel %vm14529_vm6, %v15844_v51, %v2286_v21  ;;  %3334 = vmatprep.subr.bf16.mxu0 %v15827_v3  ;;  %7024 = vmatpush1.bf16.msra.mxu1 %v11368_v5  ;;  %v11709_v30 = vsel %vm14527_vm0, %v2454_v14, %v2458_v19  ;;  %v1928_v14 = vrot.slane %v15847_v12, 1  ;;  %v7696_v17 = vld [vmem:[%s11283_s17 + $0x158] sm:$0xff]  }
 0x221   : > { %2983 = vmatmul.mubr.bf16.gmra.mrb[16].mxu1 %v11475_v29  ;;  %7009 = vmatprep.subr.bf16.mxu1 %v15827_v3  ;;  %15845 = vst [vmem:[#allocation196_spill] sm:$0xff] %v11709_v30  ;;  %v2460_v8 = vrot.slane %v14512_v1, 1  ;;  %v2129_v5 = vor.u32 %v2127_v42, %v2125_v15  ;;  %v1924_v51 = vor.u32 %v15846_v28, %v1920_v63  ;;  %v7692_v30 = vld [vmem:[%s11283_s17 + $0x148] sm:$0xff]  }
 0x222   : > { %3183 = vmatmul.mubr.bf16.gmra.mrb[16].mxu0 %v2126_v13  ;;  %2990 = vmatprep.mubr.bf16.mxu1 %v1921_v11  ;;  %v2288_v13 = vrot.slane %v11697_v38, 1  ;;  %v2139_v11 = vshll.u32 %v11697_v38, 16 }
 0x223   : > { %3190 = vmatprep.mubr.bf16.mxu0 %v2287_v39  ;;  %3335 = vmatpush1.bf16.msra.mxu0 %v7689_v34  ;;  %v11725_v39 = vcombine.low %v11704_v50, %v11706_v32  ;;  %v2462_v15 = vor.u32 %v2461_v56, %v2460_v8  ;;  %v2134_v63 = vsel %vm14528_vm13, %v2129_v5, %v2133_v49 }
 0x224   : > { %3336 = vmatprep.subr.bf16.mxu0 %v15827_v3  ;;  %7025 = vmatpush1.bf16.msra.mxu1 %v11379_v31  ;;  %v1929_v12 = vsel %vm14528_vm13, %v1924_v51, %v1928_v14  ;;  %v7695_v31 = vld [vmem:[%s11283_s17 + $0x150] sm:$0xff]   ;;  %v2289_v34 = vsel %vm14529_vm6, %v2286_v21, %v2288_v13  ;;  %v11739_v8 = vcombine.low %v11532_v43, %v11583_v9  ;;  %v2141_v5 = vrot.slane %v2139_v11, 1 }
 0x225   : > { %7010 = vmatprep.subr.bf16.mxu1 %v15827_v3  ;;  %v11729_v42 = vsel %vm14527_vm0, %v2458_v19, %v2462_v15  ;;  %v14515_v19 = vshll.u32 %v11725_v39, 16  ;;  %v14514_v56 = vshrl.u32 %v11725_v39, 16  ;;  %v2137_v21 = vor.u32 %v2135_v53, %v2133_v49 }
 0x226   : > { %v15849_v51 = vshll.u32 %v11563_v58, 16 }
 0x227   : > { %3337 = vmatpush1.bf16.msra.mxu0 %v7692_v30  ;;  %v11748_v30 = vld [vmem:[#allocation2 + $0x74] sm:$0xf]  ;;  %v2464_v43 = vrot.slane %v14514_v56, 1  ;;  %v2465_v9 = vrot.slane %v14515_v19, 2  ;;  %v2142_v53 = vsel %vm14528_vm13, %v2137_v21, %v2141_v5  ;;  %v7702_v19 = vld [vmem:[%s11283_s17 + $0x168] sm:$0xff]  }
 0x228   : > { %3338 = vmatprep.subr.bf16.mxu0 %v15827_v3  ;;  %7026 = vmatpush1.bf16.msra.mxu1 %v11386_v60  ;;  %v15848_v60 = vshrl.u32 %v11528_v40, 16  ;;  %v1936_v1 = vrot.slane %v15849_v51, 1 }
 0x229   : > { %2991 = vmatmul.mubr.bf16.gmra.mrb[20].mxu1 %v11493_v23  ;;  %7011 = vmatprep.subr.bf16.mxu1 %v15827_v3  ;;  %v2466_v49 = vor.u32 %v2465_v9, %v2464_v43 }
 0x22a   : > { %3191 = vmatmul.mubr.bf16.gmra.mrb[20].mxu0 %v2134_v63  ;;  %2998 = vmatprep.mubr.bf16.mxu1 %v1929_v12  ;;  %v1932_v28 = vor.u32 %v15848_v60, %v1928_v14  ;;  %v2290_v63 = vrot.slane %v11739_v8, 1  ;;  %v11764_v12 = vcombine.low %v11746_v59, %v11748_v30  ;;  %v7699_v60 = vld [vmem:[%s11283_s17 + $0x160] sm:$0xff]  }
 0x22b   : > { %3198 = vmatprep.mubr.bf16.mxu0 %v2289_v34  ;;  %3339 = vmatpush1.bf16.msra.mxu0 %v7695_v31  ;;  %v11769_v14 = vsel %vm14527_vm0, %v2462_v15, %v2466_v49  ;;  %v2143_v31 = vshrl.u32 %v11697_v38, 16  ;;  %v2147_v34 = vshll.u32 %v11739_v8, 16  ;;  %v11786_v38 = vld [vmem:[#allocation2 + $0x78] sm:$0xf] }
 0x22c   : > { %3340 = vmatprep.subr.bf16.mxu0 %v15827_v3  ;;  %7027 = vmatpush1.bf16.msra.mxu1 %v11393_v46  ;;  %v1937_v11 = vsel %vm14528_vm13, %v1932_v28, %v1936_v1  ;;  %v2291_v51 = vsel %vm14529_vm6, %v2288_v13, %v2290_v63  ;;  %v11779_v46 = vcombine.low %v11565_v41, %v11607_v25  ;;  %v14517_v15 = vshll.u32 %v11764_v12, 16 }
 0x22d   : > { %7012 = vmatprep.subr.bf16.mxu1 %v15827_v3  ;;  %v14516_v43 = vshrl.u32 %v11764_v12, 16  ;;  %v2145_v13 = vor.u32 %v2143_v31, %v2141_v5  ;;  %v2149_v9 = vrot.slane %v2147_v34, 1  ;;  %v15851_v28 = vshll.u32 %v11589_v33, 16 }
 0x22e   : > { %v2469_v25 = vrot.slane %v14517_v15, 2  ;;  %v7706_v15 = vld [vmem:[%s11283_s17 + $0x178] sm:$0xff]  }
 0x22f   : > { %3341 = vmatpush1.bf16.msra.mxu0 %v7696_v17  ;;  %v11788_v17 = vld [vmem:[#allocation2 + $0x7c] sm:$0xf]  ;;  %v2468_v41 = vrot.slane %v14516_v43, 1  ;;  %v1944_v56 = vrot.slane %v15851_v28, 1  ;;  %v2150_v31 = vsel %vm14528_vm13, %v2145_v13, %v2149_v9 }
 0x230   : > { %3342 = vmatprep.subr.bf16.mxu0 %v15827_v3  ;;  %7028 = vmatpush1.bf16.msra.mxu1 %v11400_v27  ;;  %v15850_v27 = vshrl.u32 %v11563_v58, 16 }
 0x231   : > { %2999 = vmatmul.mubr.bf16.gmra.mrb[24].mxu1 %v11517_v61  ;;  %7013 = vmatprep.subr.bf16.mxu1 %v15827_v3  ;;  %v2470_v5 = vor.u32 %v2469_v25, %v2468_v41 }
 0x232   : > { %3199 = vmatmul.mubr.bf16.gmra.mrb[24].mxu0 %v2142_v53  ;;  %3006 = vmatprep.mubr.bf16.mxu1 %v1937_v11  ;;  %v1940_v21 = vor.u32 %v15850_v27, %v1936_v1  ;;  %v2292_v53 = vrot.slane %v11779_v46, 1  ;;  %v11804_v11 = vcombine.low %v11786_v38, %v11788_v17  ;;  %v7703_v27 = vld [vmem:[%s11283_s17 + $0x170] sm:$0xff]  }
 0x233   : > { %3206 = vmatprep.mubr.bf16.mxu0 %v2291_v51  ;;  %3343 = vmatpush1.bf16.msra.mxu0 %v7699_v60  ;;  %v11809_v1 = vsel %vm14527_vm0, %v2466_v49, %v2470_v5  ;;  %v2151_v60 = vshrl.u32 %v11739_v8, 16  ;;  %v2155_v51 = vshll.u32 %v11779_v46, 16  ;;  %v11826_v8 = vld [vmem:[#allocation2 + $0x80] sm:$0xf] }
 0x234   : > { %3344 = vmatprep.subr.bf16.mxu0 %v15827_v3  ;;  %7029 = vmatpush1.bf16.msra.mxu1 %v11409_v4  ;;  %v1945_v34 = vsel %vm14528_vm13, %v1940_v21, %v1944_v56  ;;  %v2293_v28 = vsel %vm14529_vm6, %v2290_v63, %v2292_v53  ;;  %v11819_v4 = vcombine.low %v11591_v36, %v11622_v16  ;;  %v14519_v49 = vshll.u32 %v11804_v11, 16 }
 0x235   : > { %7014 = vmatprep.subr.bf16.mxu1 %v15827_v3  ;;  %v14518_v41 = vshrl.u32 %v11804_v11, 16  ;;  %v2153_v63 = vor.u32 %v2151_v60, %v2149_v9  ;;  %v2157_v25 = vrot.slane %v2155_v51, 1  ;;  %v15853_v21 = vshll.u32 %v11613_v20, 16  ;;  %v1738_v60 = vld [vmem:[#allocation2 + $0x8] sm:$0xe] }
 0x236   : > { %v2473_v16 = vrot.slane %v14519_v49, 2 }
 0x237   : > { %3345 = vmatpush1.bf16.msra.mxu0 %v7702_v19  ;;  %v11828_v19 = vld [vmem:[#allocation2 + $0x84] sm:$0xf]  ;;  %v2472_v36 = vrot.slane %v14518_v41, 1  ;;  %v1952_v43 = vrot.slane %v15853_v21, 1  ;;  %v7730_v41 = vld [vmem:[#allocation2 + $0xc] sm:$0xf] }
 0x238   : > { %3346 = vmatprep.subr.bf16.mxu0 %v15827_v3  ;;  %7030 = vmatpush1.bf16.msra.mxu1 %v11416_v45  ;;  %v15852_v45 = vshrl.u32 %v11589_v33, 16 }
 0x239   : > { %3007 = vmatmul.mubr.bf16.gmra.mrb[28].mxu1 %v11528_v40  ;;  %7015 = vmatprep.subr.bf16.mxu1 %v15827_v3  ;;  %v2474_v9 = vor.u32 %v2473_v16, %v2472_v36 }
 0x23a   : > { %3207 = vmatmul.mubr.bf16.gmra.mrb[28].mxu0 %v2150_v31  ;;  %3014 = vmatprep.mubr.bf16.mxu1 %v1945_v34  ;;  %v1948_v13 = vor.u32 %v15852_v45, %v1944_v56  ;;  %v2294_v31 = vrot.slane %v11819_v4, 1  ;;  %v11844_v34 = vcombine.low %v11826_v8, %v11828_v19  ;;  %v2159_v56 = vshrl.u32 %v11779_v46, 16  ;;  %v11862_v46 = vld [vmem:[#allocation2 + $0x88] sm:$0xf] }
 0x23b   : > { %3214 = vmatprep.mubr.bf16.mxu0 %v2293_v28  ;;  %3347 = vmatpush1.bf16.msra.mxu0 %v7703_v27  ;;  %v11850_v51 = vsel %vm14527_vm0, %v2470_v5, %v2474_v9  ;;  %v2158_v27 = vsel %vm14528_vm13, %v2153_v63, %v2157_v25  ;;  %v2163_v45 = vshll.u32 %v11819_v4, 16  ;;  %v11864_v5 = vld [vmem:[#allocation2 + $0x8c] sm:$0xf] }
 0x23c   : > { %3348 = vmatprep.subr.bf16.mxu0 %v15827_v3  ;;  %7031 = vmatpush1.bf16.msra.mxu1 %v11424_v47  ;;  %15854 = vst [vmem:[#allocation197_spill] sm:$0xff] %v11850_v51  ;;  %v1953_v28 = vsel %vm14528_vm13, %v1948_v13, %v1952_v43  ;;  %v2295_v21 = vsel %vm14529_vm6, %v2292_v53, %v2294_v31  ;;  %v14522_v36 = vshll.u32 %v11844_v34, 16  ;;  %v14521_v16 = vshrl.u32 %v11844_v34, 16 }
 0x23d   : > { %7016 = vmatprep.subr.bf16.mxu1 %v15827_v3  ;;  %v11856_v47 = vcombine.low %v1738_v60, %v7730_v41  ;;  %15855 = vst [vmem:[#allocation198_spill] sm:$0xff] %v11864_v5  ;;  %v2165_v63 = vrot.slane %v2163_v45, 1  ;;  %v15856_v13 = vshrl.u32 %v11613_v20, 16  ;;  %v15857_v60 = vshll.u32 %v11635_v2, 16 }
 0x23e   : > { %v2476_v53 = vrot.slane %v14521_v16, 1  ;;  %v2477_v41 = vrot.slane %v14522_v36, 2  ;;  %v14524_v3 = vrot.slane %v11456_v55, 1 }
 0x23f   : > { %3349 = vmatpush1.bf16.msra.mxu0 %v7706_v15  ;;  %v2161_v15 = vor.u32 %v2159_v56, %v2157_v25  ;;  %v1960_v49 = vrot.slane %v15857_v60, 1  ;;  %v2416_v25 = vshll.u32 %v11856_v47, 16  ;;  %v11879_v56 = vcombine.low %v11862_v46, %v11864_v5 }
 0x240   : > { %7032 = vmatpush1.bf16.msra.mxu1 %v11436_v57  ;;  %v1956_v57 = vor.u32 %v15856_v13, %v1952_v43  ;;  %v2297_v13 = vsel %vm14529_vm6, %v2294_v31, %v14524_v3  ;;  %v2167_v60 = vshrl.u32 %v11819_v4, 16 }
 0x241   : > { %3015 = vmatmul.mubr.bf16.gmra.mrb[32].mxu1 %v11563_v58  ;;  %v2166_v45 = vsel %vm14528_vm13, %v2161_v15, %v2165_v63  ;;  %v2418_v36 = vrot.slane %v2416_v25, 2  ;;  %v2006_v51 = vshll.u32 %v11879_v56, 16  ;;  %v14525_v5 = vshrl.u32 %v11879_v56, 16 }
 0x242   : > { %3215 = vmatmul.mubr.bf16.gmra.mrb[32].mxu0 %v2158_v27  ;;  %3022 = vmatprep.mubr.bf16.mxu1 %v1953_v28  ;;  %v2413_v27 = vshrl.u32 %v11856_v47, 16  ;;  %v2478_v28 = vor.u32 %v2477_v41, %v2476_v53  ;;  %v1961_v43 = vsel %vm14528_vm13, %v1956_v57, %v1960_v49  ;;  %v11895_v53 = vld [vmem:[#allocation2 + $0x94] sm:$0xf]  ;;  %v2169_v31 = vor.u32 %v2167_v60, %v2165_v63  ;;  %v11922_v60 = vld [vmem:[#allocation2 + $0x9c] sm:$0xf] }
 0x243   : > { %3222 = vmatprep.mubr.bf16.mxu0 %v2295_v21  ;;  %v2480_v15 = vrot.slane %v14525_v5, 1  ;;  %v2481_v4 = vrot.slane %v2006_v51, 2  ;;  %v15859_v41 = vshrl.u32 %v11635_v2, 16 }
 0x244   : > { %v11882_v21 = vsel %vm14527_vm0, %v2474_v9, %v2478_v28  ;;  %v2415_v16 = vrot.slane %v2413_v27, 1  ;;  %v11893_v9 = vld [vmem:[#allocation2 + $0x90] sm:$0xf]  ;;  %v15860_v27 = vshll.u32 %v11673_v0, 16  ;;  %v2174_v5 = vsel %vm14528_vm13, %v2169_v31, %v11477_v7 }
 0x245   : > { %15858 = vst [vmem:[#allocation199_spill] sm:$0xff] %v11882_v21  ;;  %v1964_v57 = vor.u32 %v15859_v41, %v1960_v49  ;;  %v11907_v21 = vcombine.low %v11893_v9, %v11895_v53  ;;  %v15862_v31 = vshll.u32 %v11725_v39, 16 }
 0x246   : > { %v1968_v25 = vrot.slane %v15860_v27, 1  ;;  %v2419_v3 = vor.u32 %v2418_v36, %v2415_v16  ;;  %v11920_v16 = vld [vmem:[#allocation2 + $0x98] sm:$0xf] }
 0x247   : > { %v2018_v36 = vshrl.u32 %v11907_v21, 16  ;;  %v1976_v41 = vrot.slane %v15862_v31, 1 }
 0x248   : > { %v1969_v63 = vsel %vm14528_vm13, %v1964_v57, %v1968_v25  ;;  %v2423_v49 = vsel %vm14527_vm0, %v2419_v3, %v11352_v54  ;;  %v2346_v54 = vrot.slane %v11856_v47, 1  ;;  %v2347_v3 = vrot.slane %v11322_v52, 1 }
 0x249   : > { %3023 = vmatmul.mubr.bf16.gmra.mrb[36].mxu1 %v11589_v33  ;;  %v2484_v7 = vrot.slane %v2018_v36, 1 }
 0x24a   : > { %3223 = vmatmul.mubr.bf16.gmra.mrb[36].mxu0 %v2166_v45  ;;  %3030 = vmatprep.mubr.bf16.mxu1 %v1961_v43  ;;  %v2482_v45 = vor.u32 %v2481_v4, %v2480_v15  ;;  %v15861_v15 = vshrl.u32 %v11673_v0, 16 }
 0x24b   : > { %3230 = vmatprep.mubr.bf16.mxu0 %v2297_v13  ;;  %v2014_v13 = vshll.u32 %v11907_v21, 16 }
 0x24c   : > { %v11910_v43 = vsel %vm14527_vm0, %v2478_v28, %v2482_v45  ;;  %v1972_v4 = vor.u32 %v15861_v15, %v1968_v25 }
 0x24d   : > { %v2485_v28 = vrot.slane %v2014_v13, 2 }
 0x24e   : > { %v1977_v47 = vsel %vm14528_vm13, %v1972_v4, %v1976_v41 }
 0x24f   : > { %v2486_v57 = vor.u32 %v2485_v28, %v2484_v7  ;;  %v15863_v7 = vshrl.u32 %v11725_v39, 16 }
 0x251   : > { %3031 = vmatmul.mubr.bf16.gmra.mrb[40].mxu1 %v11613_v20  ;;  %v11939_v27 = vsel %vm14527_vm0, %v2482_v45, %v2486_v57  ;;  %v2349_v45 = vrot.slane %v11349_v26, 1  ;;  %v1980_v28 = vor.u32 %v15863_v7, %v1976_v41  ;;  %v15865_v26 = vshrl.u32 %v11764_v12, 16 }
 0x252   : > { %3231 = vmatmul.mubr.bf16.gmra.mrb[40].mxu0 %v2174_v5  ;;  %3038 = vmatprep.mubr.bf16.mxu1 %v1969_v63  ;;  %v11936_v5 = vcombine.low %v11920_v16, %v11922_v60  ;;  %v2348_v63 = vsel %vm14529_vm6, %v2346_v54, %v2347_v3  ;;  %v15864_v54 = vshll.u32 %v11764_v12, 16  ;;  %v15866_v41 = vshll.u32 %v11804_v11, 16 }
 0x253   : > { %3350 = vmatprep.mubr.bf16.mxu0 %v2423_v49  ;;  %v15869_v7 = vshll.u32 %v11844_v34, 16 }
 0x254   : > { %v2022_v52 = vshll.u32 %v11936_v5, 16  ;;  %v14526_v49 = vshrl.u32 %v11936_v5, 16  ;;  %v1984_v4 = vrot.slane %v15864_v54, 1 }
 0x256   : > { %v2488_v25 = vrot.slane %v14526_v49, 1  ;;  %v2489_v15 = vrot.slane %v2022_v52, 2  ;;  %v1985_v49 = vsel %vm14528_vm13, %v1980_v28, %v1984_v4  ;;  %v2000_v28 = vrot.slane %v15869_v7, 1 }
 0x258   : > { %v11954_v31 = vor.u32 %v2489_v15, %v2488_v25  ;;  %v1992_v25 = vrot.slane %v15866_v41, 1  ;;  %v15867_v15 = vrot.slane %v11475_v29, 1  ;;  %v2355_v29 = vrot.slane %v11517_v61, 1 }
 0x259   : > { %3039 = vmatmul.mubr.bf16.gmra.mrb[44].mxu1 %v11635_v2  ;;  %v15872_v61 = vshrl.u32 %v11879_v56, 16 }
 0x25a   : > { %3351 = vmatmul.mubr.bf16.vlgmr.msra.gmra.mrb[0].mxu0 %v2348_v63  ;;  %3046 = vmatprep.mubr.bf16.mxu1 %v1977_v47  ;;  %v11958_v63 = vsel %vm14527_vm0, %v2486_v57, %v11954_v31  ;;  %v2350_v47 = vsel %vm14529_vm6, %v2347_v3, %v2349_v45  ;;  %v2352_v57 = vsel %vm14529_vm6, %v2349_v45, %v15867_v15  ;;  %v15870_v45 = vshrl.u32 %v11844_v34, 16  ;;  %v7716_v15 = vld [vmem:[#allocation2 + $0xa0] ss:$0 sps:$4 sm:$0x77]  }
 0x25b   : > { %3358 = vmatprep.mubr.bf16.mxu0 %v11503_v44  ;;  %v1988_v44 = vor.u32 %v15865_v26, %v1984_v4  ;;  %v2008_v4 = vrot.slane %v2006_v51, 1  ;;  %v2016_v51 = vrot.slane %v2014_v13, 1  ;;  %v2034_v7 = vshrl.u32 %v7716_v15, 16 }
 0x25d   : > { %v1993_v3 = vsel %vm14528_vm13, %v1988_v44, %v1992_v25 }
 0x261   : > { %3047 = vmatmul.mubr.bf16.gmra.mrb[48].mxu1 %v11673_v0 }
 0x262   : > { %3359 = vmatmul.mubr.bf16.gmra.mrb[4].mxu0 %v2350_v47  ;;  %3054 = vmatprep.mubr.bf16.mxu1 %v1985_v49  ;;  %v15871_v47 = vrot.slane %v11493_v23, 1 }
 0x263   : > { %3366 = vmatprep.mubr.bf16.mxu0 %v11544_v62  ;;  %v15868_v62 = vshrl.u32 %v11804_v11, 16 }
 0x264   : > { %v2356_v26 = vsel %vm14529_vm6, %v15871_v47, %v2355_v29 }
 0x265   : > { %v1996_v49 = vor.u32 %v15868_v62, %v1992_v25  ;;  %v2024_v25 = vrot.slane %v2022_v52, 1 }
 0x267   : > { %v2001_v54 = vsel %vm14528_vm13, %v1996_v49, %v2000_v28 }
 0x269   : > { %3055 = vmatmul.mubr.bf16.gmra.mrb[52].mxu1 %v11725_v39 }
 0x26a   : > { %3367 = vmatmul.mubr.bf16.gmra.mrb[8].mxu0 %v2352_v57  ;;  %3062 = vmatprep.mubr.bf16.mxu1 %v1993_v3  ;;  %v2030_v3 = vshll.u32 %v7716_v15, 16 }
 0x26b   : > { %3374 = vmatprep.mubr.bf16.mxu0 %v11579_v24  ;;  %v2004_v24 = vor.u32 %v15870_v45, %v2000_v28  ;;  %v2363_v28 = vrot.slane %v11613_v20, 1  ;;  %v2365_v45 = vrot.slane %v11635_v2, 1  ;;  %v15875_v20 = vrot.slane %v11456_v55, 1 }
 0x26c   : > { %v2032_v49 = vrot.slane %v2030_v3, 1  ;;  %v2367_v2 = vrot.slane %v11673_v0, 1  ;;  %v2369_v0 = vrot.slane %v11725_v39, 1  ;;  %v2371_v39 = vrot.slane %v11764_v12, 1 }
 0x26d   : > { %v2009_v44 = vsel %vm14528_vm13, %v2004_v24, %v2008_v4 }
 0x26e   : > { %v2368_v55 = vsel %vm14529_vm6, %v2365_v45, %v2367_v2  ;;  %v2370_v15 = vsel %vm14529_vm6, %v2367_v2, %v2369_v0 }
 0x271   : > { %3063 = vmatmul.mubr.bf16.gmra.mrb[56].mxu1 %v11764_v12  ;;  %v2373_v12 = vrot.slane %v11804_v11, 1 }
 0x272   : > { %3375 = vmatmul.mubr.bf16.gmra.mrb[12].mxu0 %v11557_v10  ;;  %3070 = vmatprep.mubr.bf16.mxu1 %v2001_v54  ;;  %v2357_v10 = vrot.slane %v11528_v40, 1  ;;  %v2020_v40 = vor.u32 %v2018_v36, %v2016_v51  ;;  %v6718_v54 = vcombine.low %v11652_v22, %v11704_v50  ;;  %v6719_v22 = vcombine.low %v11706_v32, %v11746_v59 }
 0x273   : > { %3382 = vmatprep.mubr.bf16.mxu0 %v11601_v48  ;;  %v2012_v48 = vor.u32 %v15872_v61, %v2008_v4  ;;  %v7717_v4 = vld [vmem:[#allocation2 + $0xa0] ss:$0 sps:$4 sm:$0x33]   ;;  %v6720_v32 = vcombine.low %v11748_v30, %v11786_v38  ;;  %v6721_v30 = vcombine.low %v11788_v17, %v11826_v8  ;;  %v6722_v17 = vcombine.low %v11828_v19, %v11862_v46  ;;  %v15878_v19 = vld [vmem:[#allocation198_spill] sm:$0xff] }
 0x274   : > { %v2358_v23 = vsel %vm14529_vm6, %v2355_v29, %v2357_v10  ;;  %v2025_v13 = vsel %vm14528_vm13, %v2020_v40, %v2024_v25  ;;  %v15874_v29 = vld [vmem:[#allocation196_spill] sm:$0xff]  ;;  %v2298_v24 = vrot.slane %v6718_v54, 1  ;;  %v2179_v47 = vshll.u32 %v6718_v54, 16 }
 0x275   : > { %v2017_v41 = vsel %vm14528_vm13, %v2012_v48, %v2016_v51  ;;  %v2183_v48 = vshrl.u32 %v6718_v54, 16  ;;  %v2187_v51 = vshll.u32 %v6719_v22, 16  ;;  %v2191_v40 = vshrl.u32 %v6719_v22, 16 }
 0x276   : > { %v2181_v50 = vrot.slane %v2179_v47, 1  ;;  %v6723_v46 = vcombine.low %v15878_v19, %v11893_v9  ;;  %v6724_v9 = vcombine.low %v11895_v53, %v11920_v16 }
 0x278   : > { %v2185_v59 = vor.u32 %v2183_v48, %v2181_v50 }
 0x279   : > { %3071 = vmatmul.mubr.bf16.gmra.mrb[60].mxu1 %v11804_v11  ;;  %v2375_v11 = vrot.slane %v11844_v34, 1 }
 0x27a   : > { %3383 = vmatmul.mubr.bf16.gmra.mrb[16].mxu0 %v2356_v26  ;;  %3078 = vmatprep.mubr.bf16.mxu1 %v2009_v44  ;;  %v2299_v26 = vsel %vm14529_vm6, %v15875_v20, %v2298_v24  ;;  %v2300_v44 = vrot.slane %v6719_v22, 1  ;;  %v2219_v20 = vshll.u32 %v6723_v46, 16 }
 0x27b   : > { %3390 = vmatprep.mubr.bf16.mxu0 %v11625_v6  ;;  %v2359_v6 = vrot.slane %v11563_v58, 1  ;;  %v15873_v58 = vshrl.u32 %v11936_v5, 16 }
 0x27c   : > { %v2221_v2 = vrot.slane %v2219_v20, 1 }
 0x27d   : > { %v2360_v57 = vsel %vm14529_vm6, %v2357_v10, %v2359_v6  ;;  %v2028_v62 = vor.u32 %v15873_v58, %v2024_v25  ;;  %v15876_v10 = vld [vmem:[#allocation195_spill] sm:$0xff]  ;;  %v2195_v25 = vshll.u32 %v6720_v32, 16  ;;  %v2203_v58 = vshll.u32 %v6721_v30, 16 }
 0x27e   : > { %v2182_v61 = vsel %vm14528_vm13, %v15876_v10, %v2181_v50  ;;  %v1735_v10 = vld [vmem:[#allocation2 + $0xa0] sm:$0xf] }
 0x27f   : > { %v2033_v52 = vsel %vm14528_vm13, %v2028_v62, %v2032_v49  ;;  %v2372_v62 = vsel %vm14529_vm6, %v2369_v0, %v2371_v39  ;;  %v6725_v16 = vcombine.low %v11922_v60, %v1735_v10 }
 0x281   : > { %3079 = vmatmul.mubr.bf16.gmra.mrb[64].mxu1 %v11844_v34  ;;  %v2377_v34 = vrot.slane %v11879_v56, 1 }
 0x282   : > { %3391 = vmatmul.mubr.bf16.gmra.mrb[20].mxu0 %v2358_v23  ;;  %3086 = vmatprep.mubr.bf16.mxu1 %v2017_v41  ;;  %v2301_v23 = vsel %vm14529_vm6, %v2298_v24, %v2300_v44  ;;  %v2302_v41 = vrot.slane %v6720_v32, 1  ;;  %v15879_v24 = vld [vmem:[#allocation199_spill] sm:$0xff] }
 0x283   : > { %3398 = vmatprep.mubr.bf16.mxu0 %v11655_v18  ;;  %v2361_v18 = vrot.slane %v11589_v33, 1 }
 0x285   : > { %v2362_v36 = vsel %vm14529_vm6, %v2359_v6, %v2361_v18  ;;  %v2364_v33 = vsel %vm14529_vm6, %v2361_v18, %v2363_v28  ;;  %v2199_v18 = vshrl.u32 %v6720_v32, 16 }
 0x289   : > { %3087 = vmatmul.mubr.bf16.gmra.mrb[68].mxu1 %v11879_v56 }
 0x28a   : > { %3399 = vmatmul.mubr.bf16.gmra.mrb[24].mxu0 %v2360_v57  ;;  %3094 = vmatprep.mubr.bf16.mxu1 %v2025_v13  ;;  %v2303_v57 = vsel %vm14529_vm6, %v2300_v44, %v2302_v41  ;;  %v2197_v13 = vrot.slane %v2195_v25, 1  ;;  %v2310_v44 = vrot.slane %v6724_v9, 1 }
 0x28b   : > { %3406 = vmatprep.mubr.bf16.mxu0 %v11676_v35  ;;  %v2036_v35 = vor.u32 %v2034_v7, %v2032_v49 }
 0x28c   : > { %v2201_v8 = vor.u32 %v2199_v18, %v2197_v13 }
 0x291   : > { %3095 = vmatmul.mubr.bf16.gmra.mrb[72].mxu1 %v11907_v21 }
 0x292   : > { %3407 = vmatmul.mubr.bf16.gmra.mrb[28].mxu0 %v2362_v36  ;;  %3102 = vmatprep.mubr.bf16.mxu1 %v2033_v52  ;;  %v2205_v36 = vrot.slane %v2203_v58, 1  ;;  %v2306_v52 = vrot.slane %v6722_v17, 1  ;;  %v2381_v58 = vrot.slane %v11936_v5, 1 }
 0x293   : > { %3414 = vmatprep.mubr.bf16.mxu0 %v11689_v37  ;;  %v2366_v37 = vsel %vm14529_vm6, %v2363_v28, %v2365_v45  ;;  %v2207_v28 = vshrl.u32 %v6721_v30, 16 }
 0x294   : > { %v2206_v7 = vsel %vm14528_vm13, %v2201_v8, %v2205_v36 }
 0x299   : > { %3103 = vmatmul.mubr.bf16.gmra.mrb[76].mxu1 %v11936_v5 }
 0x29a   : > { %3415 = vmatmul.mubr.bf16.gmra.mrb[32].mxu0 %v2364_v33  ;;  %3110 = vmatprep.mubr.bf16.mxu1 %v2036_v35  ;;  %v2211_v35 = vshll.u32 %v6722_v17, 16  ;;  %v2374_v33 = vsel %vm14529_vm6, %v2371_v39, %v2373_v12 }
 0x29b   : > { %3422 = vmatprep.mubr.bf16.mxu0 %v15874_v29  ;;  %v2209_v29 = vor.u32 %v2207_v28, %v2205_v36 }
 0x29c   : > { %v2213_v45 = vrot.slane %v2211_v35, 1 }
 0x29e   : > { %v2214_v47 = vsel %vm14528_vm13, %v2209_v29, %v2213_v45 }
 0x2a1   : > { %3111 = vmatmul.mubr.bf16.gmra.mrb[80].mxu1 %v7717_v4  ;;  %v2308_v4 = vrot.slane %v6723_v46, 1 }
 0x2a2   : > { %3423 = vmatmul.mubr.bf16.gmra.mrb[36].mxu0 %v2366_v37  ;;  %3238 = vmatprep.mubr.bf16.mxu1 %v2299_v26  ;;  %v2215_v37 = vshrl.u32 %v6722_v17, 16  ;;  %v2376_v26 = vsel %vm14529_vm6, %v2373_v12, %v2375_v11 }
 0x2a3   : > { %3430 = vmatprep.mubr.bf16.mxu0 %v11729_v42  ;;  %v2189_v42 = vrot.slane %v2187_v51, 1  ;;  %v2309_v22 = vsel %vm14529_vm6, %v2306_v52, %v2308_v4  ;;  %v2223_v51 = vshrl.u32 %v6723_v46, 16  ;;  %v2311_v53 = vsel %vm14529_vm6, %v2308_v4, %v2310_v44 }
 0x2a4   : > { %v2217_v50 = vor.u32 %v2215_v37, %v2213_v45 }
 0x2a5   : > { %v2190_v6 = vsel %vm14528_vm13, %v2185_v59, %v2189_v42  ;;  %v2193_v38 = vor.u32 %v2191_v40, %v2189_v42  ;;  %v2379_v59 = vrot.slane %v11907_v21, 1  ;;  %v2312_v42 = vrot.slane %v6725_v16, 1  ;;  %v7726_v21 = vld [vmem:[#allocation2 + $0xa4] ss:$0 sps:$4 sm:$0x77]  }
 0x2a6   : > { %v2222_v48 = vsel %vm14528_vm13, %v2217_v50, %v2221_v2  ;;  %v2243_v28 = vshll.u32 %v7726_v21, 16 }
 0x2a7   : > { %v2198_v3 = vsel %vm14528_vm13, %v2193_v38, %v2197_v13  ;;  %v2382_v35 = vsel %vm14529_vm6, %v2379_v59, %v2381_v58 }
 0x2a8   : > { %v2245_v29 = vrot.slane %v2243_v28, 1 }
 0x2a9   : > { %3239 = vmatmul.mubr.bf16.vlgmr.msra.gmra.mrb[44].mxu1 %v2182_v61  ;;  %v1739_v61 = vld [vmem:[#allocation2 + $0xa4] sm:$0xf] }
 0x2aa   : > { %3431 = vmatmul.mubr.bf16.gmra.mrb[40].mxu0 %v2368_v55  ;;  %3246 = vmatprep.mubr.bf16.mxu1 %v2301_v23  ;;  %v2227_v55 = vshll.u32 %v6724_v9, 16  ;;  %v2378_v23 = vsel %vm14529_vm6, %v2375_v11, %v2377_v34  ;;  %v12071_v32 = vcombine.low %v1735_v10, %v1739_v61 }
 0x2ab   : > { %3438 = vmatprep.mubr.bf16.mxu0 %v11769_v14  ;;  %v2304_v14 = vrot.slane %v6721_v30, 1  ;;  %v2380_v30 = vsel %vm14529_vm6, %v2377_v34, %v2379_v59 }
 0x2ac   : > { %v2229_v56 = vrot.slane %v2227_v55, 1  ;;  %v2383_v45 = vrot.slane %v12071_v32, 1 }
 0x2ad   : > { %v2305_v49 = vsel %vm14529_vm6, %v2302_v41, %v2304_v14  ;;  %v2307_v54 = vsel %vm14529_vm6, %v2304_v14, %v2306_v52  ;;  %v2493_v41 = vshrl.u32 %v12071_v32, 16  ;;  %v7728_v14 = vld [vmem:[#allocation2 + $0xa8] ss:$0 sps:$4 sm:$0xff]  }
 0x2ae   : > { %v2502_v8 = vshrl.u32 %v7728_v14, 16  ;;  %v2505_v36 = vshll.u32 %v7728_v14, 16 }
 0x2af   : > { %v2495_v13 = vrot.slane %v2493_v41, 1 }
 0x2b0   : > { %v2507_v19 = vrot.slane %v2505_v36, 2 }
 0x2b1   : > { %3247 = vmatmul.mubr.bf16.gmra.mrb[48].mxu1 %v2190_v6  ;;  %v2496_v6 = vshll.u32 %v12071_v32, 16 }
 0x2b2   : > { %3439 = vmatmul.mubr.bf16.gmra.mrb[44].mxu0 %v2370_v15  ;;  %3254 = vmatprep.mubr.bf16.mxu1 %v2303_v57  ;;  %v2231_v15 = vshrl.u32 %v6724_v9, 16  ;;  %v2235_v57 = vshll.u32 %v6725_v16, 16  ;;  %v2247_v9 = vshrl.u32 %v7726_v21, 16 }
 0x2b3   : > { %3446 = vmatprep.mubr.bf16.mxu0 %v11809_v1  ;;  %v15877_v1 = vld [vmem:[#allocation197_spill] sm:$0xff]  ;;  %v2498_v39 = vrot.slane %v2496_v6, 2 }
 0x2b4   : > { %v2237_v18 = vrot.slane %v2235_v57, 1  ;;  %v2249_v34 = vor.u32 %v2247_v9, %v2245_v29 }
 0x2b5   : > { %v2499_v17 = vor.u32 %v2498_v39, %v2495_v13 }
 0x2b7   : > { %v2500_v5 = vsel %vm14527_vm0, %v11954_v31, %v2499_v17  ;;  %v2384_v31 = vsel %vm14529_vm6, %v2381_v58, %v2383_v45 }
 0x2b9   : > { %3255 = vmatmul.mubr.bf16.gmra.mrb[52].mxu1 %v2198_v3  ;;  %v2233_v3 = vor.u32 %v2231_v15, %v2229_v56 }
 0x2ba   : > { %3447 = vmatmul.mubr.bf16.gmra.mrb[48].mxu0 %v2372_v62  ;;  %3262 = vmatprep.mubr.bf16.mxu1 %v2305_v49  ;;  %v2314_v62 = vrot.slane %v7726_v21, 1 }
 0x2bb   : > { %3454 = vmatprep.mubr.bf16.mxu0 %v15877_v1  ;;  %v2238_v12 = vsel %vm14528_vm13, %v2233_v3, %v2237_v18 }
 0x2c1   : > { %3263 = vmatmul.mubr.bf16.gmra.mrb[56].mxu1 %v2206_v7  ;;  %v2239_v7 = vshrl.u32 %v6725_v16, 16 }
 0x2c2   : > { %3455 = vmatmul.mubr.bf16.gmra.mrb[52].mxu0 %v2374_v33  ;;  %3270 = vmatprep.mubr.bf16.mxu1 %v2307_v54  ;;  %v2504_v54 = vrot.slane %v2502_v8, 1 }
 0x2c3   : > { %3462 = vmatprep.mubr.bf16.mxu0 %v15879_v24  ;;  %v2241_v46 = vor.u32 %v2239_v7, %v2237_v18 }
 0x2c4   : > { %v2508_v11 = vor.u32 %v2507_v19, %v2504_v54 }
 0x2c9   : > { %3271 = vmatmul.mubr.bf16.gmra.mrb[60].mxu1 %v2214_v47  ;;  %v2246_v47 = vsel %vm14528_vm13, %v2241_v46, %v2245_v29 }
 0x2ca   : > { %3463 = vmatmul.mubr.bf16.gmra.mrb[56].mxu0 %v2376_v26  ;;  %3278 = vmatprep.mubr.bf16.mxu1 %v2309_v22  ;;  %v7729_v26 = vld [vmem:[#allocation2 + $0xa8] ss:$0 sps:$4 sm:$0x77]   ;;  %v2509_v22 = vsel %vm14527_vm0, %v2499_v17, %v2508_v11 }
 0x2cb   : > { %3470 = vmatprep.mubr.bf16.mxu0 %v11910_v43  ;;  %v2225_v43 = vor.u32 %v2223_v51, %v2221_v2  ;;  %v2385_v50 = vrot.slane %v7729_v26, 1 }
 0x2cd   : > { %v2230_v60 = vsel %vm14528_vm13, %v2225_v43, %v2229_v56  ;;  %v2386_v61 = vsel %vm14529_vm6, %v2383_v45, %v2385_v50  ;;  %v15880_v45 = vld [vmem:[#allocation11_spill] sm:$0xff] }
 0x2ce   : > { %vm15881_vm0 = vnez %v15880_v45  ;;  %v15917_v45 = vld [vmem:[#allocation104_spill] sm:$0xff] }
 0x2d1   : > { %3279 = vmatmul.mubr.bf16.gmra.mrb[64].mxu1 %v2222_v48 }
 0x2d2   : > { %3471 = vmatmul.mubr.bf16.gmra.mrb[60].mxu0 %v2378_v23  ;;  %3286 = vmatprep.mubr.bf16.mxu1 %v2311_v53 }
 0x2d3   : > { %3478 = vmatprep.mubr.bf16.mxu0 %v11939_v27  ;;  %v2313_v27 = vsel %vm14529_vm6, %v2310_v44, %v2312_v42 }
 0x2d4   : > { %v12075_v0 = vpop.f32.mrb[0].mxu1 }
 0x2d5   : > { %v2954_v40 = vpop.f32.mrb[1].mxu1 }
 0x2d6   : > { %v12080_v25 = vpop.f32.mrb[2].mxu1 }
 0x2d7   : > { %v2957_v38 = vpop.f32.mrb[3].mxu1 }
 0x2d9   : > { %3287 = vmatmul.mubr.bf16.gmra.mrb[68].mxu1 %v2230_v60 }
 0x2da   : > { %3479 = vmatmul.mubr.bf16.gmra.mrb[64].mxu0 %v2380_v30  ;;  %3294 = vmatprep.mubr.bf16.mxu1 %v2313_v27 }
 0x2db   : > { %3486 = vmatprep.mubr.bf16.mxu0 %v11958_v63  ;;  %v2315_v63 = vsel %vm14529_vm6, %v2312_v42, %v2314_v62 }
 0x2dc   : > { %v12086_v49 = vpop.f32.mrb[4].mxu1 }
 0x2dd   : > { %v2962_v1 = vpop.f32.mrb[5].mxu1 }
 0x2de   : > { %v12089_v52 = vpop.f32.mrb[6].mxu1 }
 0x2df   : > { %v2965_v33 = vpop.f32.mrb[7].mxu1 }
 0x2e1   : > { %3295 = vmatmul.mubr.bf16.gmra.mrb[72].mxu1 %v2238_v12 }
 0x2e2   : > { %3487 = vmatmul.mubr.bf16.gmra.mrb[68].mxu0 %v2382_v35  ;;  %3302 = vmatprep.mubr.bf16.mxu1 %v2315_v63 }
 0x2e3   : > { %3494 = vmatprep.mubr.bf16.mxu0 %v2500_v5 }
 0x2e4   : > { %v12096_v24 = vpop.f32.mrb[8].mxu1 }
 0x2e5   : > { %v2970_v4 = vpop.f32.mrb[9].mxu1 }
 0x2e6   : > { %v12099_v37 = vpop.f32.mrb[10].mxu1  ;;  %v15885_v4 = vld [vmem:[#allocation71_spill] sm:$0xff] }
 0x2e7   : > { %v2973_v20 = vpop.f32.mrb[11].mxu1  ;;  %vm15886_vm3 = vnez %v15885_v4 }
 0x2e9   : > { %3303 = vmatmul.mubr.bf16.gmra.mrb[76].mxu1 %v2246_v47 }
 0x2ea   : > { %3495 = vmatmul.mubr.bf16.gmra.mrb[72].mxu0 %v2384_v31  ;;  %3310 = vmatprep.mubr.bf16.mxu1 %v2314_v62 }
 0x2eb   : > { %3502 = vmatprep.mubr.bf16.mxu0 %v2509_v22 }
 0x2ec   : > { %v12103_v2 = vpop.f32.mrb[12].mxu1 }
 0x2ed   : > { %v2978_v44 = vpop.f32.mrb[13].mxu1 }
 0x2ee   : > { %v12105_v10 = vpop.f32.mrb[14].mxu1  ;;  %v15890_v44 = vld [vmem:[#allocation74_spill] sm:$0xff] }
 0x2ef   : > { %v2981_v48 = vpop.f32.mrb[15].mxu1 }
 0x2f1   : > { %3311 = vmatmul.mubr.bf16.gmra.mrb[80].mxu1 %v2249_v34 }
 0x2f2   : > { %3503 = vmatmul.mubr.bf16.gmra.mrb[76].mxu0 %v2386_v61  ;;  %v15892_v61 = vld [vmem:[#allocation21_spill] sm:$0xff] }
 0x2f3   : > { %3510 = vmatprep.mubr.bf16.mxu0 %v2508_v11  ;;  %v15882_v11 = vld [vmem:[#allocation19_spill] sm:$0xff] }
 0x2f4   : > { %v12108_v51 = vpop.f32.mrb[16].mxu1  ;;  %vm15883_vm13 = vnez %v15882_v11 }
 0x2f5   : > { %v2986_v55 = vpop.f32.mrb[17].mxu1  ;;  %vm15884_vm6 = vmand %vm15881_vm0, %vm15883_vm13  ;;  %vm15893_vm0 = vnez %v15892_v61 }
 0x2f6   : > { %v12110_v23 = vpop.f32.mrb[18].mxu1  ;;  %v15895_v55 = vld [vmem:[#allocation82_spill] sm:$0xff] }
 0x2f7   : > { %v2989_v53 = vpop.f32.mrb[19].mxu1 }
 0x2f8   : > { %v15897_v53 = vld [vmem:[#allocation22_spill] sm:$0xff] }
 0x2fa   : > { %3511 = vmatmul.mubr.bf16.gmra.mrb[80].mxu0 %v2385_v50 }
 0x2fc   : > { %v12112_v16 = vpop.f32.mrb[20].mxu1 }
 0x2fd   : > { %v2994_v32 = vpop.f32.mrb[21].mxu1 }
 0x2fe   : > { %v12114_v43 = vpop.f32.mrb[22].mxu1 }
 0x2ff   : > { %v2997_v56 = vpop.f32.mrb[23].mxu1 }
 0x304   : > { %v12116_v59 = vpop.f32.mrb[24].mxu1 }
 0x305   : > { %v3002_v42 = vpop.f32.mrb[25].mxu1 }
 0x306   : > { %v12118_v41 = vpop.f32.mrb[26].mxu1 }
 0x307   : > { %v3005_v6 = vpop.f32.mrb[27].mxu1 }
 0x30c   : > { %v12120_v40 = vpop.f32.mrb[28].mxu1 }
 0x30d   : > { %v3010_v60 = vpop.f32.mrb[29].mxu1 }
 0x30e   : > { %v12122_v15 = vpop.f32.mrb[30].mxu1 }
 0x30f   : > { %v3013_v57 = vpop.f32.mrb[31].mxu1 }
 0x314   : > { %v12124_v30 = vpop.f32.mrb[32].mxu1 }
 0x315   : > { %v3018_v38 = vpop.f32.mrb[33].mxu1 }
 0x316   : > { %v12126_v27 = vpop.f32.mrb[34].mxu1 }
 0x317   : > { %v3021_v21 = vpop.f32.mrb[35].mxu1 }
 0x31c   : > { %v12128_v13 = vpop.f32.mrb[36].mxu1 }
 0x31d   : > { %v3026_v39 = vpop.f32.mrb[37].mxu1 }
 0x31e   : > { %v12130_v14 = vpop.f32.mrb[38].mxu1  ;;  %v15900_v39 = vld [vmem:[#allocation14_spill] sm:$0xff] }
 0x31f   : > { %v3029_v3 = vpop.f32.mrb[39].mxu1 }
 0x320   : > { %v15902_v3 = vld [vmem:[#allocation24_spill] sm:$0xff] }
 0x324   : > { %v12132_v18 = vpop.f32.mrb[40].mxu1 }
 0x325   : > { %v3034_v58 = vpop.f32.mrb[41].mxu1 }
 0x326   : > { %v12134_v62 = vpop.f32.mrb[42].mxu1 }
 0x327   : > { %v3037_v17 = vpop.f32.mrb[43].mxu1 }
 0x328   : > { %v15905_v17 = vld [vmem:[#allocation15_spill] sm:$0xff] }
 0x32d   : > { %v3352_v8 = vpop.f32.mrb[0].mxu0 }
 0x32e   : > { %v12137_v36 = vadd.f32 %v3352_v8, %v12075_v0  ;;  %v3354_v1 = vpop.f32.mrb[1].mxu0  ;;  %v15907_v8 = vld [vmem:[#allocation100_spill] sm:$0xff] }
 0x32f   : > { %v3355_v12 = vpop.f32.mrb[2].mxu0 }
 0x330   : > { %v7034_v7 = vadd.f32 %v3355_v12, %v12080_v25  ;;  %v3357_v28 = vpop.f32.mrb[3].mxu0  ;;  %v15887_v25 = vld [vmem:[#allocation95_spill] sm:$0xff] }
 0x331   : > { %vm15888_vm9 = vnez %v15887_v25 }
 0x332   : > { %v3519_v33 = vmax.f32 %v7034_v7, 0.0  ;;  %vm15889_vm7 = vmand %vm15886_vm3, %vm15888_vm9  ;;  %vm15896_vm9 = vnez %v15895_v55 }
 0x334   : > { %v3560_v0 = vsel %vm15884_vm6, %v3519_v33, 0.0  ;;  %vm15891_vm6 = vnez %v15890_v44 }
 0x335   : > { %v3360_v35 = vpop.f32.mrb[4].mxu0  ;;  %vm15894_vm3 = vmand %vm15891_vm6, %vm15893_vm0  ;;  %vm15901_vm6 = vnez %v15900_v39  ;;  %vm15903_vm0 = vnez %v15902_v3 }
 0x336   : > { %v7035_v63 = vadd.f32 %v3360_v35, %v12086_v49  ;;  %v3362_v5 = vpop.f32.mrb[5].mxu0 }
 0x337   : > { %v3363_v54 = vpop.f32.mrb[6].mxu0 }
 0x338   : > { %v3520_v19 = vmax.f32 %v7035_v63, 0.0  ;;  %v7036_v46 = vadd.f32 %v3363_v54, %v12089_v52  ;;  %v3365_v29 = vpop.f32.mrb[7].mxu0  ;;  %v15910_v54 = vld [vmem:[#allocation16_spill] sm:$0xff] }
 0x339   : > { %v15915_v29 = vld [vmem:[#allocation84_spill] sm:$0xff] }
 0x33a   : > { %v3561_v47 = vsel %vm15889_vm7, %v3520_v19, 0.0  ;;  %v3521_v20 = vmax.f32 %v7036_v46, 0.0  ;;  %vm15898_vm7 = vnez %v15897_v53  ;;  %v15912_v19 = vld [vmem:[#allocation102_spill] sm:$0xff] }
 0x33b   : > { %v7534_v31 = vpack.i.bf16 %v3561_v47, %v3560_v0  ;;  %vm15899_vm13 = vmand %vm15896_vm9, %vm15898_vm7  ;;  %vm15906_vm9 = vnez %v15905_v17  ;;  %vm15908_vm7 = vnez %v15907_v8 }
 0x33c   : > { %v3562_v48 = vsel %vm15894_vm3, %v3521_v20, 0.0  ;;  %vm15904_vm3 = vmand %vm15901_vm6, %vm15903_vm0  ;;  %vm15911_vm6 = vnez %v15910_v54  ;;  %vm15913_vm0 = vnez %v15912_v19 }
 0x33d   : > { %v3368_v49 = vpop.f32.mrb[8].mxu0  ;;  %7535 = vrot.lane.b32.xlu1 %v7534_v31, %s7865_s18 }
 0x33e   : > { %v7037_v52 = vadd.f32 %v3368_v49, %v12096_v24  ;;  %v3370_v26 = vpop.f32.mrb[9].mxu0 }
 0x33f   : > { %v3371_v22 = vpop.f32.mrb[10].mxu0  ;;  %v15922_v26 = vld [vmem:[#allocation106_spill] sm:$0xff] }
 0x340   : > { %v3522_v9 = vmax.f32 %v7037_v52, 0.0  ;;  %v7038_v50 = vadd.f32 %v3371_v22, %v12099_v37  ;;  %v3373_v34 = vpop.f32.mrb[11].mxu0  ;;  %v15920_v52 = vld [vmem:[#allocation17_spill] sm:$0xff] }
 0x342   : > { %v3563_v32 = vsel %vm15899_vm13, %v3522_v9, 0.0  ;;  %v3523_v42 = vmax.f32 %v7038_v50, 0.0  ;;  %vm15909_vm13 = vmand %vm15906_vm9, %vm15908_vm7  ;;  %vm15916_vm9 = vnez %v15915_v29  ;;  %vm15918_vm7 = vnez %v15917_v45  ;;  %v15925_v9 = vld [vmem:[#allocation86_spill] sm:$0xff]  ;;  %v15927_v50 = vld [vmem:[#allocation109_spill] sm:$0xff] }
 0x343   : > { %v7539_v56 = vpack.i.bf16 %v3563_v32, %v3562_v48  ;;  %v15950_v29 = vld [vmem:[#allocation101_spill] sm:$0xff]  ;;  %v15952_v45 = vld [vmem:[#allocation108_spill] sm:$0xff] }
 0x344   : > { %v3564_v58 = vsel %vm15904_vm3, %v3523_v42, 0.0  ;;  %vm15914_vm3 = vmand %vm15911_vm6, %vm15913_vm0  ;;  %vm15921_vm6 = vnez %v15920_v52  ;;  %vm15923_vm0 = vnez %v15922_v26  ;;  %v15932_v42 = vld [vmem:[#allocation27_spill] sm:$0xff]  ;;  %v15960_v26 = vld [vmem:[#allocation105_spill] sm:$0xff] }
 0x345   : > { %v3376_v24 = vpop.f32.mrb[12].mxu0  ;;  %7540 = vrot.lane.b32.xlu1 %v7539_v56, %s7865_s18 }
 0x346   : > { %v7039_v37 = vadd.f32 %v3376_v24, %v12103_v2  ;;  %v3378_v6 = vpop.f32.mrb[13].mxu0  ;;  %v15930_v24 = vld [vmem:[#allocation97_spill] sm:$0xff] }
 0x347   : > { %v3379_v60 = vpop.f32.mrb[14].mxu0  ;;  %v15935_v6 = vld [vmem:[#allocation98_spill] sm:$0xff] }
 0x348   : > { %v3524_v57 = vmax.f32 %v7039_v37, 0.0  ;;  %v7040_v38 = vadd.f32 %v3379_v60, %v12105_v10  ;;  %v3381_v21 = vpop.f32.mrb[15].mxu0  ;;  %v15937_v60 = vld [vmem:[#allocation34_spill] sm:$0xff] }
 0x34a   : > { %v3565_v1 = vsel %vm15909_vm13, %v3524_v57, 0.0  ;;  %v3525_v7 = vmax.f32 %v7040_v38, 0.0  ;;  %vm15919_vm13 = vmand %vm15916_vm9, %vm15918_vm7  ;;  %vm15926_vm9 = vnez %v15925_v9  ;;  %vm15928_vm7 = vnez %v15927_v50  ;;  %v15965_v50 = vld [vmem:[#allocation107_spill] sm:$0xff] }
 0x34b   : > { %v7544_v12 = vpack.i.bf16 %v3565_v1, %v3564_v58  ;;  %v15940_v1 = vld [vmem:[#allocation23_spill] sm:$0xff] }
 0x34c   : > { %v3566_v46 = vsel %vm15914_vm3, %v3525_v7, 0.0  ;;  %vm15924_vm3 = vmand %vm15921_vm6, %vm15923_vm0  ;;  %vm15931_vm6 = vnez %v15930_v24  ;;  %vm15933_vm0 = vnez %v15932_v42  ;;  %v15945_v7 = vld [vmem:[#allocation25_spill] sm:$0xff] }
 0x34d   : > { %v3384_v2 = vpop.f32.mrb[16].mxu0  ;;  %7545 = vrot.lane.b32.xlu0 %v7544_v12, %s7865_s18  ;;  %v15942_v12 = vld [vmem:[#allocation38_spill] sm:$0xff] }
 0x34e   : > { %v7041_v10 = vadd.f32 %v3384_v2, %v12108_v51  ;;  %v3386_v28 = vpop.f32.mrb[17].mxu0 }
 0x34f   : > { %v3387_v35 = vpop.f32.mrb[18].mxu0 }
 0x350   : > { %v3526_v33 = vmax.f32 %v7041_v10, 0.0  ;;  %v7042_v63 = vadd.f32 %v3387_v35, %v12110_v23  ;;  %v3389_v5 = vpop.f32.mrb[19].mxu0  ;;  %v15947_v10 = vld [vmem:[#allocation39_spill] sm:$0xff] }
 0x352   : > { %v3567_v11 = vsel %vm15919_vm13, %v3526_v33, 0.0  ;;  %v3527_v4 = vmax.f32 %v7042_v63, 0.0  ;;  %vm15929_vm13 = vmand %vm15926_vm9, %vm15928_vm7  ;;  %vm15936_vm9 = vnez %v15935_v6  ;;  %vm15938_vm7 = vnez %v15937_v60  ;;  %v15970_v6 = vld [vmem:[#allocation26_spill] sm:$0xff]  ;;  %v15972_v60 = vld [vmem:[#allocation44_spill] sm:$0xff] }
 0x353   : > { %v7549_v0 = vpack.i.bf16 %v3567_v11, %v3566_v46 }
 0x354   : > { %v3568_v22 = vsel %vm15924_vm3, %v3527_v4, 0.0  ;;  %vm15934_vm3 = vmand %vm15931_vm6, %vm15933_vm0  ;;  %vm15941_vm6 = vnez %v15940_v1  ;;  %vm15943_vm0 = vnez %v15942_v12 }
 0x355   : > { %v3392_v51 = vpop.f32.mrb[20].mxu0  ;;  %7550 = vrot.lane.b32.xlu1 %v7549_v0, %s7865_s18  ;;  %v15955_v0 = vld [vmem:[#allocation103_spill] sm:$0xff] }
 0x356   : > { %v7043_v23 = vadd.f32 %v3392_v51, %v12112_v16  ;;  %v3394_v25 = vpop.f32.mrb[21].mxu0  ;;  %v15957_v51 = vld [vmem:[#allocation61_spill] sm:$0xff] }
 0x357   : > { %v3395_v47 = vpop.f32.mrb[22].mxu0 }
 0x358   : > { %v3528_v31 = vmax.f32 %v7043_v23, 0.0  ;;  %v7044_v49 = vadd.f32 %v3395_v47, %v12114_v43  ;;  %v3397_v20 = vpop.f32.mrb[23].mxu0 }
 0x35a   : > { %v3569_v34 = vsel %vm15929_vm13, %v3528_v31, 0.0  ;;  %v3529_v61 = vmax.f32 %v7044_v49, 0.0  ;;  %vm15939_vm13 = vmand %vm15936_vm9, %vm15938_vm7  ;;  %vm15946_vm9 = vnez %v15945_v7  ;;  %vm15948_vm7 = vnez %v15947_v10 }
 0x35b   : > { %v7554_v44 = vpack.i.bf16 %v3569_v34, %v3568_v22  ;;  %v15962_v22 = vld [vmem:[#allocation66_spill] sm:$0xff]  ;;  %v15967_v34 = vld [vmem:[#allocation8_spill] sm:$0xff] }
 0x35c   : > { %v3570_v37 = vsel %vm15934_vm3, %v3529_v61, 0.0  ;;  %vm15944_vm3 = vmand %vm15941_vm6, %vm15943_vm0  ;;  %vm15951_vm6 = vnez %v15950_v29  ;;  %vm15953_vm0 = vnez %v15952_v45 }
 0x35d   : > { %v3400_v16 = vpop.f32.mrb[24].mxu0  ;;  %7555 = vrot.lane.b32.xlu0 %v7554_v44, %s7865_s18 }
 0x35e   : > { %v7045_v43 = vadd.f32 %v3400_v16, %v12116_v59  ;;  %v3402_v48 = vpop.f32.mrb[25].mxu0 }
 0x35f   : > { %v3403_v55 = vpop.f32.mrb[26].mxu0 }
 0x360   : > { %v3530_v53 = vmax.f32 %v7045_v43, 0.0  ;;  %v7046_v32 = vadd.f32 %v3403_v55, %v12118_v41  ;;  %v3405_v56 = vpop.f32.mrb[27].mxu0 }
 0x362   : > { %v3571_v57 = vsel %vm15939_vm13, %v3530_v53, 0.0  ;;  %v3531_v21 = vmax.f32 %v7046_v32, 0.0  ;;  %vm15949_vm13 = vmand %vm15946_vm9, %vm15948_vm7  ;;  %vm15956_vm9 = vnez %v15955_v0  ;;  %vm15958_vm7 = vnez %v15957_v51 }
 0x363   : > { %v7559_v38 = vpack.i.bf16 %v3571_v57, %v3570_v37 }
 0x364   : > { %v3572_v2 = vsel %vm15944_vm3, %v3531_v21, 0.0  ;;  %vm15954_vm3 = vmand %vm15951_vm6, %vm15953_vm0  ;;  %vm15961_vm6 = vnez %v15960_v26  ;;  %vm15963_vm0 = vnez %v15962_v22 }
 0x365   : > { %v3408_v59 = vpop.f32.mrb[28].mxu0  ;;  %7560 = vrot.lane.b32.xlu1 %v7559_v38, %s7865_s18  ;;  %v15975_v38 = vld [vmem:[#allocation31_spill] sm:$0xff] }
 0x366   : > { %v7047_v41 = vadd.f32 %v3408_v59, %v12120_v40  ;;  %v3410_v39 = vpop.f32.mrb[29].mxu0  ;;  %v15977_v59 = vld [vmem:[#allocation67_spill] sm:$0xff] }
 0x367   : > { %v3411_v3 = vpop.f32.mrb[30].mxu0 }
 0x368   : > { %v3532_v58 = vmax.f32 %v7047_v41, 0.0  ;;  %v7048_v17 = vadd.f32 %v3411_v3, %v12122_v15  ;;  %v3413_v8 = vpop.f32.mrb[31].mxu0 }
 0x36a   : > { %v3573_v28 = vsel %vm15949_vm13, %v3532_v58, 0.0  ;;  %v3533_v33 = vmax.f32 %v7048_v17, 0.0  ;;  %vm15959_vm13 = vmand %vm15956_vm9, %vm15958_vm7  ;;  %vm15966_vm9 = vnez %v15965_v50  ;;  %vm15968_vm7 = vnez %v15967_v34 }
 0x36b   : > { %v7564_v35 = vpack.i.bf16 %v3573_v28, %v3572_v2  ;;  %v15980_v28 = vld [vmem:[#allocation36_spill] sm:$0xff] }
 0x36c   : > { %v3574_v11 = vsel %vm15954_vm3, %v3533_v33, 0.0  ;;  %vm15964_vm3 = vmand %vm15961_vm6, %vm15963_vm0  ;;  %vm15971_vm6 = vnez %v15970_v6  ;;  %vm15973_vm0 = vnez %v15972_v60  ;;  %v15985_v33 = vld [vmem:[#allocation110_spill] sm:$0xff] }
 0x36d   : > { %v3416_v40 = vpop.f32.mrb[32].mxu0  ;;  %7565 = vrot.lane.b32.xlu0 %v7564_v35, %s7865_s18  ;;  %v15982_v35 = vld [vmem:[#allocation131_spill] sm:$0xff] }
 0x36e   : > { %v7049_v15 = vadd.f32 %v3416_v40, %v12124_v30  ;;  %v3418_v63 = vpop.f32.mrb[33].mxu0 }
 0x36f   : > { %v3419_v5 = vpop.f32.mrb[34].mxu0 }
 0x370   : > { %v3534_v54 = vmax.f32 %v7049_v15, 0.0  ;;  %v7050_v19 = vadd.f32 %v3419_v5, %v12126_v27  ;;  %v3421_v46 = vpop.f32.mrb[35].mxu0  ;;  %v15987_v15 = vld [vmem:[#allocation132_spill] sm:$0xff] }
 0x372   : > { %v3575_v4 = vsel %vm15959_vm13, %v3534_v54, 0.0  ;;  %v3535_v25 = vmax.f32 %v7050_v19, 0.0  ;;  %vm15969_vm13 = vmand %vm15966_vm9, %vm15968_vm7  ;;  %vm15976_vm9 = vnez %v15975_v38  ;;  %vm15978_vm7 = vnez %v15977_v59 }
 0x373   : > { %v7569_v23 = vpack.i.bf16 %v3575_v4, %v3574_v11 }
 0x374   : > { %v3576_v9 = vsel %vm15964_vm3, %v3535_v25, 0.0  ;;  %vm15974_vm3 = vmand %vm15971_vm6, %vm15973_vm0  ;;  %vm15981_vm6 = vnez %v15980_v28  ;;  %vm15983_vm0 = vnez %v15982_v35 }
 0x375   : > { %v3424_v30 = vpop.f32.mrb[36].mxu0  ;;  %7570 = vrot.lane.b32.xlu1 %v7569_v23, %s7865_s18 }
 0x376   : > { %v7051_v27 = vadd.f32 %v3424_v30, %v12128_v13  ;;  %v3426_v47 = vpop.f32.mrb[37].mxu0 }
 0x377   : > { %v3427_v31 = vpop.f32.mrb[38].mxu0  ;;  %v15992_v47 = vld [vmem:[#allocation62_spill] sm:$0xff] }
 0x378   : > { %v3536_v49 = vmax.f32 %v7051_v27, 0.0  ;;  %v7052_v20 = vadd.f32 %v3427_v31, %v12130_v14  ;;  %v3429_v52 = vpop.f32.mrb[39].mxu0  ;;  %v15990_v27 = vld [vmem:[#allocation41_spill] sm:$0xff] }
 0x37a   : > { %v3577_v44 = vsel %vm15969_vm13, %v3536_v49, 0.0  ;;  %v3537_v14 = vmax.f32 %v7052_v20, 0.0  ;;  %vm15979_vm13 = vmand %vm15976_vm9, %vm15978_vm7  ;;  %vm15986_vm9 = vnez %v15985_v33  ;;  %vm15988_vm7 = vnez %v15987_v15  ;;  %v15995_v49 = vld [vmem:[#allocation29_spill] sm:$0xff]  ;;  %v15997_v20 = vld [vmem:[#allocation46_spill] sm:$0xff] }
 0x37b   : > { %v7574_v16 = vpack.i.bf16 %v3577_v44, %v3576_v9  ;;  %vm15998_vm2 = vnez %v15997_v20 }
 0x37c   : > { %v3240_v13 = vpop.f32.mrb[44].mxu1  ;;  %v3578_v57 = vsel %vm15974_vm3, %v3537_v14, 0.0  ;;  %vm15984_vm3 = vmand %vm15981_vm6, %vm15983_vm0  ;;  %vm15991_vm6 = vnez %v15990_v27  ;;  %vm15993_vm0 = vnez %v15992_v47 }
 0x37d   : > { %v3432_v61 = vpop.f32.mrb[40].mxu0  ;;  %7575 = vrot.lane.b32.xlu0 %v7574_v16, %s7865_s18  ;;  %v3242_v43 = vpop.f32.mrb[45].mxu1 }
 0x37e   : > { %v7053_v48 = vadd.f32 %v3432_v61, %v12132_v18  ;;  %v3434_v55 = vpop.f32.mrb[41].mxu0  ;;  %v3243_v53 = vpop.f32.mrb[46].mxu1 }
 0x37f   : > { %v3435_v32 = vpop.f32.mrb[42].mxu0  ;;  %v3245_v56 = vpop.f32.mrb[47].mxu1 }
 0x380   : > { %v3538_v24 = vmax.f32 %v7053_v48, 0.0  ;;  %v7054_v42 = vadd.f32 %v3435_v32, %v12134_v62  ;;  %v3437_v37 = vpop.f32.mrb[43].mxu0  ;;  %v16002_v32 = vld [vmem:[#allocation9_spill] sm:$0xff] }
 0x382   : > { %v3579_v18 = vsel %vm15979_vm13, %v3538_v24, 0.0  ;;  %v3539_v62 = vmax.f32 %v7054_v42, 0.0  ;;  %vm15989_vm13 = vmand %vm15986_vm9, %vm15988_vm7  ;;  %vm15996_vm9 = vnez %v15995_v49  ;;  %v16005_v24 = vld [vmem:[#allocation43_spill] sm:$0xff]  ;;  %v16007_v42 = vld [vmem:[#allocation133_spill] sm:$0xff] }
 0x383   : > { %v7579_v21 = vpack.i.bf16 %v3579_v18, %v3578_v57  ;;  %vm15999_vm7 = vmand %vm15996_vm9, %vm15998_vm2  ;;  %vm16008_vm9 = vnez %v16007_v42  ;;  %v16038_v42 = vld [vmem:[#allocation137_spill] sm:$0xff] }
 0x384   : > { %v3248_v41 = vpop.f32.mrb[48].mxu1  ;;  %v3580_v40 = vsel %vm15984_vm3, %v3539_v62, 0.0  ;;  %vm15994_vm3 = vmand %vm15991_vm6, %vm15993_vm0  ;;  %vm16003_vm6 = vnez %v16002_v32  ;;  %v16035_v32 = vld [vmem:[#allocation6_spill] sm:$0xff] }
 0x385   : > { %v3440_v39 = vpop.f32.mrb[44].mxu0  ;;  %7580 = vrot.lane.b32.xlu1 %v7579_v21, %s7865_s18  ;;  %v3250_v3 = vpop.f32.mrb[49].mxu1 }
 0x386   : > { %v7055_v58 = vadd.f32 %v3440_v39, %v3240_v13  ;;  %v3442_v17 = vpop.f32.mrb[45].mxu0  ;;  %v3251_v8 = vpop.f32.mrb[50].mxu1 }
 0x387   : > { %v3443_v1 = vpop.f32.mrb[46].mxu0  ;;  %v3253_v12 = vpop.f32.mrb[51].mxu1 }
 0x388   : > { %v3540_v2 = vmax.f32 %v7055_v58, 0.0  ;;  %v7056_v7 = vadd.f32 %v3443_v1, %v3243_v53  ;;  %v3445_v10 = vpop.f32.mrb[47].mxu0  ;;  %v16000_v53 = vld [vmem:[#allocation42_spill] sm:$0xff]  ;;  %v16012_v1 = vld [vmem:[#allocation52_spill] sm:$0xff] }
 0x38a   : > { %v3581_v63 = vsel %vm15989_vm13, %v3540_v2, 0.0  ;;  %v3541_v29 = vmax.f32 %v7056_v7, 0.0  ;;  %vm16001_vm13 = vnez %v16000_v53  ;;  %v16015_v2 = vld [vmem:[#allocation134_spill] sm:$0xff]  ;;  %v16017_v7 = vld [vmem:[#allocation135_spill] sm:$0xff] }
 0x38b   : > { %v7584_v5 = vpack.i.bf16 %v3581_v63, %v3580_v40  ;;  %vm16004_vm0 = vmand %vm16001_vm13, %vm16003_vm6  ;;  %vm16013_vm13 = vnez %v16012_v1 }
 0x38c   : > { %v3256_v54 = vpop.f32.mrb[52].mxu1  ;;  %v3582_v31 = vsel %vm15994_vm3, %v3541_v29, 0.0  ;;  %vm16006_vm3 = vnez %v16005_v24  ;;  %v16036_v24 = vld [vmem:[#allocation54_spill] sm:$0xff] }
 0x38d   : > { %v3448_v19 = vpop.f32.mrb[48].mxu0  ;;  %7585 = vrot.lane.b32.xlu0 %v7584_v5, %s7865_s18  ;;  %v3258_v46 = vpop.f32.mrb[53].mxu1 }
 0x38e   : > { %v7057_v45 = vadd.f32 %v3448_v19, %v3248_v41  ;;  %v3450_v11 = vpop.f32.mrb[49].mxu0  ;;  %v3259_v0 = vpop.f32.mrb[54].mxu1 }
 0x38f   : > { %v3451_v51 = vpop.f32.mrb[50].mxu0  ;;  %v3261_v4 = vpop.f32.mrb[55].mxu1 }
 0x390   : > { %v3542_v23 = vmax.f32 %v7057_v45, 0.0  ;;  %v7058_v30 = vadd.f32 %v3451_v51, %v3251_v8  ;;  %v3453_v25 = vpop.f32.mrb[51].mxu0  ;;  %v16010_v8 = vld [vmem:[#allocation50_spill] sm:$0xff]  ;;  %v16022_v51 = vld [vmem:[#allocation64_spill] sm:$0xff] }
 0x391   : > { %vm16011_vm4 = vnez %v16010_v8 }
 0x392   : > { %v3583_v52 = vsel %vm15999_vm7, %v3542_v23, 0.0  ;;  %v3543_v34 = vmax.f32 %v7058_v30, 0.0  ;;  %vm16009_vm7 = vmand %vm16006_vm3, %vm16008_vm9  ;;  %vm16018_vm3 = vnez %v16017_v7  ;;  %v16025_v23 = vld [vmem:[#allocation136_spill] sm:$0xff]  ;;  %v16027_v30 = vld [vmem:[#allocation55_spill] sm:$0xff] }
 0x393   : > { %v7589_v26 = vpack.i.bf16 %v3583_v52, %v3582_v31  ;;  %vm16014_vm6 = vmand %vm16011_vm4, %vm16013_vm13  ;;  %vm16023_vm13 = vnez %v16022_v51 }
 0x394   : > { %v3264_v22 = vpop.f32.mrb[56].mxu1  ;;  %v3584_v56 = vsel %vm16004_vm0, %v3543_v34, 0.0  ;;  %vm16016_vm0 = vnez %v16015_v2 }
 0x395   : > { %v3456_v9 = vpop.f32.mrb[52].mxu0  ;;  %7590 = vrot.lane.b32.xlu1 %v7589_v26, %s7865_s18  ;;  %v3266_v50 = vpop.f32.mrb[57].mxu1  ;;  %vm16019_vm9 = vmand %vm16016_vm0, %vm16018_vm3  ;;  %vm16026_vm0 = vnez %v16025_v23  ;;  %vm16028_vm3 = vnez %v16027_v30 }
 0x396   : > { %v7059_v44 = vadd.f32 %v3456_v9, %v3256_v54  ;;  %v3458_v16 = vpop.f32.mrb[53].mxu0  ;;  %v3267_v13 = vpop.f32.mrb[58].mxu1  ;;  %v16030_v9 = vld [vmem:[#allocation7_spill] sm:$0xff] }
 0x397   : > { %v3459_v61 = vpop.f32.mrb[54].mxu0  ;;  %v3269_v43 = vpop.f32.mrb[59].mxu1  ;;  %vm16031_vm2 = vcmp.ge.s32.totalorder %v16030_v9, 64  ;;  %v12895_v50 = vld [vmem:[#allocation3 + $0x1d08] sm:$0xff] (%p1689_p8)  }
 0x398   : > { %v3544_v14 = vmax.f32 %v7059_v44, 0.0  ;;  %v7060_v48 = vadd.f32 %v3459_v61, %v3259_v0  ;;  %v3461_v55 = vpop.f32.mrb[55].mxu0  ;;  %v16020_v0 = vld [vmem:[#allocation63_spill] sm:$0xff] }
 0x399   : > { %v16034_v55 = vmov 0  }
 0x39a   : > { %v3585_v37 = vsel %vm16009_vm7, %v3544_v14, 0.0  ;;  %v3545_v59 = vmax.f32 %v7060_v48, 0.0  ;;  %vm16021_vm7 = vnez %v16020_v0 }
 0x39b   : > { %v7594_v6 = vpack.i.bf16 %v3585_v37, %v3584_v56  ;;  %v3707_v56 = vsub.s32 0, %v16035_v32 }
 0x39c   : > { %v3272_v60 = vpop.f32.mrb[60].mxu1  ;;  %v3586_v12 = vsel %vm16014_vm6, %v3545_v59, 0.0  ;;  %vm16024_vm6 = vmand %vm16021_vm7, %vm16023_vm13  ;;  %vm4438_vm13 = vcmask 1040384  }
 0x39d   : > { %v3464_v57 = vpop.f32.mrb[56].mxu0  ;;  %7595 = vrot.lane.b32.xlu0 %v7594_v6, %s7865_s18  ;;  %v3274_v38 = vpop.f32.mrb[61].mxu1  ;;  %vm12328_vm7 = vmpackc.low %vm16031_vm2, %vm16031_vm2  ;;  %vm16037_vm2 = vnez %v16036_v24  ;;  %v16041_v6 = vld [vmem:[#allocation140_spill] sm:$0xff] }
 0x39e   : > { %v7061_v18 = vadd.f32 %v3464_v57, %v3264_v22  ;;  %v3466_v21 = vpop.f32.mrb[57].mxu0  ;;  %v3275_v41 = vpop.f32.mrb[62].mxu1  ;;  %v3704_v53 = vsel %vm12328_vm7, 65537, %v16034_v55 }
 0x39f   : > { %v3467_v39 = vpop.f32.mrb[58].mxu0  ;;  %v3277_v3 = vpop.f32.mrb[63].mxu1 }
 0x3a0   : > { %v3546_v62 = vmax.f32 %v7061_v18, 0.0  ;;  %v7062_v58 = vadd.f32 %v3467_v39, %v3267_v13  ;;  %v3469_v17 = vpop.f32.mrb[59].mxu0  ;;  %v16094_v39 = vmov (%p1689_p8), 0  }
 0x3a1   :  { %5949 = vmatprep.subr.bf16.mxu1 (%p1689_p8), %v16094_v39  ;;  %6149 = vmatprep.subr.bf16.mxu0 (%p1689_p8), %v16094_v39 }
 0x3a2   : > { %v3587_v10 = vsel %vm16019_vm9, %v3546_v62, 0.0  ;;  %v3547_v15 = vmax.f32 %v7062_v58, 0.0  ;;  %vm16029_vm9 = vmand %vm16026_vm0, %vm16028_vm3  ;;  %vm16039_vm0 = vnez %v16038_v42  ;;  %v12357_v58 = vrot.slane %v3704_v53, %v3707_v56 }
 0x3a3   : > { %v7599_v28 = vpack.i.bf16 %v3587_v10, %v3586_v12  ;;  %vm16040_vm3 = vmand %vm16037_vm2, %vm16039_vm0 }
 0x3a4   : > { %v3280_v35 = vpop.f32.mrb[64].mxu1  ;;  %v3588_v4 = vsel %vm16024_vm6, %v3547_v15, 0.0  ;;  %vm4439_vm6 = vcmask 1044484  }
 0x3a5   : > { %v3472_v40 = vpop.f32.mrb[60].mxu0  ;;  %7600 = vrot.lane.b32.xlu1 %v7599_v28, %s7865_s18  ;;  %v3282_v33 = vpop.f32.mrb[65].mxu1  ;;  %vm12352_vm14 = vmor %vm4438_vm13, %vm4439_vm6 }
 0x3a6   : > { %v7063_v63 = vadd.f32 %v3472_v40, %v3272_v60  ;;  %v3474_v5 = vpop.f32.mrb[61].mxu0  ;;  %v3283_v54 = vpop.f32.mrb[66].mxu1  ;;  %v16043_v60 = vld [vmem:[#allocation65_spill] sm:$0xff] }
 0x3a7   : > { %v3475_v19 = vpop.f32.mrb[62].mxu0  ;;  %v3285_v46 = vpop.f32.mrb[67].mxu1  ;;  %vm16044_vm4 = vnez %v16043_v60  ;;  %v16063_v60 = vld [vmem:[#allocation72_spill] sm:$0xff] }
 0x3a8   : > { %v3548_v29 = vmax.f32 %v7063_v63, 0.0  ;;  %v7064_v45 = vadd.f32 %v3475_v19, %v3275_v41  ;;  %v3477_v11 = vpop.f32.mrb[63].mxu0  ;;  %v16050_v19 = vld [vmem:[#allocation57_spill] sm:$0xff] }
 0x3aa   : > { %v3589_v25 = vsel %vm16029_vm9, %v3548_v29, 0.0  ;;  %v3549_v20 = vmax.f32 %v7064_v45, 0.0  ;;  %vm16042_vm9 = vnez %v16041_v6  ;;  %v16053_v29 = vld [vmem:[#allocation141_spill] sm:$0xff]  ;;  %v16055_v45 = vld [vmem:[#allocation138_spill] sm:$0xff] }
 0x3ab   : > { %v7604_v27 = vpack.i.bf16 %v3589_v25, %v3588_v4  ;;  %vm16045_vm11 = vmand %vm16042_vm9, %vm16044_vm4  ;;  %vm16054_vm6 = vnez %v16053_v29  ;;  %vm16056_vm2 = vnez %v16055_v45  ;;  %vm3834_vm9 = vsmask.f32 256 }
 0x3ac   : > { %v3288_v47 = vpop.f32.mrb[68].mxu1  ;;  %v3590_v37 = vsel %vm16040_vm3, %v3549_v20, 0.0  ;;  %vm16057_vm0 = vmand %vm16054_vm6, %vm16056_vm2  ;;  %vm3709_vm3 = vcmp.ne.s16.totalorder %v12357_v58, 0  ;;  %vm16064_vm6 = vnez %v16063_v60  ;;  %v3518_v45 = vmax.f32 %v12137_v36, 0.0  ;;  %v12910_v58 = vld [vmem:[#allocation3 + $0x1d20] sm:$0xff] (%p1689_p8)  }
 0x3ad   : > { %v3480_v31 = vpop.f32.mrb[64].mxu0  ;;  %7605 = vrot.lane.b32.xlu0 %v7604_v27, %s7865_s18  ;;  %v3290_v49 = vpop.f32.mrb[69].mxu1 }
 0x3ae   : > { %v7065_v52 = vadd.f32 %v3480_v31, %v3280_v35  ;;  %v3482_v26 = vpop.f32.mrb[65].mxu0  ;;  %v3291_v22 = vpop.f32.mrb[70].mxu1 }
 0x3af   : > { %v3483_v34 = vpop.f32.mrb[66].mxu0  ;;  %v7536_v44 = vpop.permute.xlu1 %7535 }
 0x3b0   : > { %v3550_v16 = vmax.f32 %v7065_v52, 0.0  ;;  %v7066_v13 = vadd.f32 %v3483_v34, %v3283_v54  ;;  %v7538_v61 = vunpack.i.h.bf16 %v7536_v44  ;;  %v12332_v43 = vunpack.i.l.bf16 %v7536_v44  ;;  %v3293_v14 = vpop.f32.mrb[71].mxu1  ;;  %v3485_v48 = vpop.f32.mrb[67].mxu0  ;;  %v16048_v54 = vld [vmem:[#allocation56_spill] sm:$0xff] }
 0x3b1   : > { %vm16049_vm4 = vnez %v16048_v54 }
 0x3b2   : > { %v3591_v57 = vsel %vm16045_vm11, %v3550_v16, 0.0  ;;  %v6962_v38 = vpack.c.bf16 %v7538_v61, %v7538_v61  ;;  %v6961_v59 = vpack.c.bf16 %v12332_v43, %v12332_v43  ;;  %v3551_v17 = vmax.f32 %v7066_v13, 0.0 }
 0x3b3   : > { %v7609_v18 = vpack.i.bf16 %v3591_v57, %v3590_v37  ;;  %vm16051_vm11 = vnez %v16050_v19  ;;  %v16065_v57 = vld [vmem:[#allocation58_spill] sm:$0xff] }
 0x3b4   : > { %v12350_v21 = vrot.slane %v6961_v59, 7  ;;  %v3296_v41 = vpop.f32.mrb[72].mxu1  ;;  %v12359_v8 = vrot.slane %v6962_v38, 7  ;;  %vm16052_vm13 = vmand %vm16049_vm4, %vm16051_vm11  ;;  %vm3835_vm4 = vsmask.f32 4368  ;;  %vm16066_vm2 = vnez %v16065_v57 }
 0x3b5   : > { %v3488_v3 = vpop.f32.mrb[68].mxu0  ;;  %7610 = vrot.lane.b32.xlu1 %v7609_v18, %s7865_s18  ;;  %v3298_v62 = vpop.f32.mrb[73].mxu1  ;;  %v3592_v46 = vsel %vm16052_vm13, %v3551_v17, 0.0  ;;  %vm12389_vm11 = vmor %vm3834_vm9, %vm3835_vm4 }
 0x3b6   : > { %v4445_v1 = vrot.slane %v12350_v21, 4  ;;  %v7067_v12 = vadd.f32 %v3488_v3, %v3288_v47  ;;  %v3490_v2 = vpop.f32.mrb[69].mxu0  ;;  %v3299_v7 = vpop.f32.mrb[74].mxu1  ;;  %vm16062_vm13 = vmand %vm11177_vm10, %vm11184_vm8  ;;  %vm16095_vm10 = vcmask (%p1689_p8), 1046528  }
 0x3b7   : > { %v3491_v10 = vpop.f32.mrb[70].mxu0  ;;  %v7541_v28 = vpop.permute.xlu1 %7540  ;;  %vm16070_vm9 = vmand %vm11223_vm5, %vm11227_vm12 }
 0x3b8   : > { %v12365_v35 = vsel %vm12352_vm14, %v4445_v1, %v12359_v8  ;;  %v3552_v40 = vmax.f32 %v7067_v12, 0.0  ;;  %v7068_v33 = vadd.f32 %v3491_v10, %v3291_v22  ;;  %v3301_v15 = vpop.f32.mrb[75].mxu1  ;;  %v3493_v63 = vpop.f32.mrb[71].mxu0  ;;  %v7542_v5 = vunpack.i.l.bf16 %v7541_v28  ;;  %vm16073_vm4 = vmand %vm11211_vm1, %vm11215_vm15 }
 0x3b9   : > { %v7543_v24 = vunpack.i.h.bf16 %v7541_v28  ;;  %vm16096_vm1 = vsmask.f32 (%p1689_p8), 7424  ;;  %vm16099_vm8 = vmmov (%p1689_p8), %vm16095_vm10 }
 0x3ba   : > { %v3593_v11 = vsel %vm16057_vm0, %v3552_v40, 0.0  ;;  %v3683_v51 = vpack.c.bf16 %v7542_v5, %v7538_v61  ;;  %v3553_v22 = vmax.f32 %v7068_v33, 0.0  ;;  %vm16067_vm0 = vmand %vm16064_vm6, %vm16066_vm2  ;;  %v6963_v62 = vpack.c.bf16 %v7542_v5, %v7542_v5 }
 0x3bb   : > { %v7614_v0 = vpack.i.bf16 %v3593_v11, %v3592_v46  ;;  %v6964_v33 = vpack.c.bf16 %v7543_v24, %v7543_v24  ;;  %vm16097_vm12 = vmmov (%p1689_p8), %vm16096_vm1 }
 0x3bc   : > { %v3304_v4 = vpop.f32.mrb[76].mxu1  ;;  %v3711_v23 = vsel %vm3709_vm3, %v3683_v51, 0  ;;  %v3594_v38 = vsel %vm16067_vm0, %v3553_v22, 0.0  ;;  %v4449_v11 = vrot.slane %v6963_v62, 7  ;;  %vm16100_vm5 = vmmov (%p1689_p8), %vm16096_vm1 }
 0x3bd   : > { %v3496_v30 = vpop.f32.mrb[72].mxu0  ;;  %7615 = vrot.lane.b32.xlu0 %v7614_v0, %s7865_s18  ;;  %v3306_v25 = vpop.f32.mrb[77].mxu1  ;;  %v6783_v27 = vcombine.low %v3711_v23, %v3711_v23  ;;  %v6784_v47 = vcombine.high %v3711_v23, %v3711_v23  ;;  %vm16101_vm15 = vmmov (%p1689_p8), %vm16096_vm1 }
 0x3be   : > { %v7069_v31 = vadd.f32 %v3496_v30, %v3296_v41  ;;  %v3498_v49 = vpop.f32.mrb[73].mxu0  ;;  %v3307_v20 = vpop.f32.mrb[78].mxu1 }
 0x3bf   : > { %v3499_v52 = vpop.f32.mrb[74].mxu0  ;;  %v7546_v26 = vpop.permute.xlu0 %7545  ;;  %v3855_v9 = vshrl.u32 %v6783_v27, 16  ;;  %v3864_v34 = vshrl.u32 %v6784_v47, 16  ;;  %v3858_v13 = vshll.u32 %v6783_v27, 16  ;;  %v3867_v53 = vshll.u32 %v6784_v47, 16 }
 0x3c0   : > { %v3309_v44 = vpop.f32.mrb[79].mxu1  ;;  %v3501_v16 = vpop.f32.mrb[75].mxu0  ;;  %v3554_v61 = vmax.f32 %v7069_v31, 0.0  ;;  %v12381_v14 = vadd.f32 %v3499_v52, %v3299_v7  ;;  %v12385_v32 = vunpack.i.l.bf16 %v7546_v26  ;;  %v4448_v27 = vrot.slane %v12359_v8, 4 }
 0x3c1   : > { %v3857_v48 = vrot.slane %v3855_v9, 7  ;;  %v12383_v55 = vrot.slane %v3864_v34, 7  ;;  %v4452_v47 = vrot.slane %v6964_v33, 7  ;;  %v4451_v44 = vrot.slane %v4449_v11, 4 }
 0x3c2   : > { %v3595_v6 = vsel %vm16062_vm13, %v3554_v61, 0.0  ;;  %v3684_v1 = vpack.c.bf16 %v12385_v32, %v7543_v24  ;;  %v6965_v57 = vpack.c.bf16 %v12385_v32, %v12385_v32 }
 0x3c3   : > { %v12403_v59 = vor.u32 %v3858_v13, %v3857_v48  ;;  %v3862_v18 = vrot.slane %v3857_v48, 4  ;;  %v3869_v41 = vor.u32 %v3867_v53, %v12383_v55  ;;  %v7629_v17 = vpack.i.bf16 %v3595_v6, %v3594_v38 }
 0x3c4   : > { %v3312_v3 = vpop.f32.mrb[80].mxu1  ;;  %v3712_v15 = vsel %vm3709_vm3, %v3684_v1, 0  ;;  %v3871_v36 = vrot.slane %v12383_v55, 4 }
 0x3c5   : > { %v3504_v12 = vpop.f32.mrb[76].mxu0  ;;  %v3314_v2 = vpop.f32.mrb[81].mxu1  ;;  %v3870_v7 = vsel %vm12389_vm11, %v3862_v18, %v3869_v41  ;;  %7630 = vrot.lane.b32.xlu1 %v7629_v17, %s7865_s18  ;;  %v6785_v54 = vcombine.low %v3712_v15, %v3712_v15  ;;  %v6786_v19 = vcombine.high %v3712_v15, %v3712_v15  ;;  %v4454_v15 = vrot.slane %v4452_v47, 4 }
 0x3c6   : > { %v7071_v10 = vadd.f32 %v3504_v12, %v3304_v4  ;;  %v3506_v28 = vpop.f32.mrb[77].mxu0  ;;  %v3315_v40 = vpop.f32.mrb[82].mxu1  ;;  %4251 = vst [vmem:[#allocation2 + $0x10] sm:$0xf] %v3870_v7  ;;  %v7548_v4 = vunpack.i.h.bf16 %v7546_v26 }
 0x3c7   : > { %v3507_v63 = vpop.f32.mrb[78].mxu0  ;;  %v7551_v5 = vpop.permute.xlu1 %7550  ;;  %v3873_v23 = vshrl.u32 %v6785_v54, 16  ;;  %v3882_v30 = vshrl.u32 %v6786_v19, 16  ;;  %v3876_v31 = vshll.u32 %v6785_v54, 16  ;;  %v3885_v9 = vshll.u32 %v6786_v19, 16  ;;  %v16074_v28 = vld [vmem:[#allocation69_spill] sm:$0xff] }
 0x3c8   : > { %v3316_v46 = vpop.f32.mrb[83].mxu1  ;;  %v3509_v29 = vpop.f32.mrb[79].mxu0  ;;  %v7072_v0 = vadd.f32 %v3507_v63, %v3307_v20  ;;  %v12413_v51 = vunpack.i.l.bf16 %v7551_v5  ;;  %v3556_v25 = vmax.f32 %v7071_v10, 0.0  ;;  %v4450_v20 = vsel %vm12352_vm14, %v4448_v27, %v4449_v11  ;;  %v16076_v40 = vld [vmem:[#allocation85_spill] sm:$0xff] }
 0x3c9   : > { %v3875_v52 = vrot.slane %v3873_v23, 7  ;;  %v3884_v22 = vrot.slane %v3882_v30, 7  ;;  %v6966_v7 = vpack.c.bf16 %v7548_v4, %v7548_v4  ;;  %vm16075_vm13 = vnez %v16074_v28 }
 0x3ca   : > { %v3557_v49 = vmax.f32 %v7072_v0, 0.0  ;;  %v3685_v34 = vpack.c.bf16 %v12413_v51, %v7548_v4  ;;  %v3597_v55 = vsel %vm16073_vm4, %v3556_v25, 0.0  ;;  %vm16077_vm6 = vnez %v16076_v40 }
 0x3cb   : > { %v3878_v48 = vor.u32 %v3876_v31, %v3875_v52  ;;  %v3880_v53 = vrot.slane %v3875_v52, 4  ;;  %v3887_v24 = vor.u32 %v3885_v9, %v3884_v22  ;;  %vm16078_vm2 = vmand %vm16075_vm13, %vm16077_vm6  ;;  %v4453_v19 = vsel %vm12352_vm14, %v4451_v44, %v4452_v47  ;;  %v16081_v31 = vld [vmem:[#allocation149_spill] sm:$0xff] }
 0x3cc   : > { %v3598_v8 = vsel %vm16070_vm9, %v3557_v49, 0.0  ;;  %v3713_v18 = vsel %vm3709_vm3, %v3685_v34, 0  ;;  %v3559_v33 = vsel %vm16078_vm2, %v3518_v45, 0.0  ;;  %v4455_v46 = vrot.slane %v6965_v57, 7  ;;  %v16079_v45 = vld [vmem:[#allocation77_spill] sm:$0xff]  ;;  %v16086_v57 = vld [vmem:[#allocation143_spill] sm:$0xff] }
 0x3cd   : > { %v3512_v13 = vpop.f32.mrb[80].mxu0  ;;  %v4297_v61 = vld [vmem:[#allocation2 + $0x10] sm:$0xf]  ;;  %v7619_v38 = vpack.i.bf16 %v3598_v8, %v3597_v55  ;;  %v3879_v62 = vsel %vm12389_vm11, %v3871_v36, %v3878_v48  ;;  %v3888_v17 = vsel %vm12389_vm11, %v3880_v53, %v3887_v24  ;;  %v6787_v1 = vcombine.low %v3713_v18, %v3713_v18 }
 0x3ce   : > { %v3514_v6 = vpop.f32.mrb[81].mxu0  ;;  %v4606_v60 = vsel %vm12328_vm7, %v4297_v61, %v4450_v20  ;;  %v6788_v12 = vcombine.high %v3713_v18, %v3713_v18  ;;  %4252 = vst [vmem:[#allocation2 + $0x14] sm:$0xf] %v3879_v62  ;;  %4253 = vst [vmem:[#allocation2 + $0x18] sm:$0xf] %v3888_v17  ;;  %v7073_v10 = vadd.f32 %v3512_v13, %v3312_v3  ;;  %v3555_v30 = vmax.f32 %v12381_v14, 0.0 }
 0x3cf   : > { %v3515_v41 = vpop.f32.mrb[82].mxu0  ;;  %4647 = vst [vmem:[#allocation2 + $0x10] sm:$0xf] %v4606_v60  ;;  %v7556_v32 = vpop.permute.xlu0 %7555  ;;  %7620 = vrot.lane.b32.xlu0 %v7619_v38, %s7865_s18  ;;  %v3891_v63 = vshrl.u32 %v6787_v1, 16  ;;  %v3894_v29 = vshll.u32 %v6787_v1, 16  ;;  %v4458_v25 = vrot.slane %v6966_v7, 7  ;;  %v7553_v27 = vunpack.i.h.bf16 %v7551_v5 }
 0x3d0   : > { %v3516_v2 = vpop.f32.mrb[83].mxu0  ;;  %v3900_v54 = vshrl.u32 %v6788_v12, 16  ;;  %v3558_v11 = vmax.f32 %v7073_v10, 0.0  ;;  %v3903_v4 = vshll.u32 %v6788_v12, 16  ;;  %v12450_v23 = vunpack.i.l.bf16 %v7556_v32  ;;  %v16084_v60 = vld [vmem:[#allocation75_spill] sm:$0xff] }
 0x3d1   : > { %v3893_v0 = vrot.slane %v3891_v63, 7  ;;  %vm16080_vm0 = vnez %v16079_v45  ;;  %vm16082_vm9 = vnez %v16081_v31  ;;  %v3889_v47 = vrot.slane %v3884_v22, 4 }
 0x3d2   : > { %v12448_v3 = vrot.slane %v3900_v54, 7  ;;  %vm16083_vm4 = vmand %vm16080_vm0, %vm16082_vm9  ;;  %v4456_v36 = vsel %vm12352_vm14, %v4454_v15, %v4455_v46  ;;  %v6967_v20 = vpack.c.bf16 %v12413_v51, %v12413_v51  ;;  %v3686_v5 = vpack.c.bf16 %v12450_v23, %v7553_v27 }
 0x3d3   : > { %v3599_v49 = vsel %vm16083_vm4, %v3558_v11, 0.0  ;;  %v3896_v52 = vor.u32 %v3894_v29, %v3893_v0  ;;  %v3898_v9 = vrot.slane %v3893_v0, 4  ;;  %v12468_v13 = vunpack.i.h.bf16 %v7556_v32 }
 0x3d4   : > { %v3905_v34 = vor.u32 %v3903_v4, %v12448_v3  ;;  %v7624_v14 = vpack.i.bf16 %v3559_v33, %v3599_v49  ;;  %v3714_v53 = vsel %vm3709_vm3, %v3686_v5, 0  ;;  %v4457_v55 = vrot.slane %v4455_v46, 4 }
 0x3d5   : > { %v4298_v26 = vld [vmem:[#allocation2 + $0x14] sm:$0xf]  ;;  %v4299_v16 = vld [vmem:[#allocation2 + $0x18] sm:$0xf]  ;;  %v3897_v8 = vsel %vm12389_vm11, %v3889_v47, %v3896_v52  ;;  %v6789_v24 = vcombine.low %v3714_v53, %v3714_v53  ;;  %v6790_v42 = vcombine.high %v3714_v53, %v3714_v53  ;;  %v4461_v6 = vrot.slane %v6967_v20, 7 }
 0x3d6   : > { %v3906_v22 = vsel %vm12389_vm11, %v3898_v9, %v3905_v34  ;;  %v4607_v48 = vsel %vm12328_vm7, %v4298_v26, %v4453_v19  ;;  %v4608_v51 = vsel %vm12328_vm7, %v4299_v16, %v4456_v36  ;;  %4254 = vst [vmem:[#allocation2 + $0x1c] sm:$0xf] %v3897_v8  ;;  %7625 = vrot.lane.b32.xlu0 %v7624_v14, %s7865_s18  ;;  %v4460_v18 = vrot.slane %v4458_v25, 4 }
 0x3d7   : > { %v7561_v44 = vpop.permute.xlu1 %7560  ;;  %4255 = vst [vmem:[#allocation2 + $0x20] sm:$0xf] %v3906_v22  ;;  %4648 = vst [vmem:[#allocation2 + $0x14] sm:$0xf] %v4607_v48  ;;  %vm16085_vm13 = vnez %v16084_v60  ;;  %vm16087_vm6 = vnez %v16086_v57  ;;  %v3909_v41 = vshrl.u32 %v6789_v24, 16  ;;  %v3918_v62 = vshrl.u32 %v6790_v42, 16 }
 0x3d8   : > { %v12470_v61 = vunpack.i.l.bf16 %v7561_v44  ;;  %4649 = vst [vmem:[#allocation2 + $0x18] sm:$0xf] %v4608_v51  ;;  %vm16088_vm2 = vmand %vm16085_vm13, %vm16087_vm6  ;;  %v6968_v17 = vpack.c.bf16 %v7553_v27, %v7553_v27  ;;  %v3912_v1 = vshll.u32 %v6789_v24, 16  ;;  %v3921_v12 = vshll.u32 %v6790_v42, 16 }
 0x3d9   : > { %v3596_v38 = vsel %vm16088_vm2, %v3555_v30, 0.0  ;;  %v3911_v7 = vrot.slane %v3909_v41, 7  ;;  %v3920_v10 = vrot.slane %v3918_v62, 7  ;;  %v4459_v40 = vsel %vm12352_vm14, %v4457_v55, %v4458_v25 }
 0x3da   : > { %v3687_v37 = vpack.c.bf16 %v12470_v61, %v12468_v13  ;;  %3674 = vrot.lane.b32.xlu0 %v3596_v38, %s7865_s18  ;;  %v4462_v33 = vsel %vm12352_vm14, %v4460_v18, %v4461_v6  ;;  %v3907_v15 = vrot.slane %v12448_v3, 4  ;;  %v4464_v0 = vrot.slane %v6968_v17, 7 }
 0x3db   : > { %v3914_v19 = vor.u32 %v3912_v1, %v3911_v7  ;;  %v3916_v46 = vrot.slane %v3911_v7, 4  ;;  %v3923_v29 = vor.u32 %v3921_v12, %v3920_v10  ;;  %v6969_v45 = vpack.c.bf16 %v12450_v23, %v12450_v23 }
 0x3dc   : > { %v3715_v2 = vsel %vm3709_vm3, %v3687_v37, 0  ;;  %v12504_v49 = vunpack.i.h.bf16 %v7561_v44  ;;  %v4463_v34 = vrot.slane %v4461_v6, 4  ;;  %v3925_v14 = vrot.slane %v3920_v10, 4 }
 0x3dd   : > { %v6791_v32 = vcombine.low %v3715_v2, %v3715_v2  ;;  %v6792_v28 = vcombine.high %v3715_v2, %v3715_v2  ;;  %v4300_v63 = vld [vmem:[#allocation2 + $0x1c] sm:$0xf]  ;;  %v3915_v25 = vsel %vm12389_vm11, %v3907_v15, %v3914_v19  ;;  %v3924_v3 = vsel %vm12389_vm11, %v3916_v46, %v3923_v29 }
 0x3de   : > { %v4301_v54 = vld [vmem:[#allocation2 + $0x20] sm:$0xf]  ;;  %v4609_v4 = vsel %vm12328_vm7, %v4300_v63, %v4459_v40  ;;  %4256 = vst [vmem:[#allocation2 + $0x24] sm:$0xf] %v3915_v25  ;;  %4257 = vst [vmem:[#allocation2 + $0x28] sm:$0xf] %v3924_v3  ;;  %v6970_v23 = vpack.c.bf16 %v12468_v13, %v12468_v13  ;;  %v6971_v42 = vpack.c.bf16 %v12470_v61, %v12470_v61 }
 0x3df   : > { %v7566_v11 = vpop.permute.xlu0 %7565  ;;  %v4610_v30 = vsel %vm12328_vm7, %v4301_v54, %v4462_v33  ;;  %v3927_v27 = vshrl.u32 %v6791_v32, 16  ;;  %4650 = vst [vmem:[#allocation2 + $0x1c] sm:$0xf] %v4609_v4  ;;  %v3936_v31 = vshrl.u32 %v6792_v28, 16  ;;  %v3930_v52 = vshll.u32 %v6791_v32, 16 }
 0x3e0   : > { %4651 = vst [vmem:[#allocation2 + $0x20] sm:$0xf] %v4610_v30  ;;  %v12506_v9 = vunpack.i.l.bf16 %v7566_v11  ;;  %v3939_v20 = vshll.u32 %v6792_v28, 16  ;;  %v4467_v8 = vrot.slane %v6969_v45, 7  ;;  %v4466_v44 = vrot.slane %v4464_v0, 4 }
 0x3e1   : > { %v3929_v47 = vrot.slane %v3927_v27, 7  ;;  %v3938_v36 = vrot.slane %v3936_v31, 7  ;;  %v4465_v13 = vsel %vm12352_vm14, %v4463_v34, %v4464_v0  ;;  %v4470_v60 = vrot.slane %v6970_v23, 7 }
 0x3e2   : > { %v3688_v16 = vpack.c.bf16 %v12506_v9, %v12504_v49  ;;  %v4468_v18 = vsel %vm12352_vm14, %v4466_v44, %v4467_v8  ;;  %v12526_v41 = vunpack.i.h.bf16 %v7566_v11  ;;  %v4469_v17 = vrot.slane %v4467_v8, 4 }
 0x3e3   : > { %v3932_v5 = vor.u32 %v3930_v52, %v3929_v47  ;;  %v3934_v26 = vrot.slane %v3929_v47, 4  ;;  %v3941_v22 = vor.u32 %v3939_v20, %v3938_v36  ;;  %v4473_v2 = vrot.slane %v6971_v42, 7 }
 0x3e4   : > { %v3716_v51 = vsel %vm3709_vm3, %v3688_v16, 0  ;;  %v4472_v33 = vrot.slane %v4470_v60, 4  ;;  %v3943_v15 = vrot.slane %v3938_v36, 4  ;;  %v4471_v19 = vsel %vm12352_vm14, %v4469_v17, %v4470_v60 }
 0x3e5   : > { %v3933_v48 = vsel %vm12389_vm11, %v3925_v14, %v3932_v5  ;;  %v3942_v24 = vsel %vm12389_vm11, %v3934_v26, %v3941_v22  ;;  %v6793_v37 = vcombine.low %v3716_v51, %v3716_v51  ;;  %v6794_v55 = vcombine.high %v3716_v51, %v3716_v51  ;;  %v4302_v57 = vld [vmem:[#allocation2 + $0x24] sm:$0xf]  ;;  %v4303_v38 = vld [vmem:[#allocation2 + $0x28] sm:$0xf] }
 0x3e6   : > { %4258 = vst [vmem:[#allocation2 + $0x2c] sm:$0xf] %v3933_v48  ;;  %4259 = vst [vmem:[#allocation2 + $0x30] sm:$0xf] %v3942_v24  ;;  %v4611_v61 = vsel %vm12328_vm7, %v4302_v57, %v4465_v13  ;;  %v4612_v1 = vsel %vm12328_vm7, %v4303_v38, %v4468_v18  ;;  %v6972_v46 = vpack.c.bf16 %v12504_v49, %v12504_v49  ;;  %v4475_v26 = vrot.slane %v4473_v2, 4 }
 0x3e7   : > { %v7571_v53 = vpop.permute.xlu1 %7570  ;;  %v3945_v62 = vshrl.u32 %v6793_v37, 16  ;;  %v3954_v12 = vshrl.u32 %v6794_v55, 16  ;;  %4652 = vst [vmem:[#allocation2 + $0x24] sm:$0xf] %v4611_v61  ;;  %4653 = vst [vmem:[#allocation2 + $0x28] sm:$0xf] %v4612_v1  ;;  %v4474_v30 = vsel %vm12352_vm14, %v4472_v33, %v4473_v2  ;;  %v6973_v47 = vpack.c.bf16 %v12506_v9, %v12506_v9 }
 0x3e8   : > { %v12522_v6 = vunpack.i.l.bf16 %v7571_v53  ;;  %v3948_v10 = vshll.u32 %v6793_v37, 16  ;;  %v3957_v40 = vshll.u32 %v6794_v55, 16  ;;  %v4476_v36 = vrot.slane %v6972_v46, 7 }
 0x3e9   : > { %v3947_v7 = vrot.slane %v3945_v62, 7  ;;  %v3956_v28 = vrot.slane %v3954_v12, 7  ;;  %v7573_v20 = vunpack.i.h.bf16 %v7571_v53  ;;  %v4479_v8 = vrot.slane %v6973_v47, 7 }
 0x3ea   : > { %v3689_v32 = vpack.c.bf16 %v12522_v6, %v12526_v41  ;;  %v4478_v42 = vrot.slane %v4476_v36, 4  ;;  %v6974_v37 = vpack.c.bf16 %v12526_v41, %v12526_v41  ;;  %v4477_v13 = vsel %vm12352_vm14, %v4475_v26, %v4476_v36 }
 0x3eb   : > { %v3950_v63 = vor.u32 %v3948_v10, %v3947_v7  ;;  %v3952_v54 = vrot.slane %v3947_v7, 4  ;;  %v3959_v11 = vor.u32 %v3957_v40, %v3956_v28  ;;  %v3961_v51 = vrot.slane %v3956_v28, 4 }
 0x3ec   : > { %v3717_v0 = vsel %vm3709_vm3, %v3689_v32, 0  ;;  %v4480_v61 = vsel %vm12352_vm14, %v4478_v42, %v4479_v8  ;;  %v6975_v12 = vpack.c.bf16 %v12522_v6, %v12522_v6  ;;  %v4482_v32 = vrot.slane %v6974_v37, 7 }
 0x3ed   : > { %v4304_v29 = vld [vmem:[#allocation2 + $0x2c] sm:$0xf]  ;;  %v4305_v4 = vld [vmem:[#allocation2 + $0x30] sm:$0xf]  ;;  %v3951_v25 = vsel %vm12389_vm11, %v3943_v15, %v3950_v63  ;;  %v6795_v3 = vcombine.low %v3717_v0, %v3717_v0  ;;  %v3960_v49 = vsel %vm12389_vm11, %v3952_v54, %v3959_v11  ;;  %v6796_v52 = vcombine.high %v3717_v0, %v3717_v0 }
 0x3ee   : > { %v4613_v27 = vsel %vm12328_vm7, %v4304_v29, %v4471_v19  ;;  %v4614_v31 = vsel %vm12328_vm7, %v4305_v4, %v4474_v30  ;;  %4260 = vst [vmem:[#allocation2 + $0x34] sm:$0xf] %v3951_v25  ;;  %4261 = vst [vmem:[#allocation2 + $0x38] sm:$0xf] %v3960_v49  ;;  %v4481_v28 = vrot.slane %v4479_v8, 4  ;;  %v6976_v46 = vpack.c.bf16 %v7573_v20, %v7573_v20 }
 0x3ef   : > { %v7576_v45 = vpop.permute.xlu0 %7575  ;;  %4654 = vst [vmem:[#allocation2 + $0x2c] sm:$0xf] %v4613_v27  ;;  %4655 = vst [vmem:[#allocation2 + $0x30] sm:$0xf] %v4614_v31  ;;  %v3963_v34 = vshrl.u32 %v6795_v3, 16  ;;  %v3972_v14 = vshrl.u32 %v6796_v52, 16 }
 0x3f0   : > { %v12552_v5 = vunpack.i.l.bf16 %v7576_v45  ;;  %v3966_v23 = vshll.u32 %v6795_v3, 16  ;;  %v3975_v44 = vshll.u32 %v6796_v52, 16  ;;  %v7578_v40 = vunpack.i.h.bf16 %v7576_v45 }
 0x3f1   : > { %v3965_v16 = vrot.slane %v3963_v34, 7  ;;  %v3974_v22 = vrot.slane %v3972_v14, 7  ;;  %v4485_v29 = vrot.slane %v6975_v12, 7  ;;  %v4484_v27 = vrot.slane %v4482_v32, 4 }
 0x3f2   : > { %v3690_v48 = vpack.c.bf16 %v12552_v5, %v7573_v20  ;;  %v4483_v25 = vsel %vm12352_vm14, %v4481_v28, %v4482_v32  ;;  %v6977_v3 = vpack.c.bf16 %v12552_v5, %v12552_v5  ;;  %v4488_v20 = vrot.slane %v6976_v46, 7 }
 0x3f3   : > { %v3968_v24 = vor.u32 %v3966_v23, %v3965_v16  ;;  %v3970_v9 = vrot.slane %v3965_v16, 4  ;;  %v3977_v55 = vor.u32 %v3975_v44, %v3974_v22  ;;  %v3979_v11 = vrot.slane %v3974_v22, 4 }
 0x3f4   : > { %v3718_v53 = vsel %vm3709_vm3, %v3690_v48, 0  ;;  %v4486_v26 = vsel %vm12352_vm14, %v4484_v27, %v4485_v29  ;;  %v4487_v22 = vrot.slane %v4485_v29, 4  ;;  %v4491_v44 = vrot.slane %v6977_v3, 7 }
 0x3f5   : > { %v4306_v60 = vld [vmem:[#allocation2 + $0x34] sm:$0xf]  ;;  %v3969_v57 = vsel %vm12389_vm11, %v3961_v51, %v3968_v24  ;;  %v6797_v38 = vcombine.low %v3718_v53, %v3718_v53  ;;  %v6798_v18 = vcombine.high %v3718_v53, %v3718_v53  ;;  %v4307_v17 = vld [vmem:[#allocation2 + $0x38] sm:$0xf]  ;;  %v3978_v1 = vsel %vm12389_vm11, %v3970_v9, %v3977_v55 }
 0x3f6   : > { %v4615_v41 = vsel %vm12328_vm7, %v4306_v60, %v4477_v13  ;;  %4262 = vst [vmem:[#allocation2 + $0x3c] sm:$0xf] %v3969_v57  ;;  %v4616_v2 = vsel %vm12328_vm7, %v4307_v17, %v4480_v61  ;;  %4263 = vst [vmem:[#allocation2 + $0x40] sm:$0xf] %v3978_v1  ;;  %v4490_v55 = vrot.slane %v4488_v20, 4  ;;  %v6978_v53 = vpack.c.bf16 %v7578_v40, %v7578_v40 }
 0x3f7   : > { %v7581_v62 = vpop.permute.xlu1 %7580  ;;  %4656 = vst [vmem:[#allocation2 + $0x34] sm:$0xf] %v4615_v41  ;;  %v3981_v7 = vshrl.u32 %v6797_v38, 16  ;;  %v3990_v10 = vshrl.u32 %v6798_v18, 16  ;;  %4657 = vst [vmem:[#allocation2 + $0x38] sm:$0xf] %v4616_v2  ;;  %v4489_v17 = vsel %vm12352_vm14, %v4487_v22, %v4488_v20 }
 0x3f8   : > { %v12573_v33 = vunpack.i.l.bf16 %v7581_v62  ;;  %v3984_v63 = vshll.u32 %v6797_v38, 16  ;;  %v3993_v19 = vshll.u32 %v6798_v18, 16  ;;  %v7583_v48 = vunpack.i.h.bf16 %v7581_v62 }
 0x3f9   : > { %v3983_v15 = vrot.slane %v3981_v7, 7  ;;  %v3992_v54 = vrot.slane %v3990_v10, 7  ;;  %v4492_v62 = vsel %vm12352_vm14, %v4490_v55, %v4491_v44  ;;  %vm4245_vm0 = vsmask.f32 7938 }
 0x3fa   : > { %v3691_v6 = vpack.c.bf16 %v12573_v33, %v7578_v40  ;;  %v6979_v61 = vpack.c.bf16 %v12573_v33, %v12573_v33  ;;  %v4494_v40 = vrot.slane %v6978_v53, 7  ;;  %vm4288_vm9 = vcmask 1042432  }
 0x3fb   : > { %v3986_v0 = vor.u32 %v3984_v63, %v3983_v15  ;;  %v3988_v4 = vrot.slane %v3983_v15, 4  ;;  %v3995_v30 = vor.u32 %v3993_v19, %v3992_v54  ;;  %v3997_v60 = vrot.slane %v3992_v54, 4 }
 0x3fc   : > { %v3719_v45 = vsel %vm3709_vm3, %v3691_v6, 0  ;;  %v4493_v19 = vrot.slane %v4491_v44, 4  ;;  %v4497_v46 = vrot.slane %v6979_v61, 7  ;;  %v4496_v27 = vrot.slane %v4494_v40, 4 }
 0x3fd   : > { %v4308_v31 = vld [vmem:[#allocation2 + $0x3c] sm:$0xf]  ;;  %v3987_v49 = vsel %vm12389_vm11, %v3979_v11, %v3986_v0  ;;  %v3996_v47 = vsel %vm12389_vm11, %v3988_v4, %v3995_v30  ;;  %v6799_v52 = vcombine.low %v3719_v45, %v3719_v45  ;;  %v6800_v34 = vcombine.high %v3719_v45, %v3719_v45  ;;  %v4309_v14 = vld [vmem:[#allocation2 + $0x40] sm:$0xf] }
 0x3fe   : > { %v4617_v5 = vsel %vm12328_vm7, %v4308_v31, %v4483_v25  ;;  %4264 = vst [vmem:[#allocation2 + $0x44] sm:$0xf] %v3987_v49  ;;  %4265 = vst [vmem:[#allocation2 + $0x48] sm:$0xf] %v3996_v47  ;;  %v4618_v16 = vsel %vm12328_vm7, %v4309_v14, %v4486_v26  ;;  %v6980_v25 = vpack.c.bf16 %v7583_v48, %v7583_v48  ;;  %vm4289_vm4 = vsmask.f32 2304 }
 0x3ff   : > { %v7586_v36 = vpop.permute.xlu0 %7585  ;;  %4658 = vst [vmem:[#allocation2 + $0x3c] sm:$0xf] %v4617_v5  ;;  %v3999_v23 = vshrl.u32 %v6799_v52, 16  ;;  %v4008_v8 = vshrl.u32 %v6800_v34, 16  ;;  %4659 = vst [vmem:[#allocation2 + $0x40] sm:$0xf] %v4618_v16 }
 0x400   : > { %v12592_v51 = vunpack.i.l.bf16 %v7586_v36  ;;  %v4002_v9 = vshll.u32 %v6799_v52, 16  ;;  %v4011_v37 = vshll.u32 %v6800_v34, 16  ;;  %v7588_v29 = vunpack.i.h.bf16 %v7586_v36  ;;  %vm12827_vm2 = vmand %vm4288_vm9, %vm4289_vm4 }
 0x401   : > { %v4001_v24 = vrot.slane %v3999_v23, 7  ;;  %v4010_v42 = vrot.slane %v4008_v8, 7  ;;  %v4495_v52 = vsel %vm12352_vm14, %v4493_v19, %v4494_v40  ;;  %v4498_v34 = vsel %vm12352_vm14, %v4496_v27, %v4497_v46 }
 0x402   : > { %v3692_v13 = vpack.c.bf16 %v12592_v51, %v7583_v48  ;;  %v6981_v36 = vpack.c.bf16 %v12592_v51, %v12592_v51  ;;  %v4500_v44 = vrot.slane %v6980_v25, 7  ;;  %vm16089_vm13 = vcmask 1043456  }
 0x403   : > { %v4004_v57 = vor.u32 %v4002_v9, %v4001_v24  ;;  %v4006_v38 = vrot.slane %v4001_v24, 4  ;;  %v4013_v18 = vor.u32 %v4011_v37, %v4010_v42  ;;  %v4015_v45 = vrot.slane %v4010_v42, 4  ;;  %vm12819_vm6 = vmand %vm16089_vm13, %vm4245_vm0 }
 0x404   : > { %v3720_v41 = vsel %vm3709_vm3, %v3692_v13, 0  ;;  %v4499_v42 = vrot.slane %v4497_v46, 4  ;;  %v4503_v37 = vrot.slane %v6981_v36, 7  ;;  %vm16105_vm0 = vmmov (%p1689_p8), %vm16096_vm1 }
 0x405   : > { %v4310_v1 = vld [vmem:[#allocation2 + $0x44] sm:$0xf]  ;;  %v4311_v12 = vld [vmem:[#allocation2 + $0x48] sm:$0xf]  ;;  %v4005_v2 = vsel %vm12389_vm11, %v3997_v60, %v4004_v57  ;;  %v4014_v7 = vsel %vm12389_vm11, %v4006_v38, %v4013_v18  ;;  %v6801_v10 = vcombine.low %v3720_v41, %v3720_v41  ;;  %v6802_v32 = vcombine.high %v3720_v41, %v3720_v41  ;;  %vm16106_vm9 = vmmov (%p1689_p8), %vm16105_vm0 }
 0x406   : > { %v4619_v15 = vsel %vm12328_vm7, %v4310_v1, %v4489_v17  ;;  %v4620_v33 = vsel %vm12328_vm7, %v4311_v12, %v4492_v62  ;;  %4266 = vst [vmem:[#allocation2 + $0x4c] sm:$0xf] %v4005_v2  ;;  %4267 = vst [vmem:[#allocation2 + $0x50] sm:$0xf] %v4014_v7  ;;  %v4502_v18 = vrot.slane %v4500_v44, 4  ;;  %v6982_v17 = vpack.c.bf16 %v7588_v29, %v7588_v29 }
 0x407   : > { %v7591_v28 = vpop.permute.xlu1 %7590  ;;  %4660 = vst [vmem:[#allocation2 + $0x44] sm:$0xf] %v4619_v15  ;;  %4661 = vst [vmem:[#allocation2 + $0x48] sm:$0xf] %v4620_v33  ;;  %v4017_v63 = vshrl.u32 %v6801_v10, 16  ;;  %v4026_v54 = vshrl.u32 %v6802_v32, 16  ;;  %v4501_v2 = vsel %vm12352_vm14, %v4499_v42, %v4500_v44 }
 0x408   : > { %v12611_v6 = vunpack.i.l.bf16 %v7591_v28  ;;  %v4020_v0 = vshll.u32 %v6801_v10, 16  ;;  %v4029_v30 = vshll.u32 %v6802_v32, 16  ;;  %v7593_v55 = vunpack.i.h.bf16 %v7591_v28  ;;  %vm16108_vm13 = vmmov (%p1689_p8), %vm16105_vm0 }
 0x409   : > { %v4019_v11 = vrot.slane %v4017_v63, 7  ;;  %v4028_v4 = vrot.slane %v4026_v54, 7  ;;  %v4504_v7 = vsel %vm12352_vm14, %v4502_v18, %v4503_v37  ;;  %v4506_v46 = vrot.slane %v6982_v17, 7 }
 0x40a   : > { %v3693_v3 = vpack.c.bf16 %v12611_v6, %v7588_v29  ;;  %v6983_v10 = vpack.c.bf16 %v12611_v6, %v12611_v6 }
 0x40b   : > { %v4022_v31 = vor.u32 %v4020_v0, %v4019_v11  ;;  %v4024_v49 = vrot.slane %v4019_v11, 4  ;;  %v4031_v47 = vor.u32 %v4029_v30, %v4028_v4  ;;  %v4033_v61 = vrot.slane %v4028_v4, 4 }
 0x40c   : > { %v3721_v20 = vsel %vm3709_vm3, %v3693_v3, 0  ;;  %v4505_v4 = vrot.slane %v4503_v37, 4  ;;  %v4509_v30 = vrot.slane %v6983_v10, 7 }
 0x40d   : > { %v4312_v14 = vld [vmem:[#allocation2 + $0x4c] sm:$0xf]  ;;  %v4313_v26 = vld [vmem:[#allocation2 + $0x50] sm:$0xf]  ;;  %v4023_v5 = vsel %vm12389_vm11, %v4015_v45, %v4022_v31  ;;  %v4032_v16 = vsel %vm12389_vm11, %v4024_v49, %v4031_v47  ;;  %v6803_v23 = vcombine.low %v3721_v20, %v3721_v20  ;;  %v6804_v8 = vcombine.high %v3721_v20, %v3721_v20 }
 0x40e   : > { %v4621_v48 = vsel %vm12328_vm7, %v4312_v14, %v4495_v52  ;;  %v4622_v51 = vsel %vm12328_vm7, %v4313_v26, %v4498_v34  ;;  %4268 = vst [vmem:[#allocation2 + $0x54] sm:$0xf] %v4023_v5  ;;  %4269 = vst [vmem:[#allocation2 + $0x58] sm:$0xf] %v4032_v16  ;;  %v4508_v47 = vrot.slane %v4506_v46, 4  ;;  %v6984_v52 = vpack.c.bf16 %v7593_v55, %v7593_v55 }
 0x40f   : > { %v7596_v22 = vpop.permute.xlu0 %7595  ;;  %4662 = vst [vmem:[#allocation2 + $0x4c] sm:$0xf] %v4621_v48  ;;  %4663 = vst [vmem:[#allocation2 + $0x50] sm:$0xf] %v4622_v51  ;;  %v4035_v24 = vshrl.u32 %v6803_v23, 16  ;;  %v4044_v9 = vshrl.u32 %v6804_v8, 16  ;;  %v4507_v5 = vsel %vm12352_vm14, %v4505_v4, %v4506_v46 }
 0x410   : > { %v12630_v53 = vunpack.i.l.bf16 %v7596_v22  ;;  %v4038_v60 = vshll.u32 %v6803_v23, 16  ;;  %v4047_v38 = vshll.u32 %v6804_v8, 16  ;;  %v7598_v27 = vunpack.i.h.bf16 %v7596_v22 }
 0x411   : > { %v4037_v13 = vrot.slane %v4035_v24, 7  ;;  %v4046_v57 = vrot.slane %v4044_v9, 7  ;;  %v4510_v16 = vsel %vm12352_vm14, %v4508_v47, %v4509_v30  ;;  %v4512_v37 = vrot.slane %v6984_v52, 7 }
 0x412   : > { %v3694_v62 = vpack.c.bf16 %v12630_v53, %v7593_v55  ;;  %v6985_v23 = vpack.c.bf16 %v12630_v53, %v12630_v53 }
 0x413   : > { %v4040_v41 = vor.u32 %v4038_v60, %v4037_v13  ;;  %v4042_v1 = vrot.slane %v4037_v13, 4  ;;  %v4049_v12 = vor.u32 %v4047_v38, %v4046_v57  ;;  %v4051_v36 = vrot.slane %v4046_v57, 4 }
 0x414   : > { %v3722_v32 = vsel %vm3709_vm3, %v3694_v62, 0  ;;  %v4511_v57 = vrot.slane %v4509_v30, 4  ;;  %v4515_v38 = vrot.slane %v6985_v23, 7 }
 0x415   : > { %v4314_v28 = vld [vmem:[#allocation2 + $0x54] sm:$0xf]  ;;  %v4315_v40 = vld [vmem:[#allocation2 + $0x58] sm:$0xf]  ;;  %v4041_v15 = vsel %vm12389_vm11, %v4033_v61, %v4040_v41  ;;  %v4050_v33 = vsel %vm12389_vm11, %v4042_v1, %v4049_v12  ;;  %v6805_v63 = vcombine.low %v3722_v32, %v3722_v32  ;;  %v6806_v54 = vcombine.high %v3722_v32, %v3722_v32 }
 0x416   : > { %v4623_v29 = vsel %vm12328_vm7, %v4314_v28, %v4501_v2  ;;  %v4624_v6 = vsel %vm12328_vm7, %v4315_v40, %v4504_v7  ;;  %4270 = vst [vmem:[#allocation2 + $0x5c] sm:$0xf] %v4041_v15  ;;  %4271 = vst [vmem:[#allocation2 + $0x60] sm:$0xf] %v4050_v33  ;;  %v4514_v12 = vrot.slane %v4512_v37, 4  ;;  %v6986_v2 = vpack.c.bf16 %v7598_v27, %v7598_v27 }
 0x417   : > { %v7601_v19 = vpop.permute.xlu1 %7600  ;;  %4664 = vst [vmem:[#allocation2 + $0x54] sm:$0xf] %v4623_v29  ;;  %4665 = vst [vmem:[#allocation2 + $0x58] sm:$0xf] %v4624_v6  ;;  %v4053_v11 = vshrl.u32 %v6805_v63, 16  ;;  %v4062_v0 = vshrl.u32 %v6806_v54, 16  ;;  %v4513_v15 = vsel %vm12352_vm14, %v4511_v57, %v4512_v37 }
 0x418   : > { %v12649_v25 = vunpack.i.l.bf16 %v7601_v19  ;;  %v4056_v45 = vshll.u32 %v6805_v63, 16  ;;  %v4065_v49 = vshll.u32 %v6806_v54, 16  ;;  %v7603_v18 = vunpack.i.h.bf16 %v7601_v19 }
 0x419   : > { %v4055_v3 = vrot.slane %v4053_v11, 7  ;;  %v4064_v31 = vrot.slane %v4062_v0, 7  ;;  %v4516_v33 = vsel %vm12352_vm14, %v4514_v12, %v4515_v38  ;;  %v4518_v30 = vrot.slane %v6986_v2, 7 }
 0x41a   : > { %v3695_v34 = vpack.c.bf16 %v12649_v25, %v7598_v27  ;;  %v6987_v63 = vpack.c.bf16 %v12649_v25, %v12649_v25 }
 0x41b   : > { %v4058_v20 = vor.u32 %v4056_v45, %v4055_v3  ;;  %v4060_v14 = vrot.slane %v4055_v3, 4  ;;  %v4067_v26 = vor.u32 %v4065_v49, %v4064_v31  ;;  %v4069_v10 = vrot.slane %v4064_v31, 4 }
 0x41c   : > { %v3723_v8 = vsel %vm3709_vm3, %v3695_v34, 0  ;;  %v4517_v31 = vrot.slane %v4515_v38, 4  ;;  %v4521_v49 = vrot.slane %v6987_v63, 7 }
 0x41d   : > { %v4316_v22 = vld [vmem:[#allocation2 + $0x5c] sm:$0xf]  ;;  %v4317_v44 = vld [vmem:[#allocation2 + $0x60] sm:$0xf]  ;;  %v4059_v48 = vsel %vm12389_vm11, %v4051_v36, %v4058_v20  ;;  %v4068_v51 = vsel %vm12389_vm11, %v4060_v14, %v4067_v26  ;;  %v6807_v24 = vcombine.low %v3723_v8, %v3723_v8  ;;  %v6808_v9 = vcombine.high %v3723_v8, %v3723_v8 }
 0x41e   : > { %v4625_v55 = vsel %vm12328_vm7, %v4316_v22, %v4507_v5  ;;  %v4626_v53 = vsel %vm12328_vm7, %v4317_v44, %v4510_v16  ;;  %4272 = vst [vmem:[#allocation2 + $0x64] sm:$0xf] %v4059_v48  ;;  %4273 = vst [vmem:[#allocation2 + $0x68] sm:$0xf] %v4068_v51  ;;  %v4520_v26 = vrot.slane %v4518_v30, 4  ;;  %v6988_v5 = vpack.c.bf16 %v7603_v18, %v7603_v18 }
 0x41f   : > { %v7606_v42 = vpop.permute.xlu0 %7605  ;;  %4666 = vst [vmem:[#allocation2 + $0x5c] sm:$0xf] %v4625_v55  ;;  %4667 = vst [vmem:[#allocation2 + $0x60] sm:$0xf] %v4626_v53  ;;  %v4071_v13 = vshrl.u32 %v6807_v24, 16  ;;  %v4080_v60 = vshrl.u32 %v6808_v9, 16  ;;  %v4519_v48 = vsel %vm12352_vm14, %v4517_v31, %v4518_v30 }
 0x420   : > { %v12668_v17 = vunpack.i.l.bf16 %v7606_v42  ;;  %v4074_v61 = vshll.u32 %v6807_v24, 16  ;;  %v4083_v1 = vshll.u32 %v6808_v9, 16  ;;  %v7608_v47 = vunpack.i.h.bf16 %v7606_v42 }
 0x421   : > { %v4073_v62 = vrot.slane %v4071_v13, 7  ;;  %v4082_v41 = vrot.slane %v4080_v60, 7  ;;  %v4522_v51 = vsel %vm12352_vm14, %v4520_v26, %v4521_v49  ;;  %v4524_v38 = vrot.slane %v6988_v5, 7 }
 0x422   : > { %v3696_v7 = vpack.c.bf16 %v12668_v17, %v7603_v18  ;;  %v6989_v24 = vpack.c.bf16 %v12668_v17, %v12668_v17 }
 0x423   : > { %v4076_v32 = vor.u32 %v4074_v61, %v4073_v62  ;;  %v4078_v28 = vrot.slane %v4073_v62, 4  ;;  %v4085_v40 = vor.u32 %v4083_v1, %v4082_v41  ;;  %v4087_v23 = vrot.slane %v4082_v41, 4 }
 0x424   : > { %v3724_v54 = vsel %vm3709_vm3, %v3696_v7, 0  ;;  %v4523_v41 = vrot.slane %v4521_v49, 4  ;;  %v4527_v1 = vrot.slane %v6989_v24, 7 }
 0x425   : > { %v4318_v19 = vld [vmem:[#allocation2 + $0x64] sm:$0xf]  ;;  %v4319_v46 = vld [vmem:[#allocation2 + $0x68] sm:$0xf]  ;;  %v4077_v29 = vsel %vm12389_vm11, %v4069_v10, %v4076_v32  ;;  %v4086_v6 = vsel %vm12389_vm11, %v4078_v28, %v4085_v40  ;;  %v6809_v11 = vcombine.low %v3724_v54, %v3724_v54  ;;  %v6810_v0 = vcombine.high %v3724_v54, %v3724_v54 }
 0x426   : > { %v4627_v27 = vsel %vm12328_vm7, %v4318_v19, %v4513_v15  ;;  %v4628_v25 = vsel %vm12328_vm7, %v4319_v46, %v4516_v33  ;;  %4274 = vst [vmem:[#allocation2 + $0x6c] sm:$0xf] %v4077_v29  ;;  %4275 = vst [vmem:[#allocation2 + $0x70] sm:$0xf] %v4086_v6  ;;  %v4526_v40 = vrot.slane %v4524_v38, 4  ;;  %v6990_v15 = vpack.c.bf16 %v7608_v47, %v7608_v47 }
 0x427   : > { %v7611_v4 = vpop.permute.xlu1 %7610  ;;  %4668 = vst [vmem:[#allocation2 + $0x64] sm:$0xf] %v4627_v27  ;;  %4669 = vst [vmem:[#allocation2 + $0x68] sm:$0xf] %v4628_v25  ;;  %v4089_v3 = vshrl.u32 %v6809_v11, 16  ;;  %v4098_v45 = vshrl.u32 %v6810_v0, 16  ;;  %v4525_v29 = vsel %vm12352_vm14, %v4523_v41, %v4524_v38 }
 0x428   : > { %v12687_v52 = vunpack.i.l.bf16 %v7611_v4  ;;  %v4092_v36 = vshll.u32 %v6809_v11, 16  ;;  %v4101_v14 = vshll.u32 %v6810_v0, 16  ;;  %v7613_v12 = vunpack.i.h.bf16 %v7611_v4 }
 0x429   : > { %v4091_v34 = vrot.slane %v4089_v3, 7  ;;  %v4100_v20 = vrot.slane %v4098_v45, 7  ;;  %v4528_v6 = vsel %vm12352_vm14, %v4526_v40, %v4527_v1  ;;  %v4530_v31 = vrot.slane %v6990_v15, 7 }
 0x42a   : > { %v3697_v16 = vpack.c.bf16 %v12687_v52, %v7608_v47  ;;  %v6991_v11 = vpack.c.bf16 %v12687_v52, %v12687_v52 }
 0x42b   : > { %v4094_v8 = vor.u32 %v4092_v36, %v4091_v34  ;;  %v4096_v22 = vrot.slane %v4091_v34, 4  ;;  %v4103_v44 = vor.u32 %v4101_v14, %v4100_v20  ;;  %v4105_v63 = vrot.slane %v4100_v20, 4 }
 0x42c   : > { %v3725_v9 = vsel %vm3709_vm3, %v3697_v16, 0  ;;  %v4529_v20 = vrot.slane %v4527_v1, 4  ;;  %v4533_v14 = vrot.slane %v6991_v11, 7 }
 0x42d   : > { %v4320_v42 = vld [vmem:[#allocation2 + $0x6c] sm:$0xf]  ;;  %v4321_v37 = vld [vmem:[#allocation2 + $0x70] sm:$0xf]  ;;  %v4095_v55 = vsel %vm12389_vm11, %v4087_v23, %v4094_v8  ;;  %v4104_v53 = vsel %vm12389_vm11, %v4096_v22, %v4103_v44  ;;  %v6811_v13 = vcombine.low %v3725_v9, %v3725_v9  ;;  %v6812_v60 = vcombine.high %v3725_v9, %v3725_v9 }
 0x42e   : > { %v4629_v18 = vsel %vm12328_vm7, %v4320_v42, %v4519_v48  ;;  %v4630_v17 = vsel %vm12328_vm7, %v4321_v37, %v4522_v51  ;;  %4276 = vst [vmem:[#allocation2 + $0x74] sm:$0xf] %v4095_v55  ;;  %4277 = vst [vmem:[#allocation2 + $0x78] sm:$0xf] %v4104_v53  ;;  %v4532_v44 = vrot.slane %v4530_v31, 4  ;;  %v6992_v48 = vpack.c.bf16 %v7613_v12, %v7613_v12 }
 0x42f   : > { %v7616_v57 = vpop.permute.xlu0 %7615  ;;  %4670 = vst [vmem:[#allocation2 + $0x6c] sm:$0xf] %v4629_v18  ;;  %4671 = vst [vmem:[#allocation2 + $0x70] sm:$0xf] %v4630_v17  ;;  %v4107_v62 = vshrl.u32 %v6811_v13, 16  ;;  %v4116_v61 = vshrl.u32 %v6812_v60, 16  ;;  %v4531_v55 = vsel %vm12352_vm14, %v4529_v20, %v4530_v31 }
 0x430   : > { %v12706_v2 = vunpack.i.l.bf16 %v7616_v57  ;;  %v4110_v10 = vshll.u32 %v6811_v13, 16  ;;  %v4119_v28 = vshll.u32 %v6812_v60, 16  ;;  %v7618_v26 = vunpack.i.h.bf16 %v7616_v57 }
 0x431   : > { %v4109_v7 = vrot.slane %v4107_v62, 7  ;;  %v4118_v32 = vrot.slane %v4116_v61, 7  ;;  %v4534_v53 = vsel %vm12352_vm14, %v4532_v44, %v4533_v14  ;;  %v4536_v41 = vrot.slane %v6992_v48, 7 }
 0x432   : > { %v3698_v33 = vpack.c.bf16 %v12706_v2, %v7613_v12  ;;  %v6993_v13 = vpack.c.bf16 %v12706_v2, %v12706_v2 }
 0x433   : > { %v4112_v54 = vor.u32 %v4110_v10, %v4109_v7  ;;  %v4114_v19 = vrot.slane %v4109_v7, 4  ;;  %v4121_v46 = vor.u32 %v4119_v28, %v4118_v32  ;;  %v4123_v24 = vrot.slane %v4118_v32, 4 }
 0x434   : > { %v3726_v0 = vsel %vm3709_vm3, %v3698_v33, 0  ;;  %v4535_v10 = vrot.slane %v4533_v14, 4  ;;  %v4539_v32 = vrot.slane %v6993_v13, 7 }
 0x435   : > { %v4322_v4 = vld [vmem:[#allocation2 + $0x74] sm:$0xf]  ;;  %v4323_v30 = vld [vmem:[#allocation2 + $0x78] sm:$0xf]  ;;  %v4113_v27 = vsel %vm12389_vm11, %v4105_v63, %v4112_v54  ;;  %v4122_v25 = vsel %vm12389_vm11, %v4114_v19, %v4121_v46  ;;  %v6813_v3 = vcombine.low %v3726_v0, %v3726_v0  ;;  %v6814_v45 = vcombine.high %v3726_v0, %v3726_v0 }
 0x436   : > { %v4631_v49 = vsel %vm12328_vm7, %v4322_v4, %v4525_v29  ;;  %v4632_v47 = vsel %vm12328_vm7, %v4323_v30, %v4528_v6  ;;  %4278 = vst [vmem:[#allocation2 + $0x7c] sm:$0xf] %v4113_v27  ;;  %4279 = vst [vmem:[#allocation2 + $0x80] sm:$0xf] %v4122_v25  ;;  %v4538_v46 = vrot.slane %v4536_v41, 4  ;;  %v6994_v29 = vpack.c.bf16 %v7618_v26, %v7618_v26 }
 0x437   : > { %v12725_v52 = vpop.permute.xlu1 %7630  ;;  %4672 = vst [vmem:[#allocation2 + $0x74] sm:$0xf] %v4631_v49  ;;  %4673 = vst [vmem:[#allocation2 + $0x78] sm:$0xf] %v4632_v47  ;;  %v4125_v34 = vshrl.u32 %v6813_v3, 16  ;;  %v4134_v36 = vshrl.u32 %v6814_v45, 16  ;;  %v4537_v30 = vsel %vm12352_vm14, %v4535_v10, %v4536_v41 }
 0x438   : > { %v12728_v5 = vunpack.i.l.bf16 %v12725_v52  ;;  %v4128_v23 = vshll.u32 %v6813_v3, 16  ;;  %v4137_v22 = vshll.u32 %v6814_v45, 16  ;;  %v4540_v27 = vsel %vm12352_vm14, %v4538_v46, %v4539_v32 }
 0x439   : > { %v4127_v16 = vrot.slane %v4125_v34, 7  ;;  %v4136_v8 = vrot.slane %v4134_v36, 7  ;;  %v4542_v36 = vrot.slane %v6994_v29, 7 }
 0x43a   : > { %v3699_v51 = vpack.c.bf16 %v12728_v5, %v7618_v26  ;;  %v6995_v47 = vpack.c.bf16 %v12728_v5, %v12728_v5 }
 0x43b   : > { %v4130_v9 = vor.u32 %v4128_v23, %v4127_v16  ;;  %v4132_v42 = vrot.slane %v4127_v16, 4  ;;  %v4139_v37 = vor.u32 %v4137_v22, %v4136_v8  ;;  %v4141_v6 = vrot.slane %v4136_v8, 4 }
 0x43c   : > { %v3727_v60 = vsel %vm3709_vm3, %v3699_v51, 0  ;;  %v4541_v8 = vrot.slane %v4539_v32, 4  ;;  %v12768_v44 = vrot.slane %v6995_v47, 7 }
 0x43d   : > { %v4324_v57 = vld [vmem:[#allocation2 + $0x7c] sm:$0xf]  ;;  %v4325_v38 = vld [vmem:[#allocation2 + $0x80] sm:$0xf]  ;;  %v4131_v18 = vsel %vm12389_vm11, %v4123_v24, %v4130_v9  ;;  %v4140_v17 = vsel %vm12389_vm11, %v4132_v42, %v4139_v37  ;;  %v6815_v62 = vcombine.low %v3727_v60, %v3727_v60  ;;  %v6816_v61 = vcombine.high %v3727_v60, %v3727_v60 }
 0x43e   : > { %v4633_v1 = vsel %vm12328_vm7, %v4324_v57, %v4531_v55  ;;  %v4634_v12 = vsel %vm12328_vm7, %v4325_v38, %v4534_v53  ;;  %4280 = vst [vmem:[#allocation2 + $0x84] sm:$0xf] %v4131_v18  ;;  %4281 = vst [vmem:[#allocation2 + $0x88] sm:$0xf] %v4140_v17  ;;  %v4544_v9 = vrot.slane %v4542_v36, 4  ;;  %v12774_v55 = vunpack.i.h.bf16 %v12725_v52 }
 0x43f   : > { %4674 = vst [vmem:[#allocation2 + $0x7c] sm:$0xf] %v4633_v1  ;;  %4675 = vst [vmem:[#allocation2 + $0x80] sm:$0xf] %v4634_v12  ;;  %v4143_v2 = vshrl.u32 %v6815_v62, 16  ;;  %v4152_v7 = vshrl.u32 %v6816_v61, 16  ;;  %v4543_v57 = vsel %vm12352_vm14, %v4541_v8, %v4542_v36 }
 0x440   : > { %v4146_v28 = vshll.u32 %v6815_v62, 16  ;;  %v4155_v40 = vshll.u32 %v6816_v61, 16  ;;  %v4546_v52 = vsel %vm12352_vm14, %v4544_v9, %v12768_v44 }
 0x441   : > { %v7621_v15 = vpop.permute.xlu0 %7620  ;;  %v4145_v33 = vrot.slane %v4143_v2, 7  ;;  %v12747_v63 = vrot.slane %v4152_v7, 7 }
 0x442   : > { %v7623_v54 = vunpack.i.h.bf16 %v7621_v15  ;;  %v7622_v19 = vunpack.i.l.bf16 %v7621_v15 }
 0x443   : > { %v4148_v11 = vor.u32 %v4146_v28, %v4145_v33  ;;  %v4150_v0 = vrot.slane %v4145_v33, 4  ;;  %v4157_v4 = vor.u32 %v4155_v40, %v12747_v63 }
 0x444   : > { %v3701_v25 = vpack.c.bf16 %v7623_v54, %v7622_v19  ;;  %v6998_v34 = vpack.c.bf16 %v7622_v19, %v7622_v19  ;;  %v6999_v5 = vpack.c.bf16 %v7623_v54, %v7623_v54 }
 0x445   : > { %v4326_v3 = vld [vmem:[#allocation2 + $0x84] sm:$0xf]  ;;  %v4327_v45 = vld [vmem:[#allocation2 + $0x88] sm:$0xf]  ;;  %v4149_v31 = vsel %vm12389_vm11, %v4141_v6, %v4148_v11  ;;  %v4158_v49 = vsel %vm12389_vm11, %v4150_v0, %v4157_v4 }
 0x446   : > { %v4635_v20 = vsel %vm12328_vm7, %v4326_v3, %v4537_v30  ;;  %v4636_v14 = vsel %vm12328_vm7, %v4327_v45, %v4540_v27  ;;  %4282 = vst [vmem:[#allocation2 + $0x8c] sm:$0xf] %v4149_v31  ;;  %4283 = vst [vmem:[#allocation2 + $0x90] sm:$0xf] %v4158_v49  ;;  %v3729_v26 = vsel %vm3709_vm3, %v3701_v25, 0  ;;  %v12771_v24 = vrot.slane %v6998_v34, 7 }
 0x447   : > { %4676 = vst [vmem:[#allocation2 + $0x84] sm:$0xf] %v4635_v20  ;;  %4677 = vst [vmem:[#allocation2 + $0x88] sm:$0xf] %v4636_v14  ;;  %v12766_v16 = vcombine.low %v3729_v26, %v3729_v26  ;;  %v6820_v23 = vcombine.high %v3729_v26, %v3729_v26  ;;  %v12782_v38 = vrot.slane %v6999_v5, 7 }
 0x448   : > { %v7626_v22 = vpop.permute.xlu0 %7625  ;;  %v4556_v12 = vrot.slane %v12771_v24, 4  ;;  %v4291_v5 = vld [vmem:[#allocation2 + $0xa4] sm:$0x7] }
 0x449   : > { %v4179_v48 = vshrl.u32 %v12766_v16, 16  ;;  %v4188_v51 = vshrl.u32 %v6820_v23, 16  ;;  %v7628_v42 = vunpack.i.h.bf16 %v7626_v22  ;;  %v7627_v37 = vunpack.i.l.bf16 %v7626_v22 }
 0x44a   : > { %v4191_v60 = vshll.u32 %v6820_v23, 16  ;;  %v4182_v54 = vshll.u32 %v12766_v16, 16  ;;  %v4558_v6 = vsel %vm12352_vm14, %v4556_v12, %v12782_v38 }
 0x44b   : > { %v12776_v53 = vrot.slane %v4179_v48, 7  ;;  %v12778_v13 = vrot.slane %v4188_v51, 7  ;;  %v3682_v18 = vpack.c.bf16 %v12332_v43, %v7628_v42  ;;  %v12785_v17 = vpack.c.bf16 %v7627_v37, %v7627_v37 }
 0x44c   : > { %v12793_v2 = vpop.permute.xlu0 %3674  ;;  %v6960_v32 = vpack.c.bf16 %v7628_v42, %v7628_v42 }
 0x44d   : > { %v4328_v62 = vld [vmem:[#allocation2 + $0x8c] sm:$0xf]  ;;  %v4329_v61 = vld [vmem:[#allocation2 + $0x90] sm:$0xf]  ;;  %v4186_v41 = vrot.slane %v12776_v53, 4  ;;  %v4193_v1 = vor.u32 %v4191_v60, %v12778_v13  ;;  %v3710_v10 = vsel %vm3709_vm3, %v3682_v18, 0  ;;  %v3700_v46 = vpack.c.bf16 %v12793_v2, %v12774_v55 }
 0x44e   : > { %v4637_v7 = vsel %vm12328_vm7, %v4328_v62, %v4543_v57  ;;  %v4638_v43 = vsel %vm12328_vm7, %v4329_v61, %v4546_v52  ;;  %v6781_v40 = vcombine.low %v3710_v10, %v3710_v10  ;;  %v6782_v15 = vcombine.high %v3710_v10, %v3710_v10  ;;  %v7731_v60 = vld [vmem:[#allocation2 + $0x4] sm:$0xf] }
 0x44f   : > { %4678 = vst [vmem:[#allocation2 + $0x8c] sm:$0xf] %v4637_v7  ;;  %4679 = vst [vmem:[#allocation2 + $0x90] sm:$0xf] %v4638_v43  ;;  %v4194_v28 = vsel %vm12389_vm11, %v4186_v41, %v4193_v1  ;;  %v3730_v33 = vsel %vm3709_vm3, %v12785_v17, 0  ;;  %v4195_v29 = vrot.slane %v12778_v13, 4  ;;  %v6997_v14 = vpack.c.bf16 %v12793_v2, %v12793_v2 }
 0x450   : > { %4287 = vst [vmem:[#allocation2 + $0xa0] sm:$0xf] %v4194_v28  ;;  %v6821_v19 = vcombine.low %v3730_v33, %v3730_v33  ;;  %v3838_v11 = vshrl.u32 %v6781_v40, 16  ;;  %v3846_v0 = vshrl.u32 %v6782_v15, 16  ;;  %v3841_v4 = vshll.u32 %v6781_v40, 16 }
 0x451   : > { %v3849_v30 = vshll.u32 %v6782_v15, 16  ;;  %v12813_v27 = vrot.slane %v6960_v32, 7  ;;  %v3728_v49 = vsel %vm3709_vm3, %v3700_v46, 0  ;;  %v6996_v1 = vpack.c.bf16 %v12774_v55, %v12774_v55 }
 0x452   : > { %v4197_v25 = vshrl.u32 %v6821_v19, 16  ;;  %v3840_v3 = vrot.slane %v3838_v11, 7  ;;  %v3848_v45 = vrot.slane %v3846_v0, 7  ;;  %v4200_v31 = vshll.u32 %v6821_v19, 16 }
 0x453   : > { %v6817_v36 = vcombine.low %v3728_v49, %v3728_v49  ;;  %v6818_v20 = vcombine.high %v3728_v49, %v3728_v49  ;;  %v4184_v12 = vor.u32 %v4182_v54, %v12776_v53  ;;  %v4442_v28 = vrot.slane %v12813_v27, 4 }
 0x454   : > { %v4199_v34 = vrot.slane %v4197_v25, 7  ;;  %v3843_v26 = vor.u32 %v3841_v4, %v3840_v3  ;;  %v3844_v16 = vrot.slane %v3840_v3, 4  ;;  %v3851_v23 = vor.u32 %v3849_v30, %v3848_v45 }
 0x455   : > { %v3853_v8 = vrot.slane %v3848_v45, 4  ;;  %v4161_v48 = vshrl.u32 %v6817_v36, 16  ;;  %v4164_v51 = vshll.u32 %v6817_v36, 16  ;;  %v4170_v9 = vshrl.u32 %v6818_v20, 16  ;;  %v12891_v36 = vld [vmem:[#allocation3 + $0x1d00] sm:$0xff] (%p1689_p8)  }
 0x456   : > { %v4202_v22 = vor.u32 %v4200_v31, %v4199_v34  ;;  %v3852_v37 = vsel %vm12389_vm11, %v3844_v16, %v3851_v23  ;;  %v4247_v57 = vsel %vm12819_vm6, %v3843_v26, %v7731_v60  ;;  %v4173_v18 = vshll.u32 %v6818_v20, 16  ;;  %v7734_v20 = vld [vmem:[#allocation3 + $0x1c88] sm:$0xff] (%p1689_p8)   ;;  %6150 = vmatpush1.bf16.msra.mxu0 (%p1689_p8), %v12891_v36  ;;  %v12900_v26 = vld [vmem:[#allocation3 + $0x1d10] sm:$0xff] (%p1689_p8)   ;;  %v7738_v16 = vld [vmem:[#allocation3 + $0x1c98] sm:$0xff] (%p1689_p8)  }
 0x457   : > { %v4333_v42 = vld [vmem:[#allocation2 + $0xa0] sm:$0xf]  ;;  %v3861_v13 = vsel %vm12389_vm11, %v3853_v8, %v12403_v59  ;;  %4248 = vst [vmem:[#allocation2 + $0x4] sm:$0xf] %v4247_v57  ;;  %4249 = vst [vmem:[#allocation2 + $0x8] sm:$0xf] %v3852_v37  ;;  %v4444_v11 = vsel %vm12352_vm14, %v4442_v28, %v12350_v21  ;;  %6151 = vmatprep.subr.bf16.mxu0 (%p1689_p8), %v16094_v39 }
 0x458   : > { %v4642_v62 = vsel %vm12328_vm7, %v4333_v42, %v4558_v6  ;;  %4250 = vst [vmem:[#allocation2 + $0xc] sm:$0xf] %v3861_v13  ;;  %v4203_v61 = vsel %vm12389_vm11, %v4195_v29, %v4202_v22  ;;  %v4163_v52 = vrot.slane %v4161_v48, 7  ;;  %v4172_v41 = vrot.slane %v4170_v9, 7  ;;  %v12905_v23 = vld [vmem:[#allocation3 + $0x1d18] sm:$0xff] (%p1689_p8)   ;;  %v7740_v8 = vld [vmem:[#allocation3 + $0x1ca0] sm:$0xff] (%p1689_p8)  }
 0x459   : > { %v4159_v59 = vrot.slane %v12747_v63, 4  ;;  %4683 = vst [vmem:[#allocation2 + $0xa0] sm:$0xf] %v4642_v62  ;;  %v4292_v2 = vsel %vm12827_vm2, %v4203_v61, %v4291_v5  ;;  %v4551_v53 = vrot.slane %v6997_v14, 7  ;;  %v4560_v15 = vrot.slane %v12785_v17, 7  ;;  %v7736_v14 = vld [vmem:[#allocation3 + $0x1c90] sm:$0xff] (%p1689_p8)  }
 0x45a   : > { %4293 = vst [vmem:[#allocation2 + $0xa4] sm:$0x7] %v4292_v2  ;;  %v4166_v7 = vor.u32 %v4164_v51, %v4163_v52  ;;  %v4168_v43 = vrot.slane %v4163_v52, 4  ;;  %v4175_v10 = vor.u32 %v4173_v18, %v4172_v41  ;;  %v4177_v32 = vrot.slane %v4172_v41, 4  ;;  %6152 = vmatpush1.bf16.msra.mxu0 (%p1689_p8), %v12895_v50  ;;  %v7742_v5 = vld [vmem:[#allocation3 + $0x1ca8] sm:$0xff] (%p1689_p8)   ;;  %v7744_v48 = vld [vmem:[#allocation3 + $0x1cb0] sm:$0xff] (%p1689_p8)  }
 0x45b   : > { %v4548_v33 = vrot.slane %v6996_v1, 7  ;;  %v4547_v54 = vrot.slane %v12768_v44, 4  ;;  %v4559_v19 = vrot.slane %v12782_v38, 4  ;;  %v4553_v0 = vrot.slane %v4551_v53, 4  ;;  %6153 = vmatprep.subr.bf16.mxu0 (%p1689_p8), %v16094_v39  ;;  %v12915_v22 = vld [vmem:[#allocation3 + $0x1d28] sm:$0xff] (%p1689_p8)   ;;  %v12920_v51 = vld [vmem:[#allocation3 + $0x1d30] sm:$0xff] (%p1689_p8)  }
 0x45c   : > { %v4167_v40 = vsel %vm12389_vm11, %v4159_v59, %v4166_v7  ;;  %v4176_v55 = vsel %vm12389_vm11, %v4168_v43, %v4175_v10  ;;  %v4185_v63 = vsel %vm12389_vm11, %v4177_v32, %v4184_v12  ;;  %v7746_v9 = vld [vmem:[#allocation3 + $0x1cb8] sm:$0xff] (%p1689_p8)   ;;  %v7748_v37 = vld [vmem:[#allocation3 + $0x1cc0] sm:$0xff] (%p1689_p8)   ;;  %v4685_v60 = vld [vmem:[#allocation2] sm:$0xf] (%p1689_p8) }
 0x45d   : > { %4284 = vst [vmem:[#allocation2 + $0x94] sm:$0xf] %v4167_v40  ;;  %4285 = vst [vmem:[#allocation2 + $0x98] sm:$0xf] %v4176_v55  ;;  %v4561_v4 = vsel %vm12352_vm14, %v4559_v19, %v4560_v15  ;;  %v4550_v21 = vrot.slane %v4548_v33, 4  ;;  %v4555_v31 = vsel %vm12352_vm14, %v4553_v0, %v12771_v24  ;;  %v7732_v24 = vld [vmem:[#allocation3 + $0x1c80] sm:$0xff] (%p1689_p8)  }
 0x45e   : > { %4286 = vst [vmem:[#allocation2 + $0x9c] sm:$0xf] %v4185_v63  ;;  %v4294_v46 = vld [vmem:[#allocation2 + $0x4] sm:$0xe]  ;;  %v4295_v29 = vld [vmem:[#allocation2 + $0x8] sm:$0xf]  ;;  %5950 = vmatpush1.bf16.msra.mxu1 (%p1689_p8), %v7732_v24  ;;  %6154 = vmatpush1.bf16.msra.mxu0 (%p1689_p8), %v12900_v26  ;;  %vm16104_vm11 = vmmov (%p1689_p8), %vm16096_vm1 }
 0x45f   : > { %v4296_v6 = vld [vmem:[#allocation2 + $0xc] sm:$0xf]  ;;  %v4603_v56 = vsel %vm12328_vm7, %v4294_v46, %v12813_v27  ;;  %v4604_v17 = vsel %vm12328_vm7, %v4295_v29, %v4444_v11  ;;  %v4549_v27 = vsel %vm12352_vm14, %v4547_v54, %v4548_v33  ;;  %5951 = vmatprep.subr.bf16.mxu1 (%p1689_p8), %v16094_v39  ;;  %6155 = vmatprep.subr.bf16.mxu0 (%p1689_p8), %v16094_v39  ;;  %v12930_v13 = vld [vmem:[#allocation3 + $0x1d40] sm:$0xff] (%p1689_p8)   ;;  %v7750_v62 = vld [vmem:[#allocation3 + $0x1cc8] sm:$0xff] (%p1689_p8)  }
 0x460   : > { %v4605_v44 = vsel %vm12328_vm7, %v4296_v6, %v12365_v35  ;;  %4644 = vst [vmem:[#allocation2 + $0x4] sm:$0xe] %v4603_v56  ;;  %4645 = vst [vmem:[#allocation2 + $0x8] sm:$0xf] %v4604_v17  ;;  %v4552_v35 = vsel %vm12352_vm14, %v4550_v21, %v4551_v53  ;;  %v12925_v42 = vld [vmem:[#allocation3 + $0x1d38] sm:$0xff] (%p1689_p8)   ;;  %v12945_v2 = vld [vmem:[#allocation3 + $0x1d48] sm:$0xff] (%p1689_p8)  }
 0x461   : > { %4646 = vst [vmem:[#allocation2 + $0xc] sm:$0xf] %v4605_v44  ;;  %v4334_v38 = vld [vmem:[#allocation2 + $0xa4] sm:$0x7]  ;;  %v4689_v41 = vld [vmem:[#allocation2 + $0x10] sm:$0xf] (%p1689_p8)  ;;  %vm16098_vm14 = vmmov (%p1689_p8), %vm16096_vm1 }
 0x462   : > { %v4643_v30 = vsel %vm12328_vm7, %v4334_v38, %v4561_v4  ;;  %5952 = vmatpush1.bf16.msra.mxu1 (%p1689_p8), %v7734_v20  ;;  %6156 = vmatpush1.bf16.msra.mxu0 (%p1689_p8), %v12905_v23  ;;  %v7752_v63 = vld [vmem:[#allocation3 + $0x1cd0] sm:$0xff] (%p1689_p8)   ;;  %v7754_v46 = vld [vmem:[#allocation3 + $0x1cd8] sm:$0xff] (%p1689_p8)   ;;  %v7756_v6 = vld [vmem:[#allocation3 + $0x1ce0] sm:$0xff] (%p1689_p8)  }
 0x463   : > { %4684 = vst [vmem:[#allocation2 + $0xa4] sm:$0x7] %v4643_v30  ;;  %5953 = vmatprep.subr.bf16.mxu1 (%p1689_p8), %v16094_v39  ;;  %6157 = vmatprep.subr.bf16.mxu0 (%p1689_p8), %v16094_v39  ;;  %v12954_v15 = vld [vmem:[#allocation3 + $0x1d50] sm:$0xff] (%p1689_p8)   ;;  %v12963_v29 = vld [vmem:[#allocation3 + $0x1d58] sm:$0xff] (%p1689_p8)   ;;  %v12968_v11 = vld [vmem:[#allocation3 + $0x1d60] sm:$0xff] (%p1689_p8)  }
 0x464   : > { %v4330_v25 = vld [vmem:[#allocation2 + $0x94] sm:$0xf]  ;;  %v4331_v3 = vld [vmem:[#allocation2 + $0x98] sm:$0xf]  ;;  %v7760_v21 = vld [vmem:[#allocation3 + $0x1cf0] sm:$0xff] (%p1689_p8)  }
 0x465   : > { %v4332_v45 = vld [vmem:[#allocation2 + $0x9c] sm:$0xf]  ;;  %v4639_v49 = vsel %vm12328_vm7, %v4330_v25, %v4549_v27  ;;  %v4640_v47 = vsel %vm12328_vm7, %v4331_v3, %v4552_v35  ;;  %1691 = sbr.rel (!%p1689_p8) target bundleno = 446 (0x1be), region = 45  ;;  %v4690_v56 = vld [vmem:[#allocation2 + $0x14] sm:$0xf] (%p1689_p8)  ;;  %v12982_v3 = vld [vmem:[#allocation3 + $0x1d70] sm:$0xff] (%p1689_p8)  }
 0x466   : > { %v4641_v34 = vsel %vm12328_vm7, %v4332_v45, %v4555_v31  ;;  %4680 = vst [vmem:[#allocation2 + $0x94] sm:$0xf] %v4639_v49  ;;  %4681 = vst [vmem:[#allocation2 + $0x98] sm:$0xf] %v4640_v47  ;;  %5954 = vmatpush1.bf16.msra.mxu1 (%p1689_p8), %v7736_v14  ;;  %6158 = vmatpush1.bf16.msra.mxu0 (%p1689_p8), %v12910_v58  ;;  %v7758_v44 = vld [vmem:[#allocation3 + $0x1ce8] sm:$0xff] (%p1689_p8)   ;;  %v12971_v0 = vcombine.low (%p1689_p8), %v4689_v41, %v4690_v56  ;;  %v12988_v24 = vld [vmem:[#allocation3 + $0x1d78] sm:$0xff] (%p1689_p8)  }
 0x467   : > { %4682 = vst [vmem:[#allocation2 + $0x9c] sm:$0xf] %v4641_v34  ;;  %5955 = vmatprep.subr.bf16.mxu1 (%p1689_p8), %v16094_v39  ;;  %6159 = vmatprep.subr.bf16.mxu0 (%p1689_p8), %v16094_v39  ;;  %v4686_v57 = vld [vmem:[#allocation2 + $0x4] sm:$0xf] (%p1689_p8)  ;;  %v4687_v18 = vld [vmem:[#allocation2 + $0x8] sm:$0xf] (%p1689_p8)  ;;  %vm16102_vm7 = vmmov (%p1689_p8), %vm16099_vm8 }
 0x468   :  { %v12933_v61 = vld [vmem:[#allocation2 + $0xc] sm:$0xf] (%p1689_p8)  ;;  %v12935_v52 = vcombine.low (%p1689_p8), %v4685_v60, %v4686_v57  ;;  %v4729_v59 = vld [vmem:[#allocation2 + $0x4] sm:$0xe] (%p1689_p8)  ;;  %v6885_v17 = vcombine.low (%p1689_p8), %v4686_v57, %v4687_v18  ;;  %v12975_v38 = vld [vmem:[#allocation3 + $0x1d68] sm:$0xff] (%p1689_p8)   ;;  %v4878_v27 = vshll.u32 (%p1689_p8), %v12971_v0, 16 }
 0x469   :  { %v12938_v1 = vcombine.low (%p1689_p8), %v4687_v18, %v12933_v61  ;;  %v12941_v12 = vcombine.low (%p1689_p8), %v12933_v61, %v4689_v41  ;;  %v6906_v10 = vcombine.low (%p1689_p8), %v4729_v59, %v4687_v18  ;;  %v4691_v25 = vld [vmem:[#allocation2 + $0x18] sm:$0xf] (%p1689_p8)  ;;  %v4692_v49 = vld [vmem:[#allocation2 + $0x1c] sm:$0xf] (%p1689_p8)  ;;  %v7762_v34 = vld [vmem:[#allocation3 + $0x1cf8] sm:$0xff] (%p1689_p8)   ;;  %v4882_v57 = vshrl.u32 (%p1689_p8), %v12971_v0, 16 }
 0x46a   :  { %5956 = vmatpush1.bf16.msra.mxu1 (%p1689_p8), %v7738_v16  ;;  %6160 = vmatpush1.bf16.msra.mxu0 (%p1689_p8), %v12915_v22  ;;  %v4863_v7 = vshrl.u32 (%p1689_p8), %v12935_v52, 16  ;;  %v4865_v43 = vshll.u32 (%p1689_p8), %v12935_v52, 16  ;;  %v5078_v4 = vshll.u32 (%p1689_p8), %v6885_v17, 16  ;;  %v5076_v45 = vshrl.u32 (%p1689_p8), %v6885_v17, 16  ;;  %v4695_v41 = vld [vmem:[#allocation2 + $0x28] sm:$0xf] (%p1689_p8)  ;;  %vm16103_vm3 = vmmov (%p1689_p8), %vm16102_vm7 }
 0x46b   :  { %5957 = vmatprep.subr.bf16.mxu1 (%p1689_p8), %v16094_v39  ;;  %6161 = vmatprep.subr.bf16.mxu0 (%p1689_p8), %v16094_v39  ;;  %v4870_v32 = vshll.u32 (%p1689_p8), %v12938_v1, 16  ;;  %v5268_v28 = vrot.slane (%p1689_p8), %v12941_v12, 1  ;;  %v5267_v55 = vrot.slane (%p1689_p8), %v6906_v10, 1  ;;  %v5083_v30 = vshll.u32 (%p1689_p8), %v12941_v12, 16  ;;  %vm16107_vm4 = vmmov (%p1689_p8), %vm16103_vm3 }
 0x46c   :  { %v4867_v40 = vrot.slane %v4865_v43, 1  ;;  %v5080_v35 = vrot.slane %v5078_v4, 1  ;;  %v4874_v31 = vshrl.u32 %v12938_v1, 16  ;;  %v12986_v47 = vcombine.low %v4690_v56, %v4691_v25  ;;  %v13032_v4 = vld [vmem:[#allocation2 + $0x60] sm:$0xf]  ;;  %vm16109_vm6 = vmmov %vm16103_vm3 }
 0x46d   :  { %v4872_v53 = vrot.slane %v4870_v32, 1  ;;  %v5269_v54 = vsel %vm16095_vm10, %v5267_v55, %v5268_v28  ;;  %v5085_v20 = vrot.slane %v5083_v30, 1  ;;  %v4880_v14 = vrot.slane %v4878_v27, 1  ;;  %vm16110_vm2 = vmmov %vm16103_vm3 }
 0x46e   :  { %5958 = vmatpush1.bf16.msra.mxu1 %v7740_v8  ;;  %6162 = vmatpush1.bf16.msra.mxu0 %v12920_v51  ;;  %v4868_v33 = vor.u32 %v4867_v40, %v4863_v7  ;;  %v5081_v16 = vor.u32 %v5080_v35, %v5076_v45  ;;  %v5087_v60 = vshrl.u32 %v12941_v12, 16  ;;  %v7770_v7 = vld [vmem:[#allocation3 + $0x1d80] sm:$0xff]   ;;  %v5091_v10 = vshll.u32 %v12986_v47, 16 }
 0x46f   :  { %5959 = vmatprep.subr.bf16.mxu1 %v16094_v39  ;;  %6163 = vmatprep.subr.bf16.mxu0 %v16094_v39  ;;  %v4876_v8 = vor.u32 %v4874_v31, %v4872_v53  ;;  %v5095_v55 = vshrl.u32 %v12986_v47, 16  ;;  %vm16111_vm10 = vsmask.f32 6400 }
 0x470   :  { %6181 = vmatprep.mubr.bf16.mxu0 %v5269_v54  ;;  %v4873_v19 = vsel %vm16096_vm1, %v4868_v33, %v4872_v53  ;;  %v5086_v59 = vsel %vm16097_vm12, %v5081_v16, %v5085_v20  ;;  %v4696_v53 = vld [vmem:[#allocation2 + $0x2c] sm:$0xf]  ;;  %v5089_v12 = vor.u32 %v5087_v60, %v5085_v20  ;;  %v7774_v20 = vld [vmem:[#allocation3 + $0x1d90] sm:$0xff]   ;;  %vm16112_vm1 = vmmov %vm16111_vm10 }
 0x471   :  { %5981 = vmatprep.mubr.bf16.mxu1 %v4873_v19  ;;  %v4881_v43 = vsel %vm16098_vm14, %v4876_v8, %v4880_v14  ;;  %v13028_v17 = vcombine.low %v4695_v41, %v4696_v53  ;;  %vm16113_vm12 = vmmov %vm16112_vm1 }
 0x472   :  { %5960 = vmatpush1.bf16.msra.mxu1 %v7742_v5  ;;  %6164 = vmatpush1.bf16.msra.mxu0 %v12925_v42  ;;  %v12994_v5 = vcombine.low %v4691_v25, %v4692_v49  ;;  %v4697_v25 = vld [vmem:[#allocation2 + $0x30] sm:$0xf]  ;;  %vm16114_vm14 = vmmov %vm16110_vm2 }
 0x473   :  { %5961 = vmatprep.subr.bf16.mxu1 %v16094_v39  ;;  %6165 = vmatprep.subr.bf16.mxu0 %v16094_v39  ;;  %v13056_v60 = vcombine.low %v4696_v53, %v4697_v25 }
 0x474   :  { %v4886_v32 = vshll.u32 %v12994_v5, 16 }
 0x476   :  { %5962 = vmatpush1.bf16.msra.mxu1 %v7744_v48  ;;  %6166 = vmatpush1.bf16.msra.mxu0 %v12930_v13  ;;  %v4693_v48 = vld [vmem:[#allocation2 + $0x20] sm:$0xf] }
 0x477   :  { %5963 = vmatprep.subr.bf16.mxu1 %v16094_v39  ;;  %6167 = vmatprep.subr.bf16.mxu0 %v16094_v39 }
 0x47a   :  { %5964 = vmatpush1.bf16.msra.mxu1 %v7746_v9  ;;  %6168 = vmatpush1.bf16.msra.mxu0 %v12945_v2  ;;  %v4694_v9 = vld [vmem:[#allocation2 + $0x24] sm:$0xf] }
 0x47b   :  { %5965 = vmatprep.subr.bf16.mxu1 %v16094_v39  ;;  %6169 = vmatprep.subr.bf16.mxu0 %v16094_v39  ;;  %v13000_v18 = vcombine.low %v4693_v48, %v4694_v9  ;;  %v13017_v33 = vcombine.low %v4694_v9, %v4695_v41  ;;  %v4902_v9 = vshll.u32 %v13028_v17, 16 }
 0x47d   :  { %v4894_v19 = vshll.u32 %v13000_v18, 16  ;;  %v5274_v30 = vrot.slane %v13017_v33, 1  ;;  %v4898_v16 = vshrl.u32 %v13000_v18, 16 }
 0x47e   :  { %5966 = vmatpush1.bf16.msra.mxu1 %v7748_v37  ;;  %6170 = vmatpush1.bf16.msra.mxu0 %v12954_v15  ;;  %v5270_v37 = vrot.slane %v12986_v47, 1  ;;  %v13042_v47 = vld [vmem:[#allocation2 + $0x34] sm:$0xf] }
 0x47f   :  { %5967 = vmatprep.subr.bf16.mxu1 %v16094_v39  ;;  %6171 = vmatprep.subr.bf16.mxu0 %v16094_v39  ;;  %v4896_v35 = vrot.slane %v4894_v19, 1  ;;  %v13063_v41 = vcombine.low %v4697_v25, %v13042_v47 }
 0x480   :  { %v5271_v40 = vsel %vm16099_vm8, %v5268_v28, %v5270_v37  ;;  %v4884_v28 = vor.u32 %v4882_v57, %v4880_v14  ;;  %vm16115_vm8 = vmmov %vm16105_vm0 }
 0x482   :  { %5968 = vmatpush1.bf16.msra.mxu1 %v7750_v62  ;;  %6172 = vmatpush1.bf16.msra.mxu0 %v12963_v29  ;;  %v13002_v62 = vcombine.low %v4692_v49, %v4693_v48  ;;  %v5107_v49 = vshll.u32 %v13017_v33, 16 }
 0x483   :  { %5969 = vmatprep.subr.bf16.mxu1 %v16094_v39  ;;  %6173 = vmatprep.subr.bf16.mxu0 %v16094_v39 }
 0x484   :  { %v5099_v54 = vshll.u32 %v13002_v62, 16  ;;  %v5272_v56 = vrot.slane %v13002_v62, 1  ;;  %v5103_v31 = vshrl.u32 %v13002_v62, 16  ;;  %v4730_v62 = vld [vmem:[#allocation2 + $0x8] sm:$0xe] }
 0x486   :  { %5970 = vmatpush1.bf16.msra.mxu1 %v7752_v63  ;;  %6174 = vmatpush1.bf16.msra.mxu0 %v12968_v11  ;;  %v4890_v63 = vshrl.u32 %v12994_v5, 16  ;;  %v5101_v45 = vrot.slane %v5099_v54, 1  ;;  %v5273_v48 = vsel %vm16102_vm7, %v5270_v37, %v5272_v56  ;;  %v6907_v54 = vcombine.low %v4730_v62, %v12933_v61  ;;  %v13086_v61 = vld [vmem:[#allocation2 + $0x3c] sm:$0xf]  ;;  %vm16118_vm7 = vmmov %vm16110_vm2 }
 0x487   :  { %5971 = vmatprep.subr.bf16.mxu1 %v16094_v39  ;;  %6175 = vmatprep.subr.bf16.mxu0 %v16094_v39 }
 0x48a   :  { %5972 = vmatpush1.bf16.msra.mxu1 %v7754_v46  ;;  %6176 = vmatpush1.bf16.msra.mxu0 %v12975_v38  ;;  %v5093_v46 = vrot.slane %v5091_v10, 1 }
 0x48b   :  { %5973 = vmatprep.subr.bf16.mxu1 %v16094_v39  ;;  %6177 = vmatprep.subr.bf16.mxu0 %v16094_v39 }
 0x48e   :  { %5974 = vmatpush1.bf16.msra.mxu1 %v7756_v6  ;;  %6178 = vmatpush1.bf16.msra.mxu0 %v12982_v3  ;;  %v4888_v6 = vrot.slane %v4886_v32, 1 }
 0x48f   :  { %5975 = vmatprep.subr.bf16.mxu1 %v16094_v39  ;;  %6179 = vmatprep.subr.bf16.mxu0 %v16094_v39 }
 0x490   :  { %v4889_v14 = vsel %vm16101_vm15, %v4884_v28, %v4888_v6  ;;  %v5413_v28 = vrot.slane %v4878_v27, 2  ;;  %vm16117_vm15 = vmmov %vm16112_vm1 }
 0x492   :  { %5976 = vmatpush1.bf16.msra.mxu1 %v7758_v44  ;;  %6180 = vmatpush1.bf16.msra.mxu0 %v12988_v24  ;;  %v13030_v44 = vld [vmem:[#allocation2 + $0x5c] sm:$0xf] }
 0x493   :  { %5977 = vmatprep.subr.bf16.mxu1 %v16094_v39  ;;  %6349 = vmatprep.subr.bf16.mxu0 %v16094_v39  ;;  %v13050_v8 = vcombine.low %v13030_v44, %v13032_v4 }
 0x495   :  { %6182 = vmatmul.mubr.bf16.vlgmr.msra.gmra.mrb[0].mxu0 %v5086_v59  ;;  %v5163_v59 = vshll.u32 %v13050_v8, 16  ;;  %v5167_v37 = vshrl.u32 %v13050_v8, 16 }
 0x496   :  { %5978 = vmatpush1.bf16.msra.mxu1 %v7760_v21  ;;  %6350 = vmatpush1.bf16.msra.mxu0 %v7770_v7  ;;  %v4892_v21 = vor.u32 %v4890_v63, %v4888_v6  ;;  %v5339_v6 = vrot.slane %v12971_v0, 1 }
 0x497   :  { %5979 = vmatprep.subr.bf16.mxu1 %v16094_v39  ;;  %6351 = vmatprep.subr.bf16.mxu0 %v16094_v39  ;;  %v13071_v53 = vrot.slane %v5163_v59, 1 }
 0x498   :  { %6189 = vmatprep.mubr.bf16.mxu0 %v5271_v40  ;;  %v4897_v10 = vsel %vm16105_vm0, %v4892_v21, %v4896_v35  ;;  %v5105_v40 = vor.u32 %v5103_v31, %v5101_v45  ;;  %v7780_v21 = vld [vmem:[#allocation3 + $0x1da0] sm:$0xff]   ;;  %v4699_v31 = vld [vmem:[#allocation2 + $0x38] sm:$0xf] }
 0x499   :  { %v13103_v62 = vcombine.low %v4699_v31, %v13086_v61 }
 0x49a   :  { %5980 = vmatpush1.bf16.msra.mxu1 %v7762_v34  ;;  %v5094_v34 = vsel %vm16100_vm5, %v5089_v12, %v5093_v46  ;;  %v4904_v12 = vrot.slane %v4902_v9, 1  ;;  %vm16116_vm5 = vmmov %vm16110_vm2 }
 0x49b   :  { %7158 = vmatprep.subr.bf16.mxu1 %v16094_v39 }
 0x49d   :  { %5982 = vmatmul.mubr.bf16.vlgmr.msra.gmra.mrb[0].mxu1 %v12935_v52  ;;  %v7773_v52 = vld [vmem:[#allocation3 + $0x1d88] sm:$0xff]   ;;  %6190 = vmatmul.mubr.bf16.gmra.mrb[4].mxu0 %v5094_v34 }
 0x49e   :  { %5989 = vmatprep.mubr.bf16.mxu1 %v4881_v43  ;;  %7174 = vmatpush1.bf16.msra.mxu1 %v12891_v36  ;;  %v5097_v36 = vor.u32 %v5095_v55, %v5093_v46  ;;  %v7777_v43 = vld [vmem:[#allocation3 + $0x1d98] sm:$0xff]   ;;  %v4900_v55 = vor.u32 %v4898_v16, %v4896_v35  ;;  %v5276_v46 = vrot.slane %v13056_v60, 1  ;;  %v5338_v35 = vrot.slane %v6907_v54, 1 }
 0x49f   :  { %7159 = vmatprep.subr.bf16.mxu1 %v16094_v39  ;;  %6352 = vmatpush1.bf16.msra.mxu0 %v7773_v52  ;;  %v5412_v52 = vrot.slane %v4882_v57, 1  ;;  %v13089_v57 = vor.u32 %v5167_v37, %v13071_v53  ;;  %v5341_v37 = vrot.slane %v12994_v5, 1 }
 0x4a0   :  { %6353 = vmatprep.subr.bf16.mxu0 %v16094_v39  ;;  %v5102_v7 = vsel %vm16104_vm11, %v5097_v36, %v5101_v45  ;;  %6197 = vmatprep.mubr.bf16.mxu0 %v5273_v48  ;;  %v5408_v36 = vshll.u32 %v6907_v54, 16  ;;  %v5115_v45 = vshll.u32 %v13056_v60, 16  ;;  %v4906_v48 = vshrl.u32 %v13028_v17, 16  ;;  %vm16120_vm11 = vmmov %vm16110_vm2 }
 0x4a1   :  { %v5414_v27 = vor.u32 %v5413_v28, %v5412_v52  ;;  %v13106_v59 = vsel %vm16107_vm4, %v5338_v35, %v5339_v6  ;;  %v7781_v52 = vld [vmem:[#allocation3 + $0x1da8] sm:$0xff]  }
 0x4a2   :  { %7175 = vmatpush1.bf16.msra.mxu1 %v12895_v50  ;;  %v5275_v50 = vsel %vm16103_vm3, %v5272_v56, %v5274_v30  ;;  %v5111_v56 = vshrl.u32 %v13017_v33, 16  ;;  %v5410_v34 = vrot.slane %v5408_v36, 2  ;;  %v4918_v36 = vshll.u32 %v13103_v62, 16  ;;  %vm16119_vm3 = vmmov %vm16105_vm0 }
 0x4a3   :  { %7160 = vmatprep.subr.bf16.mxu1 %v16094_v39  ;;  %6354 = vmatpush1.bf16.msra.mxu0 %v7774_v20  ;;  %v5416_v20 = vrot.slane %v4890_v63, 1  ;;  %v4905_v63 = vsel %vm16108_vm13, %v4900_v55, %v4904_v12  ;;  %v5421_v55 = vrot.slane %v4894_v19, 2  ;;  %vm16121_vm0 = vmmov %vm16112_vm1 }
 0x4a4   :  { %6355 = vmatprep.subr.bf16.mxu0 %v16094_v39  ;;  %vm16123_vm4 = vmmov %vm16119_vm3 }
 0x4a5   :  { %5990 = vmatmul.mubr.bf16.gmra.mrb[4].mxu1 %v12938_v1  ;;  %v5109_v1 = vrot.slane %v5107_v49, 1  ;;  %6198 = vmatmul.mubr.bf16.gmra.mrb[8].mxu0 %v5102_v7  ;;  %vm16124_vm13 = vmmov %vm16121_vm0 }
 0x4a6   :  { %5997 = vmatprep.mubr.bf16.mxu1 %v4889_v14  ;;  %7176 = vmatpush1.bf16.msra.mxu1 %v12900_v26  ;;  %v5405_v26 = vshrl.u32 %v6907_v54, 16  ;;  %v5417_v14 = vrot.slane %v4886_v32, 2  ;;  %v4910_v32 = vshll.u32 %v13063_v41, 16  ;;  %v13119_v54 = vsel %vm16110_vm2, %v5339_v6, %v5341_v37 }
 0x4a7   :  { %7161 = vmatprep.subr.bf16.mxu1 %v16094_v39  ;;  %v13092_v25 = vsel %vm16106_vm9, %v5105_v40, %v5109_v1  ;;  %6356 = vmatpush1.bf16.msra.mxu0 %v7777_v43  ;;  %v5113_v7 = vor.u32 %v5111_v56, %v5109_v1  ;;  %v13133_v6 = vcombine.low %v13042_v47, %v4699_v31  ;;  %v13138_v1 = vld [vmem:[#allocation2 + $0x44] sm:$0xf]  ;;  %v5424_v56 = vrot.slane %v4906_v48, 1  ;;  %v4701_v31 = vld [vmem:[#allocation2 + $0x40] sm:$0xf]  ;;  %vm16122_vm9 = vmmov %vm16119_vm3 }
 0x4a8   :  { %v5407_v49 = vrot.slane %v5405_v26, 1  ;;  %6357 = vmatprep.subr.bf16.mxu0 %v16094_v39  ;;  %v5418_v40 = vor.u32 %v5417_v14, %v5416_v20  ;;  %6205 = vmatprep.mubr.bf16.mxu0 %v5275_v50  ;;  %v5119_v50 = vshrl.u32 %v13056_v60, 16  ;;  %v5425_v26 = vrot.slane %v4902_v9, 2 }
 0x4a9   :  { %v4914_v47 = vshrl.u32 %v13063_v41, 16  ;;  %v4912_v35 = vrot.slane %v4910_v32, 1  ;;  %v5123_v20 = vshll.u32 %v13133_v6, 16  ;;  %v13162_v14 = vcombine.low %v4701_v31, %v13138_v1 }
 0x4aa   :  { %7177 = vmatpush1.bf16.msra.mxu1 %v12905_v23  ;;  %v5411_v43 = vor.u32 %v5410_v34, %v5407_v49  ;;  %v5277_v23 = vsel %vm16109_vm6, %v5274_v30, %v5276_v46  ;;  %v13129_v33 = vsel %vm16112_vm1, %v5414_v27, %v5418_v40  ;;  %v4908_v30 = vor.u32 %v4906_v48, %v4904_v12  ;;  %v13164_v48 = vld [vmem:[#allocation2 + $0x4c] sm:$0xf]  ;;  %vm16125_vm6 = vmmov %vm16121_vm0 }
 0x4ab   :  { %7162 = vmatprep.subr.bf16.mxu1 %v16094_v39  ;;  %6358 = vmatpush1.bf16.msra.mxu0 %v7780_v21  ;;  %v5345_v12 = vrot.slane %v13028_v17, 1  ;;  %v5426_v9 = vor.u32 %v5425_v26, %v5424_v56  ;;  %v14538_v34 = vrot.slane %v13133_v6, 1  ;;  %v7787_v56 = vld [vmem:[#allocation3 + $0x1db8] sm:$0xff]   ;;  %vm16131_vm1 = vmmov %vm16121_vm0 }
 0x4ac   :  { %v13126_v28 = vsel %vm16111_vm10, %v5411_v43, %v5414_v27  ;;  %6359 = vmatprep.subr.bf16.mxu0 %v16094_v39  ;;  %v7784_v27 = vld [vmem:[#allocation3 + $0x1db0] sm:$0xff]   ;;  %v4922_v43 = vshrl.u32 %v13103_v62, 16  ;;  %vm16129_vm10 = vmmov %vm16121_vm0 }
 0x4ad   :  { %5998 = vmatmul.mubr.bf16.gmra.mrb[8].mxu1 %v12971_v0  ;;  %v5420_v0 = vrot.slane %v4898_v16, 1  ;;  %v5343_v16 = vrot.slane %v13000_v18, 1  ;;  %6206 = vmatmul.mubr.bf16.gmra.mrb[12].mxu0 %v13092_v25 }
 0x4ae   :  { %6005 = vmatprep.mubr.bf16.mxu1 %v4897_v10  ;;  %v5117_v10 = vrot.slane %v5115_v45, 1  ;;  %7178 = vmatpush1.bf16.msra.mxu1 %v12910_v58 }
 0x4af   :  { %v5422_v19 = vor.u32 %v5421_v55, %v5420_v0  ;;  %7163 = vmatprep.subr.bf16.mxu1 %v16094_v39  ;;  %v13150_v21 = vsel %vm16114_vm14, %v5341_v37, %v5343_v16  ;;  %6360 = vmatpush1.bf16.msra.mxu0 %v7781_v52  ;;  %v13156_v49 = vsel %vm16116_vm5, %v5343_v16, %v5345_v12  ;;  %v5428_v37 = vrot.slane %v4914_v47, 1  ;;  %vm16135_vm14 = vmmov %vm16110_vm2 }
 0x4b0   :  { %v13153_v45 = vsel %vm16115_vm8, %v5113_v7, %v5117_v10  ;;  %6361 = vmatprep.subr.bf16.mxu0 %v16094_v39  ;;  %v5429_v0 = vrot.slane %v4910_v32, 2  ;;  %v14536_v55 = vrot.slane %v13063_v41, 1  ;;  %v5121_v52 = vor.u32 %v5119_v50, %v5117_v10  ;;  %6213 = vmatprep.mubr.bf16.mxu0 %v5277_v23  ;;  %vm16136_vm8 = vmmov %vm16119_vm3 }
 0x4b1   :  { %v13147_v58 = vsel %vm16113_vm12, %v5418_v40, %v5422_v19  ;;  %v13171_v40 = vsel %vm16117_vm15, %v5422_v19, %v5426_v9  ;;  %v4916_v7 = vor.u32 %v4914_v47, %v4912_v35  ;;  %v4920_v16 = vrot.slane %v4918_v36, 1  ;;  %v13181_v19 = vld [vmem:[#allocation2 + $0x54] sm:$0xf]  ;;  %vm16133_vm12 = vmmov %vm16121_vm0 }
 0x4b2   :  { %7179 = vmatpush1.bf16.msra.mxu1 %v12915_v22  ;;  %v13176_v22 = vcombine.low %v13086_v61, %v4701_v31  ;;  %v5430_v32 = vor.u32 %v5429_v0, %v5428_v37  ;;  %v13186_v25 = vsel %vm16118_vm7, %v5345_v12, %v14536_v55  ;;  %v5125_v61 = vrot.slane %v5123_v20, 1  ;;  %v13199_v31 = vld [vmem:[#allocation2 + $0x50] sm:$0xf]  ;;  %vm16137_vm5 = vmmov %vm16121_vm0 }
 0x4b3   :  { %7164 = vmatprep.subr.bf16.mxu1 %v16094_v39  ;;  %6362 = vmatpush1.bf16.msra.mxu0 %v7784_v27  ;;  %v4926_v10 = vshll.u32 %v13162_v14, 16  ;;  %v14537_v23 = vshrl.u32 %v13162_v14, 16  ;;  %v5433_v50 = vrot.slane %v4918_v36, 2  ;;  %v4913_v47 = vsel %vm16119_vm3, %v4908_v30, %v4912_v35  ;;  %vm16138_vm15 = vmmov %vm16119_vm3 }
 0x4b4   :  { %6363 = vmatprep.subr.bf16.mxu0 %v16094_v39  ;;  %v5279_v12 = vsel %vm16120_vm11, %v5276_v46, %v14538_v34  ;;  %v5127_v27 = vshrl.u32 %v13133_v6, 16  ;;  %v13203_v20 = vsel %vm16121_vm0, %v5426_v9, %v5430_v32  ;;  %v7788_v46 = vld [vmem:[#allocation3 + $0x1dc0] sm:$0xff]   ;;  %v13212_v35 = vsel %vm16122_vm9, %v4916_v7, %v4920_v16  ;;  %vm16139_vm7 = vmmov %vm16119_vm3 }
 0x4b5   :  { %6006 = vmatmul.mubr.bf16.gmra.mrb[12].mxu1 %v12994_v5  ;;  %v4703_v5 = vld [vmem:[#allocation2 + $0x48] sm:$0xf]  ;;  %v5436_v36 = vrot.slane %v14537_v23, 1  ;;  %v5437_v60 = vrot.slane %v4926_v10, 2  ;;  %v5126_v55 = vsel %vm16123_vm4, %v5121_v52, %v5125_v61  ;;  %v4710_v23 = vld [vmem:[#allocation2 + $0x64] sm:$0xf]  ;;  %6214 = vmatmul.mubr.bf16.gmra.mrb[16].mxu0 %v13153_v45  ;;  %vm16140_vm3 = vmmov %vm16110_vm2 }
 0x4b6   :  { %6013 = vmatprep.mubr.bf16.mxu1 %v4905_v63  ;;  %v13179_v26 = vcombine.low %v4703_v5, %v13164_v48  ;;  %v5432_v63 = vrot.slane %v4922_v43, 1  ;;  %7180 = vmatpush1.bf16.msra.mxu1 %v12920_v51  ;;  %v13207_v51 = vcombine.low %v13199_v31, %v13181_v19  ;;  %v13227_v34 = vor.u32 %v5127_v27, %v5125_v61  ;;  %v4711_v27 = vld [vmem:[#allocation2 + $0x68] sm:$0xf]  ;;  %vm16141_vm11 = vmmov %vm16121_vm0 }
 0x4b7   :  { %7165 = vmatprep.subr.bf16.mxu1 %v16094_v39  ;;  %6364 = vmatpush1.bf16.msra.mxu0 %v7787_v56  ;;  %v5438_v56 = vor.u32 %v5437_v60, %v5436_v36  ;;  %v7791_v60 = vld [vmem:[#allocation3 + $0x1dc8] sm:$0xff]   ;;  %v13250_v45 = vcombine.low %v13032_v4, %v4710_v23  ;;  %v16128_v4 = vrot.slane %v13133_v6, 1  ;;  %vm16144_vm0 = vmmov %vm16110_vm2 }
 0x4b8   :  { %v5434_v30 = vor.u32 %v5433_v50, %v5432_v63  ;;  %v14542_v0 = vshll.u32 %v13179_v26, 16  ;;  %v14539_v9 = vshrl.u32 %v13179_v26, 16  ;;  %6365 = vmatprep.subr.bf16.mxu0 %v16094_v39  ;;  %v5131_v63 = vshll.u32 %v13176_v22, 16  ;;  %v13220_v50 = vld [vmem:[#allocation2 + $0x58] sm:$0xf]  ;;  %6221 = vmatprep.mubr.bf16.mxu0 %v5279_v12  ;;  %vm16145_vm9 = vmmov %vm16123_vm4 }
 0x4b9   :  { %v13231_v52 = vcombine.low %v13220_v50, %v13030_v44  ;;  %v14540_v61 = vshrl.u32 %v13207_v51, 16  ;;  %v4712_v44 = vld [vmem:[#allocation2 + $0x6c] sm:$0xf]  ;;  %vm16148_vm4 = vmmov %vm16144_vm0 }
 0x4ba   :  { %7181 = vmatpush1.bf16.msra.mxu1 %v12925_v42  ;;  %v13224_v7 = vsel %vm16124_vm13, %v5430_v32, %v5434_v30  ;;  %v5440_v37 = vrot.slane %v14539_v9, 1  ;;  %v5441_v42 = vrot.slane %v14542_v0, 2  ;;  %v13239_v32 = vor.u32 %v4922_v43, %v4920_v16  ;;  %vm16149_vm13 = vmmov %vm16131_vm1 }
 0x4bb   :  { %7166 = vmatprep.subr.bf16.mxu1 %v16094_v39  ;;  %v13244_v36 = vsel %vm16125_vm6, %v5434_v30, %v5438_v56  ;;  %6366 = vmatpush1.bf16.msra.mxu0 %v7788_v46  ;;  %v13247_v9 = vcombine.low %v13138_v1, %v4703_v5  ;;  %v13253_v16 = vrot.slane %v4926_v10, 1  ;;  %v5444_v12 = vrot.slane %v14540_v61, 1  ;;  %vm16150_vm6 = vmmov %vm16139_vm7 }
 0x4bc   :  { %16126 = vst [vmem:[#allocation146_spill] sm:$0xff] %v13244_v36  ;;  %v5442_v43 = vor.u32 %v5441_v42, %v5440_v37  ;;  %6367 = vmatprep.subr.bf16.mxu0 %v16094_v39  ;;  %v16127_v1 = vrot.slane %v13176_v22, 1  ;;  %v14544_v46 = vshll.u32 %v13231_v52, 16  ;;  %v13267_v10 = vcombine.low %v4711_v27, %v4712_v44 }
 0x4bd   :  { %6014 = vmatmul.mubr.bf16.gmra.mrb[16].mxu1 %v13000_v18  ;;  %v14541_v18 = vshll.u32 %v13207_v51, 16  ;;  %v13273_v37 = vrot.slane %v5131_v63, 1  ;;  %v14545_v42 = vshrl.u32 %v13250_v45, 16  ;;  %v4713_v63 = vld [vmem:[#allocation2 + $0x70] sm:$0xf]  ;;  %6222 = vmatmul.mubr.bf16.gmra.mrb[20].mxu0 %v5126_v55 }
 0x4be   :  { %6021 = vmatprep.mubr.bf16.mxu1 %v4913_v47  ;;  %v14543_v47 = vshrl.u32 %v13231_v52, 16  ;;  %7182 = vmatpush1.bf16.msra.mxu1 %v12930_v13  ;;  %v5281_v5 = vsel %vm16110_vm2, %v16128_v4, %v16127_v1  ;;  %v13271_v13 = vsel %vm16129_vm10, %v5438_v56, %v5442_v43  ;;  %v5135_v1 = vshrl.u32 %v13176_v22, 16  ;;  %v7794_v4 = vld [vmem:[#allocation3 + $0x1dd0] sm:$0xff]   ;;  %vm16151_vm2 = vmmov %vm16150_vm6 }
 0x4bf   :  { %v5445_v30 = vrot.slane %v14541_v18, 2  ;;  %7167 = vmatprep.subr.bf16.mxu1 %v16094_v39  ;;  %16130 = vst [vmem:[#allocation78_spill] sm:$0xff] %v13271_v13  ;;  %6368 = vmatpush1.bf16.msra.mxu0 %v7791_v60  ;;  %v5449_v56 = vrot.slane %v14544_v46, 2  ;;  %v5452_v6 = vrot.slane %v14545_v42, 1  ;;  %v14547_v46 = vshll.u32 %v13267_v10, 16  ;;  %v7795_v42 = vld [vmem:[#allocation3 + $0x1dd8] sm:$0xff]   ;;  %vm16153_vm10 = vmmov %vm16144_vm0 }
 0x4c0   :  { %v5448_v18 = vrot.slane %v14543_v47, 1  ;;  %6369 = vmatprep.subr.bf16.mxu0 %v16094_v39  ;;  %v6897_v47 = vcombine.low %v4710_v23, %v4711_v27  ;;  %v16132_v13 = vshll.u32 %v13250_v45, 16  ;;  %v13298_v27 = vcombine.low %v4712_v44, %v4713_v63  ;;  %6229 = vmatprep.mubr.bf16.mxu0 %v5281_v5 }
 0x4c1   :  { %v5446_v61 = vor.u32 %v5445_v30, %v5444_v12  ;;  %v4714_v12 = vld [vmem:[#allocation2 + $0x74] sm:$0xf]  ;;  %v14546_v30 = vshrl.u32 %v13267_v10, 16  ;;  %v5457_v55 = vrot.slane %v14547_v46, 2 }
 0x4c2   :  { %7183 = vmatpush1.bf16.msra.mxu1 %v12945_v2  ;;  %v5450_v2 = vor.u32 %v5449_v56, %v5448_v18  ;;  %v5453_v36 = vrot.slane %v16132_v13, 2  ;;  %v5171_v23 = vshll.u32 %v6897_v47, 16  ;;  %v13302_v0 = vcombine.low %v4713_v63, %v4714_v12 }
 0x4c3   :  { %v13287_v60 = vsel %vm16131_vm1, %v5442_v43, %v5446_v61  ;;  %7168 = vmatprep.subr.bf16.mxu1 %v16094_v39  ;;  %v5290_v43 = vrot.slane %v6897_v47, 1  ;;  %6370 = vmatpush1.bf16.msra.mxu0 %v7794_v4  ;;  %v5292_v13 = vrot.slane %v13298_v27, 1  ;;  %v5175_v4 = vshrl.u32 %v6897_v47, 16  ;;  %vm16154_vm1 = vmmov %vm16151_vm2 }
 0x4c4   :  { %v13305_v18 = vsel %vm16133_vm12, %v5446_v61, %v5450_v2  ;;  %v5454_v56 = vor.u32 %v5453_v36, %v5452_v6  ;;  %6371 = vmatprep.subr.bf16.mxu0 %v16094_v39  ;;  %v5173_v5 = vrot.slane %v5171_v23, 1  ;;  %v4929_v61 = vsel %vm16136_vm8, %v13239_v32, %v13253_v16  ;;  %vm16157_vm12 = vmmov %vm16144_vm0 }
 0x4c5   :  { %6022 = vmatmul.mubr.bf16.gmra.mrb[20].mxu1 %v13028_v17  ;;  %v5456_v17 = vrot.slane %v14546_v30, 1  ;;  %v5134_v63 = vsel %vm16138_vm15, %v13227_v34, %v13273_v37  ;;  %v13333_v47 = vsel %vm16140_vm3, %v5290_v43, %v5292_v13  ;;  %v16142_v30 = vrot.slane %v13247_v9, 1  ;;  %vm16161_vm8 = vmmov %vm16154_vm1 }
 0x4c6   :  { %6029 = vmatprep.mubr.bf16.mxu1 %v13212_v35  ;;  %7184 = vmatpush1.bf16.msra.mxu1 %v12954_v15  ;;  %v16134_v35 = vrot.slane %v13050_v8, 1  ;;  %v13322_v36 = vsel %vm16137_vm5, %v5450_v2, %v5454_v56  ;;  %v5179_v15 = vshll.u32 %v13298_v27, 16  ;;  %v13330_v23 = vsel %vm16139_vm7, %v13089_v57, %v5173_v5  ;;  %vm16164_vm15 = vmmov %vm16144_vm0 }
 0x4c7   :  { %7169 = vmatprep.subr.bf16.mxu1 %v16094_v39  ;;  %v5458_v6 = vor.u32 %v5457_v55, %v5456_v17  ;;  %v5177_v32 = vor.u32 %v5175_v4, %v5173_v5  ;;  %6372 = vmatpush1.bf16.msra.mxu0 %v7795_v42  ;;  %v13338_v2 = vcombine.low %v13164_v48, %v13199_v31  ;;  %v7798_v17 = vld [vmem:[#allocation3 + $0x1de0] sm:$0xff]   ;;  %v16143_v57 = vrot.slane %v13176_v22, 1  ;;  %v4715_v31 = vld [vmem:[#allocation2 + $0x78] sm:$0xf]  ;;  %vm16165_vm7 = vmmov %vm16154_vm1 }
 0x4c8   :  { %v13314_v44 = vsel %vm16135_vm14, %v16134_v35, %v5290_v43  ;;  %v5139_v35 = vshll.u32 %v13247_v9, 16  ;;  %v5181_v34 = vrot.slane %v5179_v15, 1  ;;  %6373 = vmatprep.subr.bf16.mxu0 %v16094_v39  ;;  %v14549_v5 = vshll.u32 %v13302_v0, 16  ;;  %6230 = vmatmul.mubr.bf16.gmra.mrb[24].mxu0 %v5134_v63  ;;  %vm16159_vm14 = vmmov %vm16137_vm5 }
 0x4c9   :  { %v13341_v55 = vsel %vm16141_vm11, %v5454_v56, %v5458_v6  ;;  %v5283_v43 = vsel %vm16144_vm0, %v16143_v57, %v16142_v30  ;;  %v14548_v42 = vshrl.u32 %v13302_v0, 16  ;;  %v5137_v48 = vor.u32 %v5135_v1, %v13273_v37  ;;  %v4716_v56 = vld [vmem:[#allocation2 + $0x7c] sm:$0xf]  ;;  %vm16162_vm5 = vmmov %vm16154_vm1 }
 0x4ca   :  { %7185 = vmatpush1.bf16.msra.mxu1 %v12963_v29  ;;  %v13356_v22 = vsel %vm16145_vm9, %v5177_v32, %v5181_v34  ;;  %v16146_v30 = vshrl.u32 %v13162_v14, 16  ;;  %v13361_v15 = vcombine.low %v4714_v12, %v4715_v31  ;;  %v5461_v37 = vrot.slane %v14549_v5, 2  ;;  %6237 = vmatprep.mubr.bf16.mxu0 %v5283_v43  ;;  %v7802_v5 = vld [vmem:[#allocation3 + $0x1df0] sm:$0xff]   ;;  %vm16169_vm3 = vmmov %vm16144_vm0 }
 0x4cb   :  { %7170 = vmatprep.subr.bf16.mxu1 %v16094_v39  ;;  %v5460_v29 = vrot.slane %v14548_v42, 1  ;;  %v5141_v1 = vrot.slane %v5139_v35, 1  ;;  %v16147_v57 = vshll.u32 %v13179_v26, 16  ;;  %v14550_v63 = vrot.slane %v13338_v2, 1  ;;  %6374 = vmatpush1.bf16.msra.mxu0 %v7798_v17  ;;  %vm16170_vm0 = vmmov %vm16154_vm1 }
 0x4cc   :  { %v4932_v4 = vor.u32 %v16146_v30, %v13253_v16  ;;  %v5183_v46 = vshrl.u32 %v13298_v27, 16  ;;  %6375 = vmatprep.subr.bf16.mxu0 %v16094_v39  ;;  %v13372_v16 = vcombine.low %v4715_v31, %v4716_v56  ;;  %v5294_v12 = vrot.slane %v13361_v15, 1  ;;  %vm16171_vm9 = vmmov %vm16170_vm0 }
 0x4cd   :  { %6030 = vmatmul.mubr.bf16.gmra.mrb[24].mxu1 %v13063_v41  ;;  %v4936_v32 = vrot.slane %v16147_v57, 1  ;;  %v5462_v30 = vor.u32 %v5461_v37, %v5460_v29  ;;  %v5187_v35 = vshll.u32 %v13361_v15, 16  ;;  %v5143_v43 = vshrl.u32 %v13247_v9, 16 }
 0x4ce   :  { %6037 = vmatprep.mubr.bf16.mxu1 %v4929_v61  ;;  %v7801_v61 = vld [vmem:[#allocation3 + $0x1de8] sm:$0xff]   ;;  %7186 = vmatpush1.bf16.msra.mxu1 %v12968_v11  ;;  %v5185_v57 = vor.u32 %v5183_v46, %v5181_v34  ;;  %v13380_v17 = vsel %vm16148_vm4, %v5292_v13, %v5294_v12  ;;  %v5142_v42 = vsel %vm16150_vm6, %v5137_v48, %v5141_v1  ;;  %v5147_v29 = vshll.u32 %v13338_v2, 16  ;;  %vm16173_vm4 = vmmov %vm16169_vm3 }
 0x4cf   :  { %7171 = vmatprep.subr.bf16.mxu1 %v16094_v39  ;;  %v13383_v27 = vsel %vm16149_vm13, %v5458_v6, %v5462_v30  ;;  %v5189_v31 = vrot.slane %v5187_v35, 1  ;;  %v4937_v11 = vsel %vm16151_vm2, %v4932_v4, %v4936_v32  ;;  %v13390_v37 = vcombine.low %v13181_v19, %v13220_v50  ;;  %6376 = vmatpush1.bf16.msra.mxu0 %v7801_v61  ;;  %v4717_v50 = vld [vmem:[#allocation2 + $0x80] sm:$0xf]  ;;  %v4718_v4 = vld [vmem:[#allocation2 + $0x84] sm:$0xf]  ;;  %vm16174_vm13 = vmmov %vm16170_vm0 }
 0x4d0   :  { %v16152_v46 = vrot.slane %v13247_v9, 1  ;;  %6377 = vmatprep.subr.bf16.mxu0 %v16094_v39  ;;  %v14552_v6 = vshll.u32 %v13372_v16, 16  ;;  %v14551_v34 = vshrl.u32 %v13372_v16, 16  ;;  %v5145_v19 = vor.u32 %v5143_v43, %v5141_v1  ;;  %6238 = vmatmul.mubr.bf16.gmra.mrb[28].mxu0 %v5142_v42  ;;  %v7805_v42 = vld [vmem:[#allocation3 + $0x1df8] sm:$0xff]   ;;  %vm16177_vm6 = vmmov %vm16169_vm3 }
 0x4d1   :  { %v13402_v48 = vsel %vm16154_vm1, %v5185_v57, %v5189_v31  ;;  %v16155_v9 = vshrl.u32 %v13179_v26, 16  ;;  %v6900_v35 = vcombine.low %v4716_v56, %v4717_v50  ;;  %v5149_v57 = vrot.slane %v5147_v29, 1  ;;  %vm16178_vm2 = vmmov %vm16141_vm11 }
 0x4d2   :  { %v5285_v13 = vsel %vm16153_vm10, %v16152_v46, %v14550_v63  ;;  %7187 = vmatpush1.bf16.msra.mxu1 %v12975_v38  ;;  %v5464_v46 = vrot.slane %v14551_v34, 1  ;;  %v5465_v38 = vrot.slane %v14552_v6, 2  ;;  %v16156_v1 = vshll.u32 %v13207_v51, 16  ;;  %vm16179_vm10 = vmmov %vm16170_vm0 }
 0x4d3   :  { %7172 = vmatprep.subr.bf16.mxu1 %v16094_v39  ;;  %v4940_v61 = vor.u32 %v16155_v9, %v4936_v32  ;;  %6245 = vmatprep.mubr.bf16.mxu0 %v5285_v13  ;;  %v5286_v63 = vrot.slane %v13390_v37, 1  ;;  %v13417_v56 = vcombine.low %v4717_v50, %v4718_v4  ;;  %v5296_v32 = vrot.slane %v6900_v35, 1  ;;  %vm16180_vm1 = vmmov %vm16170_vm0 }
 0x4d4   :  { %v4944_v43 = vrot.slane %v16156_v1, 1  ;;  %6378 = vmatpush1.bf16.msra.mxu0 %v7802_v5  ;;  %v5466_v9 = vor.u32 %v5465_v38, %v5464_v46  ;;  %v5195_v34 = vshll.u32 %v6900_v35, 16  ;;  %v5151_v13 = vshrl.u32 %v13338_v2, 16 }
 0x4d5   :  { %6038 = vmatmul.mubr.bf16.gmra.mrb[28].mxu1 %v13103_v62  ;;  %6379 = vmatprep.subr.bf16.mxu0 %v16094_v39  ;;  %v13423_v1 = vsel %vm16157_vm12, %v5294_v12, %v5296_v32  ;;  %v5150_v50 = vsel %vm16161_vm8, %v5145_v19, %v5149_v57  ;;  %v16163_v46 = vrot.slane %v13338_v2, 1  ;;  %v14553_v12 = vshrl.u32 %v13417_v56, 16  ;;  %v4720_v19 = vld [vmem:[#allocation2 + $0x8c] sm:$0xf]  ;;  %vm16181_vm12 = vmmov %vm16170_vm0 }
 0x4d6   :  { %6045 = vmatprep.mubr.bf16.mxu1 %v4937_v11  ;;  %v5191_v11 = vshrl.u32 %v13361_v15, 16  ;;  %7188 = vmatpush1.bf16.msra.mxu1 %v12982_v3  ;;  %16158 = vst [vmem:[#allocation154_spill] sm:$0xff] %v13423_v1  ;;  %v13426_v5 = vsel %vm16159_vm14, %v5462_v30, %v5466_v9  ;;  %v5197_v15 = vrot.slane %v5195_v34, 1  ;;  %v4945_v6 = vsel %vm16162_vm5, %v4940_v61, %v4944_v43  ;;  %v4719_v34 = vld [vmem:[#allocation2 + $0x88] sm:$0xf]  ;;  %vm16184_vm14 = vmmov %vm16170_vm0 }
 0x4d7   :  { %7173 = vmatprep.subr.bf16.mxu1 %v16094_v39  ;;  %16160 = vst [vmem:[#allocation147_spill] sm:$0xff] %v13426_v5  ;;  %v5155_v3 = vshll.u32 %v13390_v37, 16  ;;  %v5287_v39 = vsel %vm16164_vm15, %v16163_v46, %v5286_v63  ;;  %v5153_v61 = vor.u32 %v5151_v13, %v5149_v57  ;;  %v6901_v38 = vcombine.low %v4718_v4, %v4719_v34  ;;  %vm16185_vm8 = vmmov %vm16169_vm3 }
 0x4d8   :  { %v5193_v29 = vor.u32 %v5191_v11, %v5189_v31  ;;  %6380 = vmatpush1.bf16.msra.mxu0 %v7805_v42  ;;  %v14554_v31 = vshll.u32 %v13417_v56, 16  ;;  %v5468_v2 = vrot.slane %v14553_v12, 1  ;;  %v16168_v46 = vshll.u32 %v13231_v52, 16  ;;  %vm16186_vm5 = vmmov %vm16178_vm2 }
 0x4d9   :  { %6246 = vmatmul.mubr.bf16.gmra.mrb[32].mxu0 %v5150_v50  ;;  %v5157_v11 = vrot.slane %v5155_v3, 1  ;;  %v5199_v5 = vshrl.u32 %v6900_v35, 16  ;;  %v13449_v1 = vcombine.low %v4719_v34, %v4720_v19  ;;  %v5203_v4 = vshll.u32 %v6901_v38, 16  ;;  %vm16187_vm15 = vmmov %vm16170_vm0 }
 0x4da   :  { %7189 = vmatpush1.bf16.msra.mxu1 %v12988_v24  ;;  %v13438_v30 = vsel %vm16165_vm7, %v5193_v29, %v5197_v15  ;;  %v5469_v42 = vrot.slane %v14554_v31, 2  ;;  %6253 = vmatprep.mubr.bf16.mxu0 %v5287_v39  ;;  %v16167_v24 = vshrl.u32 %v13207_v51, 16  ;;  %v16172_v35 = vrot.slane %v13050_v8, 1  ;;  %vm16190_vm7 = vmmov %vm16170_vm0 }
 0x4db   :  { %16166 = vst [vmem:[#allocation79_spill] sm:$0xff] %v13438_v30  ;;  %v4952_v30 = vrot.slane %v16168_v46, 1  ;;  %v5201_v13 = vor.u32 %v5199_v5, %v5197_v15  ;;  %v5205_v3 = vrot.slane %v5203_v4, 1  ;;  %v5158_v39 = vsel %vm16170_vm0, %v5153_v61, %v5157_v11  ;;  %v4722_v4 = vld [vmem:[#allocation2 + $0x94] sm:$0xf] }
 0x4dc   :  { %v4948_v29 = vor.u32 %v16167_v24, %v4944_v43  ;;  %v5470_v57 = vor.u32 %v5469_v42, %v5468_v2  ;;  %v5159_v24 = vshrl.u32 %v13390_v37, 16  ;;  %v5289_v34 = vsel %vm16173_vm4, %v5286_v63, %v16172_v35  ;;  %vm16197_vm4 = vmmov %vm16170_vm0 }
 0x4dd   :  { %6046 = vmatmul.mubr.bf16.gmra.mrb[32].mxu1 %v13162_v14  ;;  %v4998_v2 = vshll.u32 %v13449_v1, 16  ;;  %v14555_v5 = vshrl.u32 %v13449_v1, 16  ;;  %v16175_v61 = vshrl.u32 %v13231_v52, 16 }
 0x4de   :  { %6053 = vmatprep.mubr.bf16.mxu1 %v4945_v6  ;;  %v5298_v6 = vrot.slane %v6901_v38, 1  ;;  %v13455_v12 = vsel %vm16141_vm11, %v5466_v9, %v5470_v57  ;;  %v4953_v43 = vsel %vm16171_vm9, %v4948_v29, %v4952_v30  ;;  %v4721_v9 = vld [vmem:[#allocation2 + $0x90] sm:$0xf]  ;;  %v5161_v63 = vor.u32 %v5159_v24, %v5157_v11  ;;  %vm16191_vm11 = vmmov %vm16178_vm2 }
 0x4df   :  { %v6902_v15 = vcombine.low %v4720_v19, %v4721_v9  ;;  %v5472_v37 = vrot.slane %v14555_v5, 1  ;;  %v5473_v8 = vrot.slane %v4998_v2, 2  ;;  %v4956_v42 = vor.u32 %v16175_v61, %v4952_v30  ;;  %vm16194_vm9 = vmmov %vm16170_vm0 }
 0x4e0   :  { %v13452_v50 = vsel %vm16169_vm3, %v5296_v32, %v5298_v6  ;;  %v13466_v32 = vsel %vm16174_vm13, %v5201_v13, %v5205_v3  ;;  %v16176_v29 = vshll.u32 %v13250_v45, 16  ;;  %v5207_v13 = vshrl.u32 %v6901_v38, 16  ;;  %vm16199_vm13 = vmmov %vm16170_vm0 }
 0x4e1   :  { %6254 = vmatmul.mubr.bf16.gmra.mrb[36].mxu0 %v5158_v39  ;;  %v5300_v35 = vrot.slane %v6902_v15, 1  ;;  %v5474_v39 = vor.u32 %v5473_v8, %v5472_v37  ;;  %v13477_v31 = vcombine.low %v4721_v9, %v4722_v4  ;;  %v5166_v30 = vsel %vm16179_vm10, %v5161_v63, %v13071_v53  ;;  %v4724_v63 = vld [vmem:[#allocation2 + $0x9c] sm:$0xf]  ;;  %vm16207_vm10 = vmmov %vm16169_vm3 }
 0x4e2   :  { %6261 = vmatprep.mubr.bf16.mxu0 %v5289_v34  ;;  %v4960_v46 = vrot.slane %v16176_v29, 1  ;;  %v5209_v19 = vor.u32 %v5207_v13, %v5205_v3  ;;  %v16183_v53 = vshll.u32 %v13267_v10, 16 }
 0x4e3   :  { %v13480_v5 = vsel %vm16177_vm6, %v5298_v6, %v5300_v35  ;;  %v13483_v34 = vsel %vm16178_vm2, %v5470_v57, %v5474_v39  ;;  %v14557_v3 = vshll.u32 %v13477_v31, 16  ;;  %v4723_v6 = vld [vmem:[#allocation2 + $0x98] sm:$0xf]  ;;  %v14556_v9 = vshrl.u32 %v13477_v31, 16  ;;  %vm16203_vm6 = vmmov %vm16169_vm3 }
 0x4e4   :  { %v4961_v24 = vsel %vm16180_vm1, %v4956_v42, %v4960_v46  ;;  %v16182_v57 = vshrl.u32 %v13250_v45, 16  ;;  %v4968_v8 = vrot.slane %v16183_v53, 1  ;;  %v6903_v61 = vcombine.low %v4722_v4, %v4723_v6  ;;  %vm16204_vm2 = vmmov %vm16170_vm0 }
 0x4e5   :  { %6054 = vmatmul.mubr.bf16.gmra.mrb[36].mxu1 %v13179_v26  ;;  %v5476_v42 = vrot.slane %v14556_v9, 1  ;;  %v5477_v29 = vrot.slane %v14557_v3, 2  ;;  %vm16208_vm1 = vmmov %vm16170_vm0 }
 0x4e6   :  { %6061 = vmatprep.mubr.bf16.mxu1 %v4953_v43  ;;  %v5211_v43 = vshll.u32 %v6902_v15, 16  ;;  %v4964_v37 = vor.u32 %v16182_v57, %v4960_v46  ;;  %v5302_v13 = vrot.slane %v6903_v61, 1 }
 0x4e8   :  { %v5213_v11 = vrot.slane %v5211_v43, 1  ;;  %v5215_v43 = vshrl.u32 %v6902_v15, 16  ;;  %v13507_v46 = vsel %vm16185_vm8, %v5300_v35, %v5302_v13  ;;  %v16188_v35 = vshrl.u32 %v13267_v10, 16  ;;  %vm16212_vm8 = vmmov %vm16169_vm3 }
 0x4e9   :  { %6262 = vmatmul.mubr.bf16.gmra.mrb[40].mxu0 %v5166_v30  ;;  %v13503_v30 = vcombine.low %v4723_v6, %v4724_v63 }
 0x4ea   :  { %v13489_v38 = vsel %vm16181_vm12, %v5209_v19, %v5213_v11  ;;  %6381 = vmatprep.mubr.bf16.mxu0 %v13126_v28  ;;  %v5219_v19 = vshll.u32 %v6903_v61, 16  ;;  %v5478_v28 = vor.u32 %v5477_v29, %v5476_v42  ;;  %v5217_v57 = vor.u32 %v5215_v43, %v5213_v11  ;;  %vm16210_vm12 = vmmov %vm16169_vm3 }
 0x4eb   :  { %v5014_v15 = vshll.u32 %v13503_v30, 16  ;;  %v5018_v6 = vshrl.u32 %v13503_v30, 16  ;;  %v16189_v11 = vshll.u32 %v13302_v0, 16 }
 0x4ec   :  { %v5221_v53 = vrot.slane %v5219_v19, 1  ;;  %v13510_v4 = vsel %vm16186_vm5, %v5474_v39, %v5478_v28  ;;  %v4972_v39 = vor.u32 %v16188_v35, %v4968_v8  ;;  %vm16213_vm5 = vmmov %vm16169_vm3 }
 0x4ed   :  { %6062 = vmatmul.mubr.bf16.gmra.mrb[40].mxu1 %v13207_v51  ;;  %v4976_v42 = vrot.slane %v16189_v11, 1  ;;  %v5481_v43 = vrot.slane %v5014_v15, 2 }
 0x4ee   :  { %6069 = vmatprep.mubr.bf16.mxu1 %v4961_v24  ;;  %v4969_v24 = vsel %vm16184_vm14, %v4964_v37, %v4968_v8  ;;  %v13514_v9 = vsel %vm16187_vm15, %v5217_v57, %v5221_v53  ;;  %v13519_v37 = vld [vmem:[#allocation2 + $0xa0] sm:$0xf]  ;;  %vm16211_vm14 = vmmov %vm16170_vm0 }
 0x4ef   :  { %v13527_v29 = vcombine.low %v4724_v63, %v13519_v37  ;;  %vm16214_vm15 = vmmov %vm16169_vm3 }
 0x4f1   :  { %6382 = vmatmul.mubr.bf16.vlgmr.msra.gmra.mrb[0].mxu0 %v13106_v59  ;;  %v5480_v59 = vrot.slane %v5018_v6, 1  ;;  %v5304_v19 = vrot.slane %v13527_v29, 1  ;;  %v5227_v57 = vshll.u32 %v13527_v29, 16 }
 0x4f2   :  { %6389 = vmatprep.mubr.bf16.mxu0 %v13129_v33  ;;  %v4977_v33 = vsel %vm16190_vm7, %v4972_v39, %v4976_v42  ;;  %v16193_v39 = vshll.u32 %v13372_v16, 16  ;;  %vm16215_vm7 = vmmov %vm16169_vm3 }
 0x4f3   :  { %v13533_v3 = vor.u32 %v5481_v43, %v5480_v59  ;;  %v13539_v8 = vsel %vm16169_vm3, %v5302_v13, %v5304_v19  ;;  %v13541_v35 = vrot.slane %v5227_v57, 1  ;;  %v16192_v13 = vshrl.u32 %v13302_v0, 16 }
 0x4f4   :  { %v4984_v59 = vrot.slane %v16193_v39, 1  ;;  %v16202_v39 = vrot.slane %v13063_v41, 1 }
 0x4f5   :  { %6070 = vmatmul.mubr.bf16.gmra.mrb[44].mxu1 %v13231_v52  ;;  %v13545_v11 = vsel %vm16191_vm11, %v5478_v28, %v13533_v3  ;;  %vm16218_vm11 = vmmov %vm16169_vm3 }
 0x4f6   :  { %6077 = vmatprep.mubr.bf16.mxu1 %v4969_v24  ;;  %v5223_v24 = vshrl.u32 %v6903_v61, 16 }
 0x4f8   :  { %v5225_v63 = vor.u32 %v5223_v24, %v5221_v53  ;;  %v4980_v53 = vor.u32 %v16192_v13, %v4976_v42  ;;  %v16201_v13 = vshll.u32 %v13477_v31, 16 }
 0x4f9   :  { %6390 = vmatmul.mubr.bf16.gmra.mrb[4].mxu0 %v13119_v54  ;;  %v16195_v54 = vshrl.u32 %v13372_v16, 16 }
 0x4fa   :  { %v13550_v61 = vsel %vm16170_vm0, %v5225_v63, %v13541_v35  ;;  %6397 = vmatprep.mubr.bf16.mxu0 %v13147_v58  ;;  %v4985_v28 = vsel %vm16194_vm9, %v4980_v53, %v4984_v59  ;;  %v16196_v58 = vshll.u32 %v13417_v56, 16  ;;  %v16200_v63 = vshrl.u32 %v13449_v1, 16  ;;  %vm16220_vm0 = vmmov %vm16169_vm3 }
 0x4fb   :  { %v4988_v43 = vor.u32 %v16195_v54, %v4984_v59  ;;  %v5008_v53 = vrot.slane %v16201_v13, 1  ;;  %v5016_v54 = vrot.slane %v5014_v15, 1  ;;  %vm16221_vm9 = vmmov %vm16220_vm0 }
 0x4fc   :  { %v4992_v24 = vrot.slane %v16196_v58, 1 }
 0x4fd   :  { %6078 = vmatmul.mubr.bf16.gmra.mrb[48].mxu1 %v13250_v45 }
 0x4fe   :  { %6085 = vmatprep.mubr.bf16.mxu1 %v4977_v33  ;;  %v4993_v42 = vsel %vm16197_vm4, %v4988_v43, %v4992_v24  ;;  %v7814_v43 = vld [vmem:[#allocation2 + $0xa0] ss:$0 sps:$4 sm:$0x77]   ;;  %vm16222_vm4 = vmmov %vm16220_vm0 }
 0x501   :  { %6398 = vmatmul.mubr.bf16.gmra.mrb[8].mxu0 %v13150_v21  ;;  %v16198_v21 = vshrl.u32 %v13417_v56, 16 }
 0x502   :  { %6405 = vmatprep.mubr.bf16.mxu0 %v13171_v40  ;;  %v5000_v40 = vrot.slane %v4998_v2, 1 }
 0x503   :  { %v4996_v57 = vor.u32 %v16198_v21, %v4992_v24  ;;  %v5022_v24 = vshll.u32 %v7814_v43, 16  ;;  %v5353_v21 = vrot.slane %v13179_v26, 1 }
 0x505   :  { %6086 = vmatmul.mubr.bf16.gmra.mrb[52].mxu1 %v13267_v10  ;;  %v5001_v33 = vsel %vm16199_vm13, %v4996_v57, %v5000_v40  ;;  %v5024_v57 = vrot.slane %v5022_v24, 1  ;;  %vm16223_vm13 = vmmov %vm16220_vm0 }
 0x506   :  { %6093 = vmatprep.mubr.bf16.mxu1 %v4985_v28 }
 0x509   :  { %6406 = vmatmul.mubr.bf16.gmra.mrb[12].mxu0 %v13156_v49  ;;  %v5349_v49 = vrot.slane %v13103_v62, 1  ;;  %v5351_v62 = vrot.slane %v13162_v14, 1  ;;  %v5020_v14 = vor.u32 %v5018_v6, %v5016_v54  ;;  %v5357_v6 = vrot.slane %v13231_v52, 1 }
 0x50a   :  { %6413 = vmatprep.mubr.bf16.mxu0 %v13203_v20  ;;  %v5004_v20 = vor.u32 %v16200_v63, %v5000_v40  ;;  %v5361_v52 = vrot.slane %v13267_v10, 1  ;;  %v5365_v10 = vrot.slane %v13372_v16, 1 }
 0x50b   :  { %v5350_v2 = vsel %vm16203_vm6, %v16202_v39, %v5349_v49  ;;  %v5352_v58 = vsel %vm16207_vm10, %v5349_v49, %v5351_v62  ;;  %v5354_v15 = vsel %vm16210_vm12, %v5351_v62, %v5353_v21  ;;  %v5025_v40 = vsel %vm16211_vm14, %v5020_v14, %v5024_v57  ;;  %vm16224_vm6 = vmmov %vm16220_vm0 }
 0x50c   :  { %v5009_v59 = vsel %vm16204_vm2, %v5004_v20, %v5008_v53  ;;  %v5355_v49 = vrot.slane %v13207_v51, 1  ;;  %v7815_v20 = vld [vmem:[#allocation2 + $0xa0] ss:$0 sps:$4 sm:$0x33]   ;;  %v5359_v51 = vrot.slane %v13250_v45, 1  ;;  %v5363_v45 = vrot.slane %v13302_v0, 1  ;;  %vm16226_vm10 = vmmov %vm16208_vm1 }
 0x50d   :  { %6094 = vmatmul.mubr.bf16.gmra.mrb[56].mxu1 %v13302_v0  ;;  %v5367_v0 = vrot.slane %v13417_v56, 1  ;;  %vm16225_vm2 = vsmask.f32 6400  ;;  %vm16229_vm14 = vmmov %vm16220_vm0 }
 0x50e   :  { %6101 = vmatprep.mubr.bf16.mxu1 %v4993_v42  ;;  %v16209_v42 = vld [vmem:[#allocation78_spill] sm:$0xff]  ;;  %v5356_v26 = vsel %vm16212_vm8, %v5353_v21, %v5355_v49  ;;  %v5358_v13 = vsel %vm16213_vm5, %v5355_v49, %v5357_v6  ;;  %vm16228_vm12 = vmmov %vm16225_vm2 }
 0x511   :  { %6414 = vmatmul.mubr.bf16.gmra.mrb[16].mxu0 %v13186_v25  ;;  %v16205_v25 = vld [vmem:[#allocation146_spill] sm:$0xff] }
 0x512   :  { %6421 = vmatprep.mubr.bf16.mxu0 %v13224_v7  ;;  %v16206_v7 = vshrl.u32 %v13477_v31, 16 }
 0x514   :  { %v5012_v28 = vor.u32 %v16206_v7, %v5008_v53 }
 0x515   :  { %6102 = vmatmul.mubr.bf16.gmra.mrb[60].mxu1 %v13372_v16  ;;  %v5369_v16 = vrot.slane %v13449_v1, 1 }
 0x516   :  { %6109 = vmatprep.mubr.bf16.mxu1 %v5001_v33  ;;  %v5017_v41 = vsel %vm16208_vm1, %v5012_v28, %v5016_v54  ;;  %v5026_v33 = vshrl.u32 %v7814_v43, 16  ;;  %v5231_v54 = vshrl.u32 %v13527_v29, 16  ;;  %vm16227_vm1 = vmmov %vm16220_vm0 }
 0x518   :  { %v5028_v63 = vor.u32 %v5026_v33, %v5024_v57  ;;  %v5233_v24 = vor.u32 %v5231_v54, %v13541_v35 }
 0x519   :  { %6422 = vmatmul.mubr.bf16.gmra.mrb[20].mxu0 %v5350_v2 }
 0x51a   :  { %6429 = vmatprep.mubr.bf16.mxu0 %v16205_v25 }
 0x51d   :  { %6110 = vmatmul.mubr.bf16.gmra.mrb[64].mxu1 %v13417_v56  ;;  %v5371_v56 = vrot.slane %v13477_v31, 1 }
 0x51e   :  { %6117 = vmatprep.mubr.bf16.mxu1 %v5009_v59 }
 0x521   :  { %6430 = vmatmul.mubr.bf16.gmra.mrb[24].mxu0 %v5352_v58 }
 0x522   :  { %6437 = vmatprep.mubr.bf16.mxu0 %v16209_v42 }
 0x525   :  { %6118 = vmatmul.mubr.bf16.gmra.mrb[68].mxu1 %v13449_v1 }
 0x526   :  { %6125 = vmatprep.mubr.bf16.mxu1 %v5017_v41 }
 0x529   :  { %6438 = vmatmul.mubr.bf16.gmra.mrb[28].mxu0 %v5354_v15 }
 0x52a   :  { %6445 = vmatprep.mubr.bf16.mxu0 %v13287_v60  ;;  %v5360_v60 = vsel %vm16214_vm15, %v5357_v6, %v5359_v51 }
 0x52d   :  { %6126 = vmatmul.mubr.bf16.gmra.mrb[72].mxu1 %v13477_v31  ;;  %v5373_v31 = vrot.slane %v13503_v30, 1 }
 0x52e   :  { %6133 = vmatprep.mubr.bf16.mxu1 %v5025_v40 }
 0x531   :  { %6446 = vmatmul.mubr.bf16.gmra.mrb[32].mxu0 %v5356_v26 }
 0x532   :  { %6453 = vmatprep.mubr.bf16.mxu0 %v13305_v18  ;;  %v5362_v18 = vsel %vm16215_vm7, %v5359_v51, %v5361_v52 }
 0x535   :  { %6134 = vmatmul.mubr.bf16.gmra.mrb[76].mxu1 %v13503_v30 }
 0x536   :  { %6141 = vmatprep.mubr.bf16.mxu1 %v5028_v63 }
 0x539   :  { %6454 = vmatmul.mubr.bf16.gmra.mrb[36].mxu0 %v5358_v13 }
 0x53a   :  { %6461 = vmatprep.mubr.bf16.mxu0 %v13322_v36  ;;  %v16216_v36 = vld [vmem:[#allocation154_spill] sm:$0xff] }
 0x53d   :  { %6142 = vmatmul.mubr.bf16.gmra.mrb[80].mxu1 %v7815_v20 }
 0x53e   :  { %6269 = vmatprep.mubr.bf16.mxu1 %v13314_v44  ;;  %v5364_v44 = vsel %vm16169_vm3, %v5361_v52, %v5363_v45 }
 0x541   :  { %6462 = vmatmul.mubr.bf16.gmra.mrb[40].mxu0 %v5360_v60 }
 0x542   :  { %6469 = vmatprep.mubr.bf16.mxu0 %v13341_v55  ;;  %v16219_v55 = vld [vmem:[#allocation79_spill] sm:$0xff] }
 0x545   :  { %6270 = vmatmul.mubr.bf16.vlgmr.msra.gmra.mrb[44].mxu1 %v13330_v23  ;;  %v16217_v23 = vld [vmem:[#allocation147_spill] sm:$0xff] }
 0x546   :  { %6277 = vmatprep.mubr.bf16.mxu1 %v13333_v47  ;;  %v5366_v47 = vsel %vm16218_vm11, %v5363_v45, %v5365_v10 }
 0x549   :  { %6470 = vmatmul.mubr.bf16.gmra.mrb[44].mxu0 %v5362_v18 }
 0x54a   :  { %6477 = vmatprep.mubr.bf16.mxu0 %v13383_v27  ;;  %v5370_v27 = vsel %vm16221_vm9, %v5367_v0, %v5369_v16 }
 0x54d   :  { %6278 = vmatmul.mubr.bf16.gmra.mrb[48].mxu1 %v13356_v22  ;;  %v5368_v22 = vsel %vm16220_vm0, %v5365_v10, %v5367_v0 }
 0x54e   :  { %6285 = vmatprep.mubr.bf16.mxu1 %v13380_v17  ;;  %v4731_v17 = vld [vmem:[#allocation2 + $0xa4] sm:$0xf] }
 0x551   :  { %6478 = vmatmul.mubr.bf16.gmra.mrb[48].mxu0 %v5364_v44 }
 0x552   :  { %6485 = vmatprep.mubr.bf16.mxu0 %v16217_v23 }
 0x555   :  { %6286 = vmatmul.mubr.bf16.gmra.mrb[52].mxu1 %v13402_v48  ;;  %v13639_v48 = vcombine.low %v13519_v37, %v4731_v17 }
 0x556   :  { %6293 = vmatprep.mubr.bf16.mxu1 %v16216_v36 }
 0x557   :  { %v5488_v1 = vshll.u32 %v13639_v48, 16  ;;  %v5375_v21 = vrot.slane %v13639_v48, 1 }
 0x559   :  { %6486 = vmatmul.mubr.bf16.gmra.mrb[52].mxu0 %v5366_v47  ;;  %v5490_v39 = vrot.slane %v5488_v1, 2 }
 0x55a   :  { %6493 = vmatprep.mubr.bf16.mxu0 %v13455_v12 }
 0x55d   :  { %6294 = vmatmul.mubr.bf16.gmra.mrb[56].mxu1 %v16219_v55 }
 0x55e   :  { %6301 = vmatprep.mubr.bf16.mxu1 %v13452_v50  ;;  %v5485_v50 = vshrl.u32 %v13639_v48, 16 }
 0x560   :  { %v5487_v53 = vrot.slane %v5485_v50, 1 }
 0x561   :  { %6494 = vmatmul.mubr.bf16.gmra.mrb[56].mxu0 %v5368_v22 }
 0x562   :  { %6501 = vmatprep.mubr.bf16.mxu0 %v13483_v34  ;;  %v5372_v34 = vsel %vm16222_vm4, %v5369_v16, %v5371_v56  ;;  %v5491_v59 = vor.u32 %v5490_v39, %v5487_v53 }
 0x564   :  { %v5492_v30 = vsel %vm16225_vm2, %v13533_v3, %v5491_v59  ;;  %v5376_v3 = vsel %vm16227_vm1, %v5373_v31, %v5375_v21 }
 0x565   :  { %6302 = vmatmul.mubr.bf16.gmra.mrb[60].mxu1 %v13466_v32 }
 0x566   :  { %6309 = vmatprep.mubr.bf16.mxu1 %v13480_v5 }
 0x569   :  { %6502 = vmatmul.mubr.bf16.gmra.mrb[60].mxu0 %v5370_v27 }
 0x56a   :  { %6509 = vmatprep.mubr.bf16.mxu0 %v13510_v4 }
 0x56d   :  { %6310 = vmatmul.mubr.bf16.gmra.mrb[64].mxu1 %v13489_v38  ;;  %v7825_v38 = vld [vmem:[#allocation2 + $0xa4] ss:$0 sps:$4 sm:$0x77]  }
 0x56e   :  { %6317 = vmatprep.mubr.bf16.mxu1 %v13507_v46  ;;  %v7826_v46 = vld [vmem:[#allocation2 + $0xa8] ss:$0 sps:$4 sm:$0xff]   ;;  %v5306_v4 = vrot.slane %v7825_v38, 1  ;;  %v5235_v43 = vshll.u32 %v7825_v38, 16  ;;  %v5239_v35 = vshrl.u32 %v7825_v38, 16 }
 0x56f   :  { %v5494_v25 = vshrl.u32 %v7826_v46, 16  ;;  %v5497_v62 = vshll.u32 %v7826_v46, 16 }
 0x570   :  { %v13645_v12 = vpop.f32.mrb[0].mxu1  ;;  %v5237_v42 = vrot.slane %v5235_v43, 1 }
 0x571   :  { %v5985_v5 = vpop.f32.mrb[1].mxu1  ;;  %6510 = vmatmul.mubr.bf16.gmra.mrb[64].mxu0 %v5372_v34  ;;  %v5499_v41 = vrot.slane %v5497_v62, 2 }
 0x572   :  { %v13649_v32 = vpop.f32.mrb[2].mxu1  ;;  %6517 = vmatprep.mubr.bf16.mxu0 %v13545_v11  ;;  %v5496_v11 = vrot.slane %v5494_v25, 1  ;;  %v5241_v6 = vor.u32 %v5239_v35, %v5237_v42  ;;  %v5621_v25 = vld [vmem:[%s13979_s1 + $0x8] sm:$0xff] }
 0x573   :  { %v5988_v37 = vpop.f32.mrb[3].mxu1  ;;  %v5987_v54 = vadd.f32 %v13649_v32, %v5621_v25 }
 0x574   :  { %v5500_v29 = vor.u32 %v5499_v41, %v5496_v11  ;;  %v5622_v11 = vld [vmem:[%s13979_s1 + $0x10] sm:$0xff] }
 0x575   :  { %6318 = vmatmul.mubr.bf16.gmra.mrb[68].mxu1 %v13514_v9  ;;  %v5374_v9 = vsel %vm16223_vm13, %v5371_v56, %v5373_v31 }
 0x576   :  { %6325 = vmatprep.mubr.bf16.mxu1 %v13539_v8  ;;  %v5307_v8 = vsel %vm16224_vm6, %v5304_v19, %v5306_v4  ;;  %v5238_v19 = vsel %vm16226_vm10, %v5233_v24, %v5237_v42  ;;  %v5501_v33 = vsel %vm16228_vm12, %v5491_v59, %v5500_v29  ;;  %v5620_v59 = vld [vmem:[%s13979_s1] sm:$0xff] }
 0x577   :  { %v5984_v62 = vadd.f32 %v13645_v12, %v5620_v59  ;;  %v5623_v12 = vld [vmem:[%s13979_s1 + $0x18] sm:$0xff]  ;;  %v5630_v59 = vld [vmem:[%s13979_s1 + $0x50] sm:$0xff] }
 0x578   :  { %v13656_v2 = vpop.f32.mrb[4].mxu1 }
 0x579   :  { %v5993_v7 = vpop.f32.mrb[5].mxu1  ;;  %6518 = vmatmul.mubr.bf16.gmra.mrb[68].mxu0 %v5374_v9  ;;  %v5992_v32 = vadd.f32 %v13656_v2, %v5622_v11  ;;  %v5625_v2 = vld [vmem:[%s13979_s1 + $0x28] sm:$0xff] }
 0x57a   :  { %v13658_v28 = vpop.f32.mrb[6].mxu1  ;;  %6525 = vmatprep.mubr.bf16.mxu0 %v5492_v30 }
 0x57b   :  { %v5996_v58 = vpop.f32.mrb[7].mxu1  ;;  %v5995_v24 = vadd.f32 %v13658_v28, %v5623_v12 }
 0x57d   :  { %6326 = vmatmul.mubr.bf16.gmra.mrb[72].mxu1 %v13550_v61  ;;  %v7827_v61 = vld [vmem:[#allocation2 + $0xa8] ss:$0 sps:$4 sm:$0x77]  }
 0x57e   :  { %6333 = vmatprep.mubr.bf16.mxu1 %v5307_v8  ;;  %v5377_v49 = vrot.slane %v7827_v61, 1 }
 0x580   :  { %v13670_v14 = vpop.f32.mrb[8].mxu1  ;;  %v5378_v13 = vsel %vm16229_vm14, %v5375_v21, %v5377_v49 }
 0x581   :  { %v6001_v57 = vpop.f32.mrb[9].mxu1  ;;  %6526 = vmatmul.mubr.bf16.gmra.mrb[72].mxu0 %v5376_v3  ;;  %v5624_v3 = vld [vmem:[%s13979_s1 + $0x20] sm:$0xff] }
 0x582   :  { %v13673_v15 = vpop.f32.mrb[10].mxu1  ;;  %6533 = vmatprep.mubr.bf16.mxu0 %v5501_v33  ;;  %v6000_v28 = vadd.f32 %v13670_v14, %v5624_v3  ;;  %v5627_v14 = vld [vmem:[%s13979_s1 + $0x38] sm:$0xff] }
 0x583   :  { %v6004_v40 = vpop.f32.mrb[11].mxu1  ;;  %v6003_v61 = vadd.f32 %v13673_v15, %v5625_v2 }
 0x585   :  { %6334 = vmatmul.mubr.bf16.gmra.mrb[76].mxu1 %v5238_v19 }
 0x586   :  { %6341 = vmatprep.mubr.bf16.mxu1 %v5306_v4 }
 0x588   :  { %v13677_v63 = vpop.f32.mrb[12].mxu1 }
 0x589   :  { %v6009_v26 = vpop.f32.mrb[13].mxu1  ;;  %6534 = vmatmul.mubr.bf16.gmra.mrb[76].mxu0 %v5378_v13  ;;  %v5626_v13 = vld [vmem:[%s13979_s1 + $0x30] sm:$0xff] }
 0x58a   :  { %v13679_v20 = vpop.f32.mrb[14].mxu1  ;;  %6541 = vmatprep.mubr.bf16.mxu0 %v5500_v29  ;;  %v6008_v15 = vadd.f32 %v13677_v63, %v5626_v13  ;;  %v5629_v63 = vld [vmem:[%s13979_s1 + $0x48] sm:$0xff] }
 0x58b   :  { %v6012_v51 = vpop.f32.mrb[15].mxu1 }
 0x58d   :  { %6342 = vmatmul.mubr.bf16.gmra.mrb[80].mxu1 %v5241_v6 }
 0x590   :  { %v13682_v60 = vpop.f32.mrb[16].mxu1 }
 0x591   :  { %v6017_v52 = vpop.f32.mrb[17].mxu1  ;;  %6542 = vmatmul.mubr.bf16.gmra.mrb[80].mxu0 %v5377_v49 }
 0x592   :  { %v13684_v18 = vpop.f32.mrb[18].mxu1  ;;  %v6011_v52 = vadd.f32 %v13679_v20, %v5627_v14 }
 0x593   :  { %v6020_v45 = vpop.f32.mrb[19].mxu1 }
 0x598   :  { %v13686_v44 = vpop.f32.mrb[20].mxu1 }
 0x599   :  { %v6025_v36 = vpop.f32.mrb[21].mxu1 }
 0x59a   :  { %v13688_v23 = vpop.f32.mrb[22].mxu1 }
 0x59b   :  { %v6028_v10 = vpop.f32.mrb[23].mxu1 }
 0x5a0   :  { %v13690_v47 = vpop.f32.mrb[24].mxu1 }
 0x5a1   :  { %v6033_v55 = vpop.f32.mrb[25].mxu1 }
 0x5a2   :  { %v13692_v0 = vpop.f32.mrb[26].mxu1 }
 0x5a3   :  { %v6036_v22 = vpop.f32.mrb[27].mxu1 }
 0x5a8   :  { %v13694_v16 = vpop.f32.mrb[28].mxu1 }
 0x5a9   :  { %v6041_v17 = vpop.f32.mrb[29].mxu1 }
 0x5aa   :  { %v13696_v27 = vpop.f32.mrb[30].mxu1  ;;  %v5628_v17 = vld [vmem:[%s13979_s1 + $0x40] sm:$0xff] }
 0x5ab   :  { %v6044_v48 = vpop.f32.mrb[31].mxu1  ;;  %v6016_v20 = vadd.f32 %v13682_v60, %v5628_v17  ;;  %v5631_v60 = vld [vmem:[%s13979_s1 + $0x58] sm:$0xff]  ;;  %v5640_v17 = vld [vmem:[%s13979_s1 + $0xa0] sm:$0xff] }
 0x5b0   :  { %v13698_v56 = vpop.f32.mrb[32].mxu1 }
 0x5b1   :  { %v6049_v50 = vpop.f32.mrb[33].mxu1 }
 0x5b2   :  { %v13700_v1 = vpop.f32.mrb[34].mxu1  ;;  %v6019_v50 = vadd.f32 %v13684_v18, %v5629_v63  ;;  %v6024_v18 = vadd.f32 %v13686_v44, %v5630_v59  ;;  %v5633_v44 = vld [vmem:[%s13979_s1 + $0x68] sm:$0xff] }
 0x5b3   :  { %v6052_v5 = vpop.f32.mrb[35].mxu1  ;;  %v6035_v11 = vadd.f32 %v13692_v0, %v5633_v44 }
 0x5b8   :  { %v13702_v34 = vpop.f32.mrb[36].mxu1 }
 0x5b9   :  { %v6057_v37 = vpop.f32.mrb[37].mxu1 }
 0x5ba   :  { %v13704_v38 = vpop.f32.mrb[38].mxu1 }
 0x5bb   :  { %v6060_v53 = vpop.f32.mrb[39].mxu1 }
 0x5c0   :  { %v13706_v39 = vpop.f32.mrb[40].mxu1 }
 0x5c1   :  { %v6065_v46 = vpop.f32.mrb[41].mxu1 }
 0x5c2   :  { %v13708_v31 = vpop.f32.mrb[42].mxu1 }
 0x5c3   :  { %v6068_v4 = vpop.f32.mrb[43].mxu1 }
 0x5c4   :  { %v6383_v7 = vpop.f32.mrb[0].mxu0 }
 0x5c5   :  { %v7191_v43 = vadd.f32 %v6383_v7, %v5984_v62  ;;  %v6385_v9 = vpop.f32.mrb[1].mxu0  ;;  %v6027_v62 = vadd.f32 %v13688_v23, %v5631_v60 }
 0x5c6   :  { %v6386_v58 = vpop.f32.mrb[2].mxu0 }
 0x5c7   :  { %6549 = vst [vmem:[%s13981_s3] sm:$0xff] %v7191_v43  ;;  %v7193_v8 = vadd.f32 %v6386_v58, %v5987_v54  ;;  %v6388_v30 = vpop.f32.mrb[3].mxu0 }
 0x5c9   :  { %6550 = vst [vmem:[%s13981_s3 + $0x8] sm:$0xff] %v7193_v8  ;;  %v5632_v8 = vld [vmem:[%s13979_s1 + $0x60] sm:$0xff] }
 0x5ca   :  { %v6032_v23 = vadd.f32 %v13690_v47, %v5632_v8  ;;  %v5635_v47 = vld [vmem:[%s13979_s1 + $0x78] sm:$0xff] }
 0x5cc   :  { %v6391_v41 = vpop.f32.mrb[4].mxu0 }
 0x5cd   :  { %v7195_v42 = vadd.f32 %v6391_v41, %v5992_v32  ;;  %v6393_v21 = vpop.f32.mrb[5].mxu0 }
 0x5ce   :  { %v6394_v29 = vpop.f32.mrb[6].mxu0  ;;  %v5634_v21 = vld [vmem:[%s13979_s1 + $0x70] sm:$0xff] }
 0x5cf   :  { %6551 = vst [vmem:[%s13981_s3 + $0x10] sm:$0xff] %v7195_v42  ;;  %v7197_v57 = vadd.f32 %v6394_v29, %v5995_v24  ;;  %v6396_v19 = vpop.f32.mrb[7].mxu0  ;;  %v6040_v0 = vadd.f32 %v13694_v16, %v5634_v21  ;;  %v5637_v16 = vld [vmem:[%s13979_s1 + $0x88] sm:$0xff] }
 0x5d1   :  { %6552 = vst [vmem:[%s13981_s3 + $0x18] sm:$0xff] %v7197_v57  ;;  %v6043_v57 = vadd.f32 %v13696_v27, %v5635_v47 }
 0x5d4   :  { %v6399_v40 = vpop.f32.mrb[8].mxu0 }
 0x5d5   :  { %v7199_v33 = vadd.f32 %v6399_v40, %v6000_v28  ;;  %v6401_v35 = vpop.f32.mrb[9].mxu0 }
 0x5d6   :  { %v6402_v49 = vpop.f32.mrb[10].mxu0  ;;  %v6051_v35 = vadd.f32 %v13700_v1, %v5637_v16 }
 0x5d7   :  { %6553 = vst [vmem:[%s13981_s3 + $0x20] sm:$0xff] %v7199_v33  ;;  %v7201_v26 = vadd.f32 %v6402_v49, %v6003_v61  ;;  %v6404_v6 = vpop.f32.mrb[11].mxu0  ;;  %v5636_v61 = vld [vmem:[%s13979_s1 + $0x80] sm:$0xff] }
 0x5d8   :  { %v6048_v27 = vadd.f32 %v13698_v56, %v5636_v61  ;;  %v5639_v56 = vld [vmem:[%s13979_s1 + $0x98] sm:$0xff] }
 0x5d9   :  { %6554 = vst [vmem:[%s13981_s3 + $0x28] sm:$0xff] %v7201_v26 }
 0x5dc   :  { %v6407_v51 = vpop.f32.mrb[12].mxu0 }
 0x5dd   :  { %v7203_v45 = vadd.f32 %v6407_v51, %v6008_v15  ;;  %v6409_v36 = vpop.f32.mrb[13].mxu0  ;;  %v5638_v15 = vld [vmem:[%s13979_s1 + $0x90] sm:$0xff] }
 0x5de   :  { %v6410_v10 = vpop.f32.mrb[14].mxu0  ;;  %v6056_v1 = vadd.f32 %v13702_v34, %v5638_v15  ;;  %v5641_v34 = vld [vmem:[%s13979_s1 + $0xa8] sm:$0xff] }
 0x5df   :  { %6555 = vst [vmem:[%s13981_s3 + $0x30] sm:$0xff] %v7203_v45  ;;  %v7205_v55 = vadd.f32 %v6410_v10, %v6011_v52  ;;  %v6412_v22 = vpop.f32.mrb[15].mxu0  ;;  %v6059_v52 = vadd.f32 %v13704_v38, %v5639_v56  ;;  %v6064_v38 = vadd.f32 %v13706_v39, %v5640_v17  ;;  %v5642_v39 = vld [vmem:[%s13979_s1 + $0xb0] sm:$0xff] }
 0x5e1   :  { %6556 = vst [vmem:[%s13981_s3 + $0x38] sm:$0xff] %v7205_v55 }
 0x5e4   :  { %v6415_v48 = vpop.f32.mrb[16].mxu0 }
 0x5e5   :  { %v7207_v5 = vadd.f32 %v6415_v48, %v6016_v20  ;;  %v6417_v37 = vpop.f32.mrb[17].mxu0 }
 0x5e6   :  { %v6418_v53 = vpop.f32.mrb[18].mxu0 }
 0x5e7   :  { %6557 = vst [vmem:[%s13981_s3 + $0x40] sm:$0xff] %v7207_v5  ;;  %v7209_v46 = vadd.f32 %v6418_v53, %v6019_v50  ;;  %v6420_v4 = vpop.f32.mrb[19].mxu0  ;;  %v6067_v50 = vadd.f32 %v13708_v31, %v5641_v34  ;;  %v5643_v31 = vld [vmem:[%s13979_s1 + $0xb8] sm:$0xff] }
 0x5e9   :  { %6558 = vst [vmem:[%s13981_s3 + $0x48] sm:$0xff] %v7209_v46 }
 0x5ec   :  { %v6423_v25 = vpop.f32.mrb[20].mxu0 }
 0x5ed   :  { %v7211_v7 = vadd.f32 %v6423_v25, %v6024_v18  ;;  %v6425_v54 = vpop.f32.mrb[21].mxu0 }
 0x5ee   :  { %v6426_v43 = vpop.f32.mrb[22].mxu0 }
 0x5ef   :  { %6559 = vst [vmem:[%s13981_s3 + $0x50] sm:$0xff] %v7211_v7  ;;  %v7213_v9 = vadd.f32 %v6426_v43, %v6027_v62  ;;  %v6428_v58 = vpop.f32.mrb[23].mxu0 }
 0x5f1   :  { %6560 = vst [vmem:[%s13981_s3 + $0x58] sm:$0xff] %v7213_v9 }
 0x5f4   :  { %v6431_v30 = vpop.f32.mrb[24].mxu0 }
 0x5f5   :  { %v7215_v12 = vadd.f32 %v6431_v30, %v6032_v23  ;;  %v6433_v32 = vpop.f32.mrb[25].mxu0 }
 0x5f6   :  { %v6434_v41 = vpop.f32.mrb[26].mxu0 }
 0x5f7   :  { %6561 = vst [vmem:[%s13981_s3 + $0x60] sm:$0xff] %v7215_v12  ;;  %v7217_v24 = vadd.f32 %v6434_v41, %v6035_v11  ;;  %v6436_v42 = vpop.f32.mrb[27].mxu0  ;;  %v5644_v11 = vld [vmem:[%s13979_s1 + $0xc0] sm:$0xff]  ;;  %v5645_v12 = vld [vmem:[%s13979_s1 + $0xc8] sm:$0xff] }
 0x5f9   :  { %6562 = vst [vmem:[%s13981_s3 + $0x68] sm:$0xff] %v7217_v24 }
 0x5fc   :  { %v6439_v29 = vpop.f32.mrb[28].mxu0 }
 0x5fd   :  { %v7219_v19 = vadd.f32 %v6439_v29, %v6040_v0  ;;  %v6441_v3 = vpop.f32.mrb[29].mxu0 }
 0x5fe   :  { %v6442_v2 = vpop.f32.mrb[30].mxu0 }
 0x5ff   :  { %6563 = vst [vmem:[%s13981_s3 + $0x70] sm:$0xff] %v7219_v19  ;;  %v7221_v28 = vadd.f32 %v6442_v2, %v6043_v57  ;;  %v6444_v40 = vpop.f32.mrb[31].mxu0 }
 0x600   :  { %v5647_v40 = vld [vmem:[%s13979_s1 + $0xd8] sm:$0xff] }
 0x601   :  { %6564 = vst [vmem:[%s13981_s3 + $0x78] sm:$0xff] %v7221_v28  ;;  %v5646_v28 = vld [vmem:[%s13979_s1 + $0xd0] sm:$0xff] }
 0x604   :  { %v6447_v33 = vpop.f32.mrb[32].mxu0 }
 0x605   :  { %v7223_v49 = vadd.f32 %v6447_v33, %v6048_v27  ;;  %v6449_v26 = vpop.f32.mrb[33].mxu0 }
 0x606   :  { %v6450_v6 = vpop.f32.mrb[34].mxu0 }
 0x607   :  { %6565 = vst [vmem:[%s13981_s3 + $0x80] sm:$0xff] %v7223_v49  ;;  %v7225_v13 = vadd.f32 %v6450_v6, %v6051_v35  ;;  %v6452_v14 = vpop.f32.mrb[35].mxu0 }
 0x609   :  { %6566 = vst [vmem:[%s13981_s3 + $0x88] sm:$0xff] %v7225_v13 }
 0x60c   :  { %v6455_v51 = vpop.f32.mrb[36].mxu0 }
 0x60d   :  { %v7227_v45 = vadd.f32 %v6455_v51, %v6056_v1  ;;  %v6457_v36 = vpop.f32.mrb[37].mxu0  ;;  %v5648_v1 = vld [vmem:[%s13979_s1 + $0xe0] sm:$0xff]  ;;  %v5649_v51 = vld [vmem:[%s13979_s1 + $0xe8] sm:$0xff] }
 0x60e   :  { %v6458_v10 = vpop.f32.mrb[38].mxu0 }
 0x60f   :  { %6567 = vst [vmem:[%s13981_s3 + $0x90] sm:$0xff] %v7227_v45  ;;  %v7229_v55 = vadd.f32 %v6458_v10, %v6059_v52  ;;  %v6460_v22 = vpop.f32.mrb[39].mxu0 }
 0x611   :  { %6568 = vst [vmem:[%s13981_s3 + $0x98] sm:$0xff] %v7229_v55 }
 0x614   :  { %v6463_v20 = vpop.f32.mrb[40].mxu0 }
 0x615   :  { %v7231_v5 = vadd.f32 %v6463_v20, %v6064_v38  ;;  %v6465_v37 = vpop.f32.mrb[41].mxu0 }
 0x616   :  { %v6466_v46 = vpop.f32.mrb[42].mxu0 }
 0x617   :  { %6569 = vst [vmem:[%s13981_s3 + $0xa0] sm:$0xff] %v7231_v5  ;;  %v7233_v59 = vadd.f32 %v6466_v46, %v6067_v50  ;;  %v6468_v60 = vpop.f32.mrb[43].mxu0  ;;  %v5650_v50 = vld [vmem:[%s13979_s1 + $0xf0] sm:$0xff]  ;;  %v5651_v5 = vld [vmem:[%s13979_s1 + $0xf8] sm:$0xff] }
 0x618   :  { %v6271_v63 = vpop.f32.mrb[44].mxu1 }
 0x619   :  { %v6273_v48 = vpop.f32.mrb[45].mxu1  ;;  %6570 = vst [vmem:[%s13981_s3 + $0xa8] sm:$0xff] %v7233_v59  ;;  %v7234_v18 = vadd.f32 %v6271_v63, %v5642_v39 }
 0x61a   :  { %v6274_v53 = vpop.f32.mrb[46].mxu1 }
 0x61b   :  { %v6276_v4 = vpop.f32.mrb[47].mxu1  ;;  %v7236_v54 = vadd.f32 %v6274_v53, %v5643_v31 }
 0x61c   :  { %v6471_v62 = vpop.f32.mrb[44].mxu0 }
 0x61d   :  { %v7235_v43 = vadd.f32 %v7234_v18, %v6471_v62  ;;  %v6473_v9 = vpop.f32.mrb[45].mxu0 }
 0x61e   :  { %v6474_v8 = vpop.f32.mrb[46].mxu0 }
 0x61f   :  { %6571 = vst [vmem:[%s13981_s3 + $0xb0] sm:$0xff] %v7235_v43  ;;  %v7237_v23 = vadd.f32 %v7236_v54, %v6474_v8  ;;  %v6476_v30 = vpop.f32.mrb[47].mxu0  ;;  %v5652_v54 = vld [vmem:[%s13979_s1 + $0x100] sm:$0xff]  ;;  %v5653_v43 = vld [vmem:[%s13979_s1 + $0x108] sm:$0xff] }
 0x620   :  { %v6279_v25 = vpop.f32.mrb[48].mxu1 }
 0x621   :  { %v6281_v7 = vpop.f32.mrb[49].mxu1  ;;  %6572 = vst [vmem:[%s13981_s3 + $0xb8] sm:$0xff] %v7237_v23  ;;  %v7238_v32 = vadd.f32 %v6279_v25, %v5644_v11 }
 0x622   :  { %v6282_v58 = vpop.f32.mrb[50].mxu1 }
 0x623   :  { %v6284_v44 = vpop.f32.mrb[51].mxu1  ;;  %v7240_v21 = vadd.f32 %v6282_v58, %v5645_v12 }
 0x624   :  { %v6479_v24 = vpop.f32.mrb[48].mxu0 }
 0x625   :  { %v7239_v47 = vadd.f32 %v7238_v32, %v6479_v24  ;;  %v6481_v0 = vpop.f32.mrb[49].mxu0 }
 0x626   :  { %v6482_v57 = vpop.f32.mrb[50].mxu0 }
 0x627   :  { %6573 = vst [vmem:[%s13981_s3 + $0xc0] sm:$0xff] %v7239_v47  ;;  %v7241_v3 = vadd.f32 %v7240_v21, %v6482_v57  ;;  %v6484_v2 = vpop.f32.mrb[51].mxu0  ;;  %v5654_v21 = vld [vmem:[%s13979_s1 + $0x110] sm:$0xff]  ;;  %v5655_v47 = vld [vmem:[%s13979_s1 + $0x118] sm:$0xff] }
 0x628   :  { %v6287_v41 = vpop.f32.mrb[52].mxu1 }
 0x629   :  { %v6289_v42 = vpop.f32.mrb[53].mxu1  ;;  %6574 = vst [vmem:[%s13981_s3 + $0xc8] sm:$0xff] %v7241_v3  ;;  %v7242_v61 = vadd.f32 %v6287_v41, %v5646_v28 }
 0x62a   :  { %v6290_v29 = vpop.f32.mrb[54].mxu1 }
 0x62b   :  { %v6292_v19 = vpop.f32.mrb[55].mxu1  ;;  %v7244_v35 = vadd.f32 %v6290_v29, %v5647_v40 }
 0x62c   :  { %v6487_v27 = vpop.f32.mrb[52].mxu0 }
 0x62d   :  { %v7243_v49 = vadd.f32 %v7242_v61, %v6487_v27  ;;  %v6489_v26 = vpop.f32.mrb[53].mxu0 }
 0x62e   :  { %v6490_v13 = vpop.f32.mrb[54].mxu0 }
 0x62f   :  { %6575 = vst [vmem:[%s13981_s3 + $0xd0] sm:$0xff] %v7243_v49  ;;  %v7245_v15 = vadd.f32 %v7244_v35, %v6490_v13  ;;  %v6492_v56 = vpop.f32.mrb[55].mxu0  ;;  %v5656_v35 = vld [vmem:[%s13979_s1 + $0x120] sm:$0xff]  ;;  %v5657_v49 = vld [vmem:[%s13979_s1 + $0x128] sm:$0xff] }
 0x630   :  { %v6295_v16 = vpop.f32.mrb[56].mxu1 }
 0x631   :  { %v6297_v33 = vpop.f32.mrb[57].mxu1  ;;  %6576 = vst [vmem:[%s13981_s3 + $0xd8] sm:$0xff] %v7245_v15  ;;  %v7246_v52 = vadd.f32 %v6295_v16, %v5648_v1 }
 0x632   :  { %v6298_v6 = vpop.f32.mrb[58].mxu1 }
 0x633   :  { %v6300_v14 = vpop.f32.mrb[59].mxu1  ;;  %v7248_v55 = vadd.f32 %v6298_v6, %v5649_v51 }
 0x634   :  { %v6495_v36 = vpop.f32.mrb[56].mxu0 }
 0x635   :  { %v7247_v22 = vadd.f32 %v7246_v52, %v6495_v36  ;;  %v6497_v17 = vpop.f32.mrb[57].mxu0 }
 0x636   :  { %v6498_v38 = vpop.f32.mrb[58].mxu0 }
 0x637   :  { %6577 = vst [vmem:[%s13981_s3 + $0xe0] sm:$0xff] %v7247_v22  ;;  %v7249_v20 = vadd.f32 %v7248_v55, %v6498_v38  ;;  %v6500_v48 = vpop.f32.mrb[59].mxu0  ;;  %v5658_v55 = vld [vmem:[%s13979_s1 + $0x130] sm:$0xff]  ;;  %v5659_v22 = vld [vmem:[%s13979_s1 + $0x138] sm:$0xff] }
 0x638   :  { %v6303_v45 = vpop.f32.mrb[60].mxu1 }
 0x639   :  { %v6305_v10 = vpop.f32.mrb[61].mxu1  ;;  %6578 = vst [vmem:[%s13981_s3 + $0xe8] sm:$0xff] %v7249_v20  ;;  %v7250_v37 = vadd.f32 %v6303_v45, %v5650_v50 }
 0x63a   :  { %v6306_v34 = vpop.f32.mrb[62].mxu1 }
 0x63b   :  { %v6308_v63 = vpop.f32.mrb[63].mxu1  ;;  %v7252_v59 = vadd.f32 %v6306_v34, %v5651_v5 }
 0x63c   :  { %v6503_v46 = vpop.f32.mrb[60].mxu0 }
 0x63d   :  { %v7251_v60 = vadd.f32 %v7250_v37, %v6503_v46  ;;  %v6505_v39 = vpop.f32.mrb[61].mxu0 }
 0x63e   :  { %v6506_v18 = vpop.f32.mrb[62].mxu0 }
 0x63f   :  { %6579 = vst [vmem:[%s13981_s3 + $0xf0] sm:$0xff] %v7251_v60  ;;  %v7253_v62 = vadd.f32 %v7252_v59, %v6506_v18  ;;  %v6508_v7 = vpop.f32.mrb[63].mxu0  ;;  %v5660_v59 = vld [vmem:[%s13979_s1 + $0x140] sm:$0xf] }
 0x640   :  { %v6311_v53 = vpop.f32.mrb[64].mxu1 }
 0x641   :  { %v6313_v4 = vpop.f32.mrb[65].mxu1  ;;  %6580 = vst [vmem:[%s13981_s3 + $0xf8] sm:$0xff] %v7253_v62  ;;  %v7254_v9 = vadd.f32 %v6311_v53, %v5652_v54 }
 0x642   :  { %v6314_v31 = vpop.f32.mrb[66].mxu1 }
 0x643   :  { %v6316_v25 = vpop.f32.mrb[67].mxu1  ;;  %v7256_v23 = vadd.f32 %v6314_v31, %v5653_v43 }
 0x644   :  { %v6511_v8 = vpop.f32.mrb[64].mxu0 }
 0x645   :  { %v7255_v30 = vadd.f32 %v7254_v9, %v6511_v8  ;;  %v6513_v11 = vpop.f32.mrb[65].mxu0 }
 0x646   :  { %v6514_v32 = vpop.f32.mrb[66].mxu0 }
 0x647   :  { %6581 = vst [vmem:[%s13981_s3 + $0x100] sm:$0xff] %v7255_v30  ;;  %v7257_v24 = vadd.f32 %v7256_v23, %v6514_v32  ;;  %v6516_v42 = vpop.f32.mrb[67].mxu0 }
 0x648   :  { %v6319_v58 = vpop.f32.mrb[68].mxu1 }
 0x649   :  { %v6321_v44 = vpop.f32.mrb[69].mxu1  ;;  %6582 = vst [vmem:[%s13981_s3 + $0x108] sm:$0xff] %v7257_v24  ;;  %v7258_v0 = vadd.f32 %v6319_v58, %v5654_v21 }
 0x64a   :  { %v6322_v12 = vpop.f32.mrb[70].mxu1 }
 0x64b   :  { %v6324_v41 = vpop.f32.mrb[71].mxu1  ;;  %v7260_v3 = vadd.f32 %v6322_v12, %v5655_v47 }
 0x64c   :  { %v6519_v57 = vpop.f32.mrb[68].mxu0 }
 0x64d   :  { %v7259_v2 = vadd.f32 %v7258_v0, %v6519_v57  ;;  %v6521_v28 = vpop.f32.mrb[69].mxu0 }
 0x64e   :  { %v6522_v61 = vpop.f32.mrb[70].mxu0 }
 0x64f   :  { %6583 = vst [vmem:[%s13981_s3 + $0x110] sm:$0xff] %v7259_v2  ;;  %v7261_v27 = vadd.f32 %v7260_v3, %v6522_v61  ;;  %v6524_v33 = vpop.f32.mrb[71].mxu0 }
 0x650   :  { %v6327_v29 = vpop.f32.mrb[72].mxu1 }
 0x651   :  { %v6329_v19 = vpop.f32.mrb[73].mxu1  ;;  %6584 = vst [vmem:[%s13981_s3 + $0x118] sm:$0xff] %v7261_v27  ;;  %v7262_v26 = vadd.f32 %v6327_v29, %v5656_v35 }
 0x652   :  { %v6330_v40 = vpop.f32.mrb[74].mxu1 }
 0x653   :  { %v6332_v16 = vpop.f32.mrb[75].mxu1  ;;  %v7264_v15 = vadd.f32 %v6330_v40, %v5657_v49 }
 0x654   :  { %v6527_v13 = vpop.f32.mrb[72].mxu0 }
 0x655   :  { %v7263_v56 = vadd.f32 %v7262_v26, %v6527_v13  ;;  %v6529_v1 = vpop.f32.mrb[73].mxu0 }
 0x656   :  { %v6530_v52 = vpop.f32.mrb[74].mxu0 }
 0x657   :  { %6585 = vst [vmem:[%s13981_s3 + $0x120] sm:$0xff] %v7263_v56  ;;  %v7265_v36 = vadd.f32 %v7264_v15, %v6530_v52  ;;  %v6532_v10 = vpop.f32.mrb[75].mxu0 }
 0x658   :  { %v6335_v6 = vpop.f32.mrb[76].mxu1 }
 0x659   :  { %v6337_v14 = vpop.f32.mrb[77].mxu1  ;;  %6586 = vst [vmem:[%s13981_s3 + $0x128] sm:$0xff] %v7265_v36  ;;  %v7266_v17 = vadd.f32 %v6335_v6, %v5658_v55 }
 0x65a   :  { %v6338_v51 = vpop.f32.mrb[78].mxu1 }
 0x65b   :  { %v6340_v45 = vpop.f32.mrb[79].mxu1  ;;  %v7268_v20 = vadd.f32 %v6338_v51, %v5659_v22 }
 0x65c   :  { %v6535_v38 = vpop.f32.mrb[76].mxu0 }
 0x65d   :  { %v7267_v48 = vadd.f32 %v7266_v17, %v6535_v38  ;;  %v6537_v50 = vpop.f32.mrb[77].mxu0 }
 0x65e   :  { %v6538_v37 = vpop.f32.mrb[78].mxu0 }
 0x65f   :  { %6587 = vst [vmem:[%s13981_s3 + $0x130] sm:$0xff] %v7267_v48  ;;  %v7269_v46 = vadd.f32 %v7268_v20, %v6538_v37  ;;  %v6540_v4 = vpop.f32.mrb[79].mxu0 }
 0x660   :  { %v6343_v34 = vpop.f32.mrb[80].mxu1 }
 0x661   :  { %v6345_v63 = vpop.f32.mrb[81].mxu1  ;;  %6588 = vst [vmem:[%s13981_s3 + $0x138] sm:$0xff] %v7269_v46  ;;  %v7270_v60 = vadd.f32 %v6343_v34, %v5660_v59 }
 0x662   :  { %v6346_v5 = vpop.f32.mrb[82].mxu1 }
 0x663   :  { %v6347_v53 = vpop.f32.mrb[83].mxu1 }
 0x664   :  { %v6543_v39 = vpop.f32.mrb[80].mxu0 }
 0x665   :  { %v7271_v31 = vadd.f32 %v7270_v60, %v6543_v39  ;;  %v6545_v18 = vpop.f32.mrb[81].mxu0 }
 0x666   :  { %v6546_v25 = vpop.f32.mrb[82].mxu0 }
 0x667   :  { %6589 = vst [vmem:[%s13981_s3 + $0x140] sm:$0xf] %v7271_v31  ;;  %v6547_v62 = vpop.f32.mrb[83].mxu0 }
 0x668   :  { %6594 = vsyncpa [#allocation4], 1 }

</bundles_post_ra>
